<compile_context>
chip_gen: v5e
topology: v5e:2x2
jax: 0.10.0
libtpu: 0.0.40
codegen_flags: <defaults>
</compile_context>

<pallas_src>
import functools

import jax
import jax.numpy as jnp
from jax import lax
from jax.experimental import pallas as pl
from jax.experimental.pallas import tpu as pltpu

BN_EPS = 1e-5
LANE = 128


# ----------------------------- Pallas kernels ------------------------------ #

def _mm_bn_relu_kernel(xt_ref, wt_ref, g_ref, b_ref, o_ref, acc_ref, *,
                       cout, groups, count):
    """Y = W @ X^T (one fat MXU push) fused with training-mode BatchNorm
    (per-channel stats over `groups` row-groups x all lanes) + ReLU.

    xt_ref : (K, Mp)           bf16   Mp = pixels padded to a lane multiple
    wt_ref : (groups*Cout, K)  bf16   rows ordered (group, channel)
    g_ref/b_ref : (Cout, 1)    f32
    o_ref  : (groups*Cout, Mp) bf16
    acc_ref: (groups*Cout, Mp) f32 VMEM scratch (planned staging of the f32
             matmul result; re-read for stats and normalization).

    `count` is the true number of BN samples per channel; zero-padded lanes
    contribute 0 to both sums so the statistics stay exact.
    """
    acc_ref[...] = jnp.dot(wt_ref[...], xt_ref[...],
                           preferred_element_type=jnp.float32)
    s = jnp.zeros((cout, 1), jnp.float32)
    ss = jnp.zeros((cout, 1), jnp.float32)
    for p in range(groups):
        blk = acc_ref[p * cout:(p + 1) * cout, :]
        s = s + jnp.sum(blk, axis=-1, keepdims=True)          # lane reduce (XLU)
        ss = ss + jnp.sum(blk * blk, axis=-1, keepdims=True)
    inv_n = 1.0 / count
    mean = s * inv_n
    var = ss * inv_n - mean * mean                            # biased (PyTorch BN)
    scale = g_ref[...] * lax.rsqrt(var + BN_EPS)              # (Cout, 1)
    shift = b_ref[...] - mean * scale
    for p in range(groups):
        blk = acc_ref[p * cout:(p + 1) * cout, :]
        o_ref[p * cout:(p + 1) * cout, :] = jnp.maximum(
            blk * scale + shift, 0.0).astype(o_ref.dtype)


def _mm_tanh_kernel(xt_ref, wt_ref, o_ref):
    """One M-tile of the final layer: Y = W @ X^T followed by tanh (no BN)."""
    y = jnp.dot(wt_ref[...], xt_ref[...], preferred_element_type=jnp.float32)
    o_ref[...] = jnp.tanh(y)


def _pallas_mm_bn_relu(xt, wt, gamma, beta, *, groups, count):
    xt = xt.astype(jnp.bfloat16)
    wt = wt.astype(jnp.bfloat16)
    rows = wt.shape[0]
    cout = rows // groups
    mp = xt.shape[-1]
    kern = functools.partial(_mm_bn_relu_kernel, cout=cout, groups=groups,
                             count=float(count))
    return pl.pallas_call(
        kern,
        out_shape=jax.ShapeDtypeStruct((rows, mp), jnp.bfloat16),
        in_specs=[pl.BlockSpec(memory_space=pltpu.MemorySpace.VMEM)] * 4,
        out_specs=pl.BlockSpec(memory_space=pltpu.MemorySpace.VMEM),
        scratch_shapes=[pltpu.VMEM((rows, mp), jnp.float32)],
    )(xt, wt,
      gamma.astype(jnp.float32), beta.astype(jnp.float32))


def _pallas_mm_tanh(xt, wt):
    xt = xt.astype(jnp.bfloat16)
    wt = wt.astype(jnp.bfloat16)
    k, mp = xt.shape
    rows = wt.shape[0]
    # Few, large lane tiles (>=1024) -> minimal per-step overhead; the single
    # grid axis is "parallel" so a 2-TC chip (v7x) can split the M tiles.
    tm = 1024 if (mp > 1024 and mp % 1024 == 0) else mp
    return pl.pallas_call(
        _mm_tanh_kernel,
        out_shape=jax.ShapeDtypeStruct((rows, mp), jnp.float32),
        grid=(mp // tm,),
        in_specs=[pl.BlockSpec((k, tm), lambda m: (0, m)),
                  pl.BlockSpec((rows, k), lambda m: (0, 0))],
        out_specs=pl.BlockSpec((rows, tm), lambda m: (0, m)),
        compiler_params=pltpu.CompilerParams(
            dimension_semantics=("parallel",)),
    )(xt, wt)


# ------------------------------- JAX glue ---------------------------------- #

def _pad_lanes(x):
    """Zero-pad the last (lane) axis up to a multiple of 128."""
    m = x.shape[-1]
    mp = ((m + LANE - 1) // LANE) * LANE
    if mp != m:
        x = jnp.pad(x, [(0, 0)] * (x.ndim - 1) + [(0, mp - m)])
    return x


def _union_im2col(a):
    """a: (Cin, N, H, W) channel-major -> X^T (9*Cin, N*H*W).

    The unioned 3x3 window (pad 1, stride 1) shared by all four output phases
    of a k=4 / s=2 / p=1 ConvTranspose2d; taps a phase does not use carry zero
    weights in the matching union weight matrix."""
    c, n, h, w = a.shape
    ap = jnp.pad(a, ((0, 0), (0, 0), (1, 1), (1, 1)))
    taps = [ap[:, :, dr:dr + h, dc:dc + w]
            for dr in range(3) for dc in range(3)]
    return jnp.stack(taps, axis=0).reshape(9 * c, n * h * w)


def _interleave(y, cout, n, h, w):
    """y: (4*Cout, N*H*W), rows ordered (phase_a, phase_b, cout)
       -> (Cout, N, 2H, 2W) channel-major raster."""
    y = y.reshape(2, 2, cout, n, h, w)        # (a, b, co, n, i, j)
    y = y.transpose(2, 3, 4, 0, 5, 1)         # (co, n, i, a, j, b)
    return y.reshape(cout, n, 2 * h, 2 * w)


# ------------------------ one-time weight preparation ----------------------- #

def _union_weight(w, cout_pad=None):
    """PyTorch ConvTranspose2d weight (Cin, Cout, 4, 4) (stride 2, pad 1) ->
    unioned-window matrix (4*Cout, 9*Cin): rows (phase_a, phase_b, Cout),
    columns (tap_dr, tap_dc, Cin)."""
    w = w.astype(jnp.float32)
    cin, cout = w.shape[0], w.shape[1]
    if cout_pad is not None and cout_pad > cout:
        w = jnp.pad(w, ((0, 0), (0, cout_pad - cout), (0, 0), (0, 0)))
        cout = cout_pad
    phase_rows = []
    for a in (0, 1):
        for b in (0, 1):
            taps = []
            for dr in range(3):
                for dc in range(3):
                    if (dr - a) in (0, 1) and (dc - b) in (0, 1):
                        blk = w[:, :, 3 - 2 * dr + a, 3 - 2 * dc + b].T
                    else:
                        blk = jnp.zeros((cout, cin), jnp.float32)
                    taps.append(blk)
            phase_rows.append(jnp.concatenate(taps, axis=1))   # (Cout, 9*Cin)
    return jnp.concatenate(phase_rows, axis=0).astype(jnp.bfloat16)


def prepare_params(params):
    """One-time (outside jit) weight preprocessing: phase/union decomposition,
    layer-1 stacking, bf16 casts, BN param reshapes."""
    prep = {}
    w1 = params["w1"].astype(jnp.float32)                 # (Cin, Cout, 4, 4)
    cout1, cin1 = w1.shape[1], w1.shape[0]
    # Layer 1 (k=4, s=1, p=0 on a 1x1 input): out[(r,s,co), n] = W[ci,co,r,s]x[n,ci]
    prep["w1"] = (w1.transpose(2, 3, 1, 0)
                    .reshape(16 * cout1, cin1).astype(jnp.bfloat16))
    prep["w2"] = _union_weight(params["w2"])
    prep["w3"] = _union_weight(params["w3"])
    prep["w4"] = _union_weight(params["w4"])
    nc = params["w5"].shape[1]
    nc_pad = nc + (nc % 2)                                # sublane-friendly rows
    prep["w5"] = _union_weight(params["w5"], cout_pad=nc_pad)
    for i in (1, 2, 3, 4):
        prep[f"g{i}"] = params[f"g{i}"].reshape(-1, 1).astype(jnp.float32)
        prep[f"b{i}"] = params[f"b{i}"].reshape(-1, 1).astype(jnp.float32)
    return prep, nc


# --------------------------------- forward ---------------------------------- #

@functools.partial(jax.jit, static_argnames=("nc",))
def generator_forward(x, prep, *, nc):
    """x: (N, latentVect, 1, 1) NCHW -> (N, nc, 64, 64) NCHW."""
    n, cin = x.shape[0], x.shape[1]

    # ---- layer 1: ConvTranspose(k4,s1,p0) on a 1x1 input + BN + ReLU ----
    cout1 = prep["w1"].shape[0] // 16
    x0 = _pad_lanes(x.reshape(n, cin).T.astype(jnp.bfloat16))      # (Cin, Np)
    y = _pallas_mm_bn_relu(x0, prep["w1"], prep["g1"], prep["b1"],
                           groups=16, count=16 * n)
    a = y[:, :n].reshape(4, 4, cout1, n).transpose(2, 3, 0, 1)     # (C, N, 4, 4)

    # ---- layers 2-4: ConvTranspose(k4,s2,p1) + BN + ReLU ----
    for i in (2, 3, 4):
        _, _, h, w = a.shape
        m = n * h * w
        cout = prep[f"w{i}"].shape[0] // 4
        xt = _pad_lanes(_union_im2col(a))
        y = _pallas_mm_bn_relu(xt, prep[f"w{i}"], prep[f"g{i}"], prep[f"b{i}"],
                               groups=4, count=4 * m)
        a = _interleave(y[:, :m], cout, n, h, w)                   # (C, N, 2H, 2W)

    # ---- layer 5: ConvTranspose(k4,s2,p1) + tanh ----
    _, _, h, w = a.shape
    m = n * h * w
    cout5 = prep["w5"].shape[0] // 4
    xt = _pad_lanes(_union_im2col(a))
    y = _pallas_mm_tanh(xt, prep["w5"])                            # f32
    out = _interleave(y[:, :m], cout5, n, h, w)[:nc]               # (nc, N, 64, 64)
    return out.transpose(1, 0, 2, 3)


# --------------------------- pure-JAX reference ----------------------------- #

def _ref_conv_transpose(x, W, stride, pad):
    Cin, Cout, k, _ = W.shape
    Wc = jnp.flip(W, (2, 3)).transpose(1, 0, 2, 3)        # (Cout, Cin, k, k)
    return lax.conv_general_dilated(
        x, Wc, window_strides=(1, 1),
        padding=[(k - 1 - pad, k - 1 - pad)] * 2,
        lhs_dilation=(stride, stride),
        dimension_numbers=("NCHW", "OIHW", "NCHW"),
        precision=lax.Precision.HIGHEST)


def _ref_bn_relu(x, gamma, beta):
    mean = x.mean(axis=(0, 2, 3), keepdims=True)
    var = jnp.square(x - mean).mean(axis=(0, 2, 3), keepdims=True)
    xn = (x - mean) / jnp.sqrt(var + BN_EPS)
    y = xn * gamma[None, :, None, None] + beta[None, :, None, None]
    return jnp.maximum(y, 0.0)


def _ref_forward(x, p):
    h = _ref_bn_relu(_ref_conv_transpose(x, p["w1"], 1, 0), p["g1"], p["b1"])
    h = _ref_bn_relu(_ref_conv_transpose(h, p["w2"], 2, 1), p["g2"], p["b2"])
    h = _ref_bn_relu(_ref_conv_transpose(h, p["w3"], 2, 1), p["g3"], p["b3"])
    h = _ref_bn_relu(_ref_conv_transpose(h, p["w4"], 2, 1), p["g4"], p["b4"])
    return jnp.tanh(_ref_conv_transpose(h, p["w5"], 2, 1))


# --------------------------------- main ------------------------------------ #

def init_params(key, latent, fg, nc):
    ks = jax.random.split(key, 5)
    shapes = [(latent, fg * 8, 4, 4), (fg * 8, fg * 4, 4, 4),
              (fg * 4, fg * 2, 4, 4), (fg * 2, fg, 4, 4), (fg, nc, 4, 4)]
    p = {}
    for i, (k, s) in enumerate(zip(ks, shapes), start=1):
        p[f"w{i}"] = 0.02 * jax.random.normal(k, s, dtype=jnp.float32)
    # BatchNorm2d defaults: gamma = 1, beta = 0
    for i, c in enumerate([fg * 8, fg * 4, fg * 2, fg], start=1):
        p[f"g{i}"] = jnp.ones((c,), jnp.float32)
        p[f"b{i}"] = jnp.zeros((c,), jnp.float32)
    return p


if __name__ == "__main__":
    latentVect, FeaGen, nc, batch = 16, 8, 3, 2

    key = jax.random.PRNGKey(0)
    k_x, k_p = jax.random.split(key)
    x = jax.random.normal(k_x, (batch, latentVect, 1, 1), dtype=jnp.float32)
    params = init_params(k_p, latentVect, FeaGen, nc)
    prep, nc_out = prepare_params(params)          # one-time, outside jit

    out = jax.block_until_ready(generator_forward(x, prep, nc=nc_out))
    assert out.shape == (batch, nc, 64, 64), out.shape

    ref = jax.block_until_ready(jax.jit(_ref_forward)(x, params))
    max_err = float(jnp.max(jnp.abs(out - ref)))
    # bf16 MXU operands and bf16 inter-layer activations compound across the
    # five layers -> loose tolerance (observed error is typically well below).
    assert jnp.allclose(out, ref, atol=3e-2, rtol=3e-2), max_err

    print("KERNEL_OK")
</pallas_src>

<mosaic_0001>
module attributes {stable_mosaic.version = 11 : i64} {
  func.func @_mm_bn_relu_kernel(%arg0: memref<16x128xbf16, #tpu.memory_space<vmem>>, %arg1: memref<1024x16xbf16, #tpu.memory_space<vmem>>, %arg2: memref<64x1xf32, #tpu.memory_space<vmem>>, %arg3: memref<64x1xf32, #tpu.memory_space<vmem>>, %arg4: memref<1024x128xbf16, #tpu.memory_space<vmem>>, %arg5: memref<1024x128xf32, #tpu.memory_space<vmem>>) attributes {dimension_semantics = [], scalar_prefetch = 0 : i64, scratch_operands = 1 : i64, tpu.core_type = #tpu.core_type<tc>} {
    %c0 = arith.constant 0 : index
    %c0_0 = arith.constant 0 : index
    %0 = vector.load %arg1[%c0, %c0_0] : memref<1024x16xbf16, #tpu.memory_space<vmem>>, vector<1024x16xbf16>
    %c0_1 = arith.constant 0 : index
    %c0_2 = arith.constant 0 : index
    %1 = vector.load %arg0[%c0_1, %c0_2] : memref<16x128xbf16, #tpu.memory_space<vmem>>, vector<16x128xbf16>
    %cst = arith.constant dense<0.000000e+00> : vector<1024x128xf32>
    %2 = tpu.matmul %0, %1, %cst {dimension_numbers = #tpu.dot_dimension_numbers<[1], [0], [0], [1], [0, 0, 1, 1], [], []>} : vector<1024x16xbf16>, vector<16x128xbf16>, vector<1024x128xf32> -> vector<1024x128xf32>
    %c0_3 = arith.constant 0 : index
    %c0_4 = arith.constant 0 : index
    %3 = vector.load %arg5[%c0_3, %c0_4] : memref<1024x128xf32, #tpu.memory_space<vmem>>, vector<1024x128xf32>
    tpu.vector_store %arg5[%c0_3, %c0_4], %2 {strides = array<i32>} : memref<1024x128xf32, #tpu.memory_space<vmem>>, vector<1024x128xf32>,
    %cst_5 = arith.constant 0.000000e+00 : f32
    %4 = vector.broadcast %cst_5 : f32 to vector<64x1xf32>
    %cst_6 = arith.constant 0.000000e+00 : f32
    %5 = vector.broadcast %cst_6 : f32 to vector<64x1xf32>
    %c0_7 = arith.constant 0 : index
    %c0_8 = arith.constant 0 : index
    %6 = vector.load %arg5[%c0_7, %c0_8] : memref<1024x128xf32, #tpu.memory_space<vmem>>, vector<64x128xf32>
    %cst_9 = arith.constant dense<0.000000e+00> : vector<64xf32>
    %7 = vector.multi_reduction <add>, %6, %cst_9 [1] : vector<64x128xf32> to vector<64xf32>
    %8 = vector.shape_cast %7 : vector<64xf32> to vector<64x1xf32>
    %9 = arith.addf %4, %8 : vector<64x1xf32>
    %10 = arith.mulf %6, %6 : vector<64x128xf32>
    %cst_10 = arith.constant dense<0.000000e+00> : vector<64xf32>
    %11 = vector.multi_reduction <add>, %10, %cst_10 [1] : vector<64x128xf32> to vector<64xf32>
    %12 = vector.shape_cast %11 : vector<64xf32> to vector<64x1xf32>
    %13 = arith.addf %5, %12 : vector<64x1xf32>
    %c64 = arith.constant 64 : index
    %c0_11 = arith.constant 0 : index
    %14 = vector.load %arg5[%c64, %c0_11] : memref<1024x128xf32, #tpu.memory_space<vmem>>, vector<64x128xf32>
    %cst_12 = arith.constant dense<0.000000e+00> : vector<64xf32>
    %15 = vector.multi_reduction <add>, %14, %cst_12 [1] : vector<64x128xf32> to vector<64xf32>
    %16 = vector.shape_cast %15 : vector<64xf32> to vector<64x1xf32>
    %17 = arith.addf %9, %16 : vector<64x1xf32>
    %18 = arith.mulf %14, %14 : vector<64x128xf32>
    %cst_13 = arith.constant dense<0.000000e+00> : vector<64xf32>
    %19 = vector.multi_reduction <add>, %18, %cst_13 [1] : vector<64x128xf32> to vector<64xf32>
    %20 = vector.shape_cast %19 : vector<64xf32> to vector<64x1xf32>
    %21 = arith.addf %13, %20 : vector<64x1xf32>
    %c128 = arith.constant 128 : index
    %c0_14 = arith.constant 0 : index
    %22 = vector.load %arg5[%c128, %c0_14] : memref<1024x128xf32, #tpu.memory_space<vmem>>, vector<64x128xf32>
    %cst_15 = arith.constant dense<0.000000e+00> : vector<64xf32>
    %23 = vector.multi_reduction <add>, %22, %cst_15 [1] : vector<64x128xf32> to vector<64xf32>
    %24 = vector.shape_cast %23 : vector<64xf32> to vector<64x1xf32>
    %25 = arith.addf %17, %24 : vector<64x1xf32>
    %26 = arith.mulf %22, %22 : vector<64x128xf32>
    %cst_16 = arith.constant dense<0.000000e+00> : vector<64xf32>
    %27 = vector.multi_reduction <add>, %26, %cst_16 [1] : vector<64x128xf32> to vector<64xf32>
    %28 = vector.shape_cast %27 : vector<64xf32> to vector<64x1xf32>
    %29 = arith.addf %21, %28 : vector<64x1xf32>
    %c192 = arith.constant 192 : index
    %c0_17 = arith.constant 0 : index
    %30 = vector.load %arg5[%c192, %c0_17] : memref<1024x128xf32, #tpu.memory_space<vmem>>, vector<64x128xf32>
    %cst_18 = arith.constant dense<0.000000e+00> : vector<64xf32>
    %31 = vector.multi_reduction <add>, %30, %cst_18 [1] : vector<64x128xf32> to vector<64xf32>
    %32 = vector.shape_cast %31 : vector<64xf32> to vector<64x1xf32>
    %33 = arith.addf %25, %32 : vector<64x1xf32>
    %34 = arith.mulf %30, %30 : vector<64x128xf32>
    %cst_19 = arith.constant dense<0.000000e+00> : vector<64xf32>
    %35 = vector.multi_reduction <add>, %34, %cst_19 [1] : vector<64x128xf32> to vector<64xf32>
    %36 = vector.shape_cast %35 : vector<64xf32> to vector<64x1xf32>
    %37 = arith.addf %29, %36 : vector<64x1xf32>
    %c256 = arith.constant 256 : index
    %c0_20 = arith.constant 0 : index
    %38 = vector.load %arg5[%c256, %c0_20] : memref<1024x128xf32, #tpu.memory_space<vmem>>, vector<64x128xf32>
    %cst_21 = arith.constant dense<0.000000e+00> : vector<64xf32>
    %39 = vector.multi_reduction <add>, %38, %cst_21 [1] : vector<64x128xf32> to vector<64xf32>
    %40 = vector.shape_cast %39 : vector<64xf32> to vector<64x1xf32>
    %41 = arith.addf %33, %40 : vector<64x1xf32>
    %42 = arith.mulf %38, %38 : vector<64x128xf32>
    %cst_22 = arith.constant dense<0.000000e+00> : vector<64xf32>
    %43 = vector.multi_reduction <add>, %42, %cst_22 [1] : vector<64x128xf32> to vector<64xf32>
    %44 = vector.shape_cast %43 : vector<64xf32> to vector<64x1xf32>
    %45 = arith.addf %37, %44 : vector<64x1xf32>
    %c320 = arith.constant 320 : index
    %c0_23 = arith.constant 0 : index
    %46 = vector.load %arg5[%c320, %c0_23] : memref<1024x128xf32, #tpu.memory_space<vmem>>, vector<64x128xf32>
    %cst_24 = arith.constant dense<0.000000e+00> : vector<64xf32>
    %47 = vector.multi_reduction <add>, %46, %cst_24 [1] : vector<64x128xf32> to vector<64xf32>
    %48 = vector.shape_cast %47 : vector<64xf32> to vector<64x1xf32>
    %49 = arith.addf %41, %48 : vector<64x1xf32>
    %50 = arith.mulf %46, %46 : vector<64x128xf32>
    %cst_25 = arith.constant dense<0.000000e+00> : vector<64xf32>
    %51 = vector.multi_reduction <add>, %50, %cst_25 [1] : vector<64x128xf32> to vector<64xf32>
    %52 = vector.shape_cast %51 : vector<64xf32> to vector<64x1xf32>
    %53 = arith.addf %45, %52 : vector<64x1xf32>
    %c384 = arith.constant 384 : index
    %c0_26 = arith.constant 0 : index
    %54 = vector.load %arg5[%c384, %c0_26] : memref<1024x128xf32, #tpu.memory_space<vmem>>, vector<64x128xf32>
    %cst_27 = arith.constant dense<0.000000e+00> : vector<64xf32>
    %55 = vector.multi_reduction <add>, %54, %cst_27 [1] : vector<64x128xf32> to vector<64xf32>
    %56 = vector.shape_cast %55 : vector<64xf32> to vector<64x1xf32>
    %57 = arith.addf %49, %56 : vector<64x1xf32>
    %58 = arith.mulf %54, %54 : vector<64x128xf32>
    %cst_28 = arith.constant dense<0.000000e+00> : vector<64xf32>
    %59 = vector.multi_reduction <add>, %58, %cst_28 [1] : vector<64x128xf32> to vector<64xf32>
    %60 = vector.shape_cast %59 : vector<64xf32> to vector<64x1xf32>
    %61 = arith.addf %53, %60 : vector<64x1xf32>
    %c448 = arith.constant 448 : index
    %c0_29 = arith.constant 0 : index
    %62 = vector.load %arg5[%c448, %c0_29] : memref<1024x128xf32, #tpu.memory_space<vmem>>, vector<64x128xf32>
    %cst_30 = arith.constant dense<0.000000e+00> : vector<64xf32>
    %63 = vector.multi_reduction <add>, %62, %cst_30 [1] : vector<64x128xf32> to vector<64xf32>
    %64 = vector.shape_cast %63 : vector<64xf32> to vector<64x1xf32>
    %65 = arith.addf %57, %64 : vector<64x1xf32>
    %66 = arith.mulf %62, %62 : vector<64x128xf32>
    %cst_31 = arith.constant dense<0.000000e+00> : vector<64xf32>
    %67 = vector.multi_reduction <add>, %66, %cst_31 [1] : vector<64x128xf32> to vector<64xf32>
    %68 = vector.shape_cast %67 : vector<64xf32> to vector<64x1xf32>
    %69 = arith.addf %61, %68 : vector<64x1xf32>
    %c512 = arith.constant 512 : index
    %c0_32 = arith.constant 0 : index
    %70 = vector.load %arg5[%c512, %c0_32] : memref<1024x128xf32, #tpu.memory_space<vmem>>, vector<64x128xf32>
    %cst_33 = arith.constant dense<0.000000e+00> : vector<64xf32>
    %71 = vector.multi_reduction <add>, %70, %cst_33 [1] : vector<64x128xf32> to vector<64xf32>
    %72 = vector.shape_cast %71 : vector<64xf32> to vector<64x1xf32>
    %73 = arith.addf %65, %72 : vector<64x1xf32>
    %74 = arith.mulf %70, %70 : vector<64x128xf32>
    %cst_34 = arith.constant dense<0.000000e+00> : vector<64xf32>
    %75 = vector.multi_reduction <add>, %74, %cst_34 [1] : vector<64x128xf32> to vector<64xf32>
    %76 = vector.shape_cast %75 : vector<64xf32> to vector<64x1xf32>
    %77 = arith.addf %69, %76 : vector<64x1xf32>
    %c576 = arith.constant 576 : index
    %c0_35 = arith.constant 0 : index
    %78 = vector.load %arg5[%c576, %c0_35] : memref<1024x128xf32, #tpu.memory_space<vmem>>, vector<64x128xf32>
    %cst_36 = arith.constant dense<0.000000e+00> : vector<64xf32>
    %79 = vector.multi_reduction <add>, %78, %cst_36 [1] : vector<64x128xf32> to vector<64xf32>
    %80 = vector.shape_cast %79 : vector<64xf32> to vector<64x1xf32>
    %81 = arith.addf %73, %80 : vector<64x1xf32>
    %82 = arith.mulf %78, %78 : vector<64x128xf32>
    %cst_37 = arith.constant dense<0.000000e+00> : vector<64xf32>
    %83 = vector.multi_reduction <add>, %82, %cst_37 [1] : vector<64x128xf32> to vector<64xf32>
    %84 = vector.shape_cast %83 : vector<64xf32> to vector<64x1xf32>
    %85 = arith.addf %77, %84 : vector<64x1xf32>
    %c640 = arith.constant 640 : index
    %c0_38 = arith.constant 0 : index
    %86 = vector.load %arg5[%c640, %c0_38] : memref<1024x128xf32, #tpu.memory_space<vmem>>, vector<64x128xf32>
    %cst_39 = arith.constant dense<0.000000e+00> : vector<64xf32>
    %87 = vector.multi_reduction <add>, %86, %cst_39 [1] : vector<64x128xf32> to vector<64xf32>
    %88 = vector.shape_cast %87 : vector<64xf32> to vector<64x1xf32>
    %89 = arith.addf %81, %88 : vector<64x1xf32>
    %90 = arith.mulf %86, %86 : vector<64x128xf32>
    %cst_40 = arith.constant dense<0.000000e+00> : vector<64xf32>
    %91 = vector.multi_reduction <add>, %90, %cst_40 [1] : vector<64x128xf32> to vector<64xf32>
    %92 = vector.shape_cast %91 : vector<64xf32> to vector<64x1xf32>
    %93 = arith.addf %85, %92 : vector<64x1xf32>
    %c704 = arith.constant 704 : index
    %c0_41 = arith.constant 0 : index
    %94 = vector.load %arg5[%c704, %c0_41] : memref<1024x128xf32, #tpu.memory_space<vmem>>, vector<64x128xf32>
    %cst_42 = arith.constant dense<0.000000e+00> : vector<64xf32>
    %95 = vector.multi_reduction <add>, %94, %cst_42 [1] : vector<64x128xf32> to vector<64xf32>
    %96 = vector.shape_cast %95 : vector<64xf32> to vector<64x1xf32>
    %97 = arith.addf %89, %96 : vector<64x1xf32>
    %98 = arith.mulf %94, %94 : vector<64x128xf32>
    %cst_43 = arith.constant dense<0.000000e+00> : vector<64xf32>
    %99 = vector.multi_reduction <add>, %98, %cst_43 [1] : vector<64x128xf32> to vector<64xf32>
    %100 = vector.shape_cast %99 : vector<64xf32> to vector<64x1xf32>
    %101 = arith.addf %93, %100 : vector<64x1xf32>
    %c768 = arith.constant 768 : index
    %c0_44 = arith.constant 0 : index
    %102 = vector.load %arg5[%c768, %c0_44] : memref<1024x128xf32, #tpu.memory_space<vmem>>, vector<64x128xf32>
    %cst_45 = arith.constant dense<0.000000e+00> : vector<64xf32>
    %103 = vector.multi_reduction <add>, %102, %cst_45 [1] : vector<64x128xf32> to vector<64xf32>
    %104 = vector.shape_cast %103 : vector<64xf32> to vector<64x1xf32>
    %105 = arith.addf %97, %104 : vector<64x1xf32>
    %106 = arith.mulf %102, %102 : vector<64x128xf32>
    %cst_46 = arith.constant dense<0.000000e+00> : vector<64xf32>
    %107 = vector.multi_reduction <add>, %106, %cst_46 [1] : vector<64x128xf32> to vector<64xf32>
    %108 = vector.shape_cast %107 : vector<64xf32> to vector<64x1xf32>
    %109 = arith.addf %101, %108 : vector<64x1xf32>
    %c832 = arith.constant 832 : index
    %c0_47 = arith.constant 0 : index
    %110 = vector.load %arg5[%c832, %c0_47] : memref<1024x128xf32, #tpu.memory_space<vmem>>, vector<64x128xf32>
    %cst_48 = arith.constant dense<0.000000e+00> : vector<64xf32>
    %111 = vector.multi_reduction <add>, %110, %cst_48 [1] : vector<64x128xf32> to vector<64xf32>
    %112 = vector.shape_cast %111 : vector<64xf32> to vector<64x1xf32>
    %113 = arith.addf %105, %112 : vector<64x1xf32>
    %114 = arith.mulf %110, %110 : vector<64x128xf32>
    %cst_49 = arith.constant dense<0.000000e+00> : vector<64xf32>
    %115 = vector.multi_reduction <add>, %114, %cst_49 [1] : vector<64x128xf32> to vector<64xf32>
    %116 = vector.shape_cast %115 : vector<64xf32> to vector<64x1xf32>
    %117 = arith.addf %109, %116 : vector<64x1xf32>
    %c896 = arith.constant 896 : index
    %c0_50 = arith.constant 0 : index
    %118 = vector.load %arg5[%c896, %c0_50] : memref<1024x128xf32, #tpu.memory_space<vmem>>, vector<64x128xf32>
    %cst_51 = arith.constant dense<0.000000e+00> : vector<64xf32>
    %119 = vector.multi_reduction <add>, %118, %cst_51 [1] : vector<64x128xf32> to vector<64xf32>
    %120 = vector.shape_cast %119 : vector<64xf32> to vector<64x1xf32>
    %121 = arith.addf %113, %120 : vector<64x1xf32>
    %122 = arith.mulf %118, %118 : vector<64x128xf32>
    %cst_52 = arith.constant dense<0.000000e+00> : vector<64xf32>
    %123 = vector.multi_reduction <add>, %122, %cst_52 [1] : vector<64x128xf32> to vector<64xf32>
    %124 = vector.shape_cast %123 : vector<64xf32> to vector<64x1xf32>
    %125 = arith.addf %117, %124 : vector<64x1xf32>
    %c960 = arith.constant 960 : index
    %c0_53 = arith.constant 0 : index
    %126 = vector.load %arg5[%c960, %c0_53] : memref<1024x128xf32, #tpu.memory_space<vmem>>, vector<64x128xf32>
    %cst_54 = arith.constant dense<0.000000e+00> : vector<64xf32>
    %127 = vector.multi_reduction <add>, %126, %cst_54 [1] : vector<64x128xf32> to vector<64xf32>
    %128 = vector.shape_cast %127 : vector<64xf32> to vector<64x1xf32>
    %129 = arith.addf %121, %128 : vector<64x1xf32>
    %130 = arith.mulf %126, %126 : vector<64x128xf32>
    %cst_55 = arith.constant dense<0.000000e+00> : vector<64xf32>
    %131 = vector.multi_reduction <add>, %130, %cst_55 [1] : vector<64x128xf32> to vector<64xf32>
    %132 = vector.shape_cast %131 : vector<64xf32> to vector<64x1xf32>
    %133 = arith.addf %125, %132 : vector<64x1xf32>
    %cst_56 = arith.constant 3.125000e-02 : f32
    %134 = vector.broadcast %cst_56 : f32 to vector<64x1xf32>
    %135 = arith.mulf %129, %134 : vector<64x1xf32>
    %cst_57 = arith.constant 3.125000e-02 : f32
    %136 = vector.broadcast %cst_57 : f32 to vector<64x1xf32>
    %137 = arith.mulf %133, %136 : vector<64x1xf32>
    %138 = arith.mulf %135, %135 : vector<64x1xf32>
    %139 = arith.subf %137, %138 : vector<64x1xf32>
    %c0_58 = arith.constant 0 : index
    %c0_59 = arith.constant 0 : index
    %140 = vector.load %arg2[%c0_58, %c0_59] : memref<64x1xf32, #tpu.memory_space<vmem>>, vector<64x1xf32>
    %cst_60 = arith.constant 9.99999974E-6 : f32
    %141 = vector.broadcast %cst_60 : f32 to vector<64x1xf32>
    %142 = arith.addf %139, %141 : vector<64x1xf32>
    %143 = math.rsqrt %142 : vector<64x1xf32>
    %144 = arith.mulf %140, %143 : vector<64x1xf32>
    %c0_61 = arith.constant 0 : index
    %c0_62 = arith.constant 0 : index
    %145 = vector.load %arg3[%c0_61, %c0_62] : memref<64x1xf32, #tpu.memory_space<vmem>>, vector<64x1xf32>
    %146 = arith.mulf %135, %144 : vector<64x1xf32>
    %147 = arith.subf %145, %146 : vector<64x1xf32>
    %c0_63 = arith.constant 0 : index
    %c0_64 = arith.constant 0 : index
    %148 = vector.load %arg5[%c0_63, %c0_64] : memref<1024x128xf32, #tpu.memory_space<vmem>>, vector<64x128xf32>
    %149 = vector.broadcast %144 : vector<64x1xf32> to vector<64x128xf32>
    %150 = arith.mulf %148, %149 : vector<64x128xf32>
    %151 = vector.broadcast %147 : vector<64x1xf32> to vector<64x128xf32>
    %152 = arith.addf %150, %151 : vector<64x128xf32>
    %cst_65 = arith.constant 0.000000e+00 : f32
    %153 = vector.broadcast %cst_65 : f32 to vector<64x128xf32>
    %154 = arith.maximumf %152, %153 : vector<64x128xf32>
    %155 = arith.truncf %154 : vector<64x128xf32> to vector<64x128xbf16>
    %c0_66 = arith.constant 0 : index
    %c0_67 = arith.constant 0 : index
    %156 = vector.load %arg4[%c0_66, %c0_67] : memref<1024x128xbf16, #tpu.memory_space<vmem>>, vector<64x128xbf16>
    tpu.vector_store %arg4[%c0_66, %c0_67], %155 {strides = array<i32>} : memref<1024x128xbf16, #tpu.memory_space<vmem>>, vector<64x128xbf16>,
    %c64_68 = arith.constant 64 : index
    %c0_69 = arith.constant 0 : index
    %157 = vector.load %arg5[%c64_68, %c0_69] : memref<1024x128xf32, #tpu.memory_space<vmem>>, vector<64x128xf32>
    %158 = vector.broadcast %144 : vector<64x1xf32> to vector<64x128xf32>
    %159 = arith.mulf %157, %158 : vector<64x128xf32>
    %160 = vector.broadcast %147 : vector<64x1xf32> to vector<64x128xf32>
    %161 = arith.addf %159, %160 : vector<64x128xf32>
    %cst_70 = arith.constant 0.000000e+00 : f32
    %162 = vector.broadcast %cst_70 : f32 to vector<64x128xf32>
    %163 = arith.maximumf %161, %162 : vector<64x128xf32>
    %164 = arith.truncf %163 : vector<64x128xf32> to vector<64x128xbf16>
    %c64_71 = arith.constant 64 : index
    %c0_72 = arith.constant 0 : index
    %165 = vector.load %arg4[%c64_71, %c0_72] : memref<1024x128xbf16, #tpu.memory_space<vmem>>, vector<64x128xbf16>
    tpu.vector_store %arg4[%c64_71, %c0_72], %164 {strides = array<i32>} : memref<1024x128xbf16, #tpu.memory_space<vmem>>, vector<64x128xbf16>,
    %c128_73 = arith.constant 128 : index
    %c0_74 = arith.constant 0 : index
    %166 = vector.load %arg5[%c128_73, %c0_74] : memref<1024x128xf32, #tpu.memory_space<vmem>>, vector<64x128xf32>
    %167 = vector.broadcast %144 : vector<64x1xf32> to vector<64x128xf32>
    %168 = arith.mulf %166, %167 : vector<64x128xf32>
    %169 = vector.broadcast %147 : vector<64x1xf32> to vector<64x128xf32>
    %170 = arith.addf %168, %169 : vector<64x128xf32>
    %cst_75 = arith.constant 0.000000e+00 : f32
    %171 = vector.broadcast %cst_75 : f32 to vector<64x128xf32>
    %172 = arith.maximumf %170, %171 : vector<64x128xf32>
    %173 = arith.truncf %172 : vector<64x128xf32> to vector<64x128xbf16>
    %c128_76 = arith.constant 128 : index
    %c0_77 = arith.constant 0 : index
    %174 = vector.load %arg4[%c128_76, %c0_77] : memref<1024x128xbf16, #tpu.memory_space<vmem>>, vector<64x128xbf16>
    tpu.vector_store %arg4[%c128_76, %c0_77], %173 {strides = array<i32>} : memref<1024x128xbf16, #tpu.memory_space<vmem>>, vector<64x128xbf16>,
    %c192_78 = arith.constant 192 : index
    %c0_79 = arith.constant 0 : index
    %175 = vector.load %arg5[%c192_78, %c0_79] : memref<1024x128xf32, #tpu.memory_space<vmem>>, vector<64x128xf32>
    %176 = vector.broadcast %144 : vector<64x1xf32> to vector<64x128xf32>
    %177 = arith.mulf %175, %176 : vector<64x128xf32>
    %178 = vector.broadcast %147 : vector<64x1xf32> to vector<64x128xf32>
    %179 = arith.addf %177, %178 : vector<64x128xf32>
    %cst_80 = arith.constant 0.000000e+00 : f32
    %180 = vector.broadcast %cst_80 : f32 to vector<64x128xf32>
    %181 = arith.maximumf %179, %180 : vector<64x128xf32>
    %182 = arith.truncf %181 : vector<64x128xf32> to vector<64x128xbf16>
    %c192_81 = arith.constant 192 : index
    %c0_82 = arith.constant 0 : index
    %183 = vector.load %arg4[%c192_81, %c0_82] : memref<1024x128xbf16, #tpu.memory_space<vmem>>, vector<64x128xbf16>
    tpu.vector_store %arg4[%c192_81, %c0_82], %182 {strides = array<i32>} : memref<1024x128xbf16, #tpu.memory_space<vmem>>, vector<64x128xbf16>,
    %c256_83 = arith.constant 256 : index
    %c0_84 = arith.constant 0 : index
    %184 = vector.load %arg5[%c256_83, %c0_84] : memref<1024x128xf32, #tpu.memory_space<vmem>>, vector<64x128xf32>
    %185 = vector.broadcast %144 : vector<64x1xf32> to vector<64x128xf32>
    %186 = arith.mulf %184, %185 : vector<64x128xf32>
    %187 = vector.broadcast %147 : vector<64x1xf32> to vector<64x128xf32>
    %188 = arith.addf %186, %187 : vector<64x128xf32>
    %cst_85 = arith.constant 0.000000e+00 : f32
    %189 = vector.broadcast %cst_85 : f32 to vector<64x128xf32>
    %190 = arith.maximumf %188, %189 : vector<64x128xf32>
    %191 = arith.truncf %190 : vector<64x128xf32> to vector<64x128xbf16>
    %c256_86 = arith.constant 256 : index
    %c0_87 = arith.constant 0 : index
    %192 = vector.load %arg4[%c256_86, %c0_87] : memref<1024x128xbf16, #tpu.memory_space<vmem>>, vector<64x128xbf16>
    tpu.vector_store %arg4[%c256_86, %c0_87], %191 {strides = array<i32>} : memref<1024x128xbf16, #tpu.memory_space<vmem>>, vector<64x128xbf16>,
    %c320_88 = arith.constant 320 : index
    %c0_89 = arith.constant 0 : index
    %193 = vector.load %arg5[%c320_88, %c0_89] : memref<1024x128xf32, #tpu.memory_space<vmem>>, vector<64x128xf32>
    %194 = vector.broadcast %144 : vector<64x1xf32> to vector<64x128xf32>
    %195 = arith.mulf %193, %194 : vector<64x128xf32>
    %196 = vector.broadcast %147 : vector<64x1xf32> to vector<64x128xf32>
    %197 = arith.addf %195, %196 : vector<64x128xf32>
    %cst_90 = arith.constant 0.000000e+00 : f32
    %198 = vector.broadcast %cst_90 : f32 to vector<64x128xf32>
    %199 = arith.maximumf %197, %198 : vector<64x128xf32>
    %200 = arith.truncf %199 : vector<64x128xf32> to vector<64x128xbf16>
    %c320_91 = arith.constant 320 : index
    %c0_92 = arith.constant 0 : index
    %201 = vector.load %arg4[%c320_91, %c0_92] : memref<1024x128xbf16, #tpu.memory_space<vmem>>, vector<64x128xbf16>
    tpu.vector_store %arg4[%c320_91, %c0_92], %200 {strides = array<i32>} : memref<1024x128xbf16, #tpu.memory_space<vmem>>, vector<64x128xbf16>,
    %c384_93 = arith.constant 384 : index
    %c0_94 = arith.constant 0 : index
    %202 = vector.load %arg5[%c384_93, %c0_94] : memref<1024x128xf32, #tpu.memory_space<vmem>>, vector<64x128xf32>
    %203 = vector.broadcast %144 : vector<64x1xf32> to vector<64x128xf32>
    %204 = arith.mulf %202, %203 : vector<64x128xf32>
    %205 = vector.broadcast %147 : vector<64x1xf32> to vector<64x128xf32>
    %206 = arith.addf %204, %205 : vector<64x128xf32>
    %cst_95 = arith.constant 0.000000e+00 : f32
    %207 = vector.broadcast %cst_95 : f32 to vector<64x128xf32>
    %208 = arith.maximumf %206, %207 : vector<64x128xf32>
    %209 = arith.truncf %208 : vector<64x128xf32> to vector<64x128xbf16>
    %c384_96 = arith.constant 384 : index
    %c0_97 = arith.constant 0 : index
    %210 = vector.load %arg4[%c384_96, %c0_97] : memref<1024x128xbf16, #tpu.memory_space<vmem>>, vector<64x128xbf16>
    tpu.vector_store %arg4[%c384_96, %c0_97], %209 {strides = array<i32>} : memref<1024x128xbf16, #tpu.memory_space<vmem>>, vector<64x128xbf16>,
    %c448_98 = arith.constant 448 : index
    %c0_99 = arith.constant 0 : index
    %211 = vector.load %arg5[%c448_98, %c0_99] : memref<1024x128xf32, #tpu.memory_space<vmem>>, vector<64x128xf32>
    %212 = vector.broadcast %144 : vector<64x1xf32> to vector<64x128xf32>
    %213 = arith.mulf %211, %212 : vector<64x128xf32>
    %214 = vector.broadcast %147 : vector<64x1xf32> to vector<64x128xf32>
    %215 = arith.addf %213, %214 : vector<64x128xf32>
    %cst_100 = arith.constant 0.000000e+00 : f32
    %216 = vector.broadcast %cst_100 : f32 to vector<64x128xf32>
    %217 = arith.maximumf %215, %216 : vector<64x128xf32>
    %218 = arith.truncf %217 : vector<64x128xf32> to vector<64x128xbf16>
    %c448_101 = arith.constant 448 : index
    %c0_102 = arith.constant 0 : index
    %219 = vector.load %arg4[%c448_101, %c0_102] : memref<1024x128xbf16, #tpu.memory_space<vmem>>, vector<64x128xbf16>
    tpu.vector_store %arg4[%c448_101, %c0_102], %218 {strides = array<i32>} : memref<1024x128xbf16, #tpu.memory_space<vmem>>, vector<64x128xbf16>,
    %c512_103 = arith.constant 512 : index
    %c0_104 = arith.constant 0 : index
    %220 = vector.load %arg5[%c512_103, %c0_104] : memref<1024x128xf32, #tpu.memory_space<vmem>>, vector<64x128xf32>
    %221 = vector.broadcast %144 : vector<64x1xf32> to vector<64x128xf32>
    %222 = arith.mulf %220, %221 : vector<64x128xf32>
    %223 = vector.broadcast %147 : vector<64x1xf32> to vector<64x128xf32>
    %224 = arith.addf %222, %223 : vector<64x128xf32>
    %cst_105 = arith.constant 0.000000e+00 : f32
    %225 = vector.broadcast %cst_105 : f32 to vector<64x128xf32>
    %226 = arith.maximumf %224, %225 : vector<64x128xf32>
    %227 = arith.truncf %226 : vector<64x128xf32> to vector<64x128xbf16>
    %c512_106 = arith.constant 512 : index
    %c0_107 = arith.constant 0 : index
    %228 = vector.load %arg4[%c512_106, %c0_107] : memref<1024x128xbf16, #tpu.memory_space<vmem>>, vector<64x128xbf16>
    tpu.vector_store %arg4[%c512_106, %c0_107], %227 {strides = array<i32>} : memref<1024x128xbf16, #tpu.memory_space<vmem>>, vector<64x128xbf16>,
    %c576_108 = arith.constant 576 : index
    %c0_109 = arith.constant 0 : index
    %229 = vector.load %arg5[%c576_108, %c0_109] : memref<1024x128xf32, #tpu.memory_space<vmem>>, vector<64x128xf32>
    %230 = vector.broadcast %144 : vector<64x1xf32> to vector<64x128xf32>
    %231 = arith.mulf %229, %230 : vector<64x128xf32>
    %232 = vector.broadcast %147 : vector<64x1xf32> to vector<64x128xf32>
    %233 = arith.addf %231, %232 : vector<64x128xf32>
    %cst_110 = arith.constant 0.000000e+00 : f32
    %234 = vector.broadcast %cst_110 : f32 to vector<64x128xf32>
    %235 = arith.maximumf %233, %234 : vector<64x128xf32>
    %236 = arith.truncf %235 : vector<64x128xf32> to vector<64x128xbf16>
    %c576_111 = arith.constant 576 : index
    %c0_112 = arith.constant 0 : index
    %237 = vector.load %arg4[%c576_111, %c0_112] : memref<1024x128xbf16, #tpu.memory_space<vmem>>, vector<64x128xbf16>
    tpu.vector_store %arg4[%c576_111, %c0_112], %236 {strides = array<i32>} : memref<1024x128xbf16, #tpu.memory_space<vmem>>, vector<64x128xbf16>,
    %c640_113 = arith.constant 640 : index
    %c0_114 = arith.constant 0 : index
    %238 = vector.load %arg5[%c640_113, %c0_114] : memref<1024x128xf32, #tpu.memory_space<vmem>>, vector<64x128xf32>
    %239 = vector.broadcast %144 : vector<64x1xf32> to vector<64x128xf32>
    %240 = arith.mulf %238, %239 : vector<64x128xf32>
    %241 = vector.broadcast %147 : vector<64x1xf32> to vector<64x128xf32>
    %242 = arith.addf %240, %241 : vector<64x128xf32>
    %cst_115 = arith.constant 0.000000e+00 : f32
    %243 = vector.broadcast %cst_115 : f32 to vector<64x128xf32>
    %244 = arith.maximumf %242, %243 : vector<64x128xf32>
    %245 = arith.truncf %244 : vector<64x128xf32> to vector<64x128xbf16>
    %c640_116 = arith.constant 640 : index
    %c0_117 = arith.constant 0 : index
    %246 = vector.load %arg4[%c640_116, %c0_117] : memref<1024x128xbf16, #tpu.memory_space<vmem>>, vector<64x128xbf16>
    tpu.vector_store %arg4[%c640_116, %c0_117], %245 {strides = array<i32>} : memref<1024x128xbf16, #tpu.memory_space<vmem>>, vector<64x128xbf16>,
    %c704_118 = arith.constant 704 : index
    %c0_119 = arith.constant 0 : index
    %247 = vector.load %arg5[%c704_118, %c0_119] : memref<1024x128xf32, #tpu.memory_space<vmem>>, vector<64x128xf32>
    %248 = vector.broadcast %144 : vector<64x1xf32> to vector<64x128xf32>
    %249 = arith.mulf %247, %248 : vector<64x128xf32>
    %250 = vector.broadcast %147 : vector<64x1xf32> to vector<64x128xf32>
    %251 = arith.addf %249, %250 : vector<64x128xf32>
    %cst_120 = arith.constant 0.000000e+00 : f32
    %252 = vector.broadcast %cst_120 : f32 to vector<64x128xf32>
    %253 = arith.maximumf %251, %252 : vector<64x128xf32>
    %254 = arith.truncf %253 : vector<64x128xf32> to vector<64x128xbf16>
    %c704_121 = arith.constant 704 : index
    %c0_122 = arith.constant 0 : index
    %255 = vector.load %arg4[%c704_121, %c0_122] : memref<1024x128xbf16, #tpu.memory_space<vmem>>, vector<64x128xbf16>
    tpu.vector_store %arg4[%c704_121, %c0_122], %254 {strides = array<i32>} : memref<1024x128xbf16, #tpu.memory_space<vmem>>, vector<64x128xbf16>,
    %c768_123 = arith.constant 768 : index
    %c0_124 = arith.constant 0 : index
    %256 = vector.load %arg5[%c768_123, %c0_124] : memref<1024x128xf32, #tpu.memory_space<vmem>>, vector<64x128xf32>
    %257 = vector.broadcast %144 : vector<64x1xf32> to vector<64x128xf32>
    %258 = arith.mulf %256, %257 : vector<64x128xf32>
    %259 = vector.broadcast %147 : vector<64x1xf32> to vector<64x128xf32>
    %260 = arith.addf %258, %259 : vector<64x128xf32>
    %cst_125 = arith.constant 0.000000e+00 : f32
    %261 = vector.broadcast %cst_125 : f32 to vector<64x128xf32>
    %262 = arith.maximumf %260, %261 : vector<64x128xf32>
    %263 = arith.truncf %262 : vector<64x128xf32> to vector<64x128xbf16>
    %c768_126 = arith.constant 768 : index
    %c0_127 = arith.constant 0 : index
    %264 = vector.load %arg4[%c768_126, %c0_127] : memref<1024x128xbf16, #tpu.memory_space<vmem>>, vector<64x128xbf16>
    tpu.vector_store %arg4[%c768_126, %c0_127], %263 {strides = array<i32>} : memref<1024x128xbf16, #tpu.memory_space<vmem>>, vector<64x128xbf16>,
    %c832_128 = arith.constant 832 : index
    %c0_129 = arith.constant 0 : index
    %265 = vector.load %arg5[%c832_128, %c0_129] : memref<1024x128xf32, #tpu.memory_space<vmem>>, vector<64x128xf32>
    %266 = vector.broadcast %144 : vector<64x1xf32> to vector<64x128xf32>
    %267 = arith.mulf %265, %266 : vector<64x128xf32>
    %268 = vector.broadcast %147 : vector<64x1xf32> to vector<64x128xf32>
    %269 = arith.addf %267, %268 : vector<64x128xf32>
    %cst_130 = arith.constant 0.000000e+00 : f32
    %270 = vector.broadcast %cst_130 : f32 to vector<64x128xf32>
    %271 = arith.maximumf %269, %270 : vector<64x128xf32>
    %272 = arith.truncf %271 : vector<64x128xf32> to vector<64x128xbf16>
    %c832_131 = arith.constant 832 : index
    %c0_132 = arith.constant 0 : index
    %273 = vector.load %arg4[%c832_131, %c0_132] : memref<1024x128xbf16, #tpu.memory_space<vmem>>, vector<64x128xbf16>
    tpu.vector_store %arg4[%c832_131, %c0_132], %272 {strides = array<i32>} : memref<1024x128xbf16, #tpu.memory_space<vmem>>, vector<64x128xbf16>,
    %c896_133 = arith.constant 896 : index
    %c0_134 = arith.constant 0 : index
    %274 = vector.load %arg5[%c896_133, %c0_134] : memref<1024x128xf32, #tpu.memory_space<vmem>>, vector<64x128xf32>
    %275 = vector.broadcast %144 : vector<64x1xf32> to vector<64x128xf32>
    %276 = arith.mulf %274, %275 : vector<64x128xf32>
    %277 = vector.broadcast %147 : vector<64x1xf32> to vector<64x128xf32>
    %278 = arith.addf %276, %277 : vector<64x128xf32>
    %cst_135 = arith.constant 0.000000e+00 : f32
    %279 = vector.broadcast %cst_135 : f32 to vector<64x128xf32>
    %280 = arith.maximumf %278, %279 : vector<64x128xf32>
    %281 = arith.truncf %280 : vector<64x128xf32> to vector<64x128xbf16>
    %c896_136 = arith.constant 896 : index
    %c0_137 = arith.constant 0 : index
    %282 = vector.load %arg4[%c896_136, %c0_137] : memref<1024x128xbf16, #tpu.memory_space<vmem>>, vector<64x128xbf16>
    tpu.vector_store %arg4[%c896_136, %c0_137], %281 {strides = array<i32>} : memref<1024x128xbf16, #tpu.memory_space<vmem>>, vector<64x128xbf16>,
    %c960_138 = arith.constant 960 : index
    %c0_139 = arith.constant 0 : index
    %283 = vector.load %arg5[%c960_138, %c0_139] : memref<1024x128xf32, #tpu.memory_space<vmem>>, vector<64x128xf32>
    %284 = vector.broadcast %144 : vector<64x1xf32> to vector<64x128xf32>
    %285 = arith.mulf %283, %284 : vector<64x128xf32>
    %286 = vector.broadcast %147 : vector<64x1xf32> to vector<64x128xf32>
    %287 = arith.addf %285, %286 : vector<64x128xf32>
    %cst_140 = arith.constant 0.000000e+00 : f32
    %288 = vector.broadcast %cst_140 : f32 to vector<64x128xf32>
    %289 = arith.maximumf %287, %288 : vector<64x128xf32>
    %290 = arith.truncf %289 : vector<64x128xf32> to vector<64x128xbf16>
    %c960_141 = arith.constant 960 : index
    %c0_142 = arith.constant 0 : index
    %291 = vector.load %arg4[%c960_141, %c0_142] : memref<1024x128xbf16, #tpu.memory_space<vmem>>, vector<64x128xbf16>
    tpu.vector_store %arg4[%c960_141, %c0_142], %290 {strides = array<i32>} : memref<1024x128xbf16, #tpu.memory_space<vmem>>, vector<64x128xbf16>,
    return
  }
}

module attributes {stable_mosaic.version = 11 : i64} {
  func.func @_mm_bn_relu_kernel(%arg0: memref<576x128xbf16, #tpu.memory_space<vmem>>, %arg1: memref<128x576xbf16, #tpu.memory_space<vmem>>, %arg2: memref<32x1xf32, #tpu.memory_space<vmem>>, %arg3: memref<32x1xf32, #tpu.memory_space<vmem>>, %arg4: memref<128x128xbf16, #tpu.memory_space<vmem>>, %arg5: memref<128x128xf32, #tpu.memory_space<vmem>>) attributes {dimension_semantics = [], scalar_prefetch = 0 : i64, scratch_operands = 1 : i64, tpu.core_type = #tpu.core_type<tc>} {
    %c0 = arith.constant 0 : index
    %c0_0 = arith.constant 0 : index
    %0 = vector.load %arg1[%c0, %c0_0] : memref<128x576xbf16, #tpu.memory_space<vmem>>, vector<128x576xbf16>
    %c0_1 = arith.constant 0 : index
    %c0_2 = arith.constant 0 : index
    %1 = vector.load %arg0[%c0_1, %c0_2] : memref<576x128xbf16, #tpu.memory_space<vmem>>, vector<576x128xbf16>
    %cst = arith.constant dense<0.000000e+00> : vector<128x128xf32>
    %2 = tpu.matmul %0, %1, %cst {dimension_numbers = #tpu.dot_dimension_numbers<[1], [0], [0], [1], [0, 0, 1, 1], [], []>} : vector<128x576xbf16>, vector<576x128xbf16>, vector<128x128xf32> -> vector<128x128xf32>
    %c0_3 = arith.constant 0 : index
    %c0_4 = arith.constant 0 : index
    %3 = vector.load %arg5[%c0_3, %c0_4] : memref<128x128xf32, #tpu.memory_space<vmem>>, vector<128x128xf32>
    tpu.vector_store %arg5[%c0_3, %c0_4], %2 {strides = array<i32>} : memref<128x128xf32, #tpu.memory_space<vmem>>, vector<128x128xf32>,
    %cst_5 = arith.constant 0.000000e+00 : f32
    %4 = vector.broadcast %cst_5 : f32 to vector<32x1xf32>
    %cst_6 = arith.constant 0.000000e+00 : f32
    %5 = vector.broadcast %cst_6 : f32 to vector<32x1xf32>
    %c0_7 = arith.constant 0 : index
    %c0_8 = arith.constant 0 : index
    %6 = vector.load %arg5[%c0_7, %c0_8] : memref<128x128xf32, #tpu.memory_space<vmem>>, vector<32x128xf32>
    %cst_9 = arith.constant dense<0.000000e+00> : vector<32xf32>
    %7 = vector.multi_reduction <add>, %6, %cst_9 [1] : vector<32x128xf32> to vector<32xf32>
    %8 = vector.shape_cast %7 : vector<32xf32> to vector<32x1xf32>
    %9 = arith.addf %4, %8 : vector<32x1xf32>
    %10 = arith.mulf %6, %6 : vector<32x128xf32>
    %cst_10 = arith.constant dense<0.000000e+00> : vector<32xf32>
    %11 = vector.multi_reduction <add>, %10, %cst_10 [1] : vector<32x128xf32> to vector<32xf32>
    %12 = vector.shape_cast %11 : vector<32xf32> to vector<32x1xf32>
    %13 = arith.addf %5, %12 : vector<32x1xf32>
    %c32 = arith.constant 32 : index
    %c0_11 = arith.constant 0 : index
    %14 = vector.load %arg5[%c32, %c0_11] : memref<128x128xf32, #tpu.memory_space<vmem>>, vector<32x128xf32>
    %cst_12 = arith.constant dense<0.000000e+00> : vector<32xf32>
    %15 = vector.multi_reduction <add>, %14, %cst_12 [1] : vector<32x128xf32> to vector<32xf32>
    %16 = vector.shape_cast %15 : vector<32xf32> to vector<32x1xf32>
    %17 = arith.addf %9, %16 : vector<32x1xf32>
    %18 = arith.mulf %14, %14 : vector<32x128xf32>
    %cst_13 = arith.constant dense<0.000000e+00> : vector<32xf32>
    %19 = vector.multi_reduction <add>, %18, %cst_13 [1] : vector<32x128xf32> to vector<32xf32>
    %20 = vector.shape_cast %19 : vector<32xf32> to vector<32x1xf32>
    %21 = arith.addf %13, %20 : vector<32x1xf32>
    %c64 = arith.constant 64 : index
    %c0_14 = arith.constant 0 : index
    %22 = vector.load %arg5[%c64, %c0_14] : memref<128x128xf32, #tpu.memory_space<vmem>>, vector<32x128xf32>
    %cst_15 = arith.constant dense<0.000000e+00> : vector<32xf32>
    %23 = vector.multi_reduction <add>, %22, %cst_15 [1] : vector<32x128xf32> to vector<32xf32>
    %24 = vector.shape_cast %23 : vector<32xf32> to vector<32x1xf32>
    %25 = arith.addf %17, %24 : vector<32x1xf32>
    %26 = arith.mulf %22, %22 : vector<32x128xf32>
    %cst_16 = arith.constant dense<0.000000e+00> : vector<32xf32>
    %27 = vector.multi_reduction <add>, %26, %cst_16 [1] : vector<32x128xf32> to vector<32xf32>
    %28 = vector.shape_cast %27 : vector<32xf32> to vector<32x1xf32>
    %29 = arith.addf %21, %28 : vector<32x1xf32>
    %c96 = arith.constant 96 : index
    %c0_17 = arith.constant 0 : index
    %30 = vector.load %arg5[%c96, %c0_17] : memref<128x128xf32, #tpu.memory_space<vmem>>, vector<32x128xf32>
    %cst_18 = arith.constant dense<0.000000e+00> : vector<32xf32>
    %31 = vector.multi_reduction <add>, %30, %cst_18 [1] : vector<32x128xf32> to vector<32xf32>
    %32 = vector.shape_cast %31 : vector<32xf32> to vector<32x1xf32>
    %33 = arith.addf %25, %32 : vector<32x1xf32>
    %34 = arith.mulf %30, %30 : vector<32x128xf32>
    %cst_19 = arith.constant dense<0.000000e+00> : vector<32xf32>
    %35 = vector.multi_reduction <add>, %34, %cst_19 [1] : vector<32x128xf32> to vector<32xf32>
    %36 = vector.shape_cast %35 : vector<32xf32> to vector<32x1xf32>
    %37 = arith.addf %29, %36 : vector<32x1xf32>
    %cst_20 = arith.constant 7.812500e-03 : f32
    %38 = vector.broadcast %cst_20 : f32 to vector<32x1xf32>
    %39 = arith.mulf %33, %38 : vector<32x1xf32>
    %cst_21 = arith.constant 7.812500e-03 : f32
    %40 = vector.broadcast %cst_21 : f32 to vector<32x1xf32>
    %41 = arith.mulf %37, %40 : vector<32x1xf32>
    %42 = arith.mulf %39, %39 : vector<32x1xf32>
    %43 = arith.subf %41, %42 : vector<32x1xf32>
    %c0_22 = arith.constant 0 : index
    %c0_23 = arith.constant 0 : index
    %44 = vector.load %arg2[%c0_22, %c0_23] : memref<32x1xf32, #tpu.memory_space<vmem>>, vector<32x1xf32>
    %cst_24 = arith.constant 9.99999974E-6 : f32
    %45 = vector.broadcast %cst_24 : f32 to vector<32x1xf32>
    %46 = arith.addf %43, %45 : vector<32x1xf32>
    %47 = math.rsqrt %46 : vector<32x1xf32>
    %48 = arith.mulf %44, %47 : vector<32x1xf32>
    %c0_25 = arith.constant 0 : index
    %c0_26 = arith.constant 0 : index
    %49 = vector.load %arg3[%c0_25, %c0_26] : memref<32x1xf32, #tpu.memory_space<vmem>>, vector<32x1xf32>
    %50 = arith.mulf %39, %48 : vector<32x1xf32>
    %51 = arith.subf %49, %50 : vector<32x1xf32>
    %c0_27 = arith.constant 0 : index
    %c0_28 = arith.constant 0 : index
    %52 = vector.load %arg5[%c0_27, %c0_28] : memref<128x128xf32, #tpu.memory_space<vmem>>, vector<32x128xf32>
    %53 = vector.broadcast %48 : vector<32x1xf32> to vector<32x128xf32>
    %54 = arith.mulf %52, %53 : vector<32x128xf32>
    %55 = vector.broadcast %51 : vector<32x1xf32> to vector<32x128xf32>
    %56 = arith.addf %54, %55 : vector<32x128xf32>
    %cst_29 = arith.constant 0.000000e+00 : f32
    %57 = vector.broadcast %cst_29 : f32 to vector<32x128xf32>
    %58 = arith.maximumf %56, %57 : vector<32x128xf32>
    %59 = arith.truncf %58 : vector<32x128xf32> to vector<32x128xbf16>
    %c0_30 = arith.constant 0 : index
    %c0_31 = arith.constant 0 : index
    %60 = vector.load %arg4[%c0_30, %c0_31] : memref<128x128xbf16, #tpu.memory_space<vmem>>, vector<32x128xbf16>
    tpu.vector_store %arg4[%c0_30, %c0_31], %59 {strides = array<i32>} : memref<128x128xbf16, #tpu.memory_space<vmem>>, vector<32x128xbf16>,
    %c32_32 = arith.constant 32 : index
    %c0_33 = arith.constant 0 : index
    %61 = vector.load %arg5[%c32_32, %c0_33] : memref<128x128xf32, #tpu.memory_space<vmem>>, vector<32x128xf32>
    %62 = vector.broadcast %48 : vector<32x1xf32> to vector<32x128xf32>
    %63 = arith.mulf %61, %62 : vector<32x128xf32>
    %64 = vector.broadcast %51 : vector<32x1xf32> to vector<32x128xf32>
    %65 = arith.addf %63, %64 : vector<32x128xf32>
    %cst_34 = arith.constant 0.000000e+00 : f32
    %66 = vector.broadcast %cst_34 : f32 to vector<32x128xf32>
    %67 = arith.maximumf %65, %66 : vector<32x128xf32>
    %68 = arith.truncf %67 : vector<32x128xf32> to vector<32x128xbf16>
    %c32_35 = arith.constant 32 : index
    %c0_36 = arith.constant 0 : index
    %69 = vector.load %arg4[%c32_35, %c0_36] : memref<128x128xbf16, #tpu.memory_space<vmem>>, vector<32x128xbf16>
    tpu.vector_store %arg4[%c32_35, %c0_36], %68 {strides = array<i32>} : memref<128x128xbf16, #tpu.memory_space<vmem>>, vector<32x128xbf16>,
    %c64_37 = arith.constant 64 : index
    %c0_38 = arith.constant 0 : index
    %70 = vector.load %arg5[%c64_37, %c0_38] : memref<128x128xf32, #tpu.memory_space<vmem>>, vector<32x128xf32>
    %71 = vector.broadcast %48 : vector<32x1xf32> to vector<32x128xf32>
    %72 = arith.mulf %70, %71 : vector<32x128xf32>
    %73 = vector.broadcast %51 : vector<32x1xf32> to vector<32x128xf32>
    %74 = arith.addf %72, %73 : vector<32x128xf32>
    %cst_39 = arith.constant 0.000000e+00 : f32
    %75 = vector.broadcast %cst_39 : f32 to vector<32x128xf32>
    %76 = arith.maximumf %74, %75 : vector<32x128xf32>
    %77 = arith.truncf %76 : vector<32x128xf32> to vector<32x128xbf16>
    %c64_40 = arith.constant 64 : index
    %c0_41 = arith.constant 0 : index
    %78 = vector.load %arg4[%c64_40, %c0_41] : memref<128x128xbf16, #tpu.memory_space<vmem>>, vector<32x128xbf16>
    tpu.vector_store %arg4[%c64_40, %c0_41], %77 {strides = array<i32>} : memref<128x128xbf16, #tpu.memory_space<vmem>>, vector<32x128xbf16>,
    %c96_42 = arith.constant 96 : index
    %c0_43 = arith.constant 0 : index
    %79 = vector.load %arg5[%c96_42, %c0_43] : memref<128x128xf32, #tpu.memory_space<vmem>>, vector<32x128xf32>
    %80 = vector.broadcast %48 : vector<32x1xf32> to vector<32x128xf32>
    %81 = arith.mulf %79, %80 : vector<32x128xf32>
    %82 = vector.broadcast %51 : vector<32x1xf32> to vector<32x128xf32>
    %83 = arith.addf %81, %82 : vector<32x128xf32>
    %cst_44 = arith.constant 0.000000e+00 : f32
    %84 = vector.broadcast %cst_44 : f32 to vector<32x128xf32>
    %85 = arith.maximumf %83, %84 : vector<32x128xf32>
    %86 = arith.truncf %85 : vector<32x128xf32> to vector<32x128xbf16>
    %c96_45 = arith.constant 96 : index
    %c0_46 = arith.constant 0 : index
    %87 = vector.load %arg4[%c96_45, %c0_46] : memref<128x128xbf16, #tpu.memory_space<vmem>>, vector<32x128xbf16>
    tpu.vector_store %arg4[%c96_45, %c0_46], %86 {strides = array<i32>} : memref<128x128xbf16, #tpu.memory_space<vmem>>, vector<32x128xbf16>,
    return
  }
}

module attributes {stable_mosaic.version = 11 : i64} {
  func.func @_mm_bn_relu_kernel(%arg0: memref<288x128xbf16, #tpu.memory_space<vmem>>, %arg1: memref<64x288xbf16, #tpu.memory_space<vmem>>, %arg2: memref<16x1xf32, #tpu.memory_space<vmem>>, %arg3: memref<16x1xf32, #tpu.memory_space<vmem>>, %arg4: memref<64x128xbf16, #tpu.memory_space<vmem>>, %arg5: memref<64x128xf32, #tpu.memory_space<vmem>>) attributes {dimension_semantics = [], scalar_prefetch = 0 : i64, scratch_operands = 1 : i64, tpu.core_type = #tpu.core_type<tc>} {
    %c0 = arith.constant 0 : index
    %c0_0 = arith.constant 0 : index
    %0 = vector.load %arg1[%c0, %c0_0] : memref<64x288xbf16, #tpu.memory_space<vmem>>, vector<64x288xbf16>
    %c0_1 = arith.constant 0 : index
    %c0_2 = arith.constant 0 : index
    %1 = vector.load %arg0[%c0_1, %c0_2] : memref<288x128xbf16, #tpu.memory_space<vmem>>, vector<288x128xbf16>
    %cst = arith.constant dense<0.000000e+00> : vector<64x128xf32>
    %2 = tpu.matmul %0, %1, %cst {dimension_numbers = #tpu.dot_dimension_numbers<[1], [0], [0], [1], [0, 0, 1, 1], [], []>} : vector<64x288xbf16>, vector<288x128xbf16>, vector<64x128xf32> -> vector<64x128xf32>
    %c0_3 = arith.constant 0 : index
    %c0_4 = arith.constant 0 : index
    %3 = vector.load %arg5[%c0_3, %c0_4] : memref<64x128xf32, #tpu.memory_space<vmem>>, vector<64x128xf32>
    tpu.vector_store %arg5[%c0_3, %c0_4], %2 {strides = array<i32>} : memref<64x128xf32, #tpu.memory_space<vmem>>, vector<64x128xf32>,
    %cst_5 = arith.constant 0.000000e+00 : f32
    %4 = vector.broadcast %cst_5 : f32 to vector<16x1xf32>
    %cst_6 = arith.constant 0.000000e+00 : f32
    %5 = vector.broadcast %cst_6 : f32 to vector<16x1xf32>
    %c0_7 = arith.constant 0 : index
    %c0_8 = arith.constant 0 : index
    %6 = vector.load %arg5[%c0_7, %c0_8] : memref<64x128xf32, #tpu.memory_space<vmem>>, vector<16x128xf32>
    %cst_9 = arith.constant dense<0.000000e+00> : vector<16xf32>
    %7 = vector.multi_reduction <add>, %6, %cst_9 [1] : vector<16x128xf32> to vector<16xf32>
    %8 = vector.shape_cast %7 : vector<16xf32> to vector<16x1xf32>
    %9 = arith.addf %4, %8 : vector<16x1xf32>
    %10 = arith.mulf %6, %6 : vector<16x128xf32>
    %cst_10 = arith.constant dense<0.000000e+00> : vector<16xf32>
    %11 = vector.multi_reduction <add>, %10, %cst_10 [1] : vector<16x128xf32> to vector<16xf32>
    %12 = vector.shape_cast %11 : vector<16xf32> to vector<16x1xf32>
    %13 = arith.addf %5, %12 : vector<16x1xf32>
    %c16 = arith.constant 16 : index
    %c0_11 = arith.constant 0 : index
    %14 = vector.load %arg5[%c16, %c0_11] : memref<64x128xf32, #tpu.memory_space<vmem>>, vector<16x128xf32>
    %cst_12 = arith.constant dense<0.000000e+00> : vector<16xf32>
    %15 = vector.multi_reduction <add>, %14, %cst_12 [1] : vector<16x128xf32> to vector<16xf32>
    %16 = vector.shape_cast %15 : vector<16xf32> to vector<16x1xf32>
    %17 = arith.addf %9, %16 : vector<16x1xf32>
    %18 = arith.mulf %14, %14 : vector<16x128xf32>
    %cst_13 = arith.constant dense<0.000000e+00> : vector<16xf32>
    %19 = vector.multi_reduction <add>, %18, %cst_13 [1] : vector<16x128xf32> to vector<16xf32>
    %20 = vector.shape_cast %19 : vector<16xf32> to vector<16x1xf32>
    %21 = arith.addf %13, %20 : vector<16x1xf32>
    %c32 = arith.constant 32 : index
    %c0_14 = arith.constant 0 : index
    %22 = vector.load %arg5[%c32, %c0_14] : memref<64x128xf32, #tpu.memory_space<vmem>>, vector<16x128xf32>
    %cst_15 = arith.constant dense<0.000000e+00> : vector<16xf32>
    %23 = vector.multi_reduction <add>, %22, %cst_15 [1] : vector<16x128xf32> to vector<16xf32>
    %24 = vector.shape_cast %23 : vector<16xf32> to vector<16x1xf32>
    %25 = arith.addf %17, %24 : vector<16x1xf32>
    %26 = arith.mulf %22, %22 : vector<16x128xf32>
    %cst_16 = arith.constant dense<0.000000e+00> : vector<16xf32>
    %27 = vector.multi_reduction <add>, %26, %cst_16 [1] : vector<16x128xf32> to vector<16xf32>
    %28 = vector.shape_cast %27 : vector<16xf32> to vector<16x1xf32>
    %29 = arith.addf %21, %28 : vector<16x1xf32>
    %c48 = arith.constant 48 : index
    %c0_17 = arith.constant 0 : index
    %30 = vector.load %arg5[%c48, %c0_17] : memref<64x128xf32, #tpu.memory_space<vmem>>, vector<16x128xf32>
    %cst_18 = arith.constant dense<0.000000e+00> : vector<16xf32>
    %31 = vector.multi_reduction <add>, %30, %cst_18 [1] : vector<16x128xf32> to vector<16xf32>
    %32 = vector.shape_cast %31 : vector<16xf32> to vector<16x1xf32>
    %33 = arith.addf %25, %32 : vector<16x1xf32>
    %34 = arith.mulf %30, %30 : vector<16x128xf32>
    %cst_19 = arith.constant dense<0.000000e+00> : vector<16xf32>
    %35 = vector.multi_reduction <add>, %34, %cst_19 [1] : vector<16x128xf32> to vector<16xf32>
    %36 = vector.shape_cast %35 : vector<16xf32> to vector<16x1xf32>
    %37 = arith.addf %29, %36 : vector<16x1xf32>
    %cst_20 = arith.constant 0.001953125 : f32
    %38 = vector.broadcast %cst_20 : f32 to vector<16x1xf32>
    %39 = arith.mulf %33, %38 : vector<16x1xf32>
    %cst_21 = arith.constant 0.001953125 : f32
    %40 = vector.broadcast %cst_21 : f32 to vector<16x1xf32>
    %41 = arith.mulf %37, %40 : vector<16x1xf32>
    %42 = arith.mulf %39, %39 : vector<16x1xf32>
    %43 = arith.subf %41, %42 : vector<16x1xf32>
    %c0_22 = arith.constant 0 : index
    %c0_23 = arith.constant 0 : index
    %44 = vector.load %arg2[%c0_22, %c0_23] : memref<16x1xf32, #tpu.memory_space<vmem>>, vector<16x1xf32>
    %cst_24 = arith.constant 9.99999974E-6 : f32
    %45 = vector.broadcast %cst_24 : f32 to vector<16x1xf32>
    %46 = arith.addf %43, %45 : vector<16x1xf32>
    %47 = math.rsqrt %46 : vector<16x1xf32>
    %48 = arith.mulf %44, %47 : vector<16x1xf32>
    %c0_25 = arith.constant 0 : index
    %c0_26 = arith.constant 0 : index
    %49 = vector.load %arg3[%c0_25, %c0_26] : memref<16x1xf32, #tpu.memory_space<vmem>>, vector<16x1xf32>
    %50 = arith.mulf %39, %48 : vector<16x1xf32>
    %51 = arith.subf %49, %50 : vector<16x1xf32>
    %c0_27 = arith.constant 0 : index
    %c0_28 = arith.constant 0 : index
    %52 = vector.load %arg5[%c0_27, %c0_28] : memref<64x128xf32, #tpu.memory_space<vmem>>, vector<16x128xf32>
    %53 = vector.broadcast %48 : vector<16x1xf32> to vector<16x128xf32>
    %54 = arith.mulf %52, %53 : vector<16x128xf32>
    %55 = vector.broadcast %51 : vector<16x1xf32> to vector<16x128xf32>
    %56 = arith.addf %54, %55 : vector<16x128xf32>
    %cst_29 = arith.constant 0.000000e+00 : f32
    %57 = vector.broadcast %cst_29 : f32 to vector<16x128xf32>
    %58 = arith.maximumf %56, %57 : vector<16x128xf32>
    %59 = arith.truncf %58 : vector<16x128xf32> to vector<16x128xbf16>
    %c0_30 = arith.constant 0 : index
    %c0_31 = arith.constant 0 : index
    %60 = vector.load %arg4[%c0_30, %c0_31] : memref<64x128xbf16, #tpu.memory_space<vmem>>, vector<16x128xbf16>
    tpu.vector_store %arg4[%c0_30, %c0_31], %59 {strides = array<i32>} : memref<64x128xbf16, #tpu.memory_space<vmem>>, vector<16x128xbf16>,
    %c16_32 = arith.constant 16 : index
    %c0_33 = arith.constant 0 : index
    %61 = vector.load %arg5[%c16_32, %c0_33] : memref<64x128xf32, #tpu.memory_space<vmem>>, vector<16x128xf32>
    %62 = vector.broadcast %48 : vector<16x1xf32> to vector<16x128xf32>
    %63 = arith.mulf %61, %62 : vector<16x128xf32>
    %64 = vector.broadcast %51 : vector<16x1xf32> to vector<16x128xf32>
    %65 = arith.addf %63, %64 : vector<16x128xf32>
    %cst_34 = arith.constant 0.000000e+00 : f32
    %66 = vector.broadcast %cst_34 : f32 to vector<16x128xf32>
    %67 = arith.maximumf %65, %66 : vector<16x128xf32>
    %68 = arith.truncf %67 : vector<16x128xf32> to vector<16x128xbf16>
    %c16_35 = arith.constant 16 : index
    %c0_36 = arith.constant 0 : index
    %69 = vector.load %arg4[%c16_35, %c0_36] : memref<64x128xbf16, #tpu.memory_space<vmem>>, vector<16x128xbf16>
    tpu.vector_store %arg4[%c16_35, %c0_36], %68 {strides = array<i32>} : memref<64x128xbf16, #tpu.memory_space<vmem>>, vector<16x128xbf16>,
    %c32_37 = arith.constant 32 : index
    %c0_38 = arith.constant 0 : index
    %70 = vector.load %arg5[%c32_37, %c0_38] : memref<64x128xf32, #tpu.memory_space<vmem>>, vector<16x128xf32>
    %71 = vector.broadcast %48 : vector<16x1xf32> to vector<16x128xf32>
    %72 = arith.mulf %70, %71 : vector<16x128xf32>
    %73 = vector.broadcast %51 : vector<16x1xf32> to vector<16x128xf32>
    %74 = arith.addf %72, %73 : vector<16x128xf32>
    %cst_39 = arith.constant 0.000000e+00 : f32
    %75 = vector.broadcast %cst_39 : f32 to vector<16x128xf32>
    %76 = arith.maximumf %74, %75 : vector<16x128xf32>
    %77 = arith.truncf %76 : vector<16x128xf32> to vector<16x128xbf16>
    %c32_40 = arith.constant 32 : index
    %c0_41 = arith.constant 0 : index
    %78 = vector.load %arg4[%c32_40, %c0_41] : memref<64x128xbf16, #tpu.memory_space<vmem>>, vector<16x128xbf16>
    tpu.vector_store %arg4[%c32_40, %c0_41], %77 {strides = array<i32>} : memref<64x128xbf16, #tpu.memory_space<vmem>>, vector<16x128xbf16>,
    %c48_42 = arith.constant 48 : index
    %c0_43 = arith.constant 0 : index
    %79 = vector.load %arg5[%c48_42, %c0_43] : memref<64x128xf32, #tpu.memory_space<vmem>>, vector<16x128xf32>
    %80 = vector.broadcast %48 : vector<16x1xf32> to vector<16x128xf32>
    %81 = arith.mulf %79, %80 : vector<16x128xf32>
    %82 = vector.broadcast %51 : vector<16x1xf32> to vector<16x128xf32>
    %83 = arith.addf %81, %82 : vector<16x128xf32>
    %cst_44 = arith.constant 0.000000e+00 : f32
    %84 = vector.broadcast %cst_44 : f32 to vector<16x128xf32>
    %85 = arith.maximumf %83, %84 : vector<16x128xf32>
    %86 = arith.truncf %85 : vector<16x128xf32> to vector<16x128xbf16>
    %c48_45 = arith.constant 48 : index
    %c0_46 = arith.constant 0 : index
    %87 = vector.load %arg4[%c48_45, %c0_46] : memref<64x128xbf16, #tpu.memory_space<vmem>>, vector<16x128xbf16>
    tpu.vector_store %arg4[%c48_45, %c0_46], %86 {strides = array<i32>} : memref<64x128xbf16, #tpu.memory_space<vmem>>, vector<16x128xbf16>,
    return
  }
}

module attributes {stable_mosaic.version = 11 : i64} {
  func.func @_mm_bn_relu_kernel(%arg0: memref<144x512xbf16, #tpu.memory_space<vmem>>, %arg1: memref<32x144xbf16, #tpu.memory_space<vmem>>, %arg2: memref<8x1xf32, #tpu.memory_space<vmem>>, %arg3: memref<8x1xf32, #tpu.memory_space<vmem>>, %arg4: memref<32x512xbf16, #tpu.memory_space<vmem>>, %arg5: memref<32x512xf32, #tpu.memory_space<vmem>>) attributes {dimension_semantics = [], scalar_prefetch = 0 : i64, scratch_operands = 1 : i64, tpu.core_type = #tpu.core_type<tc>} {
    %c0 = arith.constant 0 : index
    %c0_0 = arith.constant 0 : index
    %0 = vector.load %arg1[%c0, %c0_0] : memref<32x144xbf16, #tpu.memory_space<vmem>>, vector<32x144xbf16>
    %c0_1 = arith.constant 0 : index
    %c0_2 = arith.constant 0 : index
    %1 = vector.load %arg0[%c0_1, %c0_2] : memref<144x512xbf16, #tpu.memory_space<vmem>>, vector<144x512xbf16>
    %cst = arith.constant dense<0.000000e+00> : vector<32x512xf32>
    %2 = tpu.matmul %0, %1, %cst {dimension_numbers = #tpu.dot_dimension_numbers<[1], [0], [0], [1], [0, 0, 1, 1], [], []>} : vector<32x144xbf16>, vector<144x512xbf16>, vector<32x512xf32> -> vector<32x512xf32>
    %c0_3 = arith.constant 0 : index
    %c0_4 = arith.constant 0 : index
    %3 = vector.load %arg5[%c0_3, %c0_4] : memref<32x512xf32, #tpu.memory_space<vmem>>, vector<32x512xf32>
    tpu.vector_store %arg5[%c0_3, %c0_4], %2 {strides = array<i32>} : memref<32x512xf32, #tpu.memory_space<vmem>>, vector<32x512xf32>,
    %cst_5 = arith.constant 0.000000e+00 : f32
    %4 = vector.broadcast %cst_5 : f32 to vector<8x1xf32>
    %cst_6 = arith.constant 0.000000e+00 : f32
    %5 = vector.broadcast %cst_6 : f32 to vector<8x1xf32>
    %c0_7 = arith.constant 0 : index
    %c0_8 = arith.constant 0 : index
    %6 = vector.load %arg5[%c0_7, %c0_8] : memref<32x512xf32, #tpu.memory_space<vmem>>, vector<8x512xf32>
    %cst_9 = arith.constant dense<0.000000e+00> : vector<8xf32>
    %7 = vector.multi_reduction <add>, %6, %cst_9 [1] : vector<8x512xf32> to vector<8xf32>
    %8 = vector.shape_cast %7 : vector<8xf32> to vector<8x1xf32>
    %9 = arith.addf %4, %8 : vector<8x1xf32>
    %10 = arith.mulf %6, %6 : vector<8x512xf32>
    %cst_10 = arith.constant dense<0.000000e+00> : vector<8xf32>
    %11 = vector.multi_reduction <add>, %10, %cst_10 [1] : vector<8x512xf32> to vector<8xf32>
    %12 = vector.shape_cast %11 : vector<8xf32> to vector<8x1xf32>
    %13 = arith.addf %5, %12 : vector<8x1xf32>
    %c8 = arith.constant 8 : index
    %c0_11 = arith.constant 0 : index
    %14 = vector.load %arg5[%c8, %c0_11] : memref<32x512xf32, #tpu.memory_space<vmem>>, vector<8x512xf32>
    %cst_12 = arith.constant dense<0.000000e+00> : vector<8xf32>
    %15 = vector.multi_reduction <add>, %14, %cst_12 [1] : vector<8x512xf32> to vector<8xf32>
    %16 = vector.shape_cast %15 : vector<8xf32> to vector<8x1xf32>
    %17 = arith.addf %9, %16 : vector<8x1xf32>
    %18 = arith.mulf %14, %14 : vector<8x512xf32>
    %cst_13 = arith.constant dense<0.000000e+00> : vector<8xf32>
    %19 = vector.multi_reduction <add>, %18, %cst_13 [1] : vector<8x512xf32> to vector<8xf32>
    %20 = vector.shape_cast %19 : vector<8xf32> to vector<8x1xf32>
    %21 = arith.addf %13, %20 : vector<8x1xf32>
    %c16 = arith.constant 16 : index
    %c0_14 = arith.constant 0 : index
    %22 = vector.load %arg5[%c16, %c0_14] : memref<32x512xf32, #tpu.memory_space<vmem>>, vector<8x512xf32>
    %cst_15 = arith.constant dense<0.000000e+00> : vector<8xf32>
    %23 = vector.multi_reduction <add>, %22, %cst_15 [1] : vector<8x512xf32> to vector<8xf32>
    %24 = vector.shape_cast %23 : vector<8xf32> to vector<8x1xf32>
    %25 = arith.addf %17, %24 : vector<8x1xf32>
    %26 = arith.mulf %22, %22 : vector<8x512xf32>
    %cst_16 = arith.constant dense<0.000000e+00> : vector<8xf32>
    %27 = vector.multi_reduction <add>, %26, %cst_16 [1] : vector<8x512xf32> to vector<8xf32>
    %28 = vector.shape_cast %27 : vector<8xf32> to vector<8x1xf32>
    %29 = arith.addf %21, %28 : vector<8x1xf32>
    %c24 = arith.constant 24 : index
    %c0_17 = arith.constant 0 : index
    %30 = vector.load %arg5[%c24, %c0_17] : memref<32x512xf32, #tpu.memory_space<vmem>>, vector<8x512xf32>
    %cst_18 = arith.constant dense<0.000000e+00> : vector<8xf32>
    %31 = vector.multi_reduction <add>, %30, %cst_18 [1] : vector<8x512xf32> to vector<8xf32>
    %32 = vector.shape_cast %31 : vector<8xf32> to vector<8x1xf32>
    %33 = arith.addf %25, %32 : vector<8x1xf32>
    %34 = arith.mulf %30, %30 : vector<8x512xf32>
    %cst_19 = arith.constant dense<0.000000e+00> : vector<8xf32>
    %35 = vector.multi_reduction <add>, %34, %cst_19 [1] : vector<8x512xf32> to vector<8xf32>
    %36 = vector.shape_cast %35 : vector<8xf32> to vector<8x1xf32>
    %37 = arith.addf %29, %36 : vector<8x1xf32>
    %cst_20 = arith.constant 4.8828125E-4 : f32
    %38 = vector.broadcast %cst_20 : f32 to vector<8x1xf32>
    %39 = arith.mulf %33, %38 : vector<8x1xf32>
    %cst_21 = arith.constant 4.8828125E-4 : f32
    %40 = vector.broadcast %cst_21 : f32 to vector<8x1xf32>
    %41 = arith.mulf %37, %40 : vector<8x1xf32>
    %42 = arith.mulf %39, %39 : vector<8x1xf32>
    %43 = arith.subf %41, %42 : vector<8x1xf32>
    %c0_22 = arith.constant 0 : index
    %c0_23 = arith.constant 0 : index
    %44 = vector.load %arg2[%c0_22, %c0_23] : memref<8x1xf32, #tpu.memory_space<vmem>>, vector<8x1xf32>
    %cst_24 = arith.constant 9.99999974E-6 : f32
    %45 = vector.broadcast %cst_24 : f32 to vector<8x1xf32>
    %46 = arith.addf %43, %45 : vector<8x1xf32>
    %47 = math.rsqrt %46 : vector<8x1xf32>
    %48 = arith.mulf %44, %47 : vector<8x1xf32>
    %c0_25 = arith.constant 0 : index
    %c0_26 = arith.constant 0 : index
    %49 = vector.load %arg3[%c0_25, %c0_26] : memref<8x1xf32, #tpu.memory_space<vmem>>, vector<8x1xf32>
    %50 = arith.mulf %39, %48 : vector<8x1xf32>
    %51 = arith.subf %49, %50 : vector<8x1xf32>
    %c0_27 = arith.constant 0 : index
    %c0_28 = arith.constant 0 : index
    %52 = vector.load %arg5[%c0_27, %c0_28] : memref<32x512xf32, #tpu.memory_space<vmem>>, vector<8x512xf32>
    %53 = vector.broadcast %48 : vector<8x1xf32> to vector<8x512xf32>
    %54 = arith.mulf %52, %53 : vector<8x512xf32>
    %55 = vector.broadcast %51 : vector<8x1xf32> to vector<8x512xf32>
    %56 = arith.addf %54, %55 : vector<8x512xf32>
    %cst_29 = arith.constant 0.000000e+00 : f32
    %57 = vector.broadcast %cst_29 : f32 to vector<8x512xf32>
    %58 = arith.maximumf %56, %57 : vector<8x512xf32>
    %59 = arith.truncf %58 : vector<8x512xf32> to vector<8x512xbf16>
    %c0_30 = arith.constant 0 : index
    %c0_31 = arith.constant 0 : index
    %60 = vector.load %arg4[%c0_30, %c0_31] : memref<32x512xbf16, #tpu.memory_space<vmem>>, vector<8x512xbf16>
    tpu.vector_store %arg4[%c0_30, %c0_31], %59 {strides = array<i32>} : memref<32x512xbf16, #tpu.memory_space<vmem>>, vector<8x512xbf16>,
    %c8_32 = arith.constant 8 : index
    %c0_33 = arith.constant 0 : index
    %61 = vector.load %arg5[%c8_32, %c0_33] : memref<32x512xf32, #tpu.memory_space<vmem>>, vector<8x512xf32>
    %62 = vector.broadcast %48 : vector<8x1xf32> to vector<8x512xf32>
    %63 = arith.mulf %61, %62 : vector<8x512xf32>
    %64 = vector.broadcast %51 : vector<8x1xf32> to vector<8x512xf32>
    %65 = arith.addf %63, %64 : vector<8x512xf32>
    %cst_34 = arith.constant 0.000000e+00 : f32
    %66 = vector.broadcast %cst_34 : f32 to vector<8x512xf32>
    %67 = arith.maximumf %65, %66 : vector<8x512xf32>
    %68 = arith.truncf %67 : vector<8x512xf32> to vector<8x512xbf16>
    %c8_35 = arith.constant 8 : index
    %c0_36 = arith.constant 0 : index
    %69 = vector.load %arg4[%c8_35, %c0_36] : memref<32x512xbf16, #tpu.memory_space<vmem>>, vector<8x512xbf16>
    tpu.vector_store %arg4[%c8_35, %c0_36], %68 {strides = array<i32>} : memref<32x512xbf16, #tpu.memory_space<vmem>>, vector<8x512xbf16>,
    %c16_37 = arith.constant 16 : index
    %c0_38 = arith.constant 0 : index
    %70 = vector.load %arg5[%c16_37, %c0_38] : memref<32x512xf32, #tpu.memory_space<vmem>>, vector<8x512xf32>
    %71 = vector.broadcast %48 : vector<8x1xf32> to vector<8x512xf32>
    %72 = arith.mulf %70, %71 : vector<8x512xf32>
    %73 = vector.broadcast %51 : vector<8x1xf32> to vector<8x512xf32>
    %74 = arith.addf %72, %73 : vector<8x512xf32>
    %cst_39 = arith.constant 0.000000e+00 : f32
    %75 = vector.broadcast %cst_39 : f32 to vector<8x512xf32>
    %76 = arith.maximumf %74, %75 : vector<8x512xf32>
    %77 = arith.truncf %76 : vector<8x512xf32> to vector<8x512xbf16>
    %c16_40 = arith.constant 16 : index
    %c0_41 = arith.constant 0 : index
    %78 = vector.load %arg4[%c16_40, %c0_41] : memref<32x512xbf16, #tpu.memory_space<vmem>>, vector<8x512xbf16>
    tpu.vector_store %arg4[%c16_40, %c0_41], %77 {strides = array<i32>} : memref<32x512xbf16, #tpu.memory_space<vmem>>, vector<8x512xbf16>,
    %c24_42 = arith.constant 24 : index
    %c0_43 = arith.constant 0 : index
    %79 = vector.load %arg5[%c24_42, %c0_43] : memref<32x512xf32, #tpu.memory_space<vmem>>, vector<8x512xf32>
    %80 = vector.broadcast %48 : vector<8x1xf32> to vector<8x512xf32>
    %81 = arith.mulf %79, %80 : vector<8x512xf32>
    %82 = vector.broadcast %51 : vector<8x1xf32> to vector<8x512xf32>
    %83 = arith.addf %81, %82 : vector<8x512xf32>
    %cst_44 = arith.constant 0.000000e+00 : f32
    %84 = vector.broadcast %cst_44 : f32 to vector<8x512xf32>
    %85 = arith.maximumf %83, %84 : vector<8x512xf32>
    %86 = arith.truncf %85 : vector<8x512xf32> to vector<8x512xbf16>
    %c24_45 = arith.constant 24 : index
    %c0_46 = arith.constant 0 : index
    %87 = vector.load %arg4[%c24_45, %c0_46] : memref<32x512xbf16, #tpu.memory_space<vmem>>, vector<8x512xbf16>
    tpu.vector_store %arg4[%c24_45, %c0_46], %86 {strides = array<i32>} : memref<32x512xbf16, #tpu.memory_space<vmem>>, vector<8x512xbf16>,
    return
  }
}

module attributes {stable_mosaic.version = 11 : i64} {
  func.func @_mm_tanh_kernel(%arg0: i32, %arg1: memref<72x1024xbf16, #tpu.memory_space<vmem>>, %arg2: memref<16x72xbf16, #tpu.memory_space<vmem>>, %arg3: memref<16x1024xf32, #tpu.memory_space<vmem>>) attributes {dimension_semantics = [#tpu.dimension_semantics<parallel>], iteration_bounds = array<i64: 2>, scalar_prefetch = 0 : i64, scratch_operands = 0 : i64, tpu.core_type = #tpu.core_type<tc>, window_params = [{transform_indices = @transform_0, window_bounds = array<i64: 72, 1024>}, {pipeline_mode = #tpu.pipeline_mode<synchronous>, transform_indices = @transform_1, window_bounds = array<i64: 16, 72>}, {transform_indices = @transform_2, window_bounds = array<i64: 16, 1024>}]} {
    %c0 = arith.constant 0 : index
    %c0_0 = arith.constant 0 : index
    %0 = vector.load %arg2[%c0, %c0_0] : memref<16x72xbf16, #tpu.memory_space<vmem>>, vector<16x72xbf16>
    %c0_1 = arith.constant 0 : index
    %c0_2 = arith.constant 0 : index
    %1 = vector.load %arg1[%c0_1, %c0_2] : memref<72x1024xbf16, #tpu.memory_space<vmem>>, vector<72x1024xbf16>
    %cst = arith.constant dense<0.000000e+00> : vector<16x1024xf32>
    %2 = tpu.matmul %0, %1, %cst {dimension_numbers = #tpu.dot_dimension_numbers<[1], [0], [0], [1], [0, 0, 1, 1], [], []>} : vector<16x72xbf16>, vector<72x1024xbf16>, vector<16x1024xf32> -> vector<16x1024xf32>
    %3 = math.tanh %2 : vector<16x1024xf32>
    %c0_3 = arith.constant 0 : index
    %c0_4 = arith.constant 0 : index
    %4 = vector.load %arg3[%c0_3, %c0_4] : memref<16x1024xf32, #tpu.memory_space<vmem>>, vector<16x1024xf32>
    tpu.vector_store %arg3[%c0_3, %c0_4], %3 {strides = array<i32>} : memref<16x1024xf32, #tpu.memory_space<vmem>>, vector<16x1024xf32>,
    return
  }
  func.func @transform_0(%arg0: i32) -> (i32, i32) {
    %c0_i32 = arith.constant 0 : i32
    %c0_i32_0 = arith.constant 0 : i32
    return %c0_i32, %arg0 : i32, i32
  }
  func.func @transform_1(%arg0: i32) -> (i32, i32) {
    %c0_i32 = arith.constant 0 : i32
    %c0_i32_0 = arith.constant 0 : i32
    %c0_i32_1 = arith.constant 0 : i32
    return %c0_i32, %c0_i32_0 : i32, i32
  }
  func.func @transform_2(%arg0: i32) -> (i32, i32) {
    %c0_i32 = arith.constant 0 : i32
    %c0_i32_0 = arith.constant 0 : i32
    return %c0_i32, %arg0 : i32, i32
  }
}

</mosaic_0001>

<bundles_post_ra>
// kernel: generator_forward.6
= control target key start
LH: loop header
LB: loop body
LE: loop exit
PB: predicated region body
PF: predicated region fallthrough
CT: control target
= control target key end

     0   :  { %vm554_vm0 = vcmask 523264   ;;  %s2241_s0 = inlined_call_operand.vmem [shape: bf16[576,128], index: 0, kind: input, shape index: {}]   ;;  %s2242_s1 = inlined_call_operand.vmem [shape: bf16[128,576], index: 1, kind: input, shape index: {}]   ;;  %s2243_s2 = inlined_call_operand.vmem [shape: f32[32,1], index: 2, kind: input, shape index: {}]   ;;  %s2244_s3 = inlined_call_operand.vmem [shape: f32[32,1], index: 3, kind: input, shape index: {}]   ;;  %s2245_s4 = inlined_call_operand.vmem [shape: bf16[128,128], index: 4, kind: output, shape index: {}]  }
   0x1   :  { %v1543_v0 = vld [vmem:[%s2241_s0 + $0x38] sm:$0xff]  ;;  %v1542_v1 = vld [vmem:[%s2241_s0 + $0x30] sm:$0xff]  ;;  %v1541_v2 = vld [vmem:[%s2241_s0 + $0x28] sm:$0xff] }
   0x2   :  { %1619 = vmatpush.bf16.msra.mxu1 %v1543_v0  ;;  %1620 = vmatpush.bf16.msra.mxu2 %v1543_v0  ;;  %v1540_v3 = vld [vmem:[%s2241_s0 + $0x20] sm:$0xff]  ;;  %v1539_v4 = vld [vmem:[%s2241_s0 + $0x18] sm:$0xff]  ;;  %v1538_v5 = vld [vmem:[%s2241_s0 + $0x10] sm:$0xff] }
   0x3   :  { %1621 = vmatpush.bf16.msra.mxu3 %v1543_v0  ;;  %579 = vmatpush.bf16.msra.mxu0 %v1543_v0  ;;  %v1537_v6 = vld [vmem:[%s2241_s0 + $0x8] sm:$0xff]  ;;  %v1536_v7 = vld [vmem:[%s2241_s0] sm:$0xff]  ;;  %v1226_v8 = vld [vmem:[%s2242_s1 + $0x50] sm:$0xf] }
   0x4   :  { %v1508_v9 = vld [vmem:[%s2242_s1 + $0x60] sm:$0xf0]  ;;  %v1266_v10 = vld [vmem:[%s2242_s1 + $0xa0] sm:$0xf]  ;;  %v1518_v11 = vld [vmem:[%s2242_s1 + $0xb0] sm:$0xf0] }
   0x5   :  { %v1306_v12 = vld [vmem:[%s2242_s1 + $0xf0] sm:$0xf]  ;;  %v1528_v13 = vld [vmem:[%s2242_s1 + $0x100] sm:$0xf0]  ;;  %v1186_v14 = vld [vmem:[%s2242_s1] sm:$0xf]  ;;  %v1227_v18 = vor.u32 %v1508_v9, %v1226_v8  ;;  %v1267_v19 = vor.u32 %v1518_v11, %v1266_v10 }
   0x6   :  { %1622 = vmatpush.bf16.msra.mxu1 %v1542_v1  ;;  %1623 = vmatpush.bf16.msra.mxu2 %v1542_v1  ;;  %v1498_v15 = vld [vmem:[%s2242_s1 + $0x10] sm:$0xf0]  ;;  %v1559_v16 = vld [vmem:[%s2241_s0 + $0xb8] sm:$0xff]  ;;  %v1307_v20 = vor.u32 %v1528_v13, %v1306_v12  ;;  %v1557_v28 = vld [vmem:[%s2241_s0 + $0xa8] sm:$0xff] }
   0x7   :  { %1624 = vmatpush.bf16.msra.mxu3 %v1542_v1  ;;  %580 = vmatpush.bf16.msra.mxu0 %v1542_v1  ;;  %v1551_v17 = vld [vmem:[%s2241_s0 + $0x78] sm:$0xff]  ;;  %v1187_v21 = vor.u32 %v1498_v15, %v1186_v14  ;;  %v1558_v24 = vld [vmem:[%s2241_s0 + $0xb0] sm:$0xff]  ;;  %v1549_v29 = vld [vmem:[%s2241_s0 + $0x68] sm:$0xff] }
   0x8   :  { %v1567_v22 = vld [vmem:[%s2241_s0 + $0xf8] sm:$0xff]  ;;  %v1550_v25 = vld [vmem:[%s2241_s0 + $0x70] sm:$0xff]  ;;  %v1565_v30 = vld [vmem:[%s2241_s0 + $0xe8] sm:$0xff] }
   0x9   :  { %v1571_v23 = vld [vmem:[%s2241_s0 + $0x118] sm:$0xff]  ;;  %v1566_v26 = vld [vmem:[%s2241_s0 + $0xf0] sm:$0xff]  ;;  %v1569_v31 = vld [vmem:[%s2241_s0 + $0x108] sm:$0xff] }
   0xa   :  { %1625 = vmatpush.bf16.msra.mxu1 %v1541_v2  ;;  %1626 = vmatpush.bf16.msra.mxu2 %v1541_v2  ;;  %v1570_v27 = vld [vmem:[%s2241_s0 + $0x110] sm:$0xff]  ;;  %v1556_v32 = vld [vmem:[%s2241_s0 + $0xa0] sm:$0xff]  ;;  %v1246_v35 = vld [vmem:[%s2242_s1 + $0x78] sm:$0xf] }
   0xb   :  { %1627 = vmatpush.bf16.msra.mxu3 %v1541_v2  ;;  %581 = vmatpush.bf16.msra.mxu0 %v1541_v2  ;;  %v1548_v33 = vld [vmem:[%s2241_s0 + $0x60] sm:$0xff]  ;;  %v1513_v36 = vld [vmem:[%s2242_s1 + $0x88] sm:$0xf0]  ;;  %v1286_v37 = vld [vmem:[%s2242_s1 + $0xc8] sm:$0xf] }
   0xc   :  { %v1564_v34 = vld [vmem:[%s2241_s0 + $0xe0] sm:$0xff]  ;;  %v1523_v38 = vld [vmem:[%s2242_s1 + $0xd8] sm:$0xf0]  ;;  %v1326_v39 = vld [vmem:[%s2242_s1 + $0x118] sm:$0xf]  ;;  %v1247_v46 = vor.u32 %v1513_v36, %v1246_v35 }
   0xd   :  { %v1533_v40 = vld [vmem:[%s2242_s1 + $0x128] sm:$0xf0]  ;;  %v1206_v41 = vld [vmem:[%s2242_s1 + $0x28] sm:$0xf]  ;;  %v1503_v42 = vld [vmem:[%s2242_s1 + $0x38] sm:$0xf0]  ;;  %v1287_v47 = vor.u32 %v1523_v38, %v1286_v37 }
   0xe   :  { %1628 = vmatpush.bf16.msra.mxu1 %v1540_v3  ;;  %1629 = vmatpush.bf16.msra.mxu2 %v1540_v3  ;;  %v1568_v43 = vld [vmem:[%s2241_s0 + $0x100] sm:$0xff]  ;;  %v1555_v44 = vld [vmem:[%s2241_s0 + $0x98] sm:$0xff]  ;;  %v1327_v48 = vor.u32 %v1533_v40, %v1326_v39  ;;  %v1207_v49 = vor.u32 %v1503_v42, %v1206_v41  ;;  %v1554_v51 = vld [vmem:[%s2241_s0 + $0x90] sm:$0xff] }
   0xf   :  { %1630 = vmatpush.bf16.msra.mxu3 %v1540_v3  ;;  %582 = vmatpush.bf16.msra.mxu0 %v1540_v3  ;;  %v1547_v45 = vld [vmem:[%s2241_s0 + $0x58] sm:$0xff]  ;;  %v1546_v52 = vld [vmem:[%s2241_s0 + $0x50] sm:$0xff]  ;;  %v1553_v54 = vld [vmem:[%s2241_s0 + $0x88] sm:$0xff] }
  0x10   :  { %v1563_v50 = vld [vmem:[%s2241_s0 + $0xd8] sm:$0xff]  ;;  %v1562_v53 = vld [vmem:[%s2241_s0 + $0xd0] sm:$0xff]  ;;  %v1545_v55 = vld [vmem:[%s2241_s0 + $0x48] sm:$0xff] }
  0x11   :  { %v1561_v56 = vld [vmem:[%s2241_s0 + $0xc8] sm:$0xff]  ;;  %v1552_v57 = vld [vmem:[%s2241_s0 + $0x80] sm:$0xff]  ;;  %v1188_v61 = vld [vmem:[%s2242_s1 + $0x14] sm:$0xf0] }
  0x12   :  { %1631 = vmatpush.bf16.msra.mxu1 %v1539_v4  ;;  %1632 = vmatpush.bf16.msra.mxu2 %v1539_v4  ;;  %v1544_v58 = vld [vmem:[%s2241_s0 + $0x40] sm:$0xff]  ;;  %v1194_v62 = vld [vmem:[%s2242_s1 + $0x8] sm:$0xf]  ;;  %v1499_v63 = vld [vmem:[%s2242_s1 + $0x18] sm:$0xf0] }
  0x13   :  { %1633 = vmatpush.bf16.msra.mxu3 %v1539_v4  ;;  %583 = vmatpush.bf16.msra.mxu0 %v1539_v4  ;;  %v1560_v59 = vld [vmem:[%s2241_s0 + $0xc0] sm:$0xff]  ;;  %v1497_v0 = vld [vmem:[%s2242_s1 + $0xc] sm:$0xf]  ;;  %v1202_v2 = vld [vmem:[%s2242_s1 + $0x10] sm:$0xf] }
  0x14   :  { %v1496_v60 = vld [vmem:[%s2242_s1 + $0x4] sm:$0xf]  ;;  %v1196_v1 = vld [vmem:[%s2242_s1 + $0x1c] sm:$0xf0]  ;;  %v1501_v8 = vld [vmem:[%s2242_s1 + $0x2c] sm:$0xf] }
  0x15   :  { %v1500_v3 = vld [vmem:[%s2242_s1 + $0x20] sm:$0xf0]  ;;  %v1191_v4 = vor.u32 %v1496_v60, %v1188_v61  ;;  %v1208_v9 = vld [vmem:[%s2242_s1 + $0x3c] sm:$0xf0]  ;;  %v1214_v10 = vld [vmem:[%s2242_s1 + $0x30] sm:$0xf] }
  0x16   :  { %1634 = vmatpush.bf16.msra.mxu1 %v1538_v5  ;;  %1635 = vmatpush.bf16.msra.mxu2 %v1538_v5  ;;  %v1504_v11 = vld [vmem:[%s2242_s1 + $0x40] sm:$0xf0]  ;;  %v1502_v12 = vld [vmem:[%s2242_s1 + $0x34] sm:$0xf]  ;;  %v1216_v13 = vld [vmem:[%s2242_s1 + $0x44] sm:$0xf0] }
  0x17   :  { %1636 = vmatpush.bf16.msra.mxu3 %v1538_v5  ;;  %584 = vmatpush.bf16.msra.mxu0 %v1538_v5  ;;  %v1195_v5 = vor.u32 %v1499_v63, %v1194_v62  ;;  %v1222_v14 = vld [vmem:[%s2242_s1 + $0x38] sm:$0xf]  ;;  %v1505_v15 = vld [vmem:[%s2242_s1 + $0x48] sm:$0xf0]  ;;  %v1514_v35 = vld [vmem:[%s2242_s1 + $0x90] sm:$0xf0] }
  0x18   :  { %v1512_v36 = vld [vmem:[%s2242_s1 + $0x84] sm:$0xf]  ;;  %v1256_v37 = vld [vmem:[%s2242_s1 + $0x94] sm:$0xf0]  ;;  %v1262_v38 = vld [vmem:[%s2242_s1 + $0x88] sm:$0xf] }
  0x19   :  { %v1515_v39 = vld [vmem:[%s2242_s1 + $0x98] sm:$0xf0]  ;;  %v1259_v42 = vor.u32 %v1512_v36, %v1256_v37  ;;  %v1522_v60 = vld [vmem:[%s2242_s1 + $0xd4] sm:$0xf]  ;;  %v1296_v61 = vld [vmem:[%s2242_s1 + $0xe4] sm:$0xf0] }
  0x1a   :  { %1637 = vmatpush.bf16.msra.mxu1 %v1537_v6  ;;  %1638 = vmatpush.bf16.msra.mxu2 %v1537_v6  ;;  %v1302_v62 = vld [vmem:[%s2242_s1 + $0xd8] sm:$0xf]  ;;  %v1525_v63 = vld [vmem:[%s2242_s1 + $0xe8] sm:$0xf0] }
  0x1b   :  { %1639 = vmatpush.bf16.msra.mxu3 %v1537_v6  ;;  %585 = vmatpush.bf16.msra.mxu0 %v1537_v6  ;;  %v1199_v6 = vor.u32 %v1497_v0, %v1196_v1 }
  0x1e   :  { %1640 = vmatpush.bf16.msra.mxu1 %v1536_v7  ;;  %1641 = vmatpush.bf16.msra.mxu2 %v1536_v7 }
  0x1f   :  { %1642 = vmatpush.bf16.msra.mxu3 %v1536_v7  ;;  %586 = vmatpush.bf16.msra.mxu0 %v1536_v7  ;;  %v1203_v7 = vor.u32 %v1500_v3, %v1202_v2  ;;  %v1299_v2 = vor.u32 %v1522_v60, %v1296_v61  ;;  %v1303_v3 = vor.u32 %v1525_v63, %v1302_v62 }
  0x21   :  { %597 = vmatmul.bf16.vlgmr.msra.gmra.mxu1 %v1227_v18  ;;  %607 = vmatmul.bf16.vlgmr.msra.gmra.mxu2 %v1267_v19  ;;  %v1219_v18 = vor.u32 %v1502_v12, %v1216_v13  ;;  %v1223_v19 = vor.u32 %v1505_v15, %v1222_v14 }
  0x22   :  { %677 = vmatpush.bf16.msrb.mxu2 %v1559_v16  ;;  %628 = vmatpush.bf16.msrb.mxu1 %v1551_v17  ;;  %v1211_v16 = vor.u32 %v1501_v8, %v1208_v9  ;;  %v1215_v17 = vor.u32 %v1504_v11, %v1214_v10  ;;  %v1527_v8 = vld [vmem:[%s2242_s1 + $0xfc] sm:$0xf]  ;;  %v1316_v9 = vld [vmem:[%s2242_s1 + $0x10c] sm:$0xf0]  ;;  %v1322_v10 = vld [vmem:[%s2242_s1 + $0x100] sm:$0xf] }
  0x23   :  { %617 = vmatmul.bf16.vlgmr.msra.gmra.mxu3 %v1307_v20  ;;  %587 = vmatmul.bf16.vlgmr.msra.gmra.mxu0 %v1187_v21  ;;  %v1506_v20 = vld [vmem:[%s2242_s1 + $0x54] sm:$0xf]  ;;  %v1228_v21 = vld [vmem:[%s2242_s1 + $0x64] sm:$0xf0]  ;;  %v1319_v15 = vor.u32 %v1527_v8, %v1316_v9 }
  0x24   :  { %726 = vmatpush.bf16.msrb.mxu3 %v1567_v22  ;;  %779 = vmatpush.bf16.msrb.mxu0 %v1571_v23  ;;  %v1234_v22 = vld [vmem:[%s2242_s1 + $0x58] sm:$0xf]  ;;  %v1509_v23 = vld [vmem:[%s2242_s1 + $0x68] sm:$0xf0]  ;;  %v1530_v11 = vld [vmem:[%s2242_s1 + $0x110] sm:$0xf0] }
  0x26   :  { %678 = vmatpush.bf16.msrb.mxu2 %v1558_v24  ;;  %629 = vmatpush.bf16.msrb.mxu1 %v1550_v25  ;;  %v1507_v24 = vld [vmem:[%s2242_s1 + $0x5c] sm:$0xf]  ;;  %v1236_v25 = vld [vmem:[%s2242_s1 + $0x6c] sm:$0xf0] }
  0x28   :  { %727 = vmatpush.bf16.msrb.mxu3 %v1566_v26  ;;  %780 = vmatpush.bf16.msrb.mxu0 %v1570_v27  ;;  %v1242_v26 = vld [vmem:[%s2242_s1 + $0x60] sm:$0xf]  ;;  %v1510_v27 = vld [vmem:[%s2242_s1 + $0x70] sm:$0xf0] }
  0x2a   :  { %679 = vmatpush.bf16.msrb.mxu2 %v1557_v28  ;;  %630 = vmatpush.bf16.msrb.mxu1 %v1549_v29  ;;  %v1231_v28 = vor.u32 %v1506_v20, %v1228_v21  ;;  %v1235_v29 = vor.u32 %v1509_v23, %v1234_v22  ;;  %v1531_v22 = vld [vmem:[%s2242_s1 + $0x11c] sm:$0xf]  ;;  %v1328_v23 = vld [vmem:[%s2242_s1 + $0x12c] sm:$0xf0] }
  0x2c   :  { %728 = vmatpush.bf16.msrb.mxu3 %v1565_v30  ;;  %781 = vmatpush.bf16.msrb.mxu0 %v1569_v31  ;;  %v1239_v30 = vor.u32 %v1507_v24, %v1236_v25  ;;  %v1243_v31 = vor.u32 %v1510_v27, %v1242_v26  ;;  %v1334_v24 = vld [vmem:[%s2242_s1 + $0x120] sm:$0xf]  ;;  %v1534_v25 = vld [vmem:[%s2242_s1 + $0x130] sm:$0xf0]  ;;  %v1532_v26 = vld [vmem:[%s2242_s1 + $0x124] sm:$0xf] }
  0x2d   :  { %v1336_v27 = vld [vmem:[%s2242_s1 + $0x134] sm:$0xf0] }
  0x2e   :  { %680 = vmatpush.bf16.msrb.mxu2 %v1556_v32  ;;  %631 = vmatpush.bf16.msrb.mxu1 %v1548_v33  ;;  %v1511_v32 = vld [vmem:[%s2242_s1 + $0x7c] sm:$0xf]  ;;  %v1248_v33 = vld [vmem:[%s2242_s1 + $0x8c] sm:$0xf0] }
  0x2f   :  { %v1251_v40 = vor.u32 %v1511_v32, %v1248_v33  ;;  %v1331_v32 = vor.u32 %v1531_v22, %v1328_v23  ;;  %v1335_v33 = vor.u32 %v1534_v25, %v1334_v24 }
  0x30   :  { %729 = vmatpush.bf16.msrb.mxu3 %v1564_v34  ;;  %782 = vmatpush.bf16.msrb.mxu0 %v1568_v43  ;;  %v1254_v34 = vld [vmem:[%s2242_s1 + $0x80] sm:$0xf]  ;;  %v1263_v43 = vor.u32 %v1515_v39, %v1262_v38 }
  0x31   :  { %602 = vmatmul.bf16.gmra.mxu1 %v1247_v46  ;;  %612 = vmatmul.bf16.gmra.mxu2 %v1287_v47  ;;  %v1255_v41 = vor.u32 %v1514_v35, %v1254_v34  ;;  %v1274_v46 = vld [vmem:[%s2242_s1 + $0xa8] sm:$0xf]  ;;  %v1519_v47 = vld [vmem:[%s2242_s1 + $0xb8] sm:$0xf0]  ;;  %v1339_v35 = vor.u32 %v1532_v26, %v1336_v27 }
  0x32   :  { %681 = vmatpush.bf16.msrb.mxu2 %v1555_v44  ;;  %632 = vmatpush.bf16.msrb.mxu1 %v1547_v45  ;;  %v1516_v44 = vld [vmem:[%s2242_s1 + $0xa4] sm:$0xf]  ;;  %v1268_v45 = vld [vmem:[%s2242_s1 + $0xb4] sm:$0xf0] }
  0x33   :  { %622 = vmatmul.bf16.gmra.mxu3 %v1327_v48  ;;  %592 = vmatmul.bf16.gmra.mxu0 %v1207_v49  ;;  %v1517_v48 = vld [vmem:[%s2242_s1 + $0xac] sm:$0xf]  ;;  %v1276_v49 = vld [vmem:[%s2242_s1 + $0xbc] sm:$0xf0] }
  0x34   :  { %730 = vmatpush.bf16.msrb.mxu3 %v1563_v50  ;;  %v1282_v50 = vld [vmem:[%s2242_s1 + $0xb0] sm:$0xf] }
  0x36   :  { %682 = vmatpush.bf16.msrb.mxu2 %v1554_v51  ;;  %633 = vmatpush.bf16.msrb.mxu1 %v1546_v52  ;;  %v1520_v51 = vld [vmem:[%s2242_s1 + $0xc0] sm:$0xf0]  ;;  %v1271_v52 = vor.u32 %v1516_v44, %v1268_v45 }
  0x38   :  { %731 = vmatpush.bf16.msrb.mxu3 %v1562_v53  ;;  %v1275_v53 = vor.u32 %v1519_v47, %v1274_v46 }
  0x3a   :  { %683 = vmatpush.bf16.msrb.mxu2 %v1553_v54  ;;  %634 = vmatpush.bf16.msrb.mxu1 %v1545_v55  ;;  %v1279_v54 = vor.u32 %v1517_v48, %v1276_v49  ;;  %v1283_v55 = vor.u32 %v1520_v51, %v1282_v50 }
  0x3c   :  { %732 = vmatpush.bf16.msrb.mxu3 %v1561_v56  ;;  %v1521_v56 = vld [vmem:[%s2242_s1 + $0xcc] sm:$0xf] }
  0x3e   :  { %684 = vmatpush.bf16.msrb.mxu2 %v1552_v57  ;;  %635 = vmatpush.bf16.msrb.mxu1 %v1544_v58  ;;  %v1288_v57 = vld [vmem:[%s2242_s1 + $0xdc] sm:$0xf0]  ;;  %v1294_v58 = vld [vmem:[%s2242_s1 + $0xd0] sm:$0xf] }
  0x3f   :  { %v1291_v0 = vor.u32 %v1521_v56, %v1288_v57 }
  0x40   :  { %733 = vmatpush.bf16.msrb.mxu3 %v1560_v59  ;;  %v1524_v59 = vld [vmem:[%s2242_s1 + $0xe0] sm:$0xf0] }
  0x41   :  { %636 = vmatmul.bf16.vlgmr.msrb.gmra.mxu1 %v1191_v4  ;;  %685 = vmatmul.bf16.vlgmr.msrb.gmra.mxu2 %v1195_v5  ;;  %v1295_v1 = vor.u32 %v1524_v59, %v1294_v58  ;;  %v1526_v4 = vld [vmem:[%s2242_s1 + $0xf4] sm:$0xf]  ;;  %v1308_v5 = vld [vmem:[%s2242_s1 + $0x104] sm:$0xf0] }
  0x42   :  { %v1311_v12 = vor.u32 %v1526_v4, %v1308_v5 }
  0x43   :  { %734 = vmatmul.bf16.vlgmr.msrb.gmra.mxu3 %v1199_v6  ;;  %1488 = vmatmul.msk.bf16.vlgmr.msrb.gmra.mxu0 %vm554_vm0, %v1203_v7  ;;  %v1314_v6 = vld [vmem:[%s2242_s1 + $0xf8] sm:$0xf]  ;;  %v1529_v7 = vld [vmem:[%s2242_s1 + $0x108] sm:$0xf0] }
  0x44   :  { %v1315_v13 = vor.u32 %v1529_v7, %v1314_v6 }
  0x51   :  { %641 = vmatmul.bf16.gmra.mxu1 %v1211_v16  ;;  %690 = vmatmul.bf16.gmra.mxu2 %v1215_v17  ;;  %v1323_v16 = vor.u32 %v1530_v11, %v1322_v10 }
  0x53   :  { %739 = vmatmul.bf16.gmra.mxu3 %v1219_v18  ;;  %1489 = vmatmul.msk.bf16.gmra.mxu0 %vm554_vm0, %v1223_v19 }
  0x61   :  { %646 = vmatmul.bf16.gmra.mxu1 %v1231_v28  ;;  %695 = vmatmul.bf16.gmra.mxu2 %v1235_v29  ;;  %v1342_v28 = vld [vmem:[%s2242_s1 + $0x128] sm:$0xf]  ;;  %v1535_v29 = vld [vmem:[%s2242_s1 + $0x138] sm:$0xf0] }
  0x62   :  { %v1343_v36 = vor.u32 %v1535_v29, %v1342_v28 }
  0x63   :  { %744 = vmatmul.bf16.gmra.mxu3 %v1239_v30  ;;  %1490 = vmatmul.msk.bf16.gmra.mxu0 %vm554_vm0, %v1243_v31 }
  0x71   :  { %651 = vmatmul.bf16.gmra.mxu1 %v1251_v40  ;;  %700 = vmatmul.bf16.gmra.mxu2 %v1255_v41 }
  0x73   :  { %749 = vmatmul.bf16.gmra.mxu3 %v1259_v42  ;;  %1491 = vmatmul.msk.bf16.gmra.mxu0 %vm554_vm0, %v1263_v43 }
  0x81   :  { %656 = vmatmul.bf16.gmra.mxu1 %v1271_v52  ;;  %705 = vmatmul.bf16.gmra.mxu2 %v1275_v53 }
  0x83   :  { %754 = vmatmul.bf16.gmra.mxu3 %v1279_v54  ;;  %1492 = vmatmul.msk.bf16.gmra.mxu0 %vm554_vm0, %v1283_v55 }
  0x91   :  { %661 = vmatmul.bf16.gmra.mxu1 %v1291_v0  ;;  %710 = vmatmul.bf16.gmra.mxu2 %v1295_v1 }
  0x93   :  { %759 = vmatmul.bf16.gmra.mxu3 %v1299_v2  ;;  %1493 = vmatmul.msk.bf16.gmra.mxu0 %vm554_vm0, %v1303_v3 }
  0x9e   :  { %v2011_v14 = vpop.f32.mrf.mxu1 }
  0xa0   :  { %v588_v17 = vpop.f32.mrf.mxu0 }
  0xa1   :  { %666 = vmatmul.bf16.gmra.mxu1 %v1311_v12  ;;  %715 = vmatmul.bf16.gmra.mxu2 %v1315_v13 }
  0xa3   :  { %764 = vmatmul.bf16.gmra.mxu3 %v1319_v15  ;;  %1494 = vmatmul.msk.bf16.gmra.mxu0 %vm554_vm0, %v1323_v16 }
  0xa4   :  { %v2014_v18 = vpop.f32.mrf.mxu2 }
  0xa6   :  { %v2016_v19 = vpop.f32.mrf.mxu3  ;;  %v2018_v20 = vpop.f32.mrf.mxu1 }
  0xa8   :  { %v590_v21 = vpop.f32.mrf.mxu0 }
  0xac   :  { %v2044_v30 = vpop.f32.mrf.mxu2 }
  0xae   :  { %v2046_v31 = vpop.f32.mrf.mxu3  ;;  %v2048_v34 = vpop.f32.mrf.mxu1 }
  0xb0   :  { %v593_v37 = vpop.f32.mrf.mxu0 }
  0xb1   :  { %671 = vmatmul.bf16.gmra.mxu1 %v1331_v32  ;;  %720 = vmatmul.bf16.gmra.mxu2 %v1335_v33 }
  0xb3   :  { %769 = vmatmul.bf16.gmra.mxu3 %v1339_v35  ;;  %1495 = vmatmul.msk.bf16.gmra.mxu0 %vm554_vm0, %v1343_v36 }
  0xb4   :  { %v2051_v38 = vpop.f32.mrf.mxu2 }
  0xb6   :  { %v2053_v39 = vpop.f32.mrf.mxu3  ;;  %v2055_v40 = vpop.f32.mrf.mxu1 }
  0xb8   :  { %v595_v41 = vpop.f32.mrf.mxu0 }
  0xbc   :  { %v2057_v42 = vpop.f32.mrf.mxu2 }
  0xbe   :  { %v2059_v43 = vpop.f32.mrf.mxu3  ;;  %v637_v44 = vpop.f32.mrf.mxu1 }
  0xbf   :  { %v638_v46 = vadd.f32 %v637_v44, %v588_v17 }
  0xc0   :  { %v784_v45 = vpop.f32.mrf.mxu0 }
  0xc4   :  { %v686_v47 = vpop.f32.mrf.mxu2 }
  0xc5   :  { %v687_v48 = vadd.f32 %v686_v47, %v638_v46 }
  0xc6   :  { %v735_v49 = vpop.f32.mrf.mxu3  ;;  %v639_v50 = vpop.f32.mrf.mxu1 }
  0xc7   :  { %v736_v51 = vadd.f32 %v735_v49, %v687_v48  ;;  %v640_v54 = vadd.f32 %v639_v50, %v590_v21 }
  0xc8   :  { %v786_v52 = vpop.f32.mrf.mxu0 }
  0xc9   :  { %v2061_v53 = vadd.f32 %v784_v45, %v736_v51 }
  0xcb   :  { %844 = vadd.xlane.f32.xlu0 %v2061_v53  ;;  %v856_v55 = vmul.f32 %v2061_v53, %v2061_v53 }
  0xcc   :  { %v688_v56 = vpop.f32.mrf.mxu2 }
  0xcd   :  { %v689_v57 = vadd.f32 %v688_v56, %v640_v54  ;;  %860 = vadd.xlane.f32.xlu2 %v856_v55 }
  0xce   :  { %v737_v58 = vpop.f32.mrf.mxu3  ;;  %v642_v59 = vpop.f32.mrf.mxu1 }
  0xcf   :  { %v738_v60 = vadd.f32 %v737_v58, %v689_v57  ;;  %v643_v63 = vadd.f32 %v642_v59, %v593_v37 }
  0xd0   :  { %v789_v61 = vpop.f32.mrf.mxu0 }
  0xd1   :  { %v2066_v62 = vadd.f32 %v786_v52, %v738_v60 }
  0xd3   :  { %846 = vadd.xlane.f32.xlu0 %v2066_v62  ;;  %v857_v0 = vmul.f32 %v2066_v62, %v2066_v62 }
  0xd4   :  { %v691_v1 = vpop.f32.mrf.mxu2 }
  0xd5   :  { %v692_v2 = vadd.f32 %v691_v1, %v643_v63  ;;  %862 = vadd.xlane.f32.xlu2 %v857_v0 }
  0xd6   :  { %v740_v3 = vpop.f32.mrf.mxu3  ;;  %v644_v4 = vpop.f32.mrf.mxu1 }
  0xd7   :  { %v741_v5 = vadd.f32 %v740_v3, %v692_v2  ;;  %v645_v8 = vadd.f32 %v644_v4, %v595_v41 }
  0xd8   :  { %v791_v6 = vpop.f32.mrf.mxu0 }
  0xd9   :  { %v2071_v7 = vadd.f32 %v789_v61, %v741_v5 }
  0xdb   :  { %848 = vadd.xlane.f32.xlu1 %v2071_v7  ;;  %v858_v9 = vmul.f32 %v2071_v7, %v2071_v7 }
  0xdc   :  { %v693_v10 = vpop.f32.mrf.mxu2 }
  0xdd   :  { %v694_v11 = vadd.f32 %v693_v10, %v645_v8  ;;  %864 = vadd.xlane.f32.xlu0 %v858_v9 }
  0xde   :  { %v742_v12 = vpop.f32.mrf.mxu3  ;;  %v647_v13 = vpop.f32.mrf.mxu1 }
  0xdf   :  { %v743_v15 = vadd.f32 %v742_v12, %v694_v11  ;;  %v648_v21 = vadd.f32 %v647_v13, %v2011_v14 }
  0xe0   :  { %v794_v16 = vpop.f32.mrf.mxu0 }
  0xe1   :  { %v2076_v17 = vadd.f32 %v791_v6, %v743_v15 }
  0xe3   :  { %850 = vadd.xlane.f32.xlu1 %v2076_v17  ;;  %v859_v29 = vmul.f32 %v2076_v17, %v2076_v17 }
  0xe4   :  { %v696_v22 = vpop.f32.mrf.mxu2 }
  0xe5   :  { %v697_v23 = vadd.f32 %v696_v22, %v648_v21 }
  0xe6   :  { %v745_v24 = vpop.f32.mrf.mxu3  ;;  %v649_v25 = vpop.f32.mrf.mxu1 }
  0xe7   :  { %v746_v26 = vadd.f32 %v745_v24, %v697_v23  ;;  %v650_v32 = vadd.f32 %v649_v25, %v2018_v20 }
  0xe8   :  { %v796_v27 = vpop.f32.mrf.mxu0 }
  0xe9   :  { %v2080_v28 = vadd.f32 %v794_v16, %v746_v26 }
  0xeb   :  { %876 = vadd.xlane.f32.xlu2 %v2080_v28  ;;  %866 = vadd.xlane.f32.xlu1 %v859_v29  ;;  %v888_v14 = vmul.f32 %v2080_v28, %v2080_v28 }
  0xec   :  { %v698_v33 = vpop.f32.mrf.mxu2 }
  0xed   :  { %v699_v35 = vadd.f32 %v698_v33, %v650_v32  ;;  %892 = vadd.xlane.f32.xlu0 %v888_v14 }
  0xee   :  { %v747_v36 = vpop.f32.mrf.mxu3  ;;  %v652_v37 = vpop.f32.mrf.mxu1 }
  0xef   :  { %v748_v41 = vadd.f32 %v747_v36, %v699_v35  ;;  %v653_v46 = vadd.f32 %v652_v37, %v2048_v34 }
  0xf0   :  { %v799_v44 = vpop.f32.mrf.mxu0 }
  0xf1   :  { %v2088_v45 = vadd.f32 %v796_v27, %v748_v41 }
  0xf3   :  { %v889_v20 = vmul.f32 %v2088_v45, %v2088_v45 }
  0xf4   :  { %v701_v47 = vpop.f32.mrf.mxu2 }
  0xf5   :  { %v702_v48 = vadd.f32 %v701_v47, %v653_v46  ;;  %878 = vadd.xlane.f32.xlu0 %v2088_v45  ;;  %894 = vadd.xlane.f32.xlu1 %v889_v20 }
  0xf6   :  { %v750_v49 = vpop.f32.mrf.mxu3  ;;  %v654_v50 = vpop.f32.mrf.mxu1 }
  0xf7   :  { %v751_v51 = vadd.f32 %v750_v49, %v702_v48  ;;  %v655_v55 = vadd.f32 %v654_v50, %v2055_v40 }
  0xf8   :  { %v801_v52 = vpop.f32.mrf.mxu0 }
  0xf9   :  { %v2094_v54 = vadd.f32 %v799_v44, %v751_v51 }
  0xfb   :  { %v890_v56 = vmul.f32 %v2094_v54, %v2094_v54 }
  0xfc   :  { %v703_v34 = vpop.f32.mrf.mxu2 }
  0xfd   :  { %v704_v57 = vadd.f32 %v703_v34, %v655_v55  ;;  %896 = vadd.xlane.f32.xlu2 %v890_v56  ;;  %880 = vadd.xlane.f32.xlu1 %v2094_v54 }
  0xfe   :  { %v752_v58 = vpop.f32.mrf.mxu3  ;;  %v657_v59 = vpop.f32.mrf.mxu1 }
  0xff   :  { %v753_v60 = vadd.f32 %v752_v58, %v704_v57  ;;  %v658_v0 = vadd.f32 %v657_v59, %v2014_v18 }
 0x100   :  { %v804_v61 = vpop.f32.mrf.mxu0 }
 0x101   :  { %v2100_v63 = vadd.f32 %v801_v52, %v753_v60 }
 0x103   :  { %v891_v1 = vmul.f32 %v2100_v63, %v2100_v63 }
 0x104   :  { %v706_v40 = vpop.f32.mrf.mxu2 }
 0x105   :  { %v707_v2 = vadd.f32 %v706_v40, %v658_v0  ;;  %898 = vadd.xlane.f32.xlu0 %v891_v1  ;;  %882 = vadd.xlane.f32.xlu2 %v2100_v63 }
 0x106   :  { %v755_v3 = vpop.f32.mrf.mxu3  ;;  %v659_v4 = vpop.f32.mrf.mxu1 }
 0x107   :  { %v756_v5 = vadd.f32 %v755_v3, %v707_v2  ;;  %v660_v9 = vadd.f32 %v659_v4, %v2044_v30 }
 0x108   :  { %v806_v6 = vpop.f32.mrf.mxu0 }
 0x109   :  { %v2106_v8 = vadd.f32 %v804_v61, %v756_v5 }
 0x10b   :  { %908 = vadd.xlane.f32.xlu1 %v2106_v8  ;;  %v920_v18 = vmul.f32 %v2106_v8, %v2106_v8 }
 0x10c   :  { %v708_v10 = vpop.f32.mrf.mxu2 }
 0x10d   :  { %v709_v11 = vadd.f32 %v708_v10, %v660_v9  ;;  %924 = vadd.xlane.f32.xlu2 %v920_v18 }
 0x10e   :  { %v757_v12 = vpop.f32.mrf.mxu3  ;;  %v662_v13 = vpop.f32.mrf.mxu1 }
 0x10f   :  { %v758_v15 = vadd.f32 %v757_v12, %v709_v11  ;;  %v663_v22 = vadd.f32 %v662_v13, %v2051_v38 }
 0x110   :  { %v809_v16 = vpop.f32.mrf.mxu0 }
 0x111   :  { %v2112_v21 = vadd.f32 %v806_v6, %v758_v15 }
 0x113   :  { %v921_v23 = vmul.f32 %v2112_v21, %v2112_v21 }
 0x114   :  { %v711_v30 = vpop.f32.mrf.mxu2 }
 0x115   :  { %v712_v24 = vadd.f32 %v711_v30, %v663_v22  ;;  %926 = vadd.xlane.f32.xlu0 %v921_v23  ;;  %910 = vadd.xlane.f32.xlu2 %v2112_v21 }
 0x116   :  { %v760_v25 = vpop.f32.mrf.mxu3  ;;  %v664_v26 = vpop.f32.mrf.mxu1 }
 0x117   :  { %v761_v27 = vadd.f32 %v760_v25, %v712_v24  ;;  %v665_v14 = vadd.f32 %v664_v26, %v2057_v42 }
 0x118   :  { %v811_v29 = vpop.f32.mrf.mxu0 }
 0x119   :  { %v2118_v32 = vadd.f32 %v809_v16, %v761_v27 }
 0x11b   :  { %v922_v33 = vmul.f32 %v2118_v32, %v2118_v32 }
 0x11c   :  { %v713_v38 = vpop.f32.mrf.mxu2 }
 0x11d   :  { %v714_v35 = vadd.f32 %v713_v38, %v665_v14  ;;  %912 = vadd.xlane.f32.xlu0 %v2118_v32  ;;  %928 = vadd.xlane.f32.xlu1 %v922_v33 }
 0x11e   :  { %v762_v36 = vpop.f32.mrf.mxu3  ;;  %v667_v37 = vpop.f32.mrf.mxu1 }
 0x11f   :  { %v763_v41 = vadd.f32 %v762_v36, %v714_v35  ;;  %v668_v20 = vadd.f32 %v667_v37, %v2016_v19 }
 0x120   :  { %v814_v46 = vpop.f32.mrf.mxu0 }
 0x121   :  { %v2124_v44 = vadd.f32 %v811_v29, %v763_v41 }
 0x123   :  { %v923_v47 = vmul.f32 %v2124_v44, %v2124_v44 }
 0x124   :  { %v716_v42 = vpop.f32.mrf.mxu2 }
 0x125   :  { %v717_v48 = vadd.f32 %v716_v42, %v668_v20  ;;  %930 = vadd.xlane.f32.xlu2 %v923_v47  ;;  %914 = vadd.xlane.f32.xlu1 %v2124_v44 }
 0x126   :  { %v765_v49 = vpop.f32.mrf.mxu3  ;;  %v669_v50 = vpop.f32.mrf.mxu1 }
 0x127   :  { %v766_v51 = vadd.f32 %v765_v49, %v717_v48  ;;  %v670_v55 = vadd.f32 %v669_v50, %v2046_v31 }
 0x128   :  { %v816_v56 = vpop.f32.mrf.mxu0 }
 0x129   :  { %v2130_v52 = vadd.f32 %v814_v46, %v766_v51 }
 0x12b   :  { %940 = vadd.xlane.f32.xlu0 %v2130_v52  ;;  %v952_v19 = vmul.f32 %v2130_v52, %v2130_v52 }
 0x12c   :  { %v718_v34 = vpop.f32.mrf.mxu2 }
 0x12d   :  { %v719_v57 = vadd.f32 %v718_v34, %v670_v55  ;;  %956 = vadd.xlane.f32.xlu1 %v952_v19  ;;  %v1655_v19 = vmov 0  }
 0x12e   :  { %v767_v58 = vpop.f32.mrf.mxu3  ;;  %v672_v59 = vpop.f32.mrf.mxu1  ;;  %1644 = vset.pattern.permute.xlu2 %v1655_v19  ;;  %1645 = vset.pattern.permute.xlu0 %v1655_v19 }
 0x12f   :  { %v768_v60 = vadd.f32 %v767_v58, %v719_v57  ;;  %v673_v0 = vadd.f32 %v672_v59, %v2053_v39  ;;  %1646 = vset.pattern.permute.xlu1 %v1655_v19 }
 0x130   :  { %v819_v31 = vpop.f32.mrf.mxu0 }
 0x131   :  { %v2136_v61 = vadd.f32 %v816_v56, %v768_v60 }
 0x133   :  { %v953_v13 = vmul.f32 %v2136_v61, %v2136_v61 }
 0x134   :  { %v721_v1 = vpop.f32.mrf.mxu2 }
 0x135   :  { %v722_v40 = vadd.f32 %v721_v1, %v673_v0  ;;  %942 = vadd.xlane.f32.xlu1 %v2136_v61 }
 0x136   :  { %v770_v2 = vpop.f32.mrf.mxu3  ;;  %v674_v4 = vpop.f32.mrf.mxu1 }
 0x137   :  { %v771_v3 = vadd.f32 %v770_v2, %v722_v40  ;;  %v675_v6 = vadd.f32 %v674_v4, %v2059_v43 }
 0x138   :  { %v821_v12 = vpop.f32.mrf.mxu0 }
 0x139   :  { %v2140_v5 = vadd.f32 %v819_v31, %v771_v3 }
 0x13b   :  { %944 = vadd.xlane.f32.xlu2 %v2140_v5  ;;  %v954_v43 = vmul.f32 %v2140_v5, %v2140_v5 }
 0x13c   :  { %v723_v9 = vpop.f32.mrf.mxu2 }
 0x13d   :  { %v724_v18 = vadd.f32 %v723_v9, %v675_v6 }
 0x13e   :  { %v772_v10 = vpop.f32.mrf.mxu3  ;;  %v845_v16 = vpop.xlane.xlu0 %844 }
 0x13f   :  { %v773_v11 = vadd.f32 %v772_v10, %v724_v18 }
 0x140   :  { %v861_v24 = vpop.xlane.xlu2 %860 }
 0x141   :  { %v2144_v39 = vadd.f32 %v821_v12, %v773_v11 }
 0x143   :  { %946 = vadd.xlane.f32.xlu0 %v2144_v39  ;;  %958 = vadd.xlane.f32.xlu2 %v953_v13  ;;  %v955_v15 = vmul.f32 %v2144_v39, %v2144_v39 }
 0x145   :  { %962 = vadd.xlane.f32.xlu1 %v955_v15 }
 0x146   :  { %v847_v23 = vpop.xlane.xlu0 %846 }
 0x148   :  { %v863_v27 = vpop.xlane.xlu2 %862 }
 0x14b   :  { %960 = vadd.xlane.f32.xlu0 %v954_v43 }
 0x14e   :  { %v849_v22 = vpop.xlane.xlu1 %848 }
 0x150   :  { %v2153_v25 = vpop.xlane.xlu0 %864 }
 0x156   :  { %v851_v30 = vpop.xlane.xlu1 %850 }
 0x15e   :  { %v867_v26 = vpop.xlane.xlu1 %866  ;;  %v877_v33 = vpop.xlane.xlu2 %876 }
 0x15f   :  { %v884_v50 = vadd.f32 %v877_v33, %v845_v16 }
 0x160   :  { %v893_v29 = vpop.xlane.xlu0 %892 }
 0x161   :  { %v900_v51 = vadd.f32 %v893_v29, %v861_v24 }
 0x168   :  { %v895_v14 = vpop.xlane.xlu1 %894  ;;  %v879_v38 = vpop.xlane.xlu0 %878 }
 0x169   :  { %v885_v4 = vadd.f32 %v879_v38, %v847_v23  ;;  %v901_v15 = vadd.f32 %v895_v14, %v863_v27 }
 0x170   :  { %v2155_v35 = vpop.xlane.xlu2 %896  ;;  %v881_v36 = vpop.xlane.xlu1 %880 }
 0x171   :  { %v886_v29 = vadd.f32 %v881_v36, %v849_v22  ;;  %v984_v22 = vld [vmem:[%s2243_s2] sm:$0xff] }
 0x178   :  { %v899_v37 = vpop.xlane.xlu0 %898  ;;  %v883_v46 = vpop.xlane.xlu2 %882 }
 0x179   :  { %v887_v43 = vadd.f32 %v883_v46, %v851_v30  ;;  %v903_v33 = vadd.f32 %v899_v37, %v867_v26 }
 0x17e   :  { %v909_v41 = vpop.xlane.xlu1 %908 }
 0x17f   :  { %v916_v55 = vadd.f32 %v909_v41, %v884_v50 }
 0x180   :  { %v925_v42 = vpop.xlane.xlu2 %924 }
 0x181   :  { %v932_v57 = vadd.f32 %v925_v42, %v900_v51 }
 0x188   :  { %v927_v20 = vpop.xlane.xlu0 %926  ;;  %v911_v56 = vpop.xlane.xlu2 %910 }
 0x189   :  { %v917_v9 = vadd.f32 %v911_v56, %v885_v4  ;;  %v933_v41 = vadd.f32 %v927_v20, %v901_v15  ;;  %v902_v20 = vadd.f32 %v2155_v35, %v2153_v25  ;;  %v1036_v25 = vld [vmem:[%s2244_s3] sm:$0xff] }
 0x190   :  { %v2157_v47 = vpop.xlane.xlu1 %928  ;;  %v913_v48 = vpop.xlane.xlu0 %912 }
 0x191   :  { %v918_v23 = vadd.f32 %v913_v48, %v886_v29 }
 0x198   :  { %v915_v49 = vpop.xlane.xlu1 %914  ;;  %v931_v31 = vpop.xlane.xlu2 %930 }
 0x199   :  { %v919_v42 = vadd.f32 %v915_v49, %v887_v43  ;;  %v935_v38 = vadd.f32 %v931_v31, %v903_v33 }
 0x19e   :  { %v941_v34 = vpop.xlane.xlu0 %940 }
 0x19f   :  { %v948_v58 = vadd.f32 %v941_v34, %v916_v55 }
 0x1a0   :  { %v957_v59 = vpop.xlane.xlu1 %956 }
 0x1a1   :  { %v968_v60 = vmul.f32 0.0078125, %v948_v58  ;;  %v964_v0 = vadd.f32 %v957_v59, %v932_v57  ;;  %v934_v59 = vadd.f32 %v2157_v47, %v902_v20 }
 0x1a3   :  { %v976_v1 = vmul.f32 %v968_v60, %v968_v60  ;;  %v972_v40 = vmul.f32 0.0078125, %v964_v0 }
 0x1a5   :  { %v980_v2 = vsub.f32 %v972_v40, %v976_v1 }
 0x1a7   :  { %v988_v3 = vadd.f32 1e-05, %v980_v2 }
 0x1a8   :  { %v943_v6 = vpop.xlane.xlu1 %942 }
 0x1a9   :  { %1647 = vrsqrt.f32 %v988_v3  ;;  %v949_v12 = vadd.f32 %v943_v6, %v917_v9  ;;  %vm998_vm2 = vweird.f32 %v988_v3 }
 0x1ab   :  { %v2159_v24 = vmul.f32 0.0078125, %v949_v12 }
 0x1ad   :  { %v977_v27 = vmul.f32 %v2159_v24, %v2159_v24 }
 0x1ae   :  { %v945_v18 = vpop.xlane.xlu2 %944 }
 0x1af   :  { %v1648_v10 = vpop.eup %1647  ;;  %v950_v14 = vadd.f32 %v945_v18, %v918_v23 }
 0x1b0   :  { %v993_v11 = vmul.f32 %v1648_v10, %v988_v3  ;;  %vm999_vm1 = vweird.f32 %v1648_v10 }
 0x1b1   :  { %vm1000_vm3 = vmor %vm998_vm2, %vm999_vm1  ;;  %v2173_v0 = vmul.f32 0.0078125, %v950_v14 }
 0x1b2   :  { %v994_v13 = vmul.f32 %v1648_v10, %v993_v11 }
 0x1b3   :  { %v978_v35 = vmul.f32 %v2173_v0, %v2173_v0 }
 0x1b4   :  { %v995_v16 = vmul.f32 0.5, %v994_v13 }
 0x1b6   :  { %v996_v50 = vsub.f32 1.5, %v995_v16  ;;  %v947_v51 = vpop.xlane.xlu0 %946  ;;  %v959_v55 = vpop.xlane.xlu2 %958 }
 0x1b7   :  { %v951_v19 = vadd.f32 %v947_v51, %v919_v42  ;;  %v965_v56 = vadd.f32 %v959_v55, %v933_v41 }
 0x1b8   :  { %v963_v30 = vpop.xlane.xlu1 %962  ;;  %v997_v26 = vmul.f32 %v1648_v10, %v996_v50  ;;  %v985_v50 = vld [vmem:[%s2243_s2 + $0x8] sm:$0xff] }
 0x1b9   :  { %v2166_v36 = vmul.f32 0.0078125, %v951_v19  ;;  %v973_v37 = vmul.f32 0.0078125, %v965_v56  ;;  %v967_v46 = vadd.f32 %v963_v30, %v935_v38  ;;  %v987_v38 = vld [vmem:[%s2243_s2 + $0x18] sm:$0xff] }
 0x1ba   :  { %v1001_v48 = vsel %vm1000_vm3, %v1648_v10, %v997_v26 }
 0x1bb   :  { %v979_v49 = vmul.f32 %v2166_v36, %v2166_v36  ;;  %v981_v34 = vsub.f32 %v973_v37, %v977_v27  ;;  %v975_v57 = vmul.f32 0.0078125, %v967_v46  ;;  %v1032_v58 = vmul.f32 %v1001_v48, %v984_v22  ;;  %v1037_v22 = vld [vmem:[%s2244_s3 + $0x8] sm:$0xff]  ;;  %v986_v48 = vld [vmem:[%s2243_s2 + $0x10] sm:$0xff] }
 0x1bd   :  { %v989_v1 = vadd.f32 1e-05, %v981_v34  ;;  %v983_v40 = vsub.f32 %v975_v57, %v979_v49  ;;  %1050 = vperm.xlu2 %1644, %v1032_v58   ;;  %v1040_v4 = vmul.f32 %v1032_v58, %v968_v60 }
 0x1be   :  { %v961_v2 = vpop.xlane.xlu0 %960 }
 0x1bf   :  { %1649 = vrsqrt.f32 %v989_v1  ;;  %v991_v31 = vadd.f32 1e-05, %v983_v40  ;;  %v966_v3 = vadd.f32 %v961_v2, %v934_v59  ;;  %v1044_v9 = vsub.f32 %v1036_v25, %v1040_v4 }
 0x1c0   :  { %vm1008_vm5 = vweird.f32 %v989_v1 }
 0x1c1   :  { %1651 = vrsqrt.f32 %v991_v31  ;;  %v974_v6 = vmul.f32 0.0078125, %v966_v3  ;;  %vm1028_vm8 = vweird.f32 %v991_v31 }
 0x1c3   :  { %v982_v47 = vsub.f32 %v974_v6, %v978_v35 }
 0x1c5   :  { %v1650_v18 = vpop.eup %1649  ;;  %v990_v10 = vadd.f32 1e-05, %v982_v47  ;;  %1074 = vperm.xlu2 %1644, %v1044_v9  }
 0x1c6   :  { %v1003_v11 = vmul.f32 %v1650_v18, %v989_v1  ;;  %vm1009_vm4 = vweird.f32 %v1650_v18 }
 0x1c7   :  { %v1652_v12 = vpop.eup %1651  ;;  %1653 = vrsqrt.f32 %v990_v10  ;;  %vm1010_vm7 = vmor %vm1008_vm5, %vm1009_vm4  ;;  %vm1018_vm11 = vweird.f32 %v990_v10 }
 0x1c8   :  { %v1004_v13 = vmul.f32 %v1650_v18, %v1003_v11  ;;  %v1023_v15 = vmul.f32 %v1652_v12, %v991_v31  ;;  %vm1029_vm6 = vweird.f32 %v1652_v12 }
 0x1c9   :  { %vm1030_vm9 = vmor %vm1028_vm8, %vm1029_vm6 }
 0x1ca   :  { %v1005_v60 = vmul.f32 0.5, %v1004_v13  ;;  %v1024_v43 = vmul.f32 %v1652_v12, %v1023_v15 }
 0x1cc   :  { %v1006_v16 = vsub.f32 1.5, %v1005_v60  ;;  %v1025_v29 = vmul.f32 0.5, %v1024_v43 }
 0x1cd   :  { %v1654_v33 = vpop.eup %1653 }
 0x1ce   :  { %v1026_v41 = vsub.f32 1.5, %v1025_v29  ;;  %v1013_v42 = vmul.f32 %v1654_v33, %v990_v10  ;;  %v1007_v51 = vmul.f32 %v1650_v18, %v1006_v16  ;;  %vm1019_vm10 = vweird.f32 %v1654_v33 }
 0x1cf   :  { %vm1020_vm12 = vmor %vm1018_vm11, %vm1019_vm10 }
 0x1d0   :  { %v1014_v55 = vmul.f32 %v1654_v33, %v1013_v42  ;;  %v1011_v23 = vsel %vm1010_vm7, %v1650_v18, %v1007_v51  ;;  %v1027_v19 = vmul.f32 %v1652_v12, %v1026_v41 }
 0x1d1   :  { %v1033_v56 = vmul.f32 %v1011_v23, %v985_v50 }
 0x1d2   :  { %v1015_v27 = vmul.f32 0.5, %v1014_v55  ;;  %v1031_v30 = vsel %vm1030_vm9, %v1652_v12, %v1027_v19 }
 0x1d3   :  { %1055 = vperm.xlu0 %1645, %v1033_v56   ;;  %v1035_v26 = vmul.f32 %v1031_v30, %v987_v38  ;;  %v1041_v14 = vmul.f32 %v1033_v56, %v2159_v24  ;;  %v1038_v24 = vld [vmem:[%s2244_s3 + $0x10] sm:$0xff] }
 0x1d4   :  { %v1016_v37 = vsub.f32 1.5, %v1015_v27 }
 0x1d5   :  { %1065 = vperm.xlu2 %1644, %v1035_v26   ;;  %v1045_v46 = vsub.f32 %v1037_v22, %v1041_v14  ;;  %v1043_v20 = vmul.f32 %v1035_v26, %v2166_v36  ;;  %v1039_v36 = vld [vmem:[%s2244_s3 + $0x18] sm:$0xff] }
 0x1d6   :  { %v1017_v49 = vmul.f32 %v1654_v33, %v1016_v37 }
 0x1d7   :  { %1079 = vperm.xlu1 %1646, %v1045_v46   ;;  %v1047_v1 = vsub.f32 %v1039_v36, %v1043_v20 }
 0x1d8   :  { %v1021_v34 = vsel %vm1020_vm12, %v1654_v33, %v1017_v49 }
 0x1d9   :  { %v1034_v57 = vmul.f32 %v1021_v34, %v986_v48 }
 0x1db   :  { %v1042_v58 = vmul.f32 %v1034_v57, %v2173_v0 }
 0x1dd   :  { %v1046_v59 = vsub.f32 %v1038_v24, %v1042_v58 }
 0x1df   :  { %1060 = vperm.xlu1 %1646, %v1034_v57   ;;  %1084 = vperm.xlu2 %1644, %v1046_v59  }
 0x1e7   :  { %1089 = vperm.xlu1 %1646, %v1047_v1  }
 0x217   :  { %v1051_v40 = vpop.permute.xlu2 %1050 }
 0x218   :  { %v1068_v31 = vmul.f32 %v1051_v40, %v2061_v53  ;;  %v1112_v3 = vmul.f32 %v1051_v40, %v2080_v28  ;;  %v1136_v4 = vmul.f32 %v1051_v40, %v2106_v8  ;;  %v1160_v0 = vmul.f32 %v1051_v40, %v2130_v52 }
 0x21f   :  { %v1075_v2 = vpop.permute.xlu2 %1074 }
 0x220   :  { %v1092_v35 = vadd.f32 %v1075_v2, %v1068_v31  ;;  %v1116_v6 = vadd.f32 %v1112_v3, %v1075_v2  ;;  %v1140_v47 = vadd.f32 %v1136_v4, %v1075_v2  ;;  %v1164_v12 = vadd.f32 %v1160_v0, %v1075_v2 }
 0x222   :  { %v1096_v60 = vmax.f32 %v1092_v35, 0.0  ;;  %v1120_v43 = vmax.f32 %v1116_v6, 0.0  ;;  %v1144_v52 = vmax.f32 %v1140_v47, 0.0 }
 0x22f   :  { %v1066_v42 = vpop.permute.xlu2 %1065 }
 0x230   :  { %v1071_v26 = vmul.f32 %v1066_v42, %v2076_v17  ;;  %v1115_v14 = vmul.f32 %v1066_v42, %v2100_v63  ;;  %v1139_v37 = vmul.f32 %v1066_v42, %v2124_v44  ;;  %v1163_v46 = vmul.f32 %v1066_v42, %v2144_v39 }
 0x239   :  { %v1085_v56 = vpop.permute.xlu2 %1084 }
 0x245   :  { %v1056_v25 = vpop.permute.xlu0 %1055 }
 0x246   :  { %v1069_v9 = vmul.f32 %v1056_v25, %v2066_v62  ;;  %v1113_v18 = vmul.f32 %v1056_v25, %v2088_v45  ;;  %v1137_v10 = vmul.f32 %v1056_v25, %v2112_v21  ;;  %v1161_v11 = vmul.f32 %v1056_v25, %v2136_v61 }
 0x247   :  { %v1168_v62 = vmax.f32 %v1164_v12, 0.0 }
 0x249   :  { %v1080_v53 = vpop.permute.xlu1 %1079 }
 0x24a   :  { %v1093_v13 = vadd.f32 %v1080_v53, %v1069_v9  ;;  %v1117_v28 = vadd.f32 %v1113_v18, %v1080_v53  ;;  %v1141_v15 = vadd.f32 %v1137_v10, %v1080_v53  ;;  %v1165_v8 = vadd.f32 %v1161_v11, %v1080_v53 }
 0x24c   :  { %v1097_v16 = vmax.f32 %v1093_v13, 0.0  ;;  %v1121_v29 = vmax.f32 %v1117_v28, 0.0  ;;  %v1145_v33 = vmax.f32 %v1141_v15, 0.0  ;;  %v1169_v41 = vmax.f32 %v1165_v8, 0.0 }
 0x24e   :  { %v1575_v45 = vpack.c.bf16 %v1097_v16, %v1096_v60  ;;  %v1585_v50 = vpack.c.bf16 %v1121_v29, %v1120_v43  ;;  %v1595_v21 = vpack.c.bf16 %v1145_v33, %v1144_v52  ;;  %v1605_v51 = vpack.c.bf16 %v1169_v41, %v1168_v62 }
 0x250   :  { %1576 = vst [vmem:[%s2245_s4] sm:$0xff] %v1575_v45  }
 0x251   :  { %1613 = vst [vmem:[%s2245_s4 + $0x10] sm:$0xff] %v1585_v50   ;;  %v1061_v61 = vpop.permute.xlu1 %1060 }
 0x252   :  { %1615 = vst [vmem:[%s2245_s4 + $0x20] sm:$0xff] %v1595_v21   ;;  %v1070_v55 = vmul.f32 %v1061_v61, %v2071_v7  ;;  %v1114_v23 = vmul.f32 %v1061_v61, %v2094_v54  ;;  %v1138_v38 = vmul.f32 %v1061_v61, %v2118_v32  ;;  %v1162_v19 = vmul.f32 %v1061_v61, %v2140_v5 }
 0x253   :  { %1617 = vst [vmem:[%s2245_s4 + $0x30] sm:$0xff] %v1605_v51  }
 0x254   :  { %v1094_v27 = vadd.f32 %v1085_v56, %v1070_v55  ;;  %v1118_v30 = vadd.f32 %v1114_v23, %v1085_v56  ;;  %v1142_v22 = vadd.f32 %v1138_v38, %v1085_v56  ;;  %v1166_v20 = vadd.f32 %v1162_v19, %v1085_v56 }
 0x256   :  { %v1098_v34 = vmax.f32 %v1094_v27, 0.0  ;;  %v1122_v5 = vmax.f32 %v1118_v30, 0.0  ;;  %v1146_v57 = vmax.f32 %v1142_v22, 0.0  ;;  %v1170_v17 = vmax.f32 %v1166_v20, 0.0 }
 0x259   :  { %v1090_v7 = vpop.permute.xlu1 %1089 }
 0x25a   :  { %v1095_v48 = vadd.f32 %v1090_v7, %v1071_v26  ;;  %v1119_v54 = vadd.f32 %v1115_v14, %v1090_v7  ;;  %v1143_v49 = vadd.f32 %v1139_v37, %v1090_v7  ;;  %v1167_v32 = vadd.f32 %v1163_v46, %v1090_v7 }
 0x25c   :  { %v1099_v24 = vmax.f32 %v1095_v48, 0.0  ;;  %v1123_v58 = vmax.f32 %v1119_v54, 0.0  ;;  %v1147_v59 = vmax.f32 %v1143_v49, 0.0  ;;  %v1171_v36 = vmax.f32 %v1167_v32, 0.0 }
 0x25e   :  { %v1580_v1 = vpack.c.bf16 %v1099_v24, %v1098_v34  ;;  %v1590_v63 = vpack.c.bf16 %v1123_v58, %v1122_v5  ;;  %v1600_v40 = vpack.c.bf16 %v1147_v59, %v1146_v57  ;;  %v1610_v44 = vpack.c.bf16 %v1171_v36, %v1170_v17 }
 0x260   :  { %1612 = vst [vmem:[%s2245_s4 + $0x8] sm:$0xff] %v1580_v1  }
 0x261   :  { %1614 = vst [vmem:[%s2245_s4 + $0x18] sm:$0xff] %v1590_v63  }
 0x262   :  { %1616 = vst [vmem:[%s2245_s4 + $0x28] sm:$0xff] %v1600_v40  }
 0x263   :  { %1618 = vst [vmem:[%s2245_s4 + $0x38] sm:$0xff] %v1610_v44  }

// kernel: generator_forward.5
= control target key start
LH: loop header
LB: loop body
LE: loop exit
PB: predicated region body
PF: predicated region fallthrough
CT: control target
= control target key end

     0   :  { %vm474_vm0 = vcmask 130048   ;;  %s6464_s0 = inlined_call_operand.vmem [shape: bf16[16,128], index: 0, kind: input, shape index: {}]   ;;  %s6465_s1 = inlined_call_operand.vmem [shape: bf16[1024,16], index: 1, kind: input, shape index: {}]   ;;  %s6466_s2 = inlined_call_operand.vmem [shape: f32[64,1], index: 2, kind: input, shape index: {}]   ;;  %s6467_s3 = inlined_call_operand.vmem [shape: f32[64,1], index: 3, kind: input, shape index: {}]   ;;  %s6468_s4 = inlined_call_operand.vmem [shape: bf16[1024,128], index: 4, kind: output, shape index: {}]  }
   0x1   :  { %v3540_v0 = vld [vmem:[%s6464_s0] sm:$0xff]  ;;  %v3477_v4 = vld [vmem:[%s6465_s1 + $0x8] sm:$0xff]  ;;  %v3478_v7 = vld [vmem:[%s6465_s1 + $0x10] sm:$0xff] }
   0x2   :  { %v3476_v1 = vld [vmem:[%s6465_s1] sm:$0xff]  ;;  %674 = vmatpush.bf16.msra.mxu0 %v3540_v0  ;;  %3924 = vmatpush.bf16.msra.mxu1 %v3540_v0  ;;  %v3493_v5 = vld [vmem:[%s6465_s1 + $0x88] sm:$0xff]  ;;  %v3494_v8 = vld [vmem:[%s6465_s1 + $0x90] sm:$0xff] }
   0x3   :  { %v3492_v2 = vld [vmem:[%s6465_s1 + $0x80] sm:$0xff]  ;;  %3925 = vmatpush.bf16.msra.mxu2 %v3540_v0  ;;  %3926 = vmatpush.bf16.msra.mxu3 %v3540_v0  ;;  %v3509_v6 = vld [vmem:[%s6465_s1 + $0x108] sm:$0xff]  ;;  %v3510_v9 = vld [vmem:[%s6465_s1 + $0x110] sm:$0xff] }
   0x4   :  { %v3508_v3 = vld [vmem:[%s6465_s1 + $0x100] sm:$0xff]  ;;  %v3479_v10 = vld [vmem:[%s6465_s1 + $0x18] sm:$0xff]  ;;  %v3481_v15 = vld [vmem:[%s6465_s1 + $0x28] sm:$0xff] }
   0x5   :  { %3412 = vmatmul.msk.bf16.vlgmr.msra.gmra.mxu0 %vm474_vm0, %v3476_v1  ;;  %3428 = vmatmul.msk.bf16.vlgmr.msra.gmra.mxu1 %vm474_vm0, %v3492_v2  ;;  %v3495_v11 = vld [vmem:[%s6465_s1 + $0x98] sm:$0xff]  ;;  %v3480_v13 = vld [vmem:[%s6465_s1 + $0x20] sm:$0xff]  ;;  %v3497_v16 = vld [vmem:[%s6465_s1 + $0xa8] sm:$0xff] }
   0x6   :  { %3444 = vmatmul.msk.bf16.vlgmr.msra.gmra.mxu2 %vm474_vm0, %v3508_v3  ;;  %v3511_v12 = vld [vmem:[%s6465_s1 + $0x118] sm:$0xff]  ;;  %v3496_v14 = vld [vmem:[%s6465_s1 + $0xa0] sm:$0xff]  ;;  %v3482_v20 = vld [vmem:[%s6465_s1 + $0x30] sm:$0xff] }
   0x7   :  { %v3498_v21 = vld [vmem:[%s6465_s1 + $0xb0] sm:$0xff]  ;;  %v3483_v28 = vld [vmem:[%s6465_s1 + $0x38] sm:$0xff]  ;;  %v3484_v40 = vld [vmem:[%s6465_s1 + $0x40] sm:$0xff] }
   0x8   :  { %v3499_v33 = vld [vmem:[%s6465_s1 + $0xb8] sm:$0xff]  ;;  %v3500_v41 = vld [vmem:[%s6465_s1 + $0xc0] sm:$0xff]  ;;  %v3485_v47 = vld [vmem:[%s6465_s1 + $0x48] sm:$0xff] }
   0x9   :  { %v3501_v51 = vld [vmem:[%s6465_s1 + $0xc8] sm:$0xff]  ;;  %v3486_v58 = vld [vmem:[%s6465_s1 + $0x50] sm:$0xff] }
   0xa   :  { %v3502_v59 = vld [vmem:[%s6465_s1 + $0xd0] sm:$0xff] }
  0x15   :  { %3413 = vmatmul.msk.bf16.gmra.mxu0 %vm474_vm0, %v3477_v4  ;;  %3429 = vmatmul.msk.bf16.gmra.mxu1 %vm474_vm0, %v3493_v5  ;;  %v3487_v5 = vld [vmem:[%s6465_s1 + $0x58] sm:$0xff] }
  0x16   :  { %3445 = vmatmul.msk.bf16.gmra.mxu2 %vm474_vm0, %v3509_v6  ;;  %v3503_v6 = vld [vmem:[%s6465_s1 + $0xd8] sm:$0xff] }
  0x25   :  { %3414 = vmatmul.msk.bf16.gmra.mxu0 %vm474_vm0, %v3478_v7  ;;  %3430 = vmatmul.msk.bf16.gmra.mxu1 %vm474_vm0, %v3494_v8 }
  0x26   :  { %3446 = vmatmul.msk.bf16.gmra.mxu2 %vm474_vm0, %v3510_v9 }
  0x35   :  { %3415 = vmatmul.msk.bf16.gmra.mxu0 %vm474_vm0, %v3479_v10  ;;  %3431 = vmatmul.msk.bf16.gmra.mxu1 %vm474_vm0, %v3495_v11 }
  0x36   :  { %3447 = vmatmul.msk.bf16.gmra.mxu2 %vm474_vm0, %v3511_v12 }
  0x45   :  { %3416 = vmatmul.msk.bf16.gmra.mxu0 %vm474_vm0, %v3480_v13  ;;  %3432 = vmatmul.msk.bf16.gmra.mxu1 %vm474_vm0, %v3496_v14 }
  0x55   :  { %3417 = vmatmul.msk.bf16.gmra.mxu0 %vm474_vm0, %v3481_v15  ;;  %3433 = vmatmul.msk.bf16.gmra.mxu1 %vm474_vm0, %v3497_v16 }
  0x65   :  { %3418 = vmatmul.msk.bf16.gmra.mxu0 %vm474_vm0, %v3482_v20  ;;  %3434 = vmatmul.msk.bf16.gmra.mxu1 %vm474_vm0, %v3498_v21 }
  0x75   :  { %3419 = vmatmul.msk.bf16.gmra.mxu0 %vm474_vm0, %v3483_v28  ;;  %3435 = vmatmul.msk.bf16.gmra.mxu1 %vm474_vm0, %v3499_v33 }
  0x82   :  { %v4040_v17 = vpop.f32.mrf.mxu0  ;;  %v4042_v18 = vpop.f32.mrf.mxu1 }
  0x83   :  { %6605 = vst [vmem:[#allocation3_spill] sm:$0xff] %v4040_v17  ;;  %1388 = vadd.xlane.f32.xlu1 %v4042_v18  ;;  %1132 = vadd.xlane.f32.xlu0 %v4040_v17  ;;  %v1156_v19 = vmul.f32 %v4040_v17, %v4040_v17  ;;  %v1412_v22 = vmul.f32 %v4042_v18, %v4042_v18  ;;  %v3518_v17 = vld [vmem:[%s6465_s1 + $0x150] sm:$0xff] }
  0x84   :  { %6606 = vst [vmem:[#allocation4_spill] sm:$0xff] %v4042_v18 }
  0x85   :  { %1164 = vadd.xlane.f32.xlu2 %v1156_v19  ;;  %3420 = vmatmul.msk.bf16.gmra.mxu0 %vm474_vm0, %v3484_v40 }
  0x86   :  { %3436 = vmatmul.msk.bf16.gmra.mxu1 %vm474_vm0, %v3500_v41 }
  0x89   :  { %v4058_v23 = vpop.f32.mrf.mxu2 }
  0x8a   :  { %6607 = vst [vmem:[#allocation5_spill] sm:$0xff] %v4058_v23  ;;  %v1668_v24 = vmul.f32 %v4058_v23, %v4058_v23  ;;  %v4063_v25 = vpop.f32.mrf.mxu1  ;;  %v4065_v26 = vpop.f32.mrf.mxu0 }
  0x8b   :  { %1420 = vadd.xlane.f32.xlu0 %v1412_v22  ;;  %6608 = vst [vmem:[#allocation6_spill] sm:$0xff] %v4063_v25  ;;  %v1413_v27 = vmul.f32 %v4063_v25, %v4063_v25  ;;  %v1157_v31 = vmul.f32 %v4065_v26, %v4065_v26 }
  0x8c   :  { %1676 = vadd.xlane.f32.xlu1 %v1668_v24  ;;  %6609 = vst [vmem:[#allocation7_spill] sm:$0xff] %v4065_v26 }
  0x8d   :  { %1644 = vadd.xlane.f32.xlu2 %v4058_v23 }
  0x91   :  { %v4075_v29 = vpop.f32.mrf.mxu2 }
  0x92   :  { %6610 = vst [vmem:[#allocation8_spill] sm:$0xff] %v4075_v29  ;;  %v4077_v30 = vpop.f32.mrf.mxu0  ;;  %v1669_v32 = vmul.f32 %v4075_v29, %v4075_v29  ;;  %v4088_v34 = vpop.f32.mrf.mxu1 }
  0x93   :  { %1134 = vadd.xlane.f32.xlu0 %v4065_v26  ;;  %6611 = vst [vmem:[#allocation9_spill] sm:$0xff] %v4077_v30  ;;  %v1158_v35 = vmul.f32 %v4077_v30, %v4077_v30  ;;  %v1414_v36 = vmul.f32 %v4088_v34, %v4088_v34 }
  0x94   :  { %1422 = vadd.xlane.f32.xlu1 %v1413_v27  ;;  %6612 = vst [vmem:[#allocation10_spill] sm:$0xff] %v4088_v34  ;;  %v3488_v27 = vld [vmem:[%s6465_s1 + $0x60] sm:$0xff] }
  0x95   :  { %1390 = vadd.xlane.f32.xlu2 %v4063_v25  ;;  %3421 = vmatmul.msk.bf16.gmra.mxu0 %vm474_vm0, %v3485_v47 }
  0x96   :  { %3437 = vmatmul.msk.bf16.gmra.mxu1 %vm474_vm0, %v3501_v51 }
  0x99   :  { %v4097_v38 = vpop.f32.mrf.mxu2 }
  0x9a   :  { %v4095_v37 = vpop.f32.mrf.mxu0  ;;  %6614 = vst [vmem:[#allocation12_spill] sm:$0xff] %v4097_v38  ;;  %v1670_v42 = vmul.f32 %v4097_v38, %v4097_v38  ;;  %v4117_v44 = vpop.f32.mrf.mxu1 }
  0x9b   :  { %1166 = vadd.xlane.f32.xlu0 %v1157_v31  ;;  %6613 = vst [vmem:[#allocation11_spill] sm:$0xff] %v4095_v37  ;;  %v1159_v39 = vmul.f32 %v4095_v37, %v4095_v37  ;;  %v1415_v45 = vmul.f32 %v4117_v44, %v4117_v44  ;;  %v3512_v31 = vld [vmem:[%s6465_s1 + $0x120] sm:$0xff] }
  0x9c   :  { %1136 = vadd.xlane.f32.xlu1 %v4077_v30  ;;  %6616 = vst [vmem:[#allocation14_spill] sm:$0xff] %v4117_v44  ;;  %3448 = vmatmul.msk.bf16.gmra.mxu2 %vm474_vm0, %v3512_v31  ;;  %v3517_v30 = vld [vmem:[%s6465_s1 + $0x148] sm:$0xff] }
  0x9d   :  { %1678 = vadd.xlane.f32.xlu2 %v1669_v32 }
  0xa1   :  { %v4113_v43 = vpop.f32.mrf.mxu2 }
  0xa2   :  { %6615 = vst [vmem:[#allocation13_spill] sm:$0xff] %v4113_v43  ;;  %v4121_v46 = vpop.f32.mrf.mxu0  ;;  %v1671_v49 = vmul.f32 %v4113_v43, %v4113_v43  ;;  %v4133_v50 = vpop.f32.mrf.mxu1 }
  0xa3   :  { %1646 = vadd.xlane.f32.xlu0 %v4075_v29  ;;  %6617 = vst [vmem:[#allocation15_spill] sm:$0xff] %v4121_v46  ;;  %v1160_v48 = vmul.f32 %v4121_v46, %v4121_v46  ;;  %v1416_v52 = vmul.f32 %v4133_v50, %v4133_v50 }
  0xa4   :  { %1168 = vadd.xlane.f32.xlu1 %v1158_v35  ;;  %6618 = vst [vmem:[#allocation16_spill] sm:$0xff] %v4133_v50  ;;  %v3504_v35 = vld [vmem:[%s6465_s1 + $0xe0] sm:$0xff] }
  0xa5   :  { %1424 = vadd.xlane.f32.xlu2 %v1414_v36  ;;  %3422 = vmatmul.msk.bf16.gmra.mxu0 %vm474_vm0, %v3486_v58 }
  0xa6   :  { %3438 = vmatmul.msk.bf16.gmra.mxu1 %vm474_vm0, %v3502_v59 }
  0xa9   :  { %v4142_v53 = vpop.f32.mrf.mxu2 }
  0xaa   :  { %6619 = vst [vmem:[#allocation17_spill] sm:$0xff] %v4142_v53  ;;  %v4145_v54 = vpop.f32.mrf.mxu0  ;;  %v4148_v55 = vpop.f32.mrf.mxu1  ;;  %v1672_v57 = vmul.f32 %v4142_v53, %v4142_v53 }
  0xab   :  { %1392 = vadd.xlane.f32.xlu0 %v4088_v34  ;;  %6620 = vst [vmem:[#allocation18_spill] sm:$0xff] %v4145_v54  ;;  %v1161_v56 = vmul.f32 %v4145_v54, %v4145_v54  ;;  %v1417_v62 = vmul.f32 %v4148_v55, %v4148_v55 }
  0xac   :  { %1648 = vadd.xlane.f32.xlu1 %v4097_v38  ;;  %6621 = vst [vmem:[#allocation19_spill] sm:$0xff] %v4148_v55 }
  0xad   :  { %1170 = vadd.xlane.f32.xlu2 %v1159_v39 }
  0xb1   :  { %v4165_v61 = vpop.f32.mrf.mxu2 }
  0xb2   :  { %v4162_v60 = vpop.f32.mrf.mxu0  ;;  %6623 = vst [vmem:[#allocation21_spill] sm:$0xff] %v4165_v61  ;;  %v1673_v63 = vmul.f32 %v4165_v61, %v4165_v61  ;;  %v4173_v0 = vpop.f32.mrf.mxu1 }
  0xb3   :  { %1680 = vadd.xlane.f32.xlu0 %v1670_v42  ;;  %6622 = vst [vmem:[#allocation20_spill] sm:$0xff] %v4162_v60  ;;  %v1162_v1 = vmul.f32 %v4162_v60, %v4162_v60  ;;  %v1418_v2 = vmul.f32 %v4173_v0, %v4173_v0 }
  0xb4   :  { %1138 = vadd.xlane.f32.xlu1 %v4095_v37  ;;  %6624 = vst [vmem:[#allocation22_spill] sm:$0xff] %v4173_v0 }
  0xb5   :  { %1650 = vadd.xlane.f32.xlu2 %v4113_v43  ;;  %3423 = vmatmul.msk.bf16.gmra.mxu0 %vm474_vm0, %v3487_v5 }
  0xb6   :  { %3439 = vmatmul.msk.bf16.gmra.mxu1 %vm474_vm0, %v3503_v6 }
  0xb9   :  { %v4182_v4 = vpop.f32.mrf.mxu2 }
  0xba   :  { %v4180_v3 = vpop.f32.mrf.mxu0  ;;  %6626 = vst [vmem:[#allocation24_spill] sm:$0xff] %v4182_v4  ;;  %v1674_v7 = vmul.f32 %v4182_v4, %v4182_v4  ;;  %v4198_v9 = vpop.f32.mrf.mxu1 }
  0xbb   :  { %1426 = vadd.xlane.f32.xlu0 %v1415_v45  ;;  %6625 = vst [vmem:[#allocation23_spill] sm:$0xff] %v4180_v3  ;;  %v1163_v8 = vmul.f32 %v4180_v3, %v4180_v3  ;;  %v1419_v14 = vmul.f32 %v4198_v9, %v4198_v9 }
  0xbc   :  { %1394 = vadd.xlane.f32.xlu1 %v4117_v44  ;;  %6627 = vst [vmem:[#allocation25_spill] sm:$0xff] %v4198_v9 }
  0xbd   :  { %1140 = vadd.xlane.f32.xlu2 %v4121_v46  ;;  %v3507_v46 = vld [vmem:[%s6465_s1 + $0xf8] sm:$0xff] }
  0xc1   :  { %v4207_v13 = vpop.f32.mrf.mxu2 }
  0xc2   :  { %6631 = vst [vmem:[#allocation29_spill] sm:$0xff] %v4207_v13  ;;  %v4212_v15 = vpop.f32.mrf.mxu1  ;;  %v4215_v16 = vpop.f32.mrf.mxu0  ;;  %v1675_v24 = vmul.f32 %v4207_v13, %v4207_v13 }
  0xc3   :  { %1172 = vadd.xlane.f32.xlu0 %v1160_v48  ;;  %6632 = vst [vmem:[#allocation30_spill] sm:$0xff] %v4212_v15  ;;  %v1220_v21 = vmul.f32 %v4215_v16, %v4215_v16  ;;  %v1476_v40 = vmul.f32 %v4212_v15, %v4212_v15 }
  0xc4   :  { %1682 = vadd.xlane.f32.xlu1 %v1671_v49  ;;  %6633 = vst [vmem:[#allocation31_spill] sm:$0xff] %v4215_v16 }
  0xc5   :  { %1396 = vadd.xlane.f32.xlu2 %v4133_v50  ;;  %3424 = vmatmul.msk.bf16.gmra.mxu0 %vm474_vm0, %v3488_v27 }
  0xc6   :  { %3440 = vmatmul.msk.bf16.gmra.mxu1 %vm474_vm0, %v3504_v35 }
  0xca   :  { %v4245_v36 = vpop.f32.mrf.mxu0  ;;  %v4247_v39 = vpop.f32.mrf.mxu1 }
  0xcb   :  { %1652 = vadd.xlane.f32.xlu0 %v4142_v53  ;;  %6640 = vst [vmem:[#allocation38_spill] sm:$0xff] %v4245_v36  ;;  %v1221_v48 = vmul.f32 %v4245_v36, %v4245_v36  ;;  %v1477_v49 = vmul.f32 %v4247_v39, %v4247_v39 }
  0xcc   :  { %1428 = vadd.xlane.f32.xlu1 %v1416_v52  ;;  %6641 = vst [vmem:[#allocation39_spill] sm:$0xff] %v4247_v39 }
  0xcd   :  { %1142 = vadd.xlane.f32.xlu2 %v4145_v54 }
  0xd2   :  { %v4260_v47 = vpop.f32.mrf.mxu0  ;;  %v4267_v51 = vpop.f32.mrf.mxu1 }
  0xd3   :  { %1398 = vadd.xlane.f32.xlu0 %v4148_v55  ;;  %6645 = vst [vmem:[#allocation43_spill] sm:$0xff] %v4260_v47  ;;  %v1478_v58 = vmul.f32 %v4267_v51, %v4267_v51 }
  0xd4   :  { %1174 = vadd.xlane.f32.xlu1 %v1161_v56  ;;  %6646 = vst [vmem:[#allocation44_spill] sm:$0xff] %v4267_v51  ;;  %v3513_v56 = vld [vmem:[%s6465_s1 + $0x128] sm:$0xff] }
  0xd5   :  { %1684 = vadd.xlane.f32.xlu2 %v1672_v57  ;;  %3449 = vmatmul.msk.bf16.gmra.mxu2 %vm474_vm0, %v3513_v56 }
  0xdb   :  { %1144 = vadd.xlane.f32.xlu0 %v4162_v60 }
  0xdc   :  { %1654 = vadd.xlane.f32.xlu1 %v4165_v61 }
  0xdd   :  { %1430 = vadd.xlane.f32.xlu2 %v1417_v62  ;;  %v1222_v62 = vmul.f32 %v4260_v47, %v4260_v47 }
  0xe3   :  { %1686 = vadd.xlane.f32.xlu0 %v1673_v63  ;;  %v3489_v63 = vld [vmem:[%s6465_s1 + $0x68] sm:$0xff] }
  0xe4   :  { %1400 = vadd.xlane.f32.xlu1 %v4173_v0  ;;  %3425 = vmatmul.msk.bf16.gmra.mxu0 %vm474_vm0, %v3489_v63 }
  0xe5   :  { %1176 = vadd.xlane.f32.xlu2 %v1162_v1  ;;  %v3505_v1 = vld [vmem:[%s6465_s1 + $0xe8] sm:$0xff] }
  0xe6   :  { %3441 = vmatmul.msk.bf16.gmra.mxu1 %vm474_vm0, %v3505_v1 }
  0xeb   :  { %1432 = vadd.xlane.f32.xlu0 %v1418_v2  ;;  %v4290_v2 = vpop.f32.mrf.mxu0 }
  0xec   :  { %1146 = vadd.xlane.f32.xlu1 %v4180_v3  ;;  %6650 = vst [vmem:[#allocation48_spill] sm:$0xff] %v4290_v2 }
  0xed   :  { %1656 = vadd.xlane.f32.xlu2 %v4182_v4 }
  0xf3   :  { %1178 = vadd.xlane.f32.xlu0 %v1163_v8  ;;  %v1223_v8 = vmul.f32 %v4290_v2, %v4290_v2  ;;  %v4313_v31 = vpop.f32.mrf.mxu0 }
  0xf4   :  { %1688 = vadd.xlane.f32.xlu1 %v1674_v7  ;;  %6655 = vst [vmem:[#allocation53_spill] sm:$0xff] %v4313_v31  ;;  %v1224_v1 = vmul.f32 %v4313_v31, %v4313_v31 }
  0xf5   :  { %1402 = vadd.xlane.f32.xlu2 %v4198_v9 }
  0xf6   :  { %v4201_v10 = vpop.xlane.xlu1 %1388  ;;  %v4203_v11 = vpop.xlane.xlu0 %1132 }
  0xf7   :  { %6628 = vst [vmem:[#allocation26_spill] sm:$0xff] %v4201_v10 }
  0xf8   :  { %6629 = vst [vmem:[#allocation27_spill] sm:$0xff] %v4203_v11  ;;  %v4205_v12 = vpop.xlane.xlu2 %1164 }
  0xf9   :  { %6630 = vst [vmem:[#allocation28_spill] sm:$0xff] %v4205_v12 }
  0xfb   :  { %1658 = vadd.xlane.f32.xlu0 %v4207_v13  ;;  %v4333_v63 = vpop.f32.mrf.mxu0 }
  0xfc   :  { %1434 = vadd.xlane.f32.xlu1 %v1419_v14  ;;  %v4302_v14 = vpop.f32.mrf.mxu1  ;;  %6659 = vst [vmem:[#allocation57_spill] sm:$0xff] %v4333_v63 }
  0xfd   :  { %1452 = vadd.xlane.f32.xlu2 %v4212_v15  ;;  %6653 = vst [vmem:[#allocation51_spill] sm:$0xff] %v4302_v14 }
  0xfe   :  { %v4217_v19 = vpop.xlane.xlu0 %1420 }
  0xff   :  { %6634 = vst [vmem:[#allocation32_spill] sm:$0xff] %v4217_v19  ;;  %v4219_v20 = vpop.xlane.xlu1 %1676 }
 0x100   :  { %6635 = vst [vmem:[#allocation33_spill] sm:$0xff] %v4219_v20  ;;  %v4223_v22 = vpop.xlane.xlu2 %1644 }
 0x101   :  { %6636 = vst [vmem:[#allocation34_spill] sm:$0xff] %v4223_v22 }
 0x103   :  { %1228 = vadd.xlane.f32.xlu0 %v1220_v21 }
 0x104   :  { %1196 = vadd.xlane.f32.xlu1 %v4215_v16 }
 0x105   :  { %1690 = vadd.xlane.f32.xlu2 %v1675_v24  ;;  %v3514_v24 = vld [vmem:[%s6465_s1 + $0x130] sm:$0xff] }
 0x106   :  { %v4231_v28 = vpop.xlane.xlu0 %1134  ;;  %3450 = vmatmul.msk.bf16.gmra.mxu2 %vm474_vm0, %v3514_v24  ;;  %v3506_v24 = vld [vmem:[%s6465_s1 + $0xf0] sm:$0xff] }
 0x107   :  { %6637 = vst [vmem:[#allocation35_spill] sm:$0xff] %v4231_v28  ;;  %v4237_v32 = vpop.xlane.xlu1 %1422  ;;  %3442 = vmatmul.msk.bf16.gmra.mxu1 %vm474_vm0, %v3506_v24  ;;  %v4362_v24 = vpop.f32.mrf.mxu0 }
 0x108   :  { %6638 = vst [vmem:[#allocation36_spill] sm:$0xff] %v4237_v32  ;;  %v4239_v33 = vpop.xlane.xlu2 %1390 }
 0x109   :  { %6639 = vst [vmem:[#allocation37_spill] sm:$0xff] %v4239_v33 }
 0x10a   :  { %6662 = vst [vmem:[#allocation60_spill] sm:$0xff] %v4362_v24 }
 0x10b   :  { %1454 = vadd.xlane.f32.xlu0 %v4247_v39 }
 0x10c   :  { %1484 = vadd.xlane.f32.xlu1 %v1476_v40  ;;  %v4318_v40 = vpop.f32.mrf.mxu1 }
 0x10d   :  { %1198 = vadd.xlane.f32.xlu2 %v4245_v36  ;;  %6657 = vst [vmem:[#allocation55_spill] sm:$0xff] %v4318_v40  ;;  %v3525_v36 = vld [vmem:[%s6465_s1 + $0x188] sm:$0xff] }
 0x10e   :  { %v4254_v41 = vpop.xlane.xlu0 %1166 }
 0x10f   :  { %6642 = vst [vmem:[#allocation40_spill] sm:$0xff] %v4254_v41  ;;  %v4256_v42 = vpop.xlane.xlu1 %1136  ;;  %v4385_v50 = vpop.f32.mrf.mxu0 }
 0x110   :  { %6643 = vst [vmem:[#allocation41_spill] sm:$0xff] %v4256_v42  ;;  %v4258_v45 = vpop.xlane.xlu2 %1678 }
 0x111   :  { %6644 = vst [vmem:[#allocation42_spill] sm:$0xff] %v4258_v45 }
 0x112   :  { %6665 = vst [vmem:[#allocation63_spill] sm:$0xff] %v4385_v50 }
 0x113   :  { %1200 = vadd.xlane.f32.xlu0 %v4260_v47 }
 0x114   :  { %1230 = vadd.xlane.f32.xlu1 %v1221_v48  ;;  %v1479_v48 = vmul.f32 %v4302_v14, %v4302_v14 }
 0x115   :  { %1486 = vadd.xlane.f32.xlu2 %v1477_v49 }
 0x116   :  { %v4269_v52 = vpop.xlane.xlu0 %1646 }
 0x117   :  { %6647 = vst [vmem:[#allocation45_spill] sm:$0xff] %v4269_v52  ;;  %v4274_v57 = vpop.xlane.xlu1 %1168  ;;  %3443 = vmatmul.msk.bf16.gmra.mxu1 %vm474_vm0, %v3507_v46  ;;  %v4406_v34 = vpop.f32.mrf.mxu0  ;;  %v3527_v52 = vld [vmem:[%s6465_s1 + $0x198] sm:$0xff] }
 0x118   :  { %6648 = vst [vmem:[#allocation46_spill] sm:$0xff] %v4274_v57  ;;  %v4278_v59 = vpop.xlane.xlu2 %1424  ;;  %v1284_v15 = vmul.f32 %v4406_v34, %v4406_v34 }
 0x119   :  { %6649 = vst [vmem:[#allocation47_spill] sm:$0xff] %v4278_v59 }
 0x11a   :  { %6669 = vst [vmem:[#allocation67_spill] sm:$0xff] %v4406_v34 }
 0x11b   :  { %1488 = vadd.xlane.f32.xlu0 %v1478_v58 }
 0x11c   :  { %1456 = vadd.xlane.f32.xlu1 %v4267_v51 }
 0x11d   :  { %1232 = vadd.xlane.f32.xlu2 %v1222_v62  ;;  %v3490_v62 = vld [vmem:[%s6465_s1 + $0x70] sm:$0xff] }
 0x11e   :  { %v4292_v5 = vpop.xlane.xlu0 %1392  ;;  %3426 = vmatmul.msk.bf16.gmra.mxu0 %vm474_vm0, %v3490_v62  ;;  %v3515_v62 = vld [vmem:[%s6465_s1 + $0x138] sm:$0xff] }
 0x11f   :  { %6651 = vst [vmem:[#allocation49_spill] sm:$0xff] %v4292_v5  ;;  %v4296_v6 = vpop.xlane.xlu1 %1648  ;;  %3451 = vmatmul.msk.bf16.gmra.mxu2 %vm474_vm0, %v3515_v62  ;;  %v1226_v62 = vmul.f32 %v4362_v24, %v4362_v24 }
 0x120   :  { %6652 = vst [vmem:[#allocation50_spill] sm:$0xff] %v4296_v6  ;;  %v4298_v7 = vpop.xlane.xlu2 %1170 }
 0x123   :  { %1234 = vadd.xlane.f32.xlu0 %v1223_v8  ;;  %v1480_v8 = vmul.f32 %v4318_v40, %v4318_v40 }
 0x124   :  { %1202 = vadd.xlane.f32.xlu1 %v4290_v2 }
 0x125   :  { %1458 = vadd.xlane.f32.xlu2 %v4302_v14 }
 0x126   :  { %v4306_v21 = vpop.xlane.xlu0 %1680 }
 0x127   :  { %6654 = vst [vmem:[#allocation52_spill] sm:$0xff] %v4306_v21  ;;  %v4311_v27 = vpop.xlane.xlu1 %1138  ;;  %v4534_v21 = vpop.f32.mrf.mxu2 }
 0x128   :  { %v4315_v35 = vpop.xlane.xlu2 %1650  ;;  %6699 = vst [vmem:[#allocation97_spill] sm:$0xff] %v4534_v21 }
 0x129   :  { %6656 = vst [vmem:[#allocation54_spill] sm:$0xff] %v4315_v35 }
 0x12b   :  { %1460 = vadd.xlane.f32.xlu0 %v4318_v40  ;;  %v3516_v40 = vld [vmem:[%s6465_s1 + $0x140] sm:$0xff] }
 0x12c   :  { %1490 = vadd.xlane.f32.xlu1 %v1479_v48  ;;  %v4344_v48 = vpop.f32.mrf.mxu1 }
 0x12d   :  { %1204 = vadd.xlane.f32.xlu2 %v4313_v31  ;;  %6660 = vst [vmem:[#allocation58_spill] sm:$0xff] %v4344_v48 }
 0x12e   :  { %v4324_v49 = vpop.xlane.xlu0 %1426 }
 0x12f   :  { %v4326_v56 = vpop.xlane.xlu1 %1394  ;;  %3452 = vmatmul.msk.bf16.gmra.mxu2 %vm474_vm0, %v3516_v40 }
 0x130   :  { %6658 = vst [vmem:[#allocation56_spill] sm:$0xff] %v4326_v56  ;;  %v4328_v58 = vpop.xlane.xlu2 %1140 }
 0x133   :  { %1206 = vadd.xlane.f32.xlu0 %v4333_v63 }
 0x134   :  { %1236 = vadd.xlane.f32.xlu1 %v1224_v1  ;;  %v1481_v1 = vmul.f32 %v4344_v48, %v4344_v48  ;;  %v4364_v13 = vpop.f32.mrf.mxu1 }
 0x135   :  { %1492 = vadd.xlane.f32.xlu2 %v1480_v8  ;;  %v1225_v8 = vmul.f32 %v4333_v63, %v4333_v63  ;;  %6663 = vst [vmem:[#allocation61_spill] sm:$0xff] %v4364_v13 }
 0x136   :  { %v4346_v4 = vpop.xlane.xlu0 %1172 }
 0x137   :  { %v4352_v0 = vpop.xlane.xlu1 %1682 }
 0x138   :  { %6661 = vst [vmem:[#allocation59_spill] sm:$0xff] %v4352_v0  ;;  %v4354_v60 = vpop.xlane.xlu2 %1396 }
 0x13b   :  { %1494 = vadd.xlane.f32.xlu0 %v1481_v1  ;;  %v3491_v1 = vld [vmem:[%s6465_s1 + $0x78] sm:$0xff] }
 0x13c   :  { %1462 = vadd.xlane.f32.xlu1 %v4344_v48  ;;  %3427 = vmatmul.msk.bf16.gmra.mxu0 %vm474_vm0, %v3491_v1  ;;  %v1482_v1 = vmul.f32 %v4364_v13, %v4364_v13 }
 0x13d   :  { %1238 = vadd.xlane.f32.xlu2 %v1225_v8 }
 0x13e   :  { %v4366_v9 = vpop.xlane.xlu0 %1652 }
 0x13f   :  { %6664 = vst [vmem:[#allocation62_spill] sm:$0xff] %v4366_v9  ;;  %v4368_v3 = vpop.xlane.xlu1 %1428  ;;  %3453 = vmatmul.msk.bf16.gmra.mxu2 %vm474_vm0, %v3517_v30  ;;  %v3532_v9 = vld [vmem:[%s6465_s1 + $0x1c0] sm:$0xff] }
 0x140   :  { %v4372_v53 = vpop.xlane.xlu2 %1142 }
 0x143   :  { %1240 = vadd.xlane.f32.xlu0 %v1226_v62  ;;  %v4389_v62 = vpop.f32.mrf.mxu1 }
 0x144   :  { %1208 = vadd.xlane.f32.xlu1 %v4362_v24  ;;  %6666 = vst [vmem:[#allocation64_spill] sm:$0xff] %v4389_v62  ;;  %v1483_v46 = vmul.f32 %v4389_v62, %v4389_v62 }
 0x145   :  { %1464 = vadd.xlane.f32.xlu2 %v4364_v13  ;;  %v1227_v13 = vmul.f32 %v4385_v50, %v4385_v50 }
 0x146   :  { %v4379_v8 = vpop.xlane.xlu0 %1398 }
 0x147   :  { %v4387_v31 = vpop.xlane.xlu1 %1174 }
 0x148   :  { %v4391_v24 = vpop.xlane.xlu2 %1684 }
 0x149   :  { %6667 = vst [vmem:[#allocation65_spill] sm:$0xff] %v4391_v24 }
 0x14b   :  { %1466 = vadd.xlane.f32.xlu0 %v4389_v62  ;;  %v4410_v47 = vpop.f32.mrf.mxu1 }
 0x14c   :  { %1496 = vadd.xlane.f32.xlu1 %v1482_v1  ;;  %6670 = vst [vmem:[#allocation68_spill] sm:$0xff] %v4410_v47  ;;  %v1540_v16 = vmul.f32 %v4410_v47, %v4410_v47 }
 0x14d   :  { %1210 = vadd.xlane.f32.xlu2 %v4385_v50  ;;  %v4427_v50 = vpop.f32.mrf.mxu0 }
 0x14e   :  { %v4402_v38 = vpop.xlane.xlu0 %1144  ;;  %6672 = vst [vmem:[#allocation70_spill] sm:$0xff] %v4427_v50 }
 0x14f   :  { %v4404_v51 = vpop.xlane.xlu1 %1654  ;;  %3454 = vmatmul.msk.bf16.gmra.mxu2 %vm474_vm0, %v3518_v17 }
 0x150   :  { %6668 = vst [vmem:[#allocation66_spill] sm:$0xff] %v4404_v51  ;;  %v4408_v40 = vpop.xlane.xlu2 %1430 }
 0x153   :  { %1516 = vadd.xlane.f32.xlu0 %v4410_v47 }
 0x154   :  { %1242 = vadd.xlane.f32.xlu1 %v1227_v13  ;;  %v4433_v13 = vpop.f32.mrf.mxu1 }
 0x155   :  { %1498 = vadd.xlane.f32.xlu2 %v1483_v46  ;;  %6673 = vst [vmem:[#allocation71_spill] sm:$0xff] %v4433_v13  ;;  %v1541_v30 = vmul.f32 %v4433_v13, %v4433_v13 }
 0x156   :  { %v4417_v1 = vpop.xlane.xlu0 %1686 }
 0x157   :  { %6671 = vst [vmem:[#allocation69_spill] sm:$0xff] %v4417_v1  ;;  %v4422_v61 = vpop.xlane.xlu1 %1400 }
 0x158   :  { %v4424_v23 = vpop.xlane.xlu2 %1176 }
 0x15b   :  { %1262 = vadd.xlane.f32.xlu0 %v4427_v50 }
 0x15c   :  { %1292 = vadd.xlane.f32.xlu1 %v1284_v15  ;;  %v4446_v15 = vpop.f32.mrf.mxu0 }
 0x15d   :  { %1260 = vadd.xlane.f32.xlu2 %v4406_v34  ;;  %6676 = vst [vmem:[#allocation74_spill] sm:$0xff] %v4446_v15  ;;  %v1286_v55 = vmul.f32 %v4446_v15, %v4446_v15 }
 0x15e   :  { %v4435_v46 = vpop.xlane.xlu0 %1432 }
 0x15f   :  { %6674 = vst [vmem:[#allocation72_spill] sm:$0xff] %v4435_v46  ;;  %v4437_v62 = vpop.xlane.xlu1 %1146 }
 0x160   :  { %v4439_v18 = vpop.xlane.xlu2 %1656 }
 0x161   :  { %6675 = vst [vmem:[#allocation73_spill] sm:$0xff] %v4439_v18 }
 0x163   :  { %1550 = vadd.xlane.f32.xlu0 %v1541_v30  ;;  %v4457_v30 = vpop.f32.mrf.mxu1 }
 0x164   :  { %1518 = vadd.xlane.f32.xlu1 %v4433_v13  ;;  %6679 = vst [vmem:[#allocation77_spill] sm:$0xff] %v4457_v30  ;;  %v4471_v14 = vpop.f32.mrf.mxu0  ;;  %v1542_v17 = vmul.f32 %v4457_v30, %v4457_v30 }
 0x165   :  { %1548 = vadd.xlane.f32.xlu2 %v1540_v16  ;;  %v1285_v16 = vmul.f32 %v4427_v50, %v4427_v50  ;;  %6684 = vst [vmem:[#allocation82_spill] sm:$0xff] %v4471_v14  ;;  %v3520_v50 = vld [vmem:[%s6465_s1 + $0x160] sm:$0xff] }
 0x166   :  { %v4448_v34 = vpop.xlane.xlu0 %1178 }
 0x167   :  { %6677 = vst [vmem:[#allocation75_spill] sm:$0xff] %v4448_v34  ;;  %v4453_v48 = vpop.xlane.xlu1 %1688  ;;  %v1732_v34 = vmul.f32 %v4534_v21, %v4534_v21 }
 0x168   :  { %6678 = vst [vmem:[#allocation76_spill] sm:$0xff] %v4453_v48  ;;  %v4459_v63 = vpop.xlane.xlu2 %1402 }
 0x169   :  { %6680 = vst [vmem:[#allocation78_spill] sm:$0xff] %v4459_v63  ;;  %v3534_v63 = vld [vmem:[%s6465_s1 + $0x1d0] sm:$0xff] }
 0x16b   :  { %1296 = vadd.xlane.f32.xlu0 %v1286_v55  ;;  %v4473_v44 = vpop.f32.mrf.mxu1 }
 0x16c   :  { %1264 = vadd.xlane.f32.xlu1 %v4446_v15  ;;  %6685 = vst [vmem:[#allocation83_spill] sm:$0xff] %v4473_v44  ;;  %v3524_v15 = vld [vmem:[%s6465_s1 + $0x180] sm:$0xff]  ;;  %v1543_v25 = vmul.f32 %v4473_v44, %v4473_v44 }
 0x16d   :  { %1294 = vadd.xlane.f32.xlu2 %v1285_v16  ;;  %v3519_v16 = vld [vmem:[%s6465_s1 + $0x158] sm:$0xff]  ;;  %3460 = vmatmul.msk.bf16.vlgmr.msra.gmra.mxu3 %vm474_vm0, %v3524_v15 }
 0x16e   :  { %v4465_v47 = vpop.xlane.xlu0 %1658  ;;  %3455 = vmatmul.msk.bf16.gmra.mxu2 %vm474_vm0, %v3519_v16 }
 0x16f   :  { %6681 = vst [vmem:[#allocation79_spill] sm:$0xff] %v4465_v47  ;;  %v4467_v54 = vpop.xlane.xlu1 %1434 }
 0x170   :  { %6682 = vst [vmem:[#allocation80_spill] sm:$0xff] %v4467_v54  ;;  %v4469_v43 = vpop.xlane.xlu2 %1452 }
 0x171   :  { %6683 = vst [vmem:[#allocation81_spill] sm:$0xff] %v4469_v43 }
 0x173   :  { %1522 = vadd.xlane.f32.xlu0 %v4473_v44  ;;  %v4499_v29 = vpop.f32.mrf.mxu1 }
 0x174   :  { %1552 = vadd.xlane.f32.xlu1 %v1542_v17  ;;  %v4493_v17 = vpop.f32.mrf.mxu0  ;;  %6690 = vst [vmem:[#allocation88_spill] sm:$0xff] %v4499_v29  ;;  %v1544_v16 = vmul.f32 %v4499_v29, %v4499_v29 }
 0x175   :  { %1520 = vadd.xlane.f32.xlu2 %v4457_v30  ;;  %6689 = vst [vmem:[#allocation87_spill] sm:$0xff] %v4493_v17  ;;  %v1287_v30 = vmul.f32 %v4471_v14, %v4471_v14  ;;  %v1288_v44 = vmul.f32 %v4493_v17, %v4493_v17 }
 0x176   :  { %v4479_v55 = vpop.xlane.xlu0 %1228 }
 0x177   :  { %6686 = vst [vmem:[#allocation84_spill] sm:$0xff] %v4479_v55  ;;  %v4487_v2 = vpop.xlane.xlu1 %1196 }
 0x178   :  { %6687 = vst [vmem:[#allocation85_spill] sm:$0xff] %v4487_v2  ;;  %v4489_v37 = vpop.xlane.xlu2 %1690 }
 0x179   :  { %6688 = vst [vmem:[#allocation86_spill] sm:$0xff] %v4489_v37  ;;  %v3522_v37 = vld [vmem:[%s6465_s1 + $0x170] sm:$0xff] }
 0x17b   :  { %1268 = vadd.xlane.f32.xlu0 %v4493_v17  ;;  %v4550_v17 = vpop.f32.mrf.mxu2 }
 0x17c   :  { %1298 = vadd.xlane.f32.xlu1 %v1287_v30  ;;  %v4512_v30 = vpop.f32.mrf.mxu0  ;;  %6705 = vst [vmem:[#allocation103_spill] sm:$0xff] %v4550_v17 }
 0x17d   :  { %1266 = vadd.xlane.f32.xlu2 %v4471_v14  ;;  %6694 = vst [vmem:[#allocation92_spill] sm:$0xff] %v4512_v30  ;;  %3461 = vmatmul.msk.bf16.gmra.mxu3 %vm474_vm0, %v3525_v36 }
 0x17e   :  { %v4501_v13 = vpop.xlane.xlu0 %1454  ;;  %3456 = vmatmul.msk.bf16.gmra.mxu2 %vm474_vm0, %v3520_v50 }
 0x17f   :  { %6691 = vst [vmem:[#allocation89_spill] sm:$0xff] %v4501_v13  ;;  %v4503_v39 = vpop.xlane.xlu1 %1484 }
 0x180   :  { %6692 = vst [vmem:[#allocation90_spill] sm:$0xff] %v4503_v39  ;;  %v4507_v15 = vpop.xlane.xlu2 %1198 }
 0x181   :  { %6693 = vst [vmem:[#allocation91_spill] sm:$0xff] %v4507_v15 }
 0x183   :  { %1556 = vadd.xlane.f32.xlu0 %v1544_v16  ;;  %v4572_v32 = vpop.f32.mrf.mxu2 }
 0x184   :  { %1524 = vadd.xlane.f32.xlu1 %v4499_v29  ;;  %v4530_v29 = vpop.f32.mrf.mxu1  ;;  %v4541_v50 = vpop.f32.mrf.mxu0  ;;  %6708 = vst [vmem:[#allocation106_spill] sm:$0xff] %v4572_v32 }
 0x185   :  { %1554 = vadd.xlane.f32.xlu2 %v1543_v25  ;;  %v1289_v25 = vmul.f32 %v4512_v30, %v4512_v30  ;;  %6698 = vst [vmem:[#allocation96_spill] sm:$0xff] %v4530_v29 }
 0x186   :  { %v4514_v14 = vpop.xlane.xlu0 %1200  ;;  %6702 = vst [vmem:[#allocation100_spill] sm:$0xff] %v4541_v50 }
 0x187   :  { %6695 = vst [vmem:[#allocation93_spill] sm:$0xff] %v4514_v14  ;;  %v4522_v26 = vpop.xlane.xlu1 %1230 }
 0x188   :  { %6696 = vst [vmem:[#allocation94_spill] sm:$0xff] %v4522_v26  ;;  %v4524_v16 = vpop.xlane.xlu2 %1486 }
 0x189   :  { %6697 = vst [vmem:[#allocation95_spill] sm:$0xff] %v4524_v16 }
 0x18b   :  { %1302 = vadd.xlane.f32.xlu0 %v1289_v25  ;;  %v1545_v25 = vmul.f32 %v4530_v29, %v4530_v29 }
 0x18c   :  { %1270 = vadd.xlane.f32.xlu1 %v4512_v30  ;;  %v4545_v16 = vpop.f32.mrf.mxu1  ;;  %v3521_v30 = vld [vmem:[%s6465_s1 + $0x168] sm:$0xff] }
 0x18d   :  { %1300 = vadd.xlane.f32.xlu2 %v1288_v44  ;;  %6704 = vst [vmem:[#allocation102_spill] sm:$0xff] %v4545_v16  ;;  %v1546_v57 = vmul.f32 %v4545_v16, %v4545_v16 }
 0x18e   :  { %v4537_v45 = vpop.xlane.xlu0 %1488  ;;  %3457 = vmatmul.msk.bf16.gmra.mxu2 %vm474_vm0, %v3521_v30 }
 0x18f   :  { %6700 = vst [vmem:[#allocation98_spill] sm:$0xff] %v4537_v45  ;;  %v4539_v20 = vpop.xlane.xlu1 %1456  ;;  %v3526_v45 = vld [vmem:[%s6465_s1 + $0x190] sm:$0xff] }
 0x190   :  { %6701 = vst [vmem:[#allocation99_spill] sm:$0xff] %v4539_v20  ;;  %v4543_v36 = vpop.xlane.xlu2 %1232  ;;  %3462 = vmatmul.msk.bf16.gmra.mxu3 %vm474_vm0, %v3526_v45  ;;  %v3523_v20 = vld [vmem:[%s6465_s1 + $0x178] sm:$0xff] }
 0x191   :  { %6703 = vst [vmem:[#allocation101_spill] sm:$0xff] %v4543_v36 }
 0x193   :  { %1528 = vadd.xlane.f32.xlu0 %v4545_v16 }
 0x194   :  { %1558 = vadd.xlane.f32.xlu1 %v1545_v25  ;;  %v4567_v25 = vpop.f32.mrf.mxu0  ;;  %v4575_v6 = vpop.f32.mrf.mxu1 }
 0x195   :  { %1526 = vadd.xlane.f32.xlu2 %v4530_v29  ;;  %6707 = vst [vmem:[#allocation105_spill] sm:$0xff] %v4567_v25  ;;  %v1290_v29 = vmul.f32 %v4541_v50, %v4541_v50  ;;  %v1547_v45 = vmul.f32 %v4575_v6, %v4575_v6 }
 0x196   :  { %v4553_v44 = vpop.xlane.xlu0 %1234  ;;  %6709 = vst [vmem:[#allocation107_spill] sm:$0xff] %v4575_v6 }
 0x197   :  { %v4561_v59 = vpop.xlane.xlu1 %1202 }
 0x198   :  { %v4563_v39 = vpop.xlane.xlu2 %1458 }
 0x199   :  { %6706 = vst [vmem:[#allocation104_spill] sm:$0xff] %v4563_v39 }
 0x19b   :  { %1274 = vadd.xlane.f32.xlu0 %v4567_v25 }
 0x19c   :  { %1304 = vadd.xlane.f32.xlu1 %v1290_v29  ;;  %v4588_v29 = vpop.f32.mrf.mxu2  ;;  %v4604_v16 = vpop.f32.mrf.mxu0 }
 0x19d   :  { %1272 = vadd.xlane.f32.xlu2 %v4541_v50  ;;  %6710 = vst [vmem:[#allocation108_spill] sm:$0xff] %v4588_v29 }
 0x19e   :  { %v4577_v19 = vpop.xlane.xlu0 %1460  ;;  %3458 = vmatmul.msk.bf16.gmra.mxu2 %vm474_vm0, %v3522_v37  ;;  %6711 = vst [vmem:[#allocation109_spill] sm:$0xff] %v4604_v16 }
 0x19f   :  { %v4579_v36 = vpop.xlane.xlu1 %1490 }
 0x1a0   :  { %v4581_v30 = vpop.xlane.xlu2 %1204  ;;  %3463 = vmatmul.msk.bf16.gmra.mxu3 %vm474_vm0, %v3527_v52 }
 0x1a3   :  { %1562 = vadd.xlane.f32.xlu0 %v1547_v45 }
 0x1a4   :  { %1530 = vadd.xlane.f32.xlu1 %v4575_v6  ;;  %v1291_v6 = vmul.f32 %v4567_v25, %v4567_v25  ;;  %v4612_v26 = vpop.f32.mrf.mxu2  ;;  %v4622_v12 = vpop.f32.mrf.mxu0  ;;  %v1348_v25 = vmul.f32 %v4604_v16, %v4604_v16 }
 0x1a5   :  { %1560 = vadd.xlane.f32.xlu2 %v1546_v57  ;;  %v4606_v57 = vpop.f32.mrf.mxu1  ;;  %6713 = vst [vmem:[#allocation111_spill] sm:$0xff] %v4612_v26 }
 0x1a6   :  { %v4590_v50 = vpop.xlane.xlu0 %1206  ;;  %6712 = vst [vmem:[#allocation110_spill] sm:$0xff] %v4606_v57  ;;  %v1604_v37 = vmul.f32 %v4606_v57, %v4606_v57 }
 0x1a7   :  { %v4598_v22 = vpop.xlane.xlu1 %1236  ;;  %6714 = vst [vmem:[#allocation112_spill] sm:$0xff] %v4622_v12 }
 0x1a8   :  { %v4600_v45 = vpop.xlane.xlu2 %1492 }
 0x1ab   :  { %1324 = vadd.xlane.f32.xlu0 %v4604_v16 }
 0x1ac   :  { %1580 = vadd.xlane.f32.xlu1 %v4606_v57  ;;  %v3528_v57 = vld [vmem:[%s6465_s1 + $0x1a0] sm:$0xff]  ;;  %v4652_v13 = vpop.f32.mrf.mxu0 }
 0x1ad   :  { %1306 = vadd.xlane.f32.xlu2 %v1291_v6  ;;  %v4629_v6 = vpop.f32.mrf.mxu2  ;;  %v4637_v1 = vpop.f32.mrf.mxu1  ;;  %6718 = vst [vmem:[#allocation116_spill] sm:$0xff] %v4652_v13 }
 0x1ae   :  { %v4614_v41 = vpop.xlane.xlu0 %1494  ;;  %6715 = vst [vmem:[#allocation113_spill] sm:$0xff] %v4629_v6  ;;  %3459 = vmatmul.msk.bf16.gmra.mxu2 %vm474_vm0, %v3523_v20  ;;  %v1605_v24 = vmul.f32 %v4637_v1, %v4637_v1  ;;  %v1350_v20 = vmul.f32 %v4652_v13, %v4652_v13 }
 0x1af   :  { %v4616_v55 = vpop.xlane.xlu1 %1462  ;;  %6716 = vst [vmem:[#allocation114_spill] sm:$0xff] %v4637_v1 }
 0x1b0   :  { %v4620_v52 = vpop.xlane.xlu2 %1238  ;;  %3464 = vmatmul.msk.bf16.gmra.mxu3 %vm474_vm0, %v3528_v57 }
 0x1b3   :  { %1612 = vadd.xlane.f32.xlu0 %v1604_v37 }
 0x1b4   :  { %1326 = vadd.xlane.f32.xlu1 %v4622_v12  ;;  %v4676_v10 = vpop.f32.mrf.mxu0 }
 0x1b5   :  { %1356 = vadd.xlane.f32.xlu2 %v1348_v25  ;;  %v1349_v25 = vmul.f32 %v4622_v12, %v4622_v12  ;;  %v4660_v57 = vpop.f32.mrf.mxu2  ;;  %v4662_v12 = vpop.f32.mrf.mxu1  ;;  %6725 = vst [vmem:[#allocation123_spill] sm:$0xff] %v4676_v10  ;;  %v1351_v47 = vmul.f32 %v4676_v10, %v4676_v10 }
 0x1b6   :  { %v4627_v48 = vpop.xlane.xlu0 %1240  ;;  %6720 = vst [vmem:[#allocation118_spill] sm:$0xff] %v4660_v57 }
 0x1b7   :  { %v4639_v37 = vpop.xlane.xlu1 %1208  ;;  %6721 = vst [vmem:[#allocation119_spill] sm:$0xff] %v4662_v12 }
 0x1b8   :  { %v4641_v16 = vpop.xlane.xlu2 %1464 }
 0x1bb   :  { %1358 = vadd.xlane.f32.xlu0 %v1349_v25  ;;  %v3529_v25 = vld [vmem:[%s6465_s1 + $0x1a8] sm:$0xff] }
 0x1bc   :  { %1614 = vadd.xlane.f32.xlu1 %v1605_v24  ;;  %v4694_v28 = vpop.f32.mrf.mxu0 }
 0x1bd   :  { %1582 = vadd.xlane.f32.xlu2 %v4637_v1  ;;  %v4678_v14 = vpop.f32.mrf.mxu2  ;;  %v4680_v42 = vpop.f32.mrf.mxu1  ;;  %6731 = vst [vmem:[#allocation129_spill] sm:$0xff] %v4694_v28 }
 0x1be   :  { %v4650_v5 = vpop.xlane.xlu0 %1466  ;;  %6726 = vst [vmem:[#allocation124_spill] sm:$0xff] %v4678_v14 }
 0x1bf   :  { %6717 = vst [vmem:[#allocation115_spill] sm:$0xff] %v4650_v5  ;;  %v4654_v43 = vpop.xlane.xlu1 %1496 }
 0x1c0   :  { %6719 = vst [vmem:[#allocation117_spill] sm:$0xff] %v4654_v43  ;;  %v4656_v0 = vpop.xlane.xlu2 %1210  ;;  %3465 = vmatmul.msk.bf16.gmra.mxu3 %vm474_vm0, %v3529_v25  ;;  %v1607_v25 = vmul.f32 %v4680_v42, %v4680_v42 }
 0x1c1   :  { %6727 = vst [vmem:[#allocation125_spill] sm:$0xff] %v4680_v42 }
 0x1c3   :  { %1584 = vadd.xlane.f32.xlu0 %v4662_v12 }
 0x1c4   :  { %1360 = vadd.xlane.f32.xlu1 %v1350_v20  ;;  %v1606_v20 = vmul.f32 %v4662_v12, %v4662_v12  ;;  %v4722_v18 = vpop.f32.mrf.mxu0 }
 0x1c5   :  { %1328 = vadd.xlane.f32.xlu2 %v4652_v13  ;;  %v4699_v12 = vpop.f32.mrf.mxu2  ;;  %6739 = vst [vmem:[#allocation137_spill] sm:$0xff] %v4722_v18  ;;  %v1353_v2 = vmul.f32 %v4722_v18, %v4722_v18 }
 0x1c6   :  { %v4666_v24 = vpop.xlane.xlu0 %1516  ;;  %6732 = vst [vmem:[#allocation130_spill] sm:$0xff] %v4699_v12 }
 0x1c7   :  { %6722 = vst [vmem:[#allocation120_spill] sm:$0xff] %v4666_v24  ;;  %v4671_v1 = vpop.xlane.xlu1 %1242 }
 0x1c8   :  { %6723 = vst [vmem:[#allocation121_spill] sm:$0xff] %v4671_v1  ;;  %v4673_v33 = vpop.xlane.xlu2 %1498 }
 0x1c9   :  { %6724 = vst [vmem:[#allocation122_spill] sm:$0xff] %v4673_v33 }
 0x1cb   :  { %1330 = vadd.xlane.f32.xlu0 %v4676_v10 }
 0x1cc   :  { %1586 = vadd.xlane.f32.xlu1 %v4680_v42 }
 0x1cd   :  { %1616 = vadd.xlane.f32.xlu2 %v1606_v20 }
 0x1ce   :  { %v4686_v13 = vpop.xlane.xlu0 %1262 }
 0x1cf   :  { %6728 = vst [vmem:[#allocation126_spill] sm:$0xff] %v4686_v13  ;;  %v4688_v24 = vpop.xlane.xlu1 %1292  ;;  %v4706_v13 = vpop.f32.mrf.mxu1 }
 0x1d0   :  { %6729 = vst [vmem:[#allocation127_spill] sm:$0xff] %v4688_v24  ;;  %v4690_v15 = vpop.xlane.xlu2 %1260  ;;  %v3530_v24 = vld [vmem:[%s6465_s1 + $0x1b0] sm:$0xff]  ;;  %v1608_v10 = vmul.f32 %v4706_v13, %v4706_v13 }
 0x1d1   :  { %6730 = vst [vmem:[#allocation128_spill] sm:$0xff] %v4690_v15  ;;  %3466 = vmatmul.msk.bf16.gmra.mxu3 %vm474_vm0, %v3530_v24  ;;  %v3531_v24 = vld [vmem:[%s6465_s1 + $0x1b8] sm:$0xff] }
 0x1d2   :  { %6734 = vst [vmem:[#allocation132_spill] sm:$0xff] %v4706_v13 }
 0x1d3   :  { %1618 = vadd.xlane.f32.xlu0 %v1607_v25  ;;  %v1352_v25 = vmul.f32 %v4694_v28, %v4694_v28 }
 0x1d4   :  { %1332 = vadd.xlane.f32.xlu1 %v4694_v28 }
 0x1d5   :  { %1362 = vadd.xlane.f32.xlu2 %v1351_v47 }
 0x1d6   :  { %v4701_v20 = vpop.xlane.xlu0 %1550 }
 0x1d7   :  { %6733 = vst [vmem:[#allocation131_spill] sm:$0xff] %v4701_v20  ;;  %v4708_v42 = vpop.xlane.xlu1 %1518  ;;  %v4720_v20 = vpop.f32.mrf.mxu2 }
 0x1d8   :  { %6735 = vst [vmem:[#allocation133_spill] sm:$0xff] %v4708_v42  ;;  %v4712_v15 = vpop.xlane.xlu2 %1548 }
 0x1d9   :  { %6736 = vst [vmem:[#allocation134_spill] sm:$0xff] %v4712_v15  ;;  %v4728_v15 = vpop.f32.mrf.mxu1 }
 0x1da   :  { %6738 = vst [vmem:[#allocation136_spill] sm:$0xff] %v4720_v20 }
 0x1db   :  { %1364 = vadd.xlane.f32.xlu0 %v1352_v25  ;;  %6742 = vst [vmem:[#allocation140_spill] sm:$0xff] %v4728_v15 }
 0x1dc   :  { %1620 = vadd.xlane.f32.xlu1 %v1608_v10 }
 0x1dd   :  { %1588 = vadd.xlane.f32.xlu2 %v4706_v13 }
 0x1de   :  { %v4718_v47 = vpop.xlane.xlu0 %1296 }
 0x1df   :  { %6737 = vst [vmem:[#allocation135_spill] sm:$0xff] %v4718_v47  ;;  %v4724_v42 = vpop.xlane.xlu1 %1264  ;;  %v4743_v47 = vpop.f32.mrf.mxu2 }
 0x1e0   :  { %6740 = vst [vmem:[#allocation138_spill] sm:$0xff] %v4724_v42  ;;  %v4726_v28 = vpop.xlane.xlu2 %1294 }
 0x1e1   :  { %6741 = vst [vmem:[#allocation139_spill] sm:$0xff] %v4726_v28  ;;  %3467 = vmatmul.msk.bf16.gmra.mxu3 %vm474_vm0, %v3531_v24  ;;  %v4746_v28 = vpop.f32.mrf.mxu0  ;;  %v4748_v42 = vpop.f32.mrf.mxu1 }
 0x1e2   :  { %6746 = vst [vmem:[#allocation144_spill] sm:$0xff] %v4743_v47 }
 0x1e3   :  { %1590 = vadd.xlane.f32.xlu0 %v4728_v15  ;;  %6747 = vst [vmem:[#allocation145_spill] sm:$0xff] %v4746_v28 }
 0x1e4   :  { %1366 = vadd.xlane.f32.xlu1 %v1353_v2  ;;  %6748 = vst [vmem:[#allocation146_spill] sm:$0xff] %v4748_v42  ;;  %v1609_v2 = vmul.f32 %v4728_v15, %v4728_v15  ;;  %v1354_v15 = vmul.f32 %v4746_v28, %v4746_v28 }
 0x1e5   :  { %1334 = vadd.xlane.f32.xlu2 %v4722_v18 }
 0x1e6   :  { %v4734_v10 = vpop.xlane.xlu0 %1522 }
 0x1e7   :  { %6743 = vst [vmem:[#allocation141_spill] sm:$0xff] %v4734_v10  ;;  %v4739_v25 = vpop.xlane.xlu1 %1552  ;;  %v4762_v11 = vpop.f32.mrf.mxu2 }
 0x1e8   :  { %6744 = vst [vmem:[#allocation142_spill] sm:$0xff] %v4739_v25  ;;  %v4741_v13 = vpop.xlane.xlu2 %1520 }
 0x1e9   :  { %6745 = vst [vmem:[#allocation143_spill] sm:$0xff] %v4741_v13  ;;  %v1610_v13 = vmul.f32 %v4748_v42, %v4748_v42  ;;  %v4764_v51 = vpop.f32.mrf.mxu0 }
 0x1ea   :  { %6750 = vst [vmem:[#allocation148_spill] sm:$0xff] %v4764_v51 }
 0x1eb   :  { %1336 = vadd.xlane.f32.xlu0 %v4746_v28 }
 0x1ec   :  { %1592 = vadd.xlane.f32.xlu1 %v4748_v42  ;;  %v4774_v42 = vpop.f32.mrf.mxu1 }
 0x1ed   :  { %1622 = vadd.xlane.f32.xlu2 %v1609_v2  ;;  %6751 = vst [vmem:[#allocation149_spill] sm:$0xff] %v4774_v42 }
 0x1ee   :  { %v4754_v18 = vpop.xlane.xlu0 %1268 }
 0x1ef   :  { %v4756_v25 = vpop.xlane.xlu1 %1298  ;;  %v4787_v33 = vpop.f32.mrf.mxu2 }
 0x1f0   :  { %v4760_v24 = vpop.xlane.xlu2 %1266  ;;  %v4785_v28 = vpop.f32.mrf.mxu3  ;;  %6753 = vst [vmem:[#allocation151_spill] sm:$0xff] %v4787_v33 }
 0x1f1   :  { %6749 = vst [vmem:[#allocation147_spill] sm:$0xff] %v4760_v24  ;;  %3468 = vmatmul.msk.bf16.gmra.mxu3 %vm474_vm0, %v3532_v9 }
 0x1f2   :  { %6752 = vst [vmem:[#allocation150_spill] sm:$0xff] %v4785_v28 }
 0x1f3   :  { %1624 = vadd.xlane.f32.xlu0 %v1610_v13  ;;  %v1355_v13 = vmul.f32 %v4764_v51, %v4764_v51 }
 0x1f4   :  { %1338 = vadd.xlane.f32.xlu1 %v4764_v51 }
 0x1f5   :  { %1368 = vadd.xlane.f32.xlu2 %v1354_v15  ;;  %v1611_v15 = vmul.f32 %v4774_v42, %v4774_v42 }
 0x1f6   :  { %v4769_v2 = vpop.xlane.xlu0 %1556 }
 0x1f7   :  { %v4776_v35 = vpop.xlane.xlu1 %1524 }
 0x1f8   :  { %v4778_v10 = vpop.xlane.xlu2 %1554  ;;  %v4797_v9 = vpop.f32.mrf.mxu3 }
 0x1f9   :  { %6754 = vst [vmem:[#allocation152_spill] sm:$0xff] %v4797_v9 }
 0x1fb   :  { %1370 = vadd.xlane.f32.xlu0 %v1355_v13 }
 0x1fc   :  { %1626 = vadd.xlane.f32.xlu1 %v1611_v15  ;;  %v4803_v15 = vpop.f32.mrf.mxu2 }
 0x1fd   :  { %1594 = vadd.xlane.f32.xlu2 %v4774_v42  ;;  %v3533_v42 = vld [vmem:[%s6465_s1 + $0x1c8] sm:$0xff] }
 0x1fe   :  { %v4790_v54 = vpop.xlane.xlu0 %1302 }
 0x1ff   :  { %v4792_v39 = vpop.xlane.xlu1 %1270 }
 0x200   :  { %v4794_v43 = vpop.xlane.xlu2 %1300  ;;  %v4814_v9 = vpop.f32.mrf.mxu3 }
 0x201   :  { %3469 = vmatmul.msk.bf16.gmra.mxu3 %vm474_vm0, %v3533_v42  ;;  %6755 = vst [vmem:[#allocation153_spill] sm:$0xff] %v4814_v9 }
 0x203   :  { %1708 = vadd.xlane.f32.xlu0 %v4534_v21  ;;  %v1733_v21 = vmul.f32 %v4550_v17, %v4550_v17 }
 0x204   :  { %1710 = vadd.xlane.f32.xlu1 %v4550_v17  ;;  %v4824_v1 = vpop.f32.mrf.mxu2  ;;  %v1736_v17 = vmul.f32 %v4612_v26, %v4612_v26 }
 0x205   :  { %1712 = vadd.xlane.f32.xlu2 %v4572_v32  ;;  %6758 = vst [vmem:[#allocation156_spill] sm:$0xff] %v4824_v1 }
 0x206   :  { %v4801_v13 = vpop.xlane.xlu0 %1528 }
 0x207   :  { %v4808_v51 = vpop.xlane.xlu1 %1558 }
 0x208   :  { %v4810_v28 = vpop.xlane.xlu2 %1526  ;;  %v4829_v42 = vpop.f32.mrf.mxu3 }
 0x209   :  { %6759 = vst [vmem:[#allocation157_spill] sm:$0xff] %v4829_v42  ;;  %v1734_v42 = vmul.f32 %v4572_v32, %v4572_v32  ;;  %v1737_v32 = vmul.f32 %v4629_v6, %v4629_v6 }
 0x20b   :  { %1714 = vadd.xlane.f32.xlu0 %v4588_v29 }
 0x20c   :  { %1716 = vadd.xlane.f32.xlu1 %v4612_v26 }
 0x20d   :  { %1718 = vadd.xlane.f32.xlu2 %v4629_v6 }
 0x20e   :  { %v4818_v56 = vpop.xlane.xlu0 %1274 }
 0x20f   :  { %6756 = vst [vmem:[#allocation154_spill] sm:$0xff] %v4818_v56  ;;  %v4820_v5 = vpop.xlane.xlu1 %1304  ;;  %v4846_v56 = vpop.f32.mrf.mxu2 }
 0x210   :  { %6757 = vst [vmem:[#allocation155_spill] sm:$0xff] %v4820_v5  ;;  %v4822_v46 = vpop.xlane.xlu2 %1272 }
 0x211   :  { %3470 = vmatmul.msk.bf16.gmra.mxu3 %vm474_vm0, %v3534_v63  ;;  %6763 = vst [vmem:[#allocation161_spill] sm:$0xff] %v4846_v56 }
 0x213   :  { %1720 = vadd.xlane.f32.xlu0 %v4660_v57 }
 0x214   :  { %1722 = vadd.xlane.f32.xlu1 %v4678_v14 }
 0x215   :  { %1740 = vadd.xlane.f32.xlu2 %v1732_v34  ;;  %v1735_v34 = vmul.f32 %v4588_v29, %v4588_v29  ;;  %v1738_v29 = vmul.f32 %v4660_v57, %v4660_v57 }
 0x216   :  { %v4832_v9 = vpop.xlane.xlu0 %1562 }
 0x217   :  { %6760 = vst [vmem:[#allocation158_spill] sm:$0xff] %v4832_v9  ;;  %v4837_v5 = vpop.xlane.xlu1 %1530  ;;  %v4850_v9 = vpop.f32.mrf.mxu3 }
 0x218   :  { %6761 = vst [vmem:[#allocation159_spill] sm:$0xff] %v4837_v5  ;;  %v4839_v24 = vpop.xlane.xlu2 %1560 }
 0x219   :  { %6762 = vst [vmem:[#allocation160_spill] sm:$0xff] %v4839_v24 }
 0x21a   :  { %6764 = vst [vmem:[#allocation162_spill] sm:$0xff] %v4850_v9 }
 0x21b   :  { %1742 = vadd.xlane.f32.xlu0 %v1733_v21 }
 0x21c   :  { %1744 = vadd.xlane.f32.xlu1 %v1734_v42  ;;  %v4866_v42 = vpop.f32.mrf.mxu2 }
 0x21d   :  { %1746 = vadd.xlane.f32.xlu2 %v1735_v34 }
 0x21e   :  { %v4852_v5 = vpop.xlane.xlu0 %1324 }
 0x21f   :  { %6765 = vst [vmem:[#allocation163_spill] sm:$0xff] %v4852_v5  ;;  %v4854_v24 = vpop.xlane.xlu1 %1580  ;;  %v4864_v21 = vpop.f32.mrf.mxu3 }
 0x220   :  { %6766 = vst [vmem:[#allocation164_spill] sm:$0xff] %v4854_v24  ;;  %v4856_v63 = vpop.xlane.xlu2 %1306  ;;  %v3535_v24 = vld [vmem:[%s6465_s1 + $0x1d8] sm:$0xff] }
 0x221   :  { %6767 = vst [vmem:[#allocation165_spill] sm:$0xff] %v4864_v21  ;;  %3471 = vmatmul.msk.bf16.gmra.mxu3 %vm474_vm0, %v3535_v24 }
 0x223   :  { %1748 = vadd.xlane.f32.xlu0 %v1736_v17  ;;  %v1739_v17 = vmul.f32 %v4678_v14, %v4678_v14  ;;  %v3536_v14 = vld [vmem:[%s6465_s1 + $0x1e0] sm:$0xff] }
 0x224   :  { %1750 = vadd.xlane.f32.xlu1 %v1737_v32  ;;  %v4886_v57 = vpop.f32.mrf.mxu2 }
 0x225   :  { %1752 = vadd.xlane.f32.xlu2 %v1738_v29 }
 0x226   :  { %v4868_v34 = vpop.xlane.xlu0 %1612 }
 0x227   :  { %6768 = vst [vmem:[#allocation166_spill] sm:$0xff] %v4868_v34  ;;  %v4873_v26 = vpop.xlane.xlu1 %1326  ;;  %v4880_v32 = vpop.f32.mrf.mxu3 }
 0x228   :  { %6769 = vst [vmem:[#allocation167_spill] sm:$0xff] %v4873_v26  ;;  %v4875_v9 = vpop.xlane.xlu2 %1356  ;;  %v1216_v26 = vadd.f32 %v4581_v30, %v4328_v58  ;;  %v1799_v58 = vmul.f32 %v4762_v11, %v4762_v11 }
 0x229   :  { %6770 = vst [vmem:[#allocation168_spill] sm:$0xff] %v4875_v9 }
 0x22a   :  { %6771 = vst [vmem:[#allocation169_spill] sm:$0xff] %v4880_v32 }
 0x22b   :  { %1754 = vadd.xlane.f32.xlu0 %v1739_v17 }
 0x22c   :  { %1772 = vadd.xlane.f32.xlu1 %v4699_v12 }
 0x22d   :  { %1774 = vadd.xlane.f32.xlu2 %v4720_v20 }
 0x22e   :  { %v4884_v29 = vpop.xlane.xlu0 %1358 }
 0x22f   :  { %6772 = vst [vmem:[#allocation170_spill] sm:$0xff] %v4884_v29  ;;  %v4888_v6 = vpop.xlane.xlu1 %1614  ;;  %v4893_v24 = vpop.f32.mrf.mxu3 }
 0x230   :  { %6773 = vst [vmem:[#allocation171_spill] sm:$0xff] %v4888_v6  ;;  %v4890_v34 = vpop.xlane.xlu2 %1582  ;;  %v4906_v6 = vpop.f32.mrf.mxu2 }
 0x231   :  { %6774 = vst [vmem:[#allocation172_spill] sm:$0xff] %v4890_v34  ;;  %3472 = vmatmul.msk.bf16.gmra.mxu3 %vm474_vm0, %v3536_v14  ;;  %v1797_v14 = vmul.f32 %v4720_v20, %v4720_v20  ;;  %v3537_v20 = vld [vmem:[%s6465_s1 + $0x1e8] sm:$0xff] }
 0x232   :  { %6775 = vst [vmem:[#allocation173_spill] sm:$0xff] %v4893_v24 }
 0x233   :  { %1776 = vadd.xlane.f32.xlu0 %v4743_v47  ;;  %6779 = vst [vmem:[#allocation177_spill] sm:$0xff] %v4906_v6 }
 0x234   :  { %1778 = vadd.xlane.f32.xlu1 %v4762_v11 }
 0x235   :  { %1780 = vadd.xlane.f32.xlu2 %v4787_v33 }
 0x236   :  { %v4897_v17 = vpop.xlane.xlu0 %1584 }
 0x237   :  { %6776 = vst [vmem:[#allocation174_spill] sm:$0xff] %v4897_v17  ;;  %v4902_v29 = vpop.xlane.xlu1 %1360  ;;  %v4910_v34 = vpop.f32.mrf.mxu3 }
 0x238   :  { %6777 = vst [vmem:[#allocation175_spill] sm:$0xff] %v4902_v29  ;;  %v4904_v9 = vpop.xlane.xlu2 %1328  ;;  %v1796_v29 = vmul.f32 %v4699_v12, %v4699_v12  ;;  %v1280_v12 = vadd.f32 %v4754_v18, %v1216_v26  ;;  %v1248_v26 = vadd.f32 %v4598_v22, %v4346_v4 }
 0x239   :  { %6778 = vst [vmem:[#allocation176_spill] sm:$0xff] %v4904_v9  ;;  %v4924_v9 = vpop.f32.mrf.mxu2 }
 0x23a   :  { %6780 = vst [vmem:[#allocation178_spill] sm:$0xff] %v4910_v34  ;;  %v1798_v34 = vmul.f32 %v4743_v47, %v4743_v47 }
 0x23b   :  { %1782 = vadd.xlane.f32.xlu0 %v4803_v15 }
 0x23c   :  { %1784 = vadd.xlane.f32.xlu1 %v4824_v1 }
 0x23d   :  { %1786 = vadd.xlane.f32.xlu2 %v4846_v56 }
 0x23e   :  { %v4914_v17 = vpop.xlane.xlu0 %1330 }
 0x23f   :  { %v4916_v24 = vpop.xlane.xlu1 %1586  ;;  %v4928_v21 = vpop.f32.mrf.mxu3 }
 0x240   :  { %6781 = vst [vmem:[#allocation179_spill] sm:$0xff] %v4916_v24  ;;  %v4918_v32 = vpop.xlane.xlu2 %1616 }
 0x241   :  { %6782 = vst [vmem:[#allocation180_spill] sm:$0xff] %v4918_v32  ;;  %v1247_v32 = vadd.f32 %v4553_v44, %v4298_v7  ;;  %3473 = vmatmul.msk.bf16.gmra.mxu3 %vm474_vm0, %v3537_v20  ;;  %v1800_v7 = vmul.f32 %v4787_v33, %v4787_v33  ;;  %v1801_v44 = vmul.f32 %v4803_v15, %v4803_v15  ;;  %v4952_v20 = vpop.f32.mrf.mxu2 }
 0x242   :  { %6783 = vst [vmem:[#allocation181_spill] sm:$0xff] %v4928_v21 }
 0x243   :  { %1804 = vadd.xlane.f32.xlu0 %v1796_v29  ;;  %v1311_v47 = vadd.f32 %v4756_v25, %v1247_v32  ;;  %6785 = vst [vmem:[#allocation183_spill] sm:$0xff] %v4952_v20 }
 0x244   :  { %1806 = vadd.xlane.f32.xlu1 %v1797_v14  ;;  %v1802_v14 = vmul.f32 %v4824_v1, %v4824_v1 }
 0x245   :  { %1808 = vadd.xlane.f32.xlu2 %v1798_v34 }
 0x246   :  { %v1619_v5 = vpop.xlane.xlu0 %1618 }
 0x247   :  { %v1333_v29 = vpop.xlane.xlu1 %1332  ;;  %v4950_v25 = vpop.f32.mrf.mxu3 }
 0x248   :  { %v1344_v24 = vadd.f32 %v1333_v29, %v1280_v12  ;;  %v1363_v21 = vpop.xlane.xlu2 %1362  ;;  %6784 = vst [vmem:[#allocation182_spill] sm:$0xff] %v4950_v25 }
 0x249   :  { %v1375_v30 = vadd.f32 %v1363_v21, %v1311_v47  ;;  %v1312_v21 = vadd.f32 %v4794_v43, %v1248_v26  ;;  %v1803_v43 = vmul.f32 %v4846_v56, %v4846_v56  ;;  %v6859_v56 = vld [vmem:[#allocation86_spill] sm:$0xff] }
 0x24a   :  { %v1408_v18 = vadd.f32 %v4354_v60, %v1344_v24 }
 0x24b   :  { %v1439_v12 = vadd.f32 %v4324_v49, %v1375_v30  ;;  %1810 = vadd.xlane.f32.xlu0 %v1799_v58 }
 0x24c   :  { %1812 = vadd.xlane.f32.xlu1 %v1800_v7  ;;  %v1472_v47 = vadd.f32 %v4577_v19, %v1408_v18  ;;  %v4978_v7 = vpop.f32.mrf.mxu2 }
 0x24d   :  { %v1503_v60 = vadd.f32 %v4579_v36, %v1439_v12  ;;  %1814 = vadd.xlane.f32.xlu2 %v1801_v44  ;;  %6786 = vst [vmem:[#allocation184_spill] sm:$0xff] %v4978_v7 }
 0x24e   :  { %v1365_v34 = vpop.xlane.xlu0 %1364  ;;  %v1536_v32 = vadd.f32 %v4776_v35, %v1472_v47  ;;  %v1249_v35 = vadd.f32 %v4620_v52, %v4387_v31 }
 0x24f   :  { %v1621_v4 = vpop.xlane.xlu1 %1620  ;;  %v1376_v22 = vadd.f32 %v1365_v34, %v1312_v21  ;;  %v1567_v49 = vadd.f32 %v4778_v10, %v1503_v60  ;;  %v4969_v30 = vpop.f32.mrf.mxu3  ;;  %v1217_v10 = vadd.f32 %v4590_v50, %v4372_v53 }
 0x250   :  { %v1589_v24 = vpop.xlane.xlu2 %1588 }
 0x251   :  { %v1440_v29 = vadd.f32 %v4368_v3, %v1376_v22  ;;  %v4962_v58 = vadd.f32 %v1589_v24, %v1536_v32  ;;  %v4964_v19 = vadd.f32 %v1619_v5, %v1567_v49  ;;  %v1313_v5 = vadd.f32 %v4790_v54, %v1249_v35 }
 0x252   :  { %v1281_v26 = vadd.f32 %v4792_v39, %v1217_v10  ;;  %v1218_v54 = vadd.f32 %v4639_v37, %v4402_v38 }
 0x253   :  { %v1504_v36 = vadd.f32 %v4600_v45, %v1440_v29  ;;  %1816 = vadd.xlane.f32.xlu0 %v1802_v14  ;;  %v3538_v45 = vld [vmem:[%s6465_s1 + $0x1f0] sm:$0xff] }
 0x254   :  { %1818 = vadd.xlane.f32.xlu1 %v1803_v43  ;;  %3474 = vmatmul.msk.bf16.gmra.mxu3 %vm474_vm0, %v3538_v45  ;;  %v1282_v21 = vadd.f32 %v4822_v46, %v1218_v54  ;;  %v5001_v37 = vpop.f32.mrf.mxu2  ;;  %v3539_v43 = vld [vmem:[%s6465_s1 + $0x1f8] sm:$0xff] }
 0x255   :  { %1836 = vadd.xlane.f32.xlu2 %v4866_v42  ;;  %v1568_v3 = vadd.f32 %v4769_v2, %v1504_v36  ;;  %6788 = vst [vmem:[#allocation186_spill] sm:$0xff] %v5001_v37  ;;  %v6792_v36 = vld [vmem:[#allocation155_spill] sm:$0xff] }
 0x256   :  { %v1591_v18 = vpop.xlane.xlu0 %1590 }
 0x257   :  { %v1367_v31 = vpop.xlane.xlu1 %1366  ;;  %v4984_v52 = vadd.f32 %v1621_v4, %v1568_v3  ;;  %v4992_v47 = vpop.f32.mrf.mxu3  ;;  %v1860_v3 = vmul.f32 %v4866_v42, %v4866_v42 }
 0x258   :  { %v1377_v44 = vadd.f32 %v1367_v31, %v1313_v5  ;;  %v1335_v53 = vpop.xlane.xlu2 %1334  ;;  %6787 = vst [vmem:[#allocation185_spill] sm:$0xff] %v4992_v47  ;;  %v6796_v31 = vld [vmem:[#allocation121_spill] sm:$0xff] }
 0x259   :  { %v1345_v50 = vadd.f32 %v1335_v53, %v1281_v26  ;;  %v6795_v26 = vld [vmem:[#allocation75_spill] sm:$0xff]  ;;  %v1861_v53 = vmul.f32 %v4886_v57, %v4886_v57 }
 0x25a   :  { %v1441_v2 = vadd.f32 %v4408_v40, %v1377_v44  ;;  %v1251_v44 = vadd.f32 %v6796_v31, %v6795_v26  ;;  %v1865_v31 = vmul.f32 %v4978_v7, %v4978_v7 }
 0x25b   :  { %v1409_v12 = vadd.f32 %v4379_v8, %v1345_v50  ;;  %1838 = vadd.xlane.f32.xlu0 %v4886_v57  ;;  %v6797_v50 = vld [vmem:[#allocation72_spill] sm:$0xff] }
 0x25c   :  { %1840 = vadd.xlane.f32.xlu1 %v4906_v6  ;;  %v1505_v39 = vadd.f32 %v4614_v41, %v1441_v2  ;;  %v5033_v5 = vpop.f32.mrf.mxu2 }
 0x25d   :  { %v1473_v60 = vadd.f32 %v4616_v55, %v1409_v12  ;;  %1842 = vadd.xlane.f32.xlu2 %v4924_v9 }
 0x25e   :  { %v1337_v40 = vpop.xlane.xlu0 %1336  ;;  %v1569_v38 = vadd.f32 %v4808_v51, %v1505_v39  ;;  %v1219_v51 = vadd.f32 %v4656_v0, %v4437_v62  ;;  %v6791_v0 = vld [vmem:[#allocation147_spill] sm:$0xff]  ;;  %v1315_v39 = vadd.f32 %v4856_v63, %v1251_v44 }
 0x25f   :  { %v1593_v34 = vpop.xlane.xlu1 %1592  ;;  %v1346_v4 = vadd.f32 %v1337_v40, %v1282_v21  ;;  %v1537_v8 = vadd.f32 %v4810_v28, %v1473_v60  ;;  %v5010_v55 = vpop.f32.mrf.mxu3  ;;  %v1215_v28 = vadd.f32 %v4561_v59, %v4311_v27  ;;  %v6800_v21 = vld [vmem:[#allocation56_spill] sm:$0xff]  ;;  %v6801_v40 = vld [vmem:[#allocation117_spill] sm:$0xff]  ;;  %v6810_v44 = vld [vmem:[#allocation179_spill] sm:$0xff] }
 0x260   :  { %v1623_v22 = vpop.xlane.xlu2 %1622  ;;  %6789 = vst [vmem:[#allocation187_spill] sm:$0xff] %v5010_v55 }
 0x261   :  { %v1410_v32 = vadd.f32 %v4422_v61, %v1346_v4  ;;  %v5004_v49 = vadd.f32 %v1623_v22, %v1569_v38  ;;  %v5006_v41 = vadd.f32 %v1591_v18, %v1537_v8  ;;  %v1250_v61 = vadd.f32 %v4627_v48, %v4424_v23  ;;  %v6794_v18 = vld [vmem:[#allocation78_spill] sm:$0xff]  ;;  %v6802_v22 = vld [vmem:[#allocation159_spill] sm:$0xff] }
 0x262   :  { %v1279_v62 = vadd.f32 %v6791_v0, %v1215_v28  ;;  %v1862_v28 = vmul.f32 %v4906_v6, %v4906_v6 }
 0x263   :  { %v1474_v46 = vadd.f32 %v4641_v16, %v1410_v32  ;;  %1844 = vadd.xlane.f32.xlu0 %v4952_v20  ;;  %v6790_v16 = vld [vmem:[#allocation154_spill] sm:$0xff]  ;;  %v1314_v35 = vadd.f32 %v6792_v36, %v1250_v61  ;;  %v1864_v36 = vmul.f32 %v4952_v20, %v4952_v20 }
 0x264   :  { %1846 = vadd.xlane.f32.xlu1 %v4978_v7  ;;  %v1283_v14 = vadd.f32 %v6790_v16, %v1219_v51  ;;  %3475 = vmatmul.msk.bf16.gmra.mxu3 %vm474_vm0, %v3539_v43  ;;  %v1343_v48 = vadd.f32 %v4914_v17, %v1279_v62  ;;  %6793 = vst [vmem:[#allocation154_spill] sm:$0xff] %v5033_v5  ;;  %v6799_v17 = vld [vmem:[#allocation115_spill] sm:$0xff] }
 0x265   :  { %1848 = vadd.xlane.f32.xlu2 %v5001_v37  ;;  %v1538_v24 = vadd.f32 %v4801_v13, %v1474_v46  ;;  %v6803_v46 = vld [vmem:[#allocation160_spill] sm:$0xff]  ;;  %v1863_v62 = vmul.f32 %v4924_v9, %v4924_v9 }
 0x266   :  { %v1625_v29 = vpop.xlane.xlu0 %1624  ;;  %v1407_v60 = vadd.f32 %v6800_v21, %v1343_v48  ;;  %v6812_v21 = vld [vmem:[#allocation62_spill] sm:$0xff] }
 0x267   :  { %v1339_v10 = vpop.xlane.xlu1 %1338  ;;  %v5027_v59 = vadd.f32 %v1593_v34, %v1538_v24  ;;  %v5042_v54 = vpop.f32.mrf.mxu3  ;;  %v6804_v24 = vld [vmem:[#allocation104_spill] sm:$0xff] }
 0x268   :  { %v1347_v27 = vadd.f32 %v1339_v10, %v1283_v14  ;;  %v1369_v23 = vpop.xlane.xlu2 %1368  ;;  %6798 = vst [vmem:[#allocation147_spill] sm:$0xff] %v5042_v54  ;;  %v1471_v16 = vadd.f32 %v6804_v24, %v1407_v60  ;;  %v6805_v14 = vld [vmem:[#allocation80_spill] sm:$0xff]  ;;  %v1664_v60 = vadd.f32 %v6812_v21, %v4962_v58  ;;  %v6818_v58 = vld [vmem:[#allocation153_spill] sm:$0xff] }
 0x269   :  { %v1378_v13 = vadd.f32 %v1369_v23, %v1314_v35  ;;  %v6806_v35 = vld [vmem:[#allocation122_spill] sm:$0xff]  ;;  %v6808_v23 = vld [vmem:[#allocation141_spill] sm:$0xff] }
 0x26a   :  { %v1411_v45 = vadd.f32 %v6794_v18, %v1347_v27  ;;  %v1535_v48 = vadd.f32 %v6808_v23, %v1471_v16  ;;  %v6817_v16 = vld [vmem:[#allocation152_spill] sm:$0xff]  ;;  %v6826_v21 = vld [vmem:[#allocation41_spill] sm:$0xff] }
 0x26b   :  { %v1442_v2 = vadd.f32 %v6797_v50, %v1378_v13  ;;  %1850 = vadd.xlane.f32.xlu0 %v5033_v5  ;;  %v6809_v13 = vld [vmem:[#allocation158_spill] sm:$0xff]  ;;  %v1866_v50 = vmul.f32 %v5001_v37, %v5001_v37 }
 0x26c   :  { %1868 = vadd.xlane.f32.xlu1 %v1860_v3  ;;  %v1475_v12 = vadd.f32 %v6799_v17, %v1411_v45 }
 0x26d   :  { %v1506_v34 = vadd.f32 %v6801_v40, %v1442_v2  ;;  %1870 = vadd.xlane.f32.xlu2 %v1861_v53  ;;  %v1599_v53 = vadd.f32 %v6810_v44, %v1535_v48  ;;  %v1867_v2 = vmul.f32 %v5033_v5, %v5033_v5  ;;  %v6822_v48 = vld [vmem:[#allocation35_spill] sm:$0xff] }
 0x26e   :  { %v1371_v4 = vpop.xlane.xlu0 %1370  ;;  %v1539_v32 = vadd.f32 %v6802_v22, %v1475_v12  ;;  %v6811_v12 = vld [vmem:[#allocation54_spill] sm:$0xff] }
 0x26f   :  { %v1627_v38 = vpop.xlane.xlu1 %1626  ;;  %v1379_v8 = vadd.f32 %v1371_v4, %v1315_v39  ;;  %v1570_v51 = vadd.f32 %v6803_v46, %v1506_v34  ;;  %v5061_v27 = vpop.f32.mrf.mxu3  ;;  %v1663_v39 = vadd.f32 %v6811_v12, %v1599_v53  ;;  %v6824_v53 = vld [vmem:[#allocation163_spill] sm:$0xff] }
 0x270   :  { %v1595_v61 = vpop.xlane.xlu2 %1594  ;;  %6807 = vst [vmem:[#allocation155_spill] sm:$0xff] %v5061_v27 }
 0x271   :  { %v1443_v63 = vadd.f32 %v6805_v14, %v1379_v8  ;;  %v1603_v43 = vadd.f32 %v1595_v61, %v1539_v32  ;;  %v5054_v0 = vadd.f32 %v1625_v29, %v1570_v51  ;;  %v6814_v51 = vld [vmem:[#allocation150_spill] sm:$0xff]  ;;  %v6816_v61 = vld [vmem:[#allocation85_spill] sm:$0xff] }
 0x272   :  { %v6819_v14 = vld [vmem:[#allocation73_spill] sm:$0xff] }
 0x273   :  { %v1507_v10 = vadd.f32 %v6806_v35, %v1443_v63  ;;  %1872 = vadd.xlane.f32.xlu0 %v1862_v28  ;;  %v6815_v28 = vld [vmem:[#allocation27_spill] sm:$0xff]  ;;  %v1666_v63 = vadd.f32 %v6819_v14, %v5027_v59  ;;  %v6825_v59 = vld [vmem:[#allocation126_spill] sm:$0xff]  ;;  %v6833_v14 = vld [vmem:[#allocation165_spill] sm:$0xff] }
 0x274   :  { %1874 = vadd.xlane.f32.xlu1 %v1863_v62  ;;  %v1212_v24 = vadd.f32 %v6816_v61, %v6815_v28  ;;  %v6821_v35 = vld [vmem:[#allocation79_spill] sm:$0xff]  ;;  %v6831_v28 = vld [vmem:[#allocation162_spill] sm:$0xff] }
 0x275   :  { %1876 = vadd.xlane.f32.xlu2 %v1864_v36  ;;  %v1571_v3 = vadd.f32 %v6809_v13, %v1507_v10  ;;  %v1667_v10 = vadd.f32 %v6821_v35, %v1603_v43  ;;  %v6823_v13 = vld [vmem:[#allocation91_spill] sm:$0xff]  ;;  %v6832_v61 = vld [vmem:[#allocation138_spill] sm:$0xff]  ;;  %v6835_v35 = vld [vmem:[#allocation176_spill] sm:$0xff] }
 0x276   :  { %v5065_v18 = vpop.xlane.xlu0 %1708 }
 0x277   :  { %v5067_v29 = vpop.xlane.xlu1 %1710  ;;  %v5069_v45 = vadd.f32 %v1627_v38, %v1571_v3  ;;  %v5080_v17 = vpop.f32.mrf.mxu3  ;;  %v6813_v38 = vld [vmem:[#allocation66_spill] sm:$0xff]  ;;  %v1213_v3 = vadd.f32 %v6823_v13, %v6822_v48  ;;  %v6836_v48 = vld [vmem:[#allocation59_spill] sm:$0xff] }
 0x278   :  { %v5071_v26 = vpop.xlane.xlu2 %1712  ;;  %v1665_v8 = vadd.f32 %v6813_v38, %v5006_v41  ;;  %v6820_v41 = vld [vmem:[#allocation128_spill] sm:$0xff]  ;;  %v6829_v38 = vld [vmem:[#allocation157_spill] sm:$0xff]  ;;  %v1695_v13 = vadd.f32 %v6836_v48, %v4964_v19 }
 0x279   :  { %v1276_v36 = vadd.f32 %v6820_v41, %v1212_v24  ;;  %v6834_v41 = vld [vmem:[#allocation37_spill] sm:$0xff] }
 0x27a   :  { %v6844_v19 = vld [vmem:[#allocation65_spill] sm:$0xff] }
 0x27b   :  { %1878 = vadd.xlane.f32.xlu0 %v1865_v31 }
 0x27c   :  { %1880 = vadd.xlane.f32.xlu1 %v1866_v50  ;;  %v1340_v50 = vadd.f32 %v6824_v53, %v1276_v36 }
 0x27d   :  { %1882 = vadd.xlane.f32.xlu2 %v1867_v2 }
 0x27e   :  { %v1715_v40 = vpop.xlane.xlu0 %1714 }
 0x27f   :  { %v1717_v34 = vpop.xlane.xlu1 %1716  ;;  %v5085_v4 = vadd.f32 %v1715_v40, %v1663_v39  ;;  %v5100_v62 = vpop.f32.mrf.mxu3  ;;  %v1277_v39 = vadd.f32 %v6825_v59, %v1213_v3 }
 0x280   :  { %v5089_v22 = vadd.f32 %v1717_v34, %v1664_v60  ;;  %v1719_v32 = vpop.xlane.xlu2 %1718  ;;  %v6827_v60 = vld [vmem:[#allocation93_spill] sm:$0xff]  ;;  %v6828_v34 = vld [vmem:[#allocation167_spill] sm:$0xff] }
 0x281   :  { %v5091_v46 = vadd.f32 %v1719_v32, %v1665_v8  ;;  %v1214_v40 = vadd.f32 %v6827_v60, %v6826_v21  ;;  %v1341_v43 = vadd.f32 %v6828_v34, %v1277_v39  ;;  %v6830_v8 = vld [vmem:[#allocation26_spill] sm:$0xff]  ;;  %v1924_v39 = vmul.f32 %v6814_v51, %v6814_v51  ;;  %v6839_v21 = vld [vmem:[#allocation89_spill] sm:$0xff] }
 0x282   :  { %v1404_v32 = vadd.f32 %v6830_v8, %v1340_v50  ;;  %v6842_v8 = vld [vmem:[#allocation120_spill] sm:$0xff] }
 0x283   :  { %1900 = vadd.xlane.f32.xlu0 %v6814_v51  ;;  %v1278_v24 = vadd.f32 %v6832_v61, %v1214_v40  ;;  %v1405_v36 = vadd.f32 %v6834_v41, %v1341_v43  ;;  %v6840_v40 = vld [vmem:[#allocation49_spill] sm:$0xff] }
 0x284   :  { %1902 = vadd.xlane.f32.xlu1 %v6817_v16  ;;  %v6841_v43 = vld [vmem:[#allocation169_spill] sm:$0xff] }
 0x285   :  { %1904 = vadd.xlane.f32.xlu2 %v6818_v58  ;;  %v1469_v60 = vadd.f32 %v6839_v21, %v1405_v36  ;;  %v6845_v41 = vld [vmem:[#allocation69_spill] sm:$0xff] }
 0x286   :  { %v1721_v23 = vpop.xlane.xlu0 %1720 }
 0x287   :  { %v1723_v31 = vpop.xlane.xlu1 %1722  ;;  %v5106_v44 = vadd.f32 %v1721_v23, %v1666_v63  ;;  %v5130_v3 = vpop.f32.mrf.mxu3 }
 0x288   :  { %v5109_v2 = vadd.f32 %v1723_v31, %v1667_v10  ;;  %v5111_v12 = vpop.xlane.xlu2 %1740  ;;  %v1342_v10 = vadd.f32 %v6835_v35, %v1278_v24  ;;  %6837 = vst [vmem:[#allocation78_spill] sm:$0xff] %v5130_v3  ;;  %v6838_v31 = vld [vmem:[#allocation81_spill] sm:$0xff]  ;;  %v1697_v35 = vadd.f32 %v6845_v41, %v5004_v49  ;;  %v1925_v49 = vmul.f32 %v6817_v16, %v6817_v16  ;;  %v6852_v41 = vld [vmem:[#allocation84_spill] sm:$0xff] }
 0x289   :  { %v1468_v53 = vadd.f32 %v6838_v31, %v1404_v32  ;;  %v6843_v24 = vld [vmem:[#allocation173_spill] sm:$0xff]  ;;  %v1696_v32 = vadd.f32 %v6844_v19, %v4984_v52  ;;  %v6850_v52 = vld [vmem:[#allocation172_spill] sm:$0xff] }
 0x28a   :  { %v1406_v34 = vadd.f32 %v6840_v40, %v1342_v10  ;;  %v6848_v40 = vld [vmem:[#allocation76_spill] sm:$0xff] }
 0x28b   :  { %1906 = vadd.xlane.f32.xlu0 %v6829_v38  ;;  %v1532_v61 = vadd.f32 %v6842_v8, %v1468_v53  ;;  %v1698_v53 = vadd.f32 %v6848_v40, %v5054_v0  ;;  %v6849_v8 = vld [vmem:[#allocation164_spill] sm:$0xff]  ;;  %v6857_v40 = vld [vmem:[#allocation127_spill] sm:$0xff] }
 0x28c   :  { %1908 = vadd.xlane.f32.xlu1 %v6831_v28 }
 0x28d   :  { %1910 = vadd.xlane.f32.xlu2 %v6833_v14  ;;  %v1596_v37 = vadd.f32 %v6849_v8, %v1532_v61  ;;  %v6858_v8 = vld [vmem:[#allocation45_spill] sm:$0xff] }
 0x28e   :  { %v5122_v63 = vpop.xlane.xlu0 %1742 }
 0x28f   :  { %v5126_v23 = vpop.xlane.xlu1 %1744 }
 0x290   :  { %v1747_v50 = vpop.xlane.xlu2 %1746 }
 0x291   :  { %v5133_v59 = vadd.f32 %v1747_v50, %v1695_v13  ;;  %v6846_v13 = vld [vmem:[#allocation133_spill] sm:$0xff]  ;;  %v6847_v50 = vld [vmem:[#allocation99_spill] sm:$0xff] }
 0x292   :  { %v1533_v31 = vadd.f32 %v6846_v13, %v1469_v60  ;;  %v1470_v36 = vadd.f32 %v6847_v50, %v1406_v34  ;;  %v5160_v60 = vpop.f32.mrf.mxu3  ;;  %v1926_v34 = vmul.f32 %v6818_v58, %v6818_v58  ;;  %v6854_v13 = vld [vmem:[#allocation40_spill] sm:$0xff]  ;;  %v6856_v50 = vld [vmem:[#allocation34_spill] sm:$0xff] }
 0x293   :  { %1912 = vadd.xlane.f32.xlu0 %v6841_v43 }
 0x294   :  { %1914 = vadd.xlane.f32.xlu1 %v6843_v24  ;;  %v1597_v19 = vadd.f32 %v6850_v52, %v1533_v31 }
 0x295   :  { %1932 = vadd.xlane.f32.xlu2 %v1924_v39 }
 0x296   :  { %v1749_v48 = vpop.xlane.xlu0 %1748  ;;  %v1661_v52 = vadd.f32 %v6858_v8, %v1597_v19  ;;  %v6866_v8 = vld [vmem:[#allocation135_spill] sm:$0xff] }
 0x297   :  { %v1751_v21 = vpop.xlane.xlu1 %1750  ;;  %v5148_v10 = vadd.f32 %v1749_v48, %v1696_v32  ;;  %v6851_v32 = vld [vmem:[#allocation28_spill] sm:$0xff]  ;;  %v6853_v48 = vld [vmem:[#allocation143_spill] sm:$0xff] }
 0x298   :  { %v5153_v39 = vadd.f32 %v1751_v21, %v1697_v35  ;;  %v1753_v1 = vpop.xlane.xlu2 %1752  ;;  %v1244_v0 = vadd.f32 %v6852_v41, %v6851_v32  ;;  %v1534_v61 = vadd.f32 %v6853_v48, %v1470_v36  ;;  %v1927_v35 = vmul.f32 %v6829_v38, %v6829_v38  ;;  %v6860_v41 = vld [vmem:[#allocation46_spill] sm:$0xff]  ;;  %v6861_v36 = vld [vmem:[#allocation101_spill] sm:$0xff]  ;;  %v6862_v48 = vld [vmem:[#allocation139_spill] sm:$0xff] }
 0x299   :  { %v5156_v5 = vadd.f32 %v1753_v1, %v1698_v53  ;;  %v6855_v1 = vld [vmem:[#allocation94_spill] sm:$0xff]  ;;  %v1660_v21 = vadd.f32 %v6856_v50, %v1596_v37  ;;  %v1699_v32 = vadd.f32 %v6859_v56, %v5069_v45  ;;  %v1725_v37 = vadd.f32 %v5067_v29, %v1661_v52 }
 0x29a   :  { %v1245_v31 = vadd.f32 %v6855_v1, %v6854_v13  ;;  %v1308_v53 = vadd.f32 %v6857_v40, %v1244_v0  ;;  %v6863_v13 = vld [vmem:[#allocation168_spill] sm:$0xff]  ;;  %v1929_v29 = vmul.f32 %v6833_v14, %v6833_v14 }
 0x29b   :  { %1934 = vadd.xlane.f32.xlu0 %v1925_v49  ;;  %v1246_v49 = vadd.f32 %v6861_v36, %v6860_v41  ;;  %v1724_v33 = vadd.f32 %v5065_v18, %v1660_v21  ;;  %v1928_v18 = vmul.f32 %v6831_v28, %v6831_v28  ;;  %v6867_v21 = vld [vmem:[#allocation32_spill] sm:$0xff] }
 0x29c   :  { %1936 = vadd.xlane.f32.xlu1 %v1926_v34  ;;  %v1309_v20 = vadd.f32 %v6862_v48, %v1245_v31  ;;  %v1372_v1 = vadd.f32 %v6863_v13, %v1308_v53  ;;  %v6864_v34 = vld [vmem:[#allocation174_spill] sm:$0xff]  ;;  %v6868_v53 = vld [vmem:[#allocation175_spill] sm:$0xff]  ;;  %v6871_v36 = vld [vmem:[#allocation36_spill] sm:$0xff] }
 0x29d   :  { %1938 = vadd.xlane.f32.xlu2 %v1927_v35  ;;  %v1598_v0 = vadd.f32 %v6864_v34, %v1534_v61  ;;  %v6865_v35 = vld [vmem:[#allocation170_spill] sm:$0xff]  ;;  %v1310_v41 = vadd.f32 %v6866_v8, %v1246_v49  ;;  %v6874_v8 = vld [vmem:[#allocation95_spill] sm:$0xff] }
 0x29e   :  { %v1755_v58 = vpop.xlane.xlu0 %1754  ;;  %v1373_v40 = vadd.f32 %v6865_v35, %v1309_v20  ;;  %v1436_v61 = vadd.f32 %v6867_v21, %v1372_v1  ;;  %v1930_v20 = vmul.f32 %v6841_v43, %v6841_v43  ;;  %v6873_v1 = vld [vmem:[#allocation47_spill] sm:$0xff] }
 0x29f   :  { %v1773_v50 = vpop.xlane.xlu1 %1772  ;;  %v5183_v19 = vadd.f32 %v1755_v58, %v1699_v32  ;;  %v1374_v58 = vadd.f32 %v6868_v53, %v1310_v41  ;;  %v5200_v32 = vpop.f32.mrf.mxu3 }
 0x2a0   :  { %v5186_v56 = vadd.f32 %v1773_v50, %v1724_v33  ;;  %v1775_v45 = vpop.xlane.xlu2 %1774  ;;  %v6869_v33 = vld [vmem:[#allocation50_spill] sm:$0xff]  ;;  %6870 = vst [vmem:[#allocation75_spill] sm:$0xff] %v5200_v32  ;;  %v1437_v49 = vadd.f32 %v6871_v36, %v1373_v40 }
 0x2a1   :  { %v5191_v31 = vadd.f32 %v1775_v45, %v1725_v37  ;;  %v1662_v52 = vadd.f32 %v6869_v33, %v1598_v0  ;;  %v6872_v37 = vld [vmem:[#allocation90_spill] sm:$0xff]  ;;  %v1438_v50 = vadd.f32 %v6873_v1, %v1374_v58  ;;  %v6877_v58 = vld [vmem:[#allocation131_spill] sm:$0xff] }
 0x2a2   :  { %v1500_v34 = vadd.f32 %v6872_v37, %v1436_v61  ;;  %v1501_v41 = vadd.f32 %v6874_v8, %v1437_v49  ;;  %v6876_v61 = vld [vmem:[#allocation134_spill] sm:$0xff] }
 0x2a3   :  { %1940 = vadd.xlane.f32.xlu0 %v1928_v18  ;;  %v1726_v48 = vadd.f32 %v5071_v26, %v1662_v52  ;;  %v1931_v26 = vmul.f32 %v6843_v24, %v6843_v24  ;;  %v6878_v33 = vld [vmem:[#allocation178_spill] sm:$0xff]  ;;  %v6879_v52 = vld [vmem:[#allocation181_spill] sm:$0xff] }
 0x2a4   :  { %1942 = vadd.xlane.f32.xlu1 %v1929_v29  ;;  %v6875_v29 = vld [vmem:[#allocation98_spill] sm:$0xff]  ;;  %v1564_v53 = vadd.f32 %v6876_v61, %v1500_v34 }
 0x2a5   :  { %1944 = vadd.xlane.f32.xlu2 %v1930_v20  ;;  %v1502_v21 = vadd.f32 %v6875_v29, %v1438_v50  ;;  %v1565_v20 = vadd.f32 %v6877_v58, %v1501_v41  ;;  %v6881_v49 = vld [vmem:[#allocation142_spill] sm:$0xff]  ;;  %v6883_v50 = vld [vmem:[#allocation171_spill] sm:$0xff]  ;;  %v6884_v41 = vld [vmem:[#allocation180_spill] sm:$0xff] }
 0x2a6   :  { %v1777_v13 = vpop.xlane.xlu0 %1776  ;;  %v6885_v29 = vld [vmem:[#allocation33_spill] sm:$0xff]  ;;  %v6887_v58 = vld [vmem:[#allocation52_spill] sm:$0xff] }
 0x2a7   :  { %v1779_v35 = vpop.xlane.xlu1 %1778  ;;  %v5206_v45 = vadd.f32 %v1777_v13, %v1726_v48  ;;  %v6882_v48 = vld [vmem:[#allocation166_spill] sm:$0xff]  ;;  %v1629_v34 = vadd.f32 %v6883_v50, %v1565_v20 }
 0x2a8   :  { %v5210_v0 = vadd.f32 %v1779_v35, %v5085_v4  ;;  %v1781_v18 = vpop.xlane.xlu2 %1780  ;;  %v5222_v4 = vpop.f32.mrf.mxu3  ;;  %v1628_v13 = vadd.f32 %v6882_v48, %v1564_v53 }
 0x2a9   :  { %v5213_v40 = vadd.f32 %v1781_v18, %v5089_v22  ;;  %6880 = vst [vmem:[#allocation121_spill] sm:$0xff] %v5222_v4  ;;  %v1566_v22 = vadd.f32 %v6881_v49, %v1502_v21  ;;  %v6886_v21 = vld [vmem:[#allocation42_spill] sm:$0xff] }
 0x2aa   :  { %v1692_v61 = vadd.f32 %v6885_v29, %v1628_v13  ;;  %v1693_v53 = vadd.f32 %v6886_v21, %v1629_v34  ;;  %v1990_v21 = vmul.f32 %v4950_v25, %v4950_v25 }
 0x2ab   :  { %1946 = vadd.xlane.f32.xlu0 %v1931_v26  ;;  %v1630_v18 = vadd.f32 %v6884_v41, %v1566_v22  ;;  %v1988_v41 = vmul.f32 %v6878_v33, %v6878_v33 }
 0x2ac   :  { %1964 = vadd.xlane.f32.xlu1 %v6878_v33 }
 0x2ad   :  { %1966 = vadd.xlane.f32.xlu2 %v6879_v52  ;;  %v1694_v20 = vadd.f32 %v6887_v58, %v1630_v18 }
 0x2ae   :  { %v1783_v36 = vpop.xlane.xlu0 %1782 }
 0x2af   :  { %v1785_v37 = vpop.xlane.xlu1 %1784  ;;  %v5227_v1 = vadd.f32 %v1783_v36, %v5091_v46  ;;  %v1756_v46 = vadd.f32 %v5111_v12, %v1692_v61  ;;  %v1989_v61 = vmul.f32 %v6879_v52, %v6879_v52 }
 0x2b0   :  { %v5231_v35 = vadd.f32 %v1785_v37, %v5106_v44  ;;  %v1787_v8 = vpop.xlane.xlu2 %1786  ;;  %v1757_v44 = vadd.f32 %v5122_v63, %v1693_v53  ;;  %v5246_v48 = vpop.f32.mrf.mxu3 }
 0x2b1   :  { %v5235_v26 = vadd.f32 %v1787_v8, %v5109_v2  ;;  %v1758_v2 = vadd.f32 %v5126_v23, %v1694_v20  ;;  %6888 = vst [vmem:[#allocation72_spill] sm:$0xff] %v5246_v48 }
 0x2b3   :  { %1968 = vadd.xlane.f32.xlu0 %v4950_v25 }
 0x2b4   :  { %1970 = vadd.xlane.f32.xlu1 %v4969_v30 }
 0x2b5   :  { %1972 = vadd.xlane.f32.xlu2 %v4992_v47 }
 0x2b6   :  { %v1805_v36 = vpop.xlane.xlu0 %1804 }
 0x2b7   :  { %v1807_v49 = vpop.xlane.xlu1 %1806  ;;  %v1820_v22 = vadd.f32 %v1805_v36, %v1756_v46  ;;  %v1993_v36 = vmul.f32 %v5010_v55, %v5010_v55 }
 0x2b8   :  { %v1821_v13 = vadd.f32 %v1807_v49, %v1757_v44  ;;  %v1809_v37 = vpop.xlane.xlu2 %1808  ;;  %v5260_v29 = vpop.f32.mrf.mxu3  ;;  %v1992_v44 = vmul.f32 %v4992_v47, %v4992_v47 }
 0x2b9   :  { %v5248_v50 = vadd.f32 %v1809_v37, %v1758_v2  ;;  %6889 = vst [vmem:[#allocation115_spill] sm:$0xff] %v5260_v29 }
 0x2bb   :  { %1974 = vadd.xlane.f32.xlu0 %v5010_v55  ;;  %v3947_v55 = vmov 0  }
 0x2bc   :  { %1976 = vadd.xlane.f32.xlu1 %v5042_v54  ;;  %3930 = vset.pattern.permute.xlu0 %v3947_v55 }
 0x2bd   :  { %1978 = vadd.xlane.f32.xlu2 %v5061_v27  ;;  %3928 = vset.pattern.permute.xlu1 %v3947_v55 }
 0x2be   :  { %v1811_v12 = vpop.xlane.xlu0 %1810  ;;  %3929 = vset.pattern.permute.xlu2 %v3947_v55 }
 0x2bf   :  { %v1813_v34 = vpop.xlane.xlu1 %1812  ;;  %v1823_v63 = vadd.f32 %v1811_v12, %v5133_v59 }
 0x2c0   :  { %v1824_v23 = vadd.f32 %v1813_v34, %v5148_v10  ;;  %v1815_v8 = vpop.xlane.xlu2 %1814  ;;  %v5277_v2 = vpop.f32.mrf.mxu3 }
 0x2c1   :  { %v5258_v18 = vadd.f32 %v1815_v8, %v5153_v39  ;;  %v1991_v39 = vmul.f32 %v4969_v30, %v4969_v30  ;;  %v1995_v8 = vmul.f32 %v5061_v27, %v5061_v27 }
 0x2c3   :  { %1996 = vadd.xlane.f32.xlu0 %v1988_v41 }
 0x2c4   :  { %1998 = vadd.xlane.f32.xlu1 %v1989_v61 }
 0x2c5   :  { %2000 = vadd.xlane.f32.xlu2 %v1990_v21 }
 0x2c6   :  { %v1817_v59 = vpop.xlane.xlu0 %1816 }
 0x2c7   :  { %v1819_v10 = vpop.xlane.xlu1 %1818  ;;  %v1826_v53 = vadd.f32 %v1817_v59, %v5156_v5 }
 0x2c8   :  { %v1827_v46 = vadd.f32 %v1819_v10, %v5183_v19  ;;  %v1837_v58 = vpop.xlane.xlu2 %1836  ;;  %v5289_v41 = vpop.f32.mrf.mxu3 }
 0x2c9   :  { %v5271_v20 = vadd.f32 %v1837_v58, %v5186_v56  ;;  %v1994_v56 = vmul.f32 %v5042_v54, %v5042_v54 }
 0x2cb   :  { %2002 = vadd.xlane.f32.xlu0 %v1991_v39 }
 0x2cc   :  { %2004 = vadd.xlane.f32.xlu1 %v1992_v44 }
 0x2cd   :  { %2006 = vadd.xlane.f32.xlu2 %v1993_v36 }
 0x2ce   :  { %v1839_v5 = vpop.xlane.xlu0 %1838 }
 0x2cf   :  { %v1841_v19 = vpop.xlane.xlu1 %1840  ;;  %v1853_v49 = vadd.f32 %v1839_v5, %v5191_v31 }
 0x2d0   :  { %v1854_v37 = vadd.f32 %v1841_v19, %v5206_v45  ;;  %v1843_v12 = vpop.xlane.xlu2 %1842  ;;  %v5300_v44 = vpop.f32.mrf.mxu3 }
 0x2d1   :  { %v5284_v34 = vadd.f32 %v1843_v12, %v5210_v0  ;;  %6890 = vst [vmem:[#allocation56_spill] sm:$0xff] %v5300_v44 }
 0x2d3   :  { %2008 = vadd.xlane.f32.xlu0 %v1994_v56 }
 0x2d4   :  { %2010 = vadd.xlane.f32.xlu1 %v1995_v8 }
 0x2d5   :  { %2028 = vadd.xlane.f32.xlu2 %v5080_v17 }
 0x2d6   :  { %v1845_v61 = vpop.xlane.xlu0 %1844 }
 0x2d7   :  { %v1847_v31 = vpop.xlane.xlu1 %1846  ;;  %v1856_v45 = vadd.f32 %v1845_v61, %v5213_v40 }
 0x2d8   :  { %v1857_v21 = vadd.f32 %v1847_v31, %v5227_v1  ;;  %v1849_v59 = vpop.xlane.xlu2 %1848 }
 0x2d9   :  { %v5294_v10 = vadd.f32 %v1849_v59, %v5231_v35 }
 0x2db   :  { %2030 = vadd.xlane.f32.xlu0 %v5100_v62 }
 0x2dc   :  { %2032 = vadd.xlane.f32.xlu1 %v5130_v3 }
 0x2dd   :  { %2034 = vadd.xlane.f32.xlu2 %v5160_v60 }
 0x2de   :  { %v1851_v0 = vpop.xlane.xlu0 %1850 }
 0x2df   :  { %v1869_v58 = vpop.xlane.xlu1 %1868  ;;  %v1859_v39 = vadd.f32 %v1851_v0, %v5235_v26  ;;  %v5310_v26 = vpop.f32.mrf.mxu3 }
 0x2e0   :  { %v1884_v36 = vadd.f32 %v1869_v58, %v1820_v22  ;;  %v1871_v40 = vpop.xlane.xlu2 %1870  ;;  %v2052_v22 = vmul.f32 %v5080_v17, %v5080_v17  ;;  %v2055_v58 = vmul.f32 %v5160_v60, %v5160_v60 }
 0x2e1   :  { %v5302_v5 = vadd.f32 %v1871_v40, %v1821_v13  ;;  %v2053_v13 = vmul.f32 %v5100_v62, %v5100_v62  ;;  %v2056_v40 = vmul.f32 %v5200_v32, %v5200_v32 }
 0x2e3   :  { %2036 = vadd.xlane.f32.xlu0 %v5200_v32 }
 0x2e4   :  { %2038 = vadd.xlane.f32.xlu1 %v5222_v4 }
 0x2e5   :  { %2040 = vadd.xlane.f32.xlu2 %v5246_v48 }
 0x2e6   :  { %v1873_v1 = vpop.xlane.xlu0 %1872 }
 0x2e7   :  { %v1875_v35 = vpop.xlane.xlu1 %1874  ;;  %v1886_v19 = vadd.f32 %v1873_v1, %v5248_v50  ;;  %v5326_v1 = vpop.f32.mrf.mxu3 }
 0x2e8   :  { %v1887_v12 = vadd.f32 %v1875_v35, %v1823_v63  ;;  %v1877_v56 = vpop.xlane.xlu2 %1876  ;;  %6891 = vst [vmem:[#allocation117_spill] sm:$0xff] %v5326_v1 }
 0x2e9   :  { %v5308_v8 = vadd.f32 %v1877_v56, %v1824_v23  ;;  %v2054_v23 = vmul.f32 %v5130_v3, %v5130_v3 }
 0x2eb   :  { %2042 = vadd.xlane.f32.xlu0 %v5260_v29 }
 0x2ec   :  { %2060 = vadd.xlane.f32.xlu1 %v2052_v22 }
 0x2ed   :  { %2062 = vadd.xlane.f32.xlu2 %v2053_v13 }
 0x2ee   :  { %v1879_v61 = vpop.xlane.xlu0 %1878 }
 0x2ef   :  { %v1881_v31 = vpop.xlane.xlu1 %1880  ;;  %v1889_v50 = vadd.f32 %v1879_v61, %v5258_v18  ;;  %v2058_v61 = vmul.f32 %v5246_v48, %v5246_v48 }
 0x2f0   :  { %v1890_v63 = vadd.f32 %v1881_v31, %v1826_v53  ;;  %v1883_v59 = vpop.xlane.xlu2 %1882  ;;  %v2059_v31 = vmul.f32 %v5260_v29, %v5260_v29 }
 0x2f1   :  { %v5320_v0 = vadd.f32 %v1883_v59, %v1827_v46  ;;  %v2057_v46 = vmul.f32 %v5222_v4, %v5222_v4  ;;  %v5337_v59 = vpop.f32.mrf.mxu3 }
 0x2f2   :  { %6892 = vst [vmem:[#allocation159_spill] sm:$0xff] %v5337_v59 }
 0x2f3   :  { %2064 = vadd.xlane.f32.xlu0 %v2054_v23 }
 0x2f4   :  { %2066 = vadd.xlane.f32.xlu1 %v2055_v58 }
 0x2f5   :  { %2068 = vadd.xlane.f32.xlu2 %v2056_v40 }
 0x2f6   :  { %v1901_v35 = vpop.xlane.xlu0 %1900 }
 0x2f7   :  { %v1903_v18 = vpop.xlane.xlu1 %1902  ;;  %v1916_v53 = vadd.f32 %v1901_v35, %v5271_v20 }
 0x2f8   :  { %v1917_v56 = vadd.f32 %v1903_v18, %v1853_v49  ;;  %v1905_v22 = vpop.xlane.xlu2 %1904 }
 0x2f9   :  { %v5331_v13 = vadd.f32 %v1905_v22, %v1854_v37 }
 0x2fb   :  { %2070 = vadd.xlane.f32.xlu0 %v2057_v46  ;;  %v5344_v46 = vpop.f32.mrf.mxu3 }
 0x2fc   :  { %2072 = vadd.xlane.f32.xlu1 %v2058_v61  ;;  %6893 = vst [vmem:[#allocation160_spill] sm:$0xff] %v5344_v46 }
 0x2fd   :  { %2074 = vadd.xlane.f32.xlu2 %v2059_v31 }
 0x2fe   :  { %v1907_v23 = vpop.xlane.xlu0 %1906 }
 0x2ff   :  { %v1909_v20 = vpop.xlane.xlu1 %1908  ;;  %v1919_v49 = vadd.f32 %v1907_v23, %v5284_v34 }
 0x300   :  { %v1920_v58 = vadd.f32 %v1909_v20, %v1856_v45  ;;  %v1911_v40 = vpop.xlane.xlu2 %1910 }
 0x301   :  { %v1921_v35 = vadd.f32 %v1911_v40, %v1857_v21 }
 0x303   :  { %2092 = vadd.xlane.f32.xlu0 %v5277_v2  ;;  %v5350_v54 = vpop.f32.mrf.mxu3 }
 0x304   :  { %2094 = vadd.xlane.f32.xlu1 %v5289_v41  ;;  %6894 = vst [vmem:[#allocation104_spill] sm:$0xff] %v5350_v54 }
 0x305   :  { %2096 = vadd.xlane.f32.xlu2 %v5300_v44 }
 0x306   :  { %v1913_v37 = vpop.xlane.xlu0 %1912 }
 0x307   :  { %v1915_v18 = vpop.xlane.xlu1 %1914  ;;  %v1922_v22 = vadd.f32 %v1913_v37, %v5294_v10  ;;  %v2116_v10 = vmul.f32 %v5277_v2, %v5277_v2 }
 0x308   :  { %v1923_v61 = vadd.f32 %v1915_v18, %v1859_v39  ;;  %v1933_v31 = vpop.xlane.xlu2 %1932 }
 0x309   :  { %v1948_v48 = vadd.f32 %v1933_v31, %v1884_v36 }
 0x30b   :  { %2098 = vadd.xlane.f32.xlu0 %v5310_v26 }
 0x30c   :  { %2100 = vadd.xlane.f32.xlu1 %v5326_v1 }
 0x30d   :  { %2102 = vadd.xlane.f32.xlu2 %v5337_v59 }
 0x30e   :  { %v1935_v34 = vpop.xlane.xlu0 %1934 }
 0x30f   :  { %v1937_v45 = vpop.xlane.xlu1 %1936  ;;  %v1949_v21 = vadd.f32 %v1935_v34, %v5302_v5  ;;  %v2117_v5 = vmul.f32 %v5289_v41, %v5289_v41  ;;  %v2119_v34 = vmul.f32 %v5310_v26, %v5310_v26 }
 0x310   :  { %v1950_v23 = vadd.f32 %v1937_v45, %v1886_v19  ;;  %v1939_v20 = vpop.xlane.xlu2 %1938 }
 0x311   :  { %v1951_v40 = vadd.f32 %v1939_v20, %v1887_v12  ;;  %v2118_v12 = vmul.f32 %v5300_v44, %v5300_v44 }
 0x313   :  { %2104 = vadd.xlane.f32.xlu0 %v5344_v46 }
 0x314   :  { %2106 = vadd.xlane.f32.xlu1 %v5350_v54 }
 0x315   :  { %2124 = vadd.xlane.f32.xlu2 %v2116_v10 }
 0x316   :  { %v1941_v39 = vpop.xlane.xlu0 %1940 }
 0x317   :  { %v1943_v36 = vpop.xlane.xlu1 %1942  ;;  %v1952_v37 = vadd.f32 %v1941_v39, %v5308_v8  ;;  %v2120_v39 = vmul.f32 %v5326_v1, %v5326_v1 }
 0x318   :  { %v1953_v18 = vadd.f32 %v1943_v36, %v1889_v50  ;;  %v1945_v31 = vpop.xlane.xlu2 %1944  ;;  %v2121_v36 = vmul.f32 %v5337_v59, %v5337_v59 }
 0x319   :  { %v1954_v19 = vadd.f32 %v1945_v31, %v1890_v63  ;;  %v2122_v31 = vmul.f32 %v5344_v46, %v5344_v46 }
 0x31b   :  { %2126 = vadd.xlane.f32.xlu0 %v2117_v5 }
 0x31c   :  { %2128 = vadd.xlane.f32.xlu1 %v2118_v12 }
 0x31d   :  { %2130 = vadd.xlane.f32.xlu2 %v2119_v34 }
 0x31e   :  { %v1947_v45 = vpop.xlane.xlu0 %1946 }
 0x31f   :  { %v1965_v20 = vpop.xlane.xlu1 %1964  ;;  %v1955_v10 = vadd.f32 %v1947_v45, %v5320_v0  ;;  %v2123_v45 = vmul.f32 %v5350_v54, %v5350_v54 }
 0x320   :  { %v5364_v8 = vadd.f32 %v1965_v20, %v1916_v53  ;;  %v1967_v50 = vpop.xlane.xlu2 %1966 }
 0x321   :  { %v5368_v63 = vadd.f32 %v1967_v50, %v1917_v56 }
 0x323   :  { %2132 = vadd.xlane.f32.xlu0 %v2120_v39 }
 0x324   :  { %2134 = vadd.xlane.f32.xlu1 %v2121_v36 }
 0x325   :  { %2136 = vadd.xlane.f32.xlu2 %v2122_v31 }
 0x326   :  { %v1969_v5 = vpop.xlane.xlu0 %1968 }
 0x327   :  { %v1971_v12 = vpop.xlane.xlu1 %1970  ;;  %v1982_v0 = vadd.f32 %v1969_v5, %v5331_v13 }
 0x328   :  { %v1983_v53 = vadd.f32 %v1971_v12, %v1919_v49  ;;  %v1973_v34 = vpop.xlane.xlu2 %1972 }
 0x329   :  { %v5377_v56 = vadd.f32 %v1973_v34, %v1920_v58 }
 0x32b   :  { %2138 = vadd.xlane.f32.xlu0 %v2123_v45 }
 0x32e   :  { %v1975_v20 = vpop.xlane.xlu0 %1974 }
 0x32f   :  { %v1977_v50 = vpop.xlane.xlu1 %1976  ;;  %v1985_v43 = vadd.f32 %v1975_v20, %v1921_v35 }
 0x330   :  { %v1986_v29 = vadd.f32 %v1977_v50, %v1922_v22  ;;  %v1979_v46 = vpop.xlane.xlu2 %1978 }
 0x331   :  { %v1987_v39 = vadd.f32 %v1979_v46, %v1923_v61 }
 0x336   :  { %v1997_v36 = vpop.xlane.xlu0 %1996 }
 0x337   :  { %v1999_v31 = vpop.xlane.xlu1 %1998  ;;  %v2012_v27 = vadd.f32 %v1997_v36, %v1948_v48 }
 0x338   :  { %v2013_v24 = vadd.f32 %v1999_v31, %v1949_v21  ;;  %v2001_v1 = vpop.xlane.xlu2 %2000 }
 0x339   :  { %v2014_v13 = vadd.f32 %v2001_v1, %v1950_v23 }
 0x33e   :  { %v2003_v49 = vpop.xlane.xlu0 %2002 }
 0x33f   :  { %v2005_v5 = vpop.xlane.xlu1 %2004  ;;  %v2015_v12 = vadd.f32 %v2003_v49, %v1951_v40 }
 0x340   :  { %v5379_v32 = vadd.f32 %v2005_v5, %v1952_v37  ;;  %v2007_v58 = vpop.xlane.xlu2 %2006 }
 0x341   :  { %v5381_v34 = vadd.f32 %v2007_v58, %v1953_v18 }
 0x346   :  { %v2009_v45 = vpop.xlane.xlu0 %2008 }
 0x347   :  { %v2011_v54 = vpop.xlane.xlu1 %2010  ;;  %v5383_v35 = vadd.f32 %v2009_v45, %v1954_v19 }
 0x348   :  { %v5385_v22 = vadd.f32 %v2011_v54, %v1955_v10  ;;  %v2029_v46 = vpop.xlane.xlu2 %2028 }
 0x34e   :  { %v2031_v61 = vpop.xlane.xlu0 %2030 }
 0x34f   :  { %v2033_v48 = vpop.xlane.xlu1 %2032 }
 0x350   :  { %v2035_v21 = vpop.xlane.xlu2 %2034  ;;  %v2046_v6 = vadd.f32 %v2033_v48, %v1982_v0 }
 0x351   :  { %v2047_v20 = vadd.f32 %v2035_v21, %v1983_v53 }
 0x356   :  { %v2037_v1 = vpop.xlane.xlu0 %2036 }
 0x357   :  { %v2039_v23 = vpop.xlane.xlu1 %2038 }
 0x358   :  { %v2049_v50 = vadd.f32 %v2039_v23, %v1985_v43  ;;  %v2041_v40 = vpop.xlane.xlu2 %2040 }
 0x359   :  { %v2050_v37 = vadd.f32 %v2041_v40, %v1986_v29  ;;  %v2044_v29 = vadd.f32 %v2029_v46, %v5364_v8 }
 0x35e   :  { %v2043_v36 = vpop.xlane.xlu0 %2042 }
 0x35f   :  { %v2061_v31 = vpop.xlane.xlu1 %2060  ;;  %v5387_v18 = vadd.f32 %v2043_v36, %v1987_v39  ;;  %v2045_v39 = vadd.f32 %v2031_v61, %v5368_v63 }
 0x360   :  { %v2063_v49 = vpop.xlane.xlu2 %2062  ;;  %v2076_v44 = vadd.f32 %v2061_v31, %v2012_v27  ;;  %v2048_v31 = vadd.f32 %v2037_v1, %v5377_v56 }
 0x361   :  { %v2077_v27 = vadd.f32 %v2063_v49, %v2013_v24 }
 0x366   :  { %v2065_v5 = vpop.xlane.xlu0 %2064 }
 0x367   :  { %v2067_v19 = vpop.xlane.xlu1 %2066  ;;  %v2078_v0 = vadd.f32 %v2065_v5, %v2014_v13 }
 0x368   :  { %v2069_v58 = vpop.xlane.xlu2 %2068 }
 0x36e   :  { %v2071_v54 = vpop.xlane.xlu0 %2070 }
 0x36f   :  { %v5389_v10 = vpop.xlane.xlu1 %2072 }
 0x370   :  { %v5391_v45 = vpop.xlane.xlu2 %2074 }
 0x376   :  { %v2093_v47 = vpop.xlane.xlu0 %2092 }
 0x377   :  { %v2095_v53 = vpop.xlane.xlu1 %2094  ;;  %v2108_v40 = vadd.f32 %v2093_v47, %v2044_v29  ;;  %v2079_v29 = vadd.f32 %v2067_v19, %v2015_v12 }
 0x378   :  { %v2097_v21 = vpop.xlane.xlu2 %2096  ;;  %v2109_v59 = vadd.f32 %v2095_v53, %v2045_v39 }
 0x379   :  { %v5395_v3 = vmul.f32 0.03125, %v2108_v40  ;;  %v2110_v7 = vadd.f32 %v2097_v21, %v2046_v6  ;;  %v2080_v21 = vadd.f32 %v2069_v58, %v5379_v32  ;;  %v2082_v58 = vadd.f32 %v5389_v10, %v5383_v35 }
 0x37a   :  { %v5401_v46 = vmul.f32 0.03125, %v2109_v59 }
 0x37b   :  { %v2164_v47 = vmul.f32 %v5395_v3, %v5395_v3  ;;  %v5404_v48 = vmul.f32 0.03125, %v2110_v7 }
 0x37d   :  { %v2166_v7 = vmul.f32 %v5404_v48, %v5404_v48 }
 0x37e   :  { %v2099_v28 = vpop.xlane.xlu0 %2098 }
 0x37f   :  { %v2101_v43 = vpop.xlane.xlu1 %2100  ;;  %v2111_v8 = vadd.f32 %v2099_v28, %v2047_v20  ;;  %v2165_v28 = vmul.f32 %v5401_v46, %v5401_v46 }
 0x380   :  { %v2103_v23 = vpop.xlane.xlu2 %2102  ;;  %v2112_v24 = vadd.f32 %v2101_v43, %v2048_v31 }
 0x381   :  { %v5406_v40 = vmul.f32 0.03125, %v2111_v8  ;;  %v2113_v20 = vadd.f32 %v2103_v23, %v2049_v50  ;;  %v2081_v8 = vadd.f32 %v2071_v54, %v5381_v34 }
 0x382   :  { %v5418_v39 = vmul.f32 0.03125, %v2112_v24 }
 0x383   :  { %v2167_v12 = vmul.f32 %v5406_v40, %v5406_v40  ;;  %v5427_v31 = vmul.f32 0.03125, %v2113_v20 }
 0x385   :  { %v2169_v35 = vmul.f32 %v5427_v31, %v5427_v31 }
 0x386   :  { %v2105_v36 = vpop.xlane.xlu0 %2104 }
 0x387   :  { %v5397_v25 = vpop.xlane.xlu1 %2106  ;;  %v2114_v5 = vadd.f32 %v2105_v36, %v2050_v37  ;;  %v2168_v36 = vmul.f32 %v5418_v39, %v5418_v39 }
 0x388   :  { %v2125_v4 = vpop.xlane.xlu2 %2124  ;;  %v2115_v10 = vadd.f32 %v5397_v25, %v5387_v18 }
 0x389   :  { %v2140_v14 = vadd.f32 %v2125_v4, %v2076_v44  ;;  %v5434_v23 = vmul.f32 0.03125, %v2114_v5 }
 0x38a   :  { %v5459_v18 = vmul.f32 0.03125, %v2115_v10 }
 0x38b   :  { %v2156_v63 = vmul.f32 0.03125, %v2140_v14 }
 0x38d   :  { %v2172_v61 = vsub.f32 %v2156_v63, %v2164_v47 }
 0x38e   :  { %v2127_v53 = vpop.xlane.xlu0 %2126 }
 0x38f   :  { %v5408_v55 = vadd.f32 1e-05, %v2172_v61  ;;  %v2129_v6 = vpop.xlane.xlu1 %2128  ;;  %v2141_v4 = vadd.f32 %v2127_v53, %v2077_v27 }
 0x390   :  { %v2142_v14 = vadd.f32 %v2129_v6, %v2078_v0  ;;  %v2131_v44 = vpop.xlane.xlu2 %2130 }
 0x391   :  { %3931 = vrsqrt.f32 %v5408_v55  ;;  %v2157_v59 = vmul.f32 0.03125, %v2141_v4  ;;  %v2143_v56 = vadd.f32 %v2131_v44, %v2079_v29  ;;  %vm2202_vm2 = vweird.f32 %v5408_v55 }
 0x392   :  { %v2158_v13 = vmul.f32 0.03125, %v2142_v14  ;;  %v2170_v14 = vmul.f32 %v5434_v23, %v5434_v23 }
 0x393   :  { %v2173_v1 = vsub.f32 %v2157_v59, %v2165_v28  ;;  %v2159_v49 = vmul.f32 0.03125, %v2143_v56 }
 0x394   :  { %v2174_v19 = vsub.f32 %v2158_v13, %v2166_v7 }
 0x395   :  { %v5420_v43 = vadd.f32 1e-05, %v2173_v1  ;;  %v2175_v47 = vsub.f32 %v2159_v49, %v2167_v12 }
 0x396   :  { %v5423_v63 = vadd.f32 1e-05, %v2174_v19  ;;  %v2133_v27 = vpop.xlane.xlu0 %2132 }
 0x397   :  { %v5425_v61 = vpop.eup %3931  ;;  %3933 = vrsqrt.f32 %v5420_v43  ;;  %v5430_v50 = vadd.f32 1e-05, %v2175_v47  ;;  %v2135_v37 = vpop.xlane.xlu1 %2134  ;;  %v2144_v32 = vadd.f32 %v2133_v27, %v2080_v21  ;;  %v2083_v21 = vadd.f32 %v5391_v45, %v5385_v22  ;;  %v2180_v22 = vld [vmem:[%s6466_s2] sm:$0xff] }
 0x398   :  { %v2197_v34 = vmul.f32 %v5425_v61, %v5408_v55  ;;  %3935 = vrsqrt.f32 %v5423_v63  ;;  %v2137_v54 = vpop.xlane.xlu2 %2136  ;;  %v2145_v0 = vadd.f32 %v2135_v37, %v2081_v8  ;;  %vm2203_vm1 = vweird.f32 %v5425_v61 }
 0x399   :  { %3937 = vrsqrt.f32 %v5430_v50  ;;  %v2160_v53 = vmul.f32 0.03125, %v2144_v32  ;;  %v2146_v6 = vadd.f32 %v2137_v54, %v2082_v58  ;;  %v2171_v54 = vmul.f32 %v5459_v18, %v5459_v18  ;;  %vm2204_vm3 = vmor %vm2202_vm2, %vm2203_vm1 }
 0x39a   :  { %v2198_v29 = vmul.f32 %v5425_v61, %v2197_v34  ;;  %v2161_v4 = vmul.f32 0.03125, %v2145_v0  ;;  %vm2212_vm6 = vweird.f32 %v5420_v43  ;;  %vm2222_vm7 = vweird.f32 %v5423_v63 }
 0x39b   :  { %v2176_v28 = vsub.f32 %v2160_v53, %v2168_v36  ;;  %v2162_v24 = vmul.f32 0.03125, %v2146_v6  ;;  %vm2232_vm11 = vweird.f32 %v5430_v50 }
 0x39c   :  { %v2199_v44 = vmul.f32 0.5, %v2198_v29  ;;  %v2177_v56 = vsub.f32 %v2161_v4, %v2169_v35 }
 0x39d   :  { %v5449_v59 = vpop.eup %3933  ;;  %v5451_v7 = vadd.f32 1e-05, %v2176_v28  ;;  %v2178_v1 = vsub.f32 %v2162_v24, %v2170_v14 }
 0x39e   :  { %v5453_v13 = vpop.eup %3935  ;;  %v2200_v12 = vsub.f32 1.5, %v2199_v44  ;;  %v2207_v20 = vmul.f32 %v5449_v59, %v5420_v43  ;;  %v5463_v5 = vadd.f32 1e-05, %v2177_v56  ;;  %v2139_v19 = vpop.xlane.xlu0 %2138  ;;  %vm2213_vm4 = vweird.f32 %v5449_v59 }
 0x39f   :  { %v5457_v25 = vpop.eup %3937  ;;  %v2217_v49 = vmul.f32 %v5453_v13, %v5423_v63  ;;  %3939 = vrsqrt.f32 %v5451_v7  ;;  %v5475_v37 = vadd.f32 1e-05, %v2178_v1  ;;  %v2147_v34 = vadd.f32 %v2139_v19, %v2083_v21  ;;  %vm5498_vm8 = vmor %vm2212_vm6, %vm2213_vm4 }
 0x3a0   :  { %v2208_v47 = vmul.f32 %v5449_v59, %v2207_v20  ;;  %v2227_v8 = vmul.f32 %v5457_v25, %v5430_v50  ;;  %3941 = vrsqrt.f32 %v5463_v5  ;;  %v2201_v45 = vmul.f32 %v5425_v61, %v2200_v12 }
 0x3a1   :  { %v2218_v27 = vmul.f32 %v5453_v13, %v2217_v49  ;;  %3943 = vrsqrt.f32 %v5475_v37  ;;  %v2163_v53 = vmul.f32 0.03125, %v2147_v34  ;;  %vm2223_vm5 = vweird.f32 %v5453_v13  ;;  %v2182_v49 = vld [vmem:[%s6466_s2 + $0x10] sm:$0xff]  ;;  %v2183_v34 = vld [vmem:[%s6466_s2 + $0x18] sm:$0xff] }
 0x3a2   :  { %v2209_v32 = vmul.f32 0.5, %v2208_v47  ;;  %v2228_v58 = vmul.f32 %v5457_v25, %v2227_v8  ;;  %v2205_v29 = vsel %vm2204_vm3, %v5425_v61, %v2201_v45  ;;  %vm5507_vm9 = vmor %vm2222_vm7, %vm2223_vm5  ;;  %vm2233_vm10 = vweird.f32 %v5457_v25 }
 0x3a3   :  { %v2219_v55 = vmul.f32 0.5, %v2218_v27  ;;  %v2276_v10 = vmul.f32 %v2205_v29, %v2180_v22  ;;  %v2179_v14 = vsub.f32 %v2163_v53, %v2171_v54  ;;  %vm2234_vm12 = vmor %vm2232_vm11, %vm2233_vm10  ;;  %vm2242_vm14 = vweird.f32 %v5451_v7 }
 0x3a4   :  { %v2210_v36 = vsub.f32 1.5, %v2209_v32  ;;  %v2229_v0 = vmul.f32 0.5, %v2228_v58  ;;  %vm2252_vm0 = vweird.f32 %v5463_v5  ;;  %vm2262_vm4 = vweird.f32 %v5475_v37 }
 0x3a5   :  { %v5487_v6 = vpop.eup %3939  ;;  %v2220_v35 = vsub.f32 1.5, %v2219_v55  ;;  %2310 = vperm.xlu1 %3928, %v2276_v10   ;;  %v5505_v56 = vmul.f32 %v2276_v10, %v5395_v3  ;;  %v5515_v1 = vadd.f32 1e-05, %v2179_v14  ;;  %v2181_v3 = vld [vmem:[%s6466_s2 + $0x8] sm:$0xff] }
 0x3a6   :  { %v2230_v4 = vsub.f32 1.5, %v2229_v0  ;;  %v2237_v28 = vmul.f32 %v5487_v6, %v5451_v7  ;;  %v5493_v44 = vpop.eup %3941  ;;  %v2211_v43 = vmul.f32 %v5449_v59, %v2210_v36  ;;  %vm2243_vm13 = vweird.f32 %v5487_v6 }
 0x3a7   :  { %v2221_v24 = vmul.f32 %v5453_v13, %v2220_v35  ;;  %v2247_v63 = vmul.f32 %v5493_v44, %v5463_v5  ;;  %v3944_v19 = vpop.eup %3943  ;;  %3945 = vrsqrt.f32 %v5515_v1  ;;  %vm2253_vm15 = vweird.f32 %v5493_v44  ;;  %v2184_v35 = vld [vmem:[%s6466_s2 + $0x20] sm:$0xff]  ;;  %vm2244_vm1 = vmor %vm2242_vm14, %vm2243_vm13 }
 0x3a8   :  { %v2238_v20 = vmul.f32 %v5487_v6, %v2237_v28  ;;  %v2215_v47 = vsel %vm5498_vm8, %v5449_v59, %v2211_v43  ;;  %v2231_v8 = vmul.f32 %v5457_v25, %v2230_v4  ;;  %v2257_v58 = vmul.f32 %v3944_v19, %v5475_v37  ;;  %v2185_v4 = vld [vmem:[%s6466_s2 + $0x28] sm:$0xff]  ;;  %vm2254_vm3 = vmor %vm2252_vm0, %vm2253_vm15 }
 0x3a9   :  { %v2225_v21 = vsel %vm5507_vm9, %v5453_v13, %v2221_v24  ;;  %v2248_v27 = vmul.f32 %v5493_v44, %v2247_v63  ;;  %v2277_v13 = vmul.f32 %v2215_v47, %v2181_v3  ;;  %vm2263_vm2 = vweird.f32 %v3944_v19 }
 0x3aa   :  { %v2239_v32 = vmul.f32 0.5, %v2238_v20  ;;  %v2278_v59 = vmul.f32 %v2225_v21, %v2182_v49  ;;  %v2258_v45 = vmul.f32 %v3944_v19, %v2257_v58  ;;  %v2235_v54 = vsel %vm2234_vm12, %v5457_v25, %v2231_v8  ;;  %vm2264_vm5 = vmor %vm2262_vm4, %vm2263_vm2  ;;  %v2288_v8 = vld [vmem:[%s6467_s3 + $0x20] sm:$0xff] }
 0x3ab   :  { %v2249_v22 = vmul.f32 0.5, %v2248_v27  ;;  %2315 = vperm.xlu2 %3929, %v2277_v13   ;;  %v2279_v55 = vmul.f32 %v2235_v54, %v2183_v34  ;;  %v2293_v36 = vmul.f32 %v2277_v13, %v5401_v46  ;;  %vm2272_vm7 = vweird.f32 %v5515_v1  ;;  %v2287_v13 = vld [vmem:[%s6467_s3 + $0x18] sm:$0xff] }
 0x3ac   :  { %v2240_v50 = vsub.f32 1.5, %v2239_v32  ;;  %2320 = vperm.xlu0 %3930, %v2278_v59   ;;  %v5544_v0 = vmul.f32 %v2278_v59, %v5404_v48  ;;  %v2259_v29 = vmul.f32 0.5, %v2258_v45  ;;  %v2285_v48 = vld [vmem:[%s6467_s3 + $0x8] sm:$0xff]  ;;  %v2284_v32 = vld [vmem:[%s6467_s3] sm:$0xff] }
 0x3ad   :  { %v2250_v53 = vsub.f32 1.5, %v2249_v22  ;;  %v2295_v46 = vmul.f32 %v2279_v55, %v5406_v40  ;;  %v3946_v5 = vpop.eup %3945  ;;  %v2301_v43 = vsub.f32 %v2285_v48, %v2293_v36  ;;  %v2300_v34 = vsub.f32 %v2284_v32, %v5505_v56  ;;  %v2286_v22 = vld [vmem:[%s6467_s3 + $0x10] sm:$0xff]  ;;  %v2289_v45 = vld [vmem:[%s6467_s3 + $0x28] sm:$0xff] }
 0x3ae   :  { %v2241_v25 = vmul.f32 %v5487_v6, %v2240_v50  ;;  %v2260_v7 = vsub.f32 1.5, %v2259_v29  ;;  %v2267_v40 = vmul.f32 %v3946_v5, %v5515_v1  ;;  %vm2273_vm6 = vweird.f32 %v3946_v5  ;;  %v2291_v1 = vld [vmem:[%s6467_s3 + $0x38] sm:$0xff]  ;;  %v2290_v56 = vld [vmem:[%s6467_s3 + $0x30] sm:$0xff]  ;;  %v6899_v29 = vld [vmem:[#allocation7_spill] sm:$0xff] }
 0x3af   :  { %v2251_v28 = vmul.f32 %v5493_v44, %v2250_v53  ;;  %vm2274_vm8 = vmor %vm2272_vm7, %vm2273_vm6  ;;  %v2303_v50 = vsub.f32 %v2287_v13, %v2295_v46  ;;  %v6901_v46 = vld [vmem:[#allocation70_spill] sm:$0xff]  ;;  %v6902_v48 = vld [vmem:[#allocation112_spill] sm:$0xff] }
 0x3b0   :  { %v2245_v10 = vsel %vm2244_vm1, %v5487_v6, %v2241_v25  ;;  %v2186_v6 = vld [vmem:[%s6466_s2 + $0x30] sm:$0xff]  ;;  %v2261_v24 = vmul.f32 %v3944_v19, %v2260_v7  ;;  %v2268_v20 = vmul.f32 %v3946_v5, %v2267_v40  ;;  %v6900_v25 = vld [vmem:[#allocation38_spill] sm:$0xff]  ;;  %v6905_v40 = vld [vmem:[#allocation71_spill] sm:$0xff] }
 0x3b1   :  { %v2280_v14 = vmul.f32 %v2245_v10, %v2184_v35  ;;  %v2255_v61 = vsel %vm2254_vm3, %v5493_v44, %v2251_v28  ;;  %v6924_v13 = vld [vmem:[#allocation125_spill] sm:$0xff] }
 0x3b2   :  { %v2281_v12 = vmul.f32 %v2255_v61, %v2185_v4  ;;  %v2265_v49 = vsel %vm2264_vm5, %v3944_v19, %v2261_v24  ;;  %v2269_v21 = vmul.f32 0.5, %v2268_v20  ;;  %v6903_v4 = vld [vmem:[#allocation6_spill] sm:$0xff] }
 0x3b3   :  { %2330 = vperm.xlu1 %3928, %v2280_v14   ;;  %v2296_v63 = vmul.f32 %v2280_v14, %v5418_v39  ;;  %2325 = vperm.xlu2 %3929, %v2279_v55   ;;  %v2282_v37 = vmul.f32 %v2265_v49, %v2186_v6  ;;  %v2187_v39 = vld [vmem:[%s6466_s2 + $0x38] sm:$0xff]  ;;  %v6909_v49 = vld [vmem:[#allocation136_spill] sm:$0xff] }
 0x3b4   :  { %2363 = vperm.xlu0 %3930, %v2301_v43   ;;  %v2297_v3 = vmul.f32 %v2281_v12, %v5427_v31  ;;  %v2270_v47 = vsub.f32 1.5, %v2269_v21  ;;  %v6906_v6 = vld [vmem:[#allocation114_spill] sm:$0xff]  ;;  %v6907_v43 = vld [vmem:[#allocation8_spill] sm:$0xff] }
 0x3b5   :  { %v2298_v44 = vmul.f32 %v2282_v37, %v5434_v23  ;;  %v2304_v27 = vsub.f32 %v2288_v8, %v2296_v63  ;;  %v6908_v63 = vld [vmem:[#allocation103_spill] sm:$0xff] }
 0x3b6   :  { %v2271_v19 = vmul.f32 %v3946_v5, %v2270_v47  ;;  %v2305_v55 = vsub.f32 %v2289_v45, %v2297_v3 }
 0x3b7   :  { %v2306_v54 = vsub.f32 %v2290_v56, %v2298_v44  ;;  %v6928_v56 = vld [vmem:[#allocation108_spill] sm:$0xff] }
 0x3b8   :  { %v2275_v31 = vsel %vm2274_vm8, %v3946_v5, %v2271_v19  ;;  %v6904_v5 = vld [vmem:[#allocation39_spill] sm:$0xff] }
 0x3b9   :  { %v2283_v23 = vmul.f32 %v2275_v31, %v2187_v39  ;;  %v6910_v19 = vld [vmem:[#allocation11_spill] sm:$0xff]  ;;  %v6912_v31 = vld [vmem:[#allocation48_spill] sm:$0xff] }
 0x3bb   :  { %2340 = vperm.xlu1 %3928, %v2282_v37   ;;  %2335 = vperm.xlu2 %3929, %v2281_v12   ;;  %v2299_v58 = vmul.f32 %v2283_v23, %v5459_v18  ;;  %v2302_v18 = vsub.f32 %v2286_v22, %v5544_v0 }
 0x3bc   :  { %2378 = vperm.xlu0 %3930, %v2304_v27  }
 0x3bd   :  { %v2307_v59 = vsub.f32 %v2291_v1, %v2299_v58 }
 0x3c3   :  { %2358 = vperm.xlu1 %3928, %v2300_v34   ;;  %2345 = vperm.xlu2 %3929, %v2283_v23  }
 0x3c4   :  { %2393 = vperm.xlu0 %3930, %v2307_v59  }
 0x3cb   :  { %2373 = vperm.xlu1 %3928, %v2303_v50   ;;  %2368 = vperm.xlu2 %3929, %v2302_v18   ;;  %v6926_v50 = vld [vmem:[#allocation13_spill] sm:$0xff] }
 0x3d3   :  { %2388 = vperm.xlu1 %3928, %v2306_v54   ;;  %2383 = vperm.xlu2 %3929, %v2305_v55  }
 0x405   :  { %v2316_v36 = vpop.permute.xlu2 %2315 }
 0x406   :  { %v5603_v35 = vmul.f32 %v2316_v36, %v6899_v29  ;;  %v5606_v0 = vmul.f32 %v2316_v36, %v6900_v25  ;;  %v5609_v7 = vmul.f32 %v2316_v36, %v6901_v46  ;;  %v5612_v10 = vmul.f32 %v2316_v36, %v6902_v48 }
 0x407   :  { %v5615_v28 = vmul.f32 %v2316_v36, %v6903_v4  ;;  %v5618_v14 = vmul.f32 %v2316_v36, %v6904_v5  ;;  %v5621_v61 = vmul.f32 %v2316_v36, %v6905_v40  ;;  %v5624_v24 = vmul.f32 %v2316_v36, %v6906_v6  ;;  %v6936_v4 = vld [vmem:[#allocation18_spill] sm:$0xff] }
 0x408   :  { %v5627_v12 = vmul.f32 %v2316_v36, %v6907_v43  ;;  %v5630_v20 = vmul.f32 %v2316_v36, %v6908_v63  ;;  %v5633_v37 = vmul.f32 %v2316_v36, %v6909_v49  ;;  %v5636_v3 = vmul.f32 %v2316_v36, %v4886_v57  ;;  %v6914_v57 = vld [vmem:[#allocation82_spill] sm:$0xff] }
 0x409   :  { %v5639_v44 = vmul.f32 %v2316_v36, %v6817_v16  ;;  %v5642_v47 = vmul.f32 %v2316_v36, %v6879_v52  ;;  %v5645_v8 = vmul.f32 %v2316_v36, %v5100_v62  ;;  %v5648_v39 = vmul.f32 %v2316_v36, %v5289_v41  ;;  %v6916_v16 = vld [vmem:[#allocation123_spill] sm:$0xff]  ;;  %v6918_v52 = vld [vmem:[#allocation14_spill] sm:$0xff] }
 0x40a   :  { %v6920_v62 = vld [vmem:[#allocation51_spill] sm:$0xff] }
 0x40b   :  { %v6922_v41 = vld [vmem:[#allocation83_spill] sm:$0xff] }
 0x40d   :  { %v2326_v53 = vpop.permute.xlu2 %2325 }
 0x40e   :  { %v5651_v27 = vmul.f32 %v2326_v53, %v6910_v19  ;;  %v5654_v23 = vmul.f32 %v2326_v53, %v6912_v31  ;;  %v5657_v32 = vmul.f32 %v2326_v53, %v6914_v57  ;;  %v5660_v58 = vmul.f32 %v2326_v53, %v6916_v16  ;;  %v6943_v19 = vld [vmem:[#allocation140_spill] sm:$0xff]  ;;  %v6944_v57 = vld [vmem:[#allocation3_spill] sm:$0xff] }
 0x40f   :  { %v5663_v1 = vmul.f32 %v2326_v53, %v6918_v52  ;;  %v5666_v34 = vmul.f32 %v2326_v53, %v6920_v62  ;;  %v5669_v59 = vmul.f32 %v2326_v53, %v6922_v41  ;;  %v5672_v22 = vmul.f32 %v2326_v53, %v6924_v13  ;;  %v6946_v52 = vld [vmem:[#allocation31_spill] sm:$0xff] }
 0x410   :  { %6911 = vst [vmem:[#allocation80_spill] sm:$0xff] %v5651_v27  ;;  %v5675_v18 = vmul.f32 %v2326_v53, %v6926_v50  ;;  %v5678_v45 = vmul.f32 %v2326_v53, %v6928_v56  ;;  %v5681_v54 = vmul.f32 %v2326_v53, %v4762_v11  ;;  %v5684_v55 = vmul.f32 %v2326_v53, %v4924_v9  ;;  %v6937_v11 = vld [vmem:[#allocation57_spill] sm:$0xff]  ;;  %v6938_v9 = vld [vmem:[#allocation92_spill] sm:$0xff]  ;;  %v6948_v41 = vld [vmem:[#allocation67_spill] sm:$0xff] }
 0x411   :  { %6913 = vst [vmem:[#allocation122_spill] sm:$0xff] %v5654_v23  ;;  %v5687_v36 = vmul.f32 %v2326_v53, %v6829_v38  ;;  %v5690_v29 = vmul.f32 %v2326_v53, %v4969_v30  ;;  %v5693_v25 = vmul.f32 %v2326_v53, %v5160_v60  ;;  %v5696_v46 = vmul.f32 %v2326_v53, %v5310_v26  ;;  %v6939_v38 = vld [vmem:[#allocation137_spill] sm:$0xff]  ;;  %v6940_v30 = vld [vmem:[#allocation19_spill] sm:$0xff]  ;;  %v6941_v60 = vld [vmem:[#allocation58_spill] sm:$0xff] }
 0x412   :  { %6915 = vst [vmem:[#allocation141_spill] sm:$0xff] %v5657_v32  ;;  %v6942_v26 = vld [vmem:[#allocation96_spill] sm:$0xff]  ;;  %v6950_v50 = vld [vmem:[#allocation109_spill] sm:$0xff]  ;;  %v6983_v27 = vld [vmem:[#allocation10_spill] sm:$0xff] }
 0x413   :  { %6917 = vst [vmem:[#allocation158_spill] sm:$0xff] %v5660_v58  ;;  %v6981_v58 = vld [vmem:[#allocation74_spill] sm:$0xff] }
 0x414   :  { %6919 = vst [vmem:[#allocation179_spill] sm:$0xff] %v5663_v1  ;;  %v6980_v1 = vld [vmem:[#allocation43_spill] sm:$0xff] }
 0x415   :  { %v2336_v21 = vpop.permute.xlu2 %2335  ;;  %6921 = vst [vmem:[#allocation54_spill] sm:$0xff] %v5666_v34 }
 0x416   :  { %6923 = vst [vmem:[#allocation62_spill] sm:$0xff] %v5669_v59  ;;  %v5699_v5 = vmul.f32 %v2336_v21, %v6936_v4  ;;  %v5702_v40 = vmul.f32 %v2336_v21, %v6937_v11  ;;  %v5705_v6 = vmul.f32 %v2336_v21, %v6938_v9  ;;  %v5708_v43 = vmul.f32 %v2336_v21, %v6939_v38  ;;  %v6953_v11 = vld [vmem:[#allocation4_spill] sm:$0xff]  ;;  %v6955_v38 = vld [vmem:[#allocation30_spill] sm:$0xff] }
 0x417   :  { %6925 = vst [vmem:[#allocation66_spill] sm:$0xff] %v5672_v22  ;;  %v2311_v48 = vpop.permute.xlu1 %2310  ;;  %v5711_v63 = vmul.f32 %v2336_v21, %v6940_v30  ;;  %v5714_v49 = vmul.f32 %v2336_v21, %v6941_v60  ;;  %v5717_v53 = vmul.f32 %v2336_v21, %v6942_v26  ;;  %v5720_v31 = vmul.f32 %v2336_v21, %v6943_v19  ;;  %v6957_v60 = vld [vmem:[#allocation68_spill] sm:$0xff]  ;;  %v6959_v19 = vld [vmem:[#allocation110_spill] sm:$0xff] }
 0x418   :  { %6927 = vst [vmem:[#allocation150_spill] sm:$0xff] %v5675_v18  ;;  %v5723_v16 = vmul.f32 %v2311_v48, %v6944_v57  ;;  %v5726_v62 = vmul.f32 %v2311_v48, %v6946_v52  ;;  %v5729_v13 = vmul.f32 %v2311_v48, %v6948_v41  ;;  %v5732_v56 = vmul.f32 %v2311_v48, %v6950_v50  ;;  %v6961_v52 = vld [vmem:[#allocation5_spill] sm:$0xff] }
 0x419   :  { %6929 = vst [vmem:[#allocation27_spill] sm:$0xff] %v5678_v45  ;;  %v5737_v9 = vmul.f32 %v2311_v48, %v6953_v11  ;;  %v5740_v30 = vmul.f32 %v2311_v48, %v6955_v38  ;;  %v5743_v26 = vmul.f32 %v2311_v48, %v6957_v60  ;;  %v5746_v57 = vmul.f32 %v2311_v48, %v6959_v19 }
 0x41a   :  { %6930 = vst [vmem:[#allocation85_spill] sm:$0xff] %v5681_v54  ;;  %v5749_v41 = vmul.f32 %v2311_v48, %v6961_v52  ;;  %v5758_v11 = vmul.f32 %v2311_v48, %v4866_v42  ;;  %v5761_v38 = vmul.f32 %v2311_v48, %v6814_v51  ;;  %v5764_v60 = vmul.f32 %v2311_v48, %v6878_v33  ;;  %v6974_v51 = vld [vmem:[#allocation184_spill] sm:$0xff]  ;;  %v6975_v33 = vld [vmem:[#allocation165_spill] sm:$0xff] }
 0x41b   :  { %6931 = vst [vmem:[#allocation152_spill] sm:$0xff] %v5684_v55  ;;  %v5767_v19 = vmul.f32 %v2311_v48, %v5080_v17  ;;  %v5770_v52 = vmul.f32 %v2311_v48, %v5277_v2  ;;  %v5779_v42 = vmul.f32 %v2336_v21, %v4803_v15  ;;  %v5782_v45 = vmul.f32 %v2336_v21, %v6974_v51  ;;  %v6976_v17 = vld [vmem:[#allocation187_spill] sm:$0xff]  ;;  %v6977_v2 = vld [vmem:[#allocation121_spill] sm:$0xff]  ;;  %v6982_v51 = vld [vmem:[#allocation116_spill] sm:$0xff] }
 0x41c   :  { %6932 = vst [vmem:[#allocation73_spill] sm:$0xff] %v5687_v36  ;;  %v6972_v36 = vld [vmem:[#allocation21_spill] sm:$0xff]  ;;  %v5785_v18 = vmul.f32 %v2336_v21, %v6975_v33  ;;  %v5788_v22 = vmul.f32 %v2336_v21, %v6976_v17 }
 0x41d   :  { %6933 = vst [vmem:[#allocation128_spill] sm:$0xff] %v5690_v29  ;;  %v5734_v4 = vpop.permute.xlu2 %2345  ;;  %v5773_v55 = vmul.f32 %v2336_v21, %v6972_v36  ;;  %v6978_v36 = vld [vmem:[#allocation159_spill] sm:$0xff]  ;;  %v6985_v17 = vld [vmem:[#allocation77_spill] sm:$0xff] }
 0x41e   :  { %6934 = vst [vmem:[#allocation79_spill] sm:$0xff] %v5693_v25  ;;  %v6965_v25 = vld [vmem:[#allocation130_spill] sm:$0xff]  ;;  %v5794_v59 = vmul.f32 %v2336_v21, %v6978_v36 }
 0x41f   :  { %6935 = vst [vmem:[#allocation35_spill] sm:$0xff] %v5696_v46  ;;  %v6963_v46 = vld [vmem:[#allocation97_spill] sm:$0xff]  ;;  %v5755_v29 = vmul.f32 %v2311_v48, %v6965_v25  ;;  %v6988_v36 = vld [vmem:[#allocation106_spill] sm:$0xff] }
 0x420   :  { %6945 = vst [vmem:[#allocation91_spill] sm:$0xff] %v5723_v16  ;;  %v5752_v50 = vmul.f32 %v2311_v48, %v6963_v46  ;;  %v2321_v46 = vpop.permute.xlu0 %2320  ;;  %v6973_v25 = vld [vmem:[#allocation113_spill] sm:$0xff]  ;;  %v5791_v48 = vmul.f32 %v2336_v21, %v6977_v2 }
 0x421   :  { %6947 = vst [vmem:[#allocation163_spill] sm:$0xff] %v5726_v62  ;;  %v5776_v54 = vmul.f32 %v2336_v21, %v6973_v25  ;;  %v6979_v25 = vld [vmem:[#allocation9_spill] sm:$0xff]  ;;  %v2438_v15 = vmul.f32 %v2321_v46, %v6980_v1  ;;  %v2486_v32 = vmul.f32 %v2321_v46, %v6981_v58  ;;  %v2534_v23 = vmul.f32 %v2321_v46, %v6982_v51  ;;  %v6992_v51 = vld [vmem:[#allocation182_spill] sm:$0xff] }
 0x422   :  { %6949 = vst [vmem:[#allocation126_spill] sm:$0xff] %v5729_v13  ;;  %v2350_v34 = vmul.f32 %v2321_v46, %v6979_v25  ;;  %v2582_v33 = vmul.f32 %v2321_v46, %v6983_v27  ;;  %v6989_v25 = vld [vmem:[#allocation144_spill] sm:$0xff]  ;;  %v6990_v1 = vld [vmem:[#allocation177_spill] sm:$0xff]  ;;  %v6993_v27 = vld [vmem:[#allocation78_spill] sm:$0xff] }
 0x423   :  { %6951 = vst [vmem:[#allocation41_spill] sm:$0xff] %v5732_v56  ;;  %v6991_v58 = vld [vmem:[#allocation153_spill] sm:$0xff]  ;;  %v6995_v56 = vld [vmem:[#allocation15_spill] sm:$0xff] }
 0x424   :  { %6952 = vst [vmem:[#allocation93_spill] sm:$0xff] %v5734_v4  ;;  %v6984_v4 = vld [vmem:[#allocation44_spill] sm:$0xff]  ;;  %v6997_v13 = vld [vmem:[#allocation53_spill] sm:$0xff] }
 0x425   :  { %6954 = vst [vmem:[#allocation167_spill] sm:$0xff] %v5737_v9 }
 0x426   :  { %6956 = vst [vmem:[#allocation157_spill] sm:$0xff] %v5740_v30  ;;  %v3062_v30 = vmul.f32 %v2321_v46, %v6993_v27 }
 0x427   :  { %6958 = vst [vmem:[#allocation26_spill] sm:$0xff] %v5743_v26  ;;  %v3014_v26 = vmul.f32 %v2321_v46, %v6992_v51  ;;  %v7005_v51 = vld [vmem:[#allocation55_spill] sm:$0xff] }
 0x428   :  { %6960 = vst [vmem:[#allocation138_spill] sm:$0xff] %v5746_v57  ;;  %v2966_v57 = vmul.f32 %v2321_v46, %v6991_v58  ;;  %v7003_v58 = vld [vmem:[#allocation16_spill] sm:$0xff] }
 0x429   :  { %6962 = vst [vmem:[#allocation37_spill] sm:$0xff] %v5749_v41  ;;  %v2918_v41 = vmul.f32 %v2321_v46, %v6990_v1 }
 0x42a   :  { %6964 = vst [vmem:[#allocation176_spill] sm:$0xff] %v5752_v50  ;;  %v2870_v50 = vmul.f32 %v2321_v46, %v6989_v25  ;;  %v7001_v25 = vld [vmem:[#allocation129_spill] sm:$0xff] }
 0x42b   :  { %6966 = vst [vmem:[#allocation59_spill] sm:$0xff] %v5755_v29  ;;  %v2822_v29 = vmul.f32 %v2321_v46, %v6988_v36  ;;  %v6999_v36 = vld [vmem:[#allocation87_spill] sm:$0xff] }
 0x42c   :  { %6967 = vst [vmem:[#allocation81_spill] sm:$0xff] %v5758_v11  ;;  %v6987_v11 = vld [vmem:[#allocation12_spill] sm:$0xff] }
 0x42d   :  { %6968 = vst [vmem:[#allocation89_spill] sm:$0xff] %v5761_v38  ;;  %v2331_v38 = vpop.permute.xlu1 %2330  ;;  %v2774_v21 = vmul.f32 %v2321_v46, %v6987_v11 }
 0x42e   :  { %6969 = vst [vmem:[#allocation49_spill] sm:$0xff] %v5764_v60  ;;  %v6986_v60 = vld [vmem:[#allocation119_spill] sm:$0xff]  ;;  %v5816_v11 = vmul.f32 %v2331_v38, %v6997_v13  ;;  %v5819_v62 = vmul.f32 %v2331_v38, %v6999_v36  ;;  %v5822_v1 = vmul.f32 %v2331_v38, %v7001_v25  ;;  %v5825_v16 = vmul.f32 %v2331_v38, %v7003_v58 }
 0x42f   :  { %6970 = vst [vmem:[#allocation120_spill] sm:$0xff] %v5767_v19  ;;  %v2678_v19 = vmul.f32 %v2321_v46, %v6985_v17  ;;  %v2726_v2 = vmul.f32 %v2321_v46, %v6986_v60  ;;  %v2369_v17 = vpop.permute.xlu2 %2368  ;;  %v5813_v60 = vmul.f32 %v2331_v38, %v6995_v56  ;;  %v5828_v27 = vmul.f32 %v2331_v38, %v7005_v51  ;;  %v7009_v56 = vld [vmem:[#allocation132_spill] sm:$0xff] }
 0x430   :  { %6971 = vst [vmem:[#allocation65_spill] sm:$0xff] %v5770_v52  ;;  %v2630_v52 = vmul.f32 %v2321_v46, %v6984_v4  ;;  %v6994_v4 = vld [vmem:[#allocation56_spill] sm:$0xff]  ;;  %v5836_v13 = vadd.f32 %v2369_v17, %v2350_v34  ;;  %v5840_v36 = vadd.f32 %v2486_v32, %v2369_v17  ;;  %v5842_v25 = vadd.f32 %v2534_v23, %v2369_v17  ;;  %v7021_v32 = vld [vmem:[#allocation183_spill] sm:$0xff] }
 0x431   :  { %v3110_v9 = vmul.f32 %v2321_v46, %v6994_v4  ;;  %6996 = vst [vmem:[#allocation69_spill] sm:$0xff] %v5813_v60  ;;  %v7007_v46 = vld [vmem:[#allocation88_spill] sm:$0xff]  ;;  %v5834_v60 = vmul.f32 %v2331_v38, %v7009_v56  ;;  %v5848_v51 = vadd.f32 %v2678_v19, %v2369_v17  ;;  %v7018_v56 = vld [vmem:[#allocation111_spill] sm:$0xff]  ;;  %v5862_v23 = vmul.f32 %v2331_v38, %v7021_v32 }
 0x432   :  { %6998 = vst [vmem:[#allocation133_spill] sm:$0xff] %v5816_v11  ;;  %v5831_v4 = vmul.f32 %v2331_v38, %v7007_v46  ;;  %v5838_v11 = vadd.f32 %v2438_v15, %v2369_v17  ;;  %v5846_v58 = vadd.f32 %v2630_v52, %v2369_v17  ;;  %v7016_v46 = vld [vmem:[#allocation17_spill] sm:$0xff]  ;;  %v5856_v34 = vmul.f32 %v2331_v38, %v7018_v56  ;;  %v7019_v15 = vld [vmem:[#allocation151_spill] sm:$0xff] }
 0x433   :  { %7000 = vst [vmem:[#allocation99_spill] sm:$0xff] %v5819_v62  ;;  %v7024_v52 = vld [vmem:[#allocation185_spill] sm:$0xff]  ;;  %v5894_v32 = vadd.f32 %v3014_v26, %v2369_v17 }
 0x434   :  { %7002 = vst [vmem:[#allocation76_spill] sm:$0xff] %v5822_v1  ;;  %v5844_v1 = vadd.f32 %v2582_v33, %v2369_v17  ;;  %v7022_v33 = vld [vmem:[#allocation162_spill] sm:$0xff]  ;;  %v5868_v19 = vmul.f32 %v2331_v38, %v7024_v52 }
 0x435   :  { %7004 = vst [vmem:[#allocation164_spill] sm:$0xff] %v5825_v16  ;;  %v5865_v16 = vmul.f32 %v2331_v38, %v7022_v33  ;;  %v5896_v33 = vadd.f32 %v3062_v30, %v2369_v17 }
 0x436   :  { %7006 = vst [vmem:[#allocation172_spill] sm:$0xff] %v5828_v27  ;;  %v5850_v27 = vadd.f32 %v2726_v2, %v2369_v17  ;;  %v7026_v2 = vld [vmem:[#allocation75_spill] sm:$0xff] }
 0x437   :  { %7008 = vst [vmem:[#allocation28_spill] sm:$0xff] %v5831_v4  ;;  %v5853_v4 = vmul.f32 %v2331_v38, %v7016_v46  ;;  %v5871_v62 = vmul.f32 %v2331_v38, %v7026_v2  ;;  %v7028_v46 = vld [vmem:[#allocation117_spill] sm:$0xff]  ;;  %v2384_v2 = vpop.permute.xlu2 %2383 }
 0x438   :  { %7010 = vst [vmem:[#allocation84_spill] sm:$0xff] %v5834_v60  ;;  %v5859_v60 = vmul.f32 %v2331_v38, %v7019_v15  ;;  %v5890_v15 = vadd.f32 %v2918_v41, %v2369_v17  ;;  %v2401_v26 = vadd.f32 %v2384_v2, %v5699_v5 }
 0x439   :  { %7011 = vst [vmem:[#allocation143_spill] sm:$0xff] %v5842_v25 }
 0x43a   :  { %7012 = vst [vmem:[#allocation40_spill] sm:$0xff] %v5844_v1 }
 0x43b   :  { %7013 = vst [vmem:[#allocation94_spill] sm:$0xff] %v5846_v58 }
 0x43c   :  { %7014 = vst [vmem:[#allocation34_spill] sm:$0xff] %v5848_v51 }
 0x43d   :  { %7015 = vst [vmem:[#allocation127_spill] sm:$0xff] %v5850_v27 }
 0x43e   :  { %7017 = vst [vmem:[#allocation45_spill] sm:$0xff] %v5853_v4  ;;  %v5874_v4 = vmul.f32 %v2331_v38, %v7028_v46  ;;  %v5886_v38 = vadd.f32 %v2822_v29, %v2369_v17  ;;  %v5888_v46 = vadd.f32 %v2870_v50, %v2369_v17  ;;  %v2545_v50 = vadd.f32 %v5708_v43, %v2384_v2 }
 0x43f   :  { %7020 = vst [vmem:[#allocation86_spill] sm:$0xff] %v5859_v60  ;;  %v5892_v60 = vadd.f32 %v2966_v57, %v2369_v17 }
 0x440   :  { %7023 = vst [vmem:[#allocation46_spill] sm:$0xff] %v5865_v16  ;;  %v5898_v16 = vadd.f32 %v3110_v9, %v2369_v17 }
 0x441   :  { %7025 = vst [vmem:[#allocation101_spill] sm:$0xff] %v5868_v19  ;;  %v5884_v19 = vadd.f32 %v2774_v21, %v2369_v17 }
 0x442   :  { %7027 = vst [vmem:[#allocation139_spill] sm:$0xff] %v5871_v62  ;;  %v2364_v62 = vpop.permute.xlu0 %2363 }
 0x443   :  { %7029 = vst [vmem:[#allocation168_spill] sm:$0xff] %v5884_v19  ;;  %v5901_v52 = vadd.f32 %v2364_v62, %v5603_v35  ;;  %v5904_v21 = vadd.f32 %v5606_v0, %v2364_v62  ;;  %v5907_v29 = vadd.f32 %v5609_v7, %v2364_v62  ;;  %v5910_v41 = vadd.f32 %v5612_v10, %v2364_v62 }
 0x444   :  { %7030 = vst [vmem:[#allocation174_spill] sm:$0xff] %v5886_v38  ;;  %v5913_v57 = vadd.f32 %v5615_v28, %v2364_v62  ;;  %v5916_v30 = vadd.f32 %v5618_v14, %v2364_v62  ;;  %v5919_v9 = vadd.f32 %v5621_v61, %v2364_v62  ;;  %v5922_v35 = vadd.f32 %v5624_v24, %v2364_v62 }
 0x445   :  { %7031 = vst [vmem:[#allocation170_spill] sm:$0xff] %v5888_v46  ;;  %v5941_v14 = vadd.f32 %v5627_v12, %v2364_v62  ;;  %v5944_v61 = vadd.f32 %v5630_v20, %v2364_v62  ;;  %v5947_v56 = vadd.f32 %v5633_v37, %v2364_v62  ;;  %v5950_v7 = vadd.f32 %v5636_v3, %v2364_v62 }
 0x446   :  { %7032 = vst [vmem:[#allocation135_spill] sm:$0xff] %v5890_v15  ;;  %v2449_v10 = vadd.f32 %v5702_v40, %v2384_v2  ;;  %v2497_v28 = vadd.f32 %v5705_v6, %v2384_v2  ;;  %v2593_v12 = vadd.f32 %v5711_v63, %v2384_v2  ;;  %v2641_v0 = vadd.f32 %v5714_v49, %v2384_v2  ;;  %v7042_v15 = vld [vmem:[#allocation164_spill] sm:$0xff] }
 0x447   :  { %7033 = vst [vmem:[#allocation32_spill] sm:$0xff] %v5892_v60  ;;  %v5959_v20 = vadd.f32 %v5717_v53, %v2384_v2  ;;  %v5962_v37 = vadd.f32 %v5720_v31, %v2384_v2  ;;  %v5965_v3 = vadd.f32 %v5639_v44, %v2364_v62  ;;  %v5968_v5 = vadd.f32 %v5642_v47, %v2364_v62  ;;  %v7041_v60 = vld [vmem:[#allocation76_spill] sm:$0xff] }
 0x448   :  { %7034 = vst [vmem:[#allocation175_spill] sm:$0xff] %v5894_v32  ;;  %v5971_v40 = vadd.f32 %v5645_v8, %v2364_v62  ;;  %v5974_v6 = vadd.f32 %v5648_v39, %v2364_v62  ;;  %v2409_v63 = vmax.f32 %v2401_v26, 0.0  ;;  %v2457_v49 = vmax.f32 %v2449_v10, 0.0 }
 0x449   :  { %7035 = vst [vmem:[#allocation50_spill] sm:$0xff] %v5896_v33  ;;  %v2505_v53 = vmax.f32 %v2497_v28, 0.0  ;;  %v2553_v24 = vmax.f32 %v2545_v50, 0.0  ;;  %v5978_v31 = vadd.f32 %v5773_v55, %v2384_v2  ;;  %v5981_v44 = vadd.f32 %v5776_v54, %v2384_v2 }
 0x44a   :  { %7036 = vst [vmem:[#allocation36_spill] sm:$0xff] %v5898_v16  ;;  %v5984_v47 = vadd.f32 %v5779_v42, %v2384_v2  ;;  %v2601_v8 = vmax.f32 %v2593_v12, 0.0  ;;  %v2649_v17 = vmax.f32 %v2641_v0, 0.0  ;;  %v2697_v39 = vmax.f32 %v5959_v20, 0.0  ;;  %v2379_v43 = vpop.permute.xlu0 %2378  ;;  %v6000_v42 = vpop.permute.xlu1 %2340  ;;  %v7038_v12 = vld [vmem:[#allocation69_spill] sm:$0xff] }
 0x44b   :  { %v2745_v62 = vmax.f32 %v5962_v37, 0.0  ;;  %v5989_v26 = vadd.f32 %v5782_v45, %v2384_v2  ;;  %v5992_v10 = vadd.f32 %v5785_v18, %v2384_v2  ;;  %v5995_v55 = vadd.f32 %v5788_v22, %v2384_v2  ;;  %7037 = vst [vmem:[#allocation90_spill] sm:$0xff] %v6000_v42  ;;  %v7039_v20 = vld [vmem:[#allocation133_spill] sm:$0xff]  ;;  %v7040_v22 = vld [vmem:[#allocation99_spill] sm:$0xff]  ;;  %v7043_v42 = vld [vmem:[#allocation172_spill] sm:$0xff] }
 0x44c   :  { %v5998_v54 = vadd.f32 %v5791_v48, %v2384_v2  ;;  %v2793_v0 = vmax.f32 %v5978_v31, 0.0  ;;  %v2841_v28 = vmax.f32 %v5981_v44, 0.0  ;;  %v2889_v50 = vmax.f32 %v5984_v47, 0.0  ;;  %v7044_v31 = vld [vmem:[#allocation28_spill] sm:$0xff] }
 0x44d   :  { %v6006_v45 = vadd.f32 %v5794_v59, %v2384_v2  ;;  %v2400_v18 = vadd.f32 %v2379_v43, %v7038_v12  ;;  %v2448_v37 = vadd.f32 %v7039_v20, %v2379_v43  ;;  %v2496_v32 = vadd.f32 %v7040_v22, %v2379_v43  ;;  %v7045_v44 = vld [vmem:[#allocation84_spill] sm:$0xff] }
 0x44e   :  { %v2544_v48 = vadd.f32 %v7041_v60, %v2379_v43  ;;  %v2592_v16 = vadd.f32 %v7042_v15, %v2379_v43  ;;  %v2640_v33 = vadd.f32 %v7043_v42, %v2379_v43  ;;  %v2688_v46 = vadd.f32 %v7044_v31, %v2379_v43 }
 0x44f   :  { %v2736_v38 = vadd.f32 %v7045_v44, %v2379_v43  ;;  %v2408_v47 = vmax.f32 %v2400_v18, 0.0  ;;  %v2456_v19 = vmax.f32 %v2448_v37, 0.0  ;;  %v2504_v59 = vmax.f32 %v2496_v32, 0.0  ;;  %v7046_v32 = vld [vmem:[#allocation45_spill] sm:$0xff]  ;;  %v7047_v37 = vld [vmem:[#allocation86_spill] sm:$0xff] }
 0x450   :  { %v2552_v2 = vmax.f32 %v2544_v48, 0.0  ;;  %v2937_v12 = vmax.f32 %v5989_v26, 0.0  ;;  %v2985_v20 = vmax.f32 %v5992_v10, 0.0  ;;  %v2600_v27 = vmax.f32 %v2592_v16, 0.0 }
 0x451   :  { %v2648_v22 = vmax.f32 %v2640_v33, 0.0  ;;  %v3554_v51 = vpack.c.bf16 %v2409_v63, %v2408_v47  ;;  %v3574_v60 = vpack.c.bf16 %v2457_v49, %v2456_v19  ;;  %v3594_v58 = vpack.c.bf16 %v2505_v53, %v2504_v59  ;;  %v7048_v19 = vld [vmem:[#allocation46_spill] sm:$0xff]  ;;  %v7049_v33 = vld [vmem:[#allocation101_spill] sm:$0xff]  ;;  %v7052_v59 = vld [vmem:[#allocation163_spill] sm:$0xff] }
 0x452   :  { %v2696_v15 = vmax.f32 %v2688_v46, 0.0  ;;  %v3614_v1 = vpack.c.bf16 %v2553_v24, %v2552_v2  ;;  %v3634_v42 = vpack.c.bf16 %v2601_v8, %v2600_v27  ;;  %v2744_v31 = vmax.f32 %v2736_v38, 0.0  ;;  %v7050_v46 = vld [vmem:[#allocation139_spill] sm:$0xff]  ;;  %v2359_v44 = vpop.permute.xlu1 %2358 }
 0x453   :  { %v3654_v25 = vpack.c.bf16 %v2649_v17, %v2648_v22  ;;  %3862 = vst [vmem:[%s6468_s4 + $0x10] sm:$0xff] %v3554_v51   ;;  %v2784_v18 = vadd.f32 %v7046_v32, %v2379_v43  ;;  %v2832_v26 = vadd.f32 %v5856_v34, %v2379_v43  ;;  %v2880_v10 = vadd.f32 %v7047_v37, %v2379_v43  ;;  %v7053_v22 = vld [vmem:[#allocation126_spill] sm:$0xff] }
 0x454   :  { %v2928_v16 = vadd.f32 %v5862_v23, %v2379_v43  ;;  %3866 = vst [vmem:[%s6468_s4 + $0x30] sm:$0xff] %v3574_v60   ;;  %v2976_v27 = vadd.f32 %v7048_v19, %v2379_v43  ;;  %v3024_v38 = vadd.f32 %v7049_v33, %v2379_v43  ;;  %v3072_v17 = vadd.f32 %v7050_v46, %v2379_v43  ;;  %v7054_v60 = vld [vmem:[#allocation41_spill] sm:$0xff]  ;;  %v7057_v32 = vld [vmem:[#allocation26_spill] sm:$0xff] }
 0x455   :  { %v3120_v51 = vadd.f32 %v5874_v4, %v2379_v43  ;;  %3870 = vst [vmem:[%s6468_s4 + $0x50] sm:$0xff] %v3594_v58   ;;  %v3674_v34 = vpack.c.bf16 %v2697_v39, %v2696_v15  ;;  %v2792_v24 = vmax.f32 %v2784_v18, 0.0  ;;  %v2840_v63 = vmax.f32 %v2832_v26, 0.0 }
 0x456   :  { %v2888_v23 = vmax.f32 %v2880_v10, 0.0  ;;  %v3033_v49 = vmax.f32 %v5995_v55, 0.0  ;;  %v3081_v53 = vmax.f32 %v5998_v54, 0.0  ;;  %3874 = vst [vmem:[%s6468_s4 + $0x70] sm:$0xff] %v3614_v1   ;;  %v3694_v8 = vpack.c.bf16 %v2745_v62, %v2744_v31  ;;  %v7051_v62 = vld [vmem:[#allocation91_spill] sm:$0xff] }
 0x457   :  { %v2936_v48 = vmax.f32 %v2928_v16, 0.0  ;;  %v3129_v4 = vmax.f32 %v6006_v45, 0.0  ;;  %3878 = vst [vmem:[%s6468_s4 + $0x90] sm:$0xff] %v3634_v42   ;;  %v3714_v58 = vpack.c.bf16 %v2793_v0, %v2792_v24  ;;  %v2984_v43 = vmax.f32 %v2976_v27, 0.0  ;;  %v7056_v42 = vld [vmem:[#allocation157_spill] sm:$0xff] }
 0x458   :  { %v3032_v39 = vmax.f32 %v3024_v38, 0.0  ;;  %3882 = vst [vmem:[%s6468_s4 + $0xb0] sm:$0xff] %v3654_v25   ;;  %v3734_v55 = vpack.c.bf16 %v2841_v28, %v2840_v63  ;;  %v3754_v54 = vpack.c.bf16 %v2889_v50, %v2888_v23  ;;  %v3080_v47 = vmax.f32 %v3072_v17, 0.0  ;;  %v7055_v28 = vld [vmem:[#allocation167_spill] sm:$0xff]  ;;  %v7058_v17 = vld [vmem:[#allocation138_spill] sm:$0xff] }
 0x459   :  { %v3128_v1 = vmax.f32 %v3120_v51, 0.0  ;;  %3886 = vst [vmem:[%s6468_s4 + $0xd0] sm:$0xff] %v3674_v34   ;;  %v2396_v45 = vadd.f32 %v2359_v44, %v7051_v62  ;;  %v2444_v2 = vadd.f32 %v7052_v59, %v2359_v44  ;;  %v2492_v0 = vadd.f32 %v7053_v22, %v2359_v44  ;;  %v7068_v62 = vld [vmem:[#allocation65_spill] sm:$0xff] }
 0x45a   :  { %v2540_v15 = vadd.f32 %v7054_v60, %v2359_v44  ;;  %3890 = vst [vmem:[%s6468_s4 + $0xf0] sm:$0xff] %v3694_v8   ;;  %v3774_v25 = vpack.c.bf16 %v2937_v12, %v2936_v48  ;;  %v2588_v50 = vadd.f32 %v7055_v28, %v2359_v44  ;;  %v2636_v31 = vadd.f32 %v7056_v42, %v2359_v44  ;;  %v7062_v8 = vld [vmem:[#allocation176_spill] sm:$0xff] }
 0x45b   :  { %v2684_v18 = vadd.f32 %v7057_v32, %v2359_v44  ;;  %v2837_v26 = vmax.f32 %v5944_v61, 0.0  ;;  %3894 = vst [vmem:[%s6468_s4 + $0x110] sm:$0xff] %v3714_v58   ;;  %v3794_v37 = vpack.c.bf16 %v2985_v20, %v2984_v43  ;;  %v2404_v10 = vmax.f32 %v2396_v45, 0.0  ;;  %v7064_v43 = vld [vmem:[#allocation81_spill] sm:$0xff] }
 0x45c   :  { %v2452_v16 = vmax.f32 %v2444_v2, 0.0  ;;  %v2885_v19 = vmax.f32 %v5947_v56, 0.0  ;;  %3898 = vst [vmem:[%s6468_s4 + $0x130] sm:$0xff] %v3734_v55   ;;  %v3814_v12 = vpack.c.bf16 %v3033_v49, %v3032_v39  ;;  %v3834_v27 = vpack.c.bf16 %v3081_v53, %v3080_v47  ;;  %v7061_v49 = vld [vmem:[#allocation37_spill] sm:$0xff]  ;;  %v7067_v47 = vld [vmem:[#allocation120_spill] sm:$0xff] }
 0x45d   :  { %v3854_v33 = vpack.c.bf16 %v3129_v4, %v3128_v1  ;;  %3902 = vst [vmem:[%s6468_s4 + $0x150] sm:$0xff] %v3754_v54   ;;  %v2500_v61 = vmax.f32 %v2492_v0, 0.0  ;;  %v2548_v38 = vmax.f32 %v2540_v15, 0.0  ;;  %v2596_v46 = vmax.f32 %v2588_v50, 0.0  ;;  %v7063_v4 = vld [vmem:[#allocation59_spill] sm:$0xff]  ;;  %v7066_v55 = vld [vmem:[#allocation49_spill] sm:$0xff] }
 0x45e   :  { %v2732_v20 = vadd.f32 %v7058_v17, %v2359_v44  ;;  %3906 = vst [vmem:[%s6468_s4 + $0x170] sm:$0xff] %v3774_v25   ;;  %v7059_v56 = vmax.f32 %v5901_v52, 0.0  ;;  %v7060_v34 = vmax.f32 %v5904_v21, 0.0  ;;  %v2644_v63 = vmax.f32 %v2636_v31, 0.0  ;;  %v7065_v52 = vld [vmem:[#allocation89_spill] sm:$0xff] }
 0x45f   :  { %v2692_v23 = vmax.f32 %v2684_v18, 0.0  ;;  %3910 = vst [vmem:[%s6468_s4 + $0x190] sm:$0xff] %v3794_v37   ;;  %v2780_v53 = vadd.f32 %v7061_v49, %v2359_v44  ;;  %v2828_v48 = vadd.f32 %v7062_v8, %v2359_v44  ;;  %v2876_v58 = vadd.f32 %v7063_v4, %v2359_v44  ;;  %v7081_v49 = vld [vmem:[#allocation25_spill] sm:$0xff]  ;;  %v7082_v8 = vld [vmem:[#allocation64_spill] sm:$0xff]  ;;  %v7083_v4 = vld [vmem:[#allocation107_spill] sm:$0xff] }
 0x460   :  { %v3544_v51 = vpack.c.bf16 %v7059_v56, %v2404_v10  ;;  %v3564_v24 = vpack.c.bf16 %v7060_v34, %v2452_v16  ;;  %v2924_v39 = vadd.f32 %v7064_v43, %v2359_v44  ;;  %3914 = vst [vmem:[%s6468_s4 + $0x1b0] sm:$0xff] %v3814_v12   ;;  %v2972_v21 = vadd.f32 %v7065_v52, %v2359_v44  ;;  %v7076_v56 = vld [vmem:[#allocation23_spill] sm:$0xff]  ;;  %v7079_v34 = vld [vmem:[#allocation105_spill] sm:$0xff] }
 0x461   :  { %v3020_v54 = vadd.f32 %v7066_v55, %v2359_v44  ;;  %v3068_v1 = vadd.f32 %v7067_v47, %v2359_v44  ;;  %v3116_v45 = vadd.f32 %v7068_v62, %v2359_v44  ;;  %3918 = vst [vmem:[%s6468_s4 + $0x1d0] sm:$0xff] %v3834_v27   ;;  %v7069_v59 = vmax.f32 %v5907_v29, 0.0  ;;  %v7084_v43 = vld [vmem:[#allocation149_spill] sm:$0xff] }
 0x462   :  { %v7070_v22 = vmax.f32 %v5910_v41, 0.0  ;;  %v7071_v60 = vmax.f32 %v5913_v57, 0.0  ;;  %v2740_v25 = vmax.f32 %v2732_v20, 0.0  ;;  %3922 = vst [vmem:[%s6468_s4 + $0x1f0] sm:$0xff] %v3854_v33   ;;  %v2788_v28 = vmax.f32 %v2780_v53, 0.0 }
 0x463   :  { %v3584_v2 = vpack.c.bf16 %v7069_v59, %v2500_v61  ;;  %v2836_v44 = vmax.f32 %v2828_v48, 0.0  ;;  %v2884_v50 = vmax.f32 %v2876_v58, 0.0  ;;  %v2932_v42 = vmax.f32 %v2924_v39, 0.0  ;;  %3545 = vst [vmem:[%s6468_s4] sm:$0xff] %v3544_v51   ;;  %v7085_v59 = vld [vmem:[#allocation29_spill] sm:$0xff] }
 0x464   :  { %v3604_v0 = vpack.c.bf16 %v7070_v22, %v2548_v38  ;;  %v3624_v15 = vpack.c.bf16 %v7071_v60, %v2596_v46  ;;  %v2980_v29 = vmax.f32 %v2972_v21, 0.0  ;;  %v3028_v31 = vmax.f32 %v3020_v54, 0.0  ;;  %3864 = vst [vmem:[%s6468_s4 + $0x20] sm:$0xff] %v3564_v24   ;;  %v7086_v22 = vld [vmem:[#allocation124_spill] sm:$0xff]  ;;  %v7087_v60 = vld [vmem:[#allocation161_spill] sm:$0xff] }
 0x465   :  { %v3076_v41 = vmax.f32 %v3068_v1, 0.0  ;;  %v3124_v32 = vmax.f32 %v3116_v45, 0.0  ;;  %v2933_v57 = vmax.f32 %v5950_v7, 0.0  ;;  %v2981_v18 = vmax.f32 %v5965_v3, 0.0  ;;  %3868 = vst [vmem:[%s6468_s4 + $0x40] sm:$0xff] %v3584_v2  }
 0x466   :  { %v3029_v37 = vmax.f32 %v5968_v5, 0.0  ;;  %v7072_v10 = vmax.f32 %v5916_v30, 0.0  ;;  %v3077_v12 = vmax.f32 %v5971_v40, 0.0  ;;  %v3125_v27 = vmax.f32 %v5974_v6, 0.0  ;;  %3872 = vst [vmem:[%s6468_s4 + $0x60] sm:$0xff] %v3604_v0  }
 0x467   :  { %v7073_v7 = vmax.f32 %v5919_v9, 0.0  ;;  %v7074_v5 = vmax.f32 %v5922_v35, 0.0  ;;  %v7075_v30 = vmax.f32 %v5941_v14, 0.0  ;;  %v3724_v40 = vpack.c.bf16 %v2837_v26, %v2836_v44  ;;  %3876 = vst [vmem:[%s6468_s4 + $0x80] sm:$0xff] %v3624_v15   ;;  %v6133_v35 = vpop.permute.xlu0 %2393  ;;  %v7077_v14 = vld [vmem:[#allocation93_spill] sm:$0xff]  ;;  %v7078_v26 = vld [vmem:[#allocation63_spill] sm:$0xff] }
 0x468   :  { %v3644_v16 = vpack.c.bf16 %v7072_v10, %v2644_v63  ;;  %v3744_v38 = vpack.c.bf16 %v2885_v19, %v2884_v50  ;;  %v3764_v6 = vpack.c.bf16 %v2933_v57, %v2932_v42  ;;  %v3784_v46 = vpack.c.bf16 %v2981_v18, %v2980_v29  ;;  %v7080_v63 = vld [vmem:[#allocation148_spill] sm:$0xff]  ;;  %v7089_v44 = vld [vmem:[#allocation173_spill] sm:$0xff]  ;;  %v7090_v42 = vld [vmem:[#allocation155_spill] sm:$0xff] }
 0x469   :  { %v3664_v3 = vpack.c.bf16 %v7073_v7, %v2692_v23  ;;  %v3684_v33 = vpack.c.bf16 %v7074_v5, %v2740_v25  ;;  %v3704_v61 = vpack.c.bf16 %v7075_v30, %v2788_v28  ;;  %v3804_v9 = vpack.c.bf16 %v3029_v37, %v3028_v31  ;;  %3896 = vst [vmem:[%s6468_s4 + $0x120] sm:$0xff] %v3724_v40   ;;  %v7088_v25 = vld [vmem:[#allocation154_spill] sm:$0xff]  ;;  %v7091_v31 = vld [vmem:[#allocation115_spill] sm:$0xff] }
 0x46a   :  { %v3824_v17 = vpack.c.bf16 %v3077_v12, %v3076_v41  ;;  %v3844_v20 = vpack.c.bf16 %v3125_v27, %v3124_v32  ;;  %3880 = vst [vmem:[%s6468_s4 + $0xa0] sm:$0xff] %v3644_v16   ;;  %v2355_v51 = vmul.f32 %v7077_v14, %v7076_v56  ;;  %v2443_v19 = vmul.f32 %v7077_v14, %v7078_v26  ;;  %v7092_v32 = vld [vmem:[#allocation104_spill] sm:$0xff]  ;;  %v2374_v12 = vpop.permute.xlu1 %2373  ;;  %v7095_v56 = vld [vmem:[#allocation141_spill] sm:$0xff] }
 0x46b   :  { %v2491_v24 = vmul.f32 %v7077_v14, %v7079_v34  ;;  %v2539_v23 = vmul.f32 %v7077_v14, %v7080_v63  ;;  %3884 = vst [vmem:[%s6468_s4 + $0xc0] sm:$0xff] %v3664_v3   ;;  %v2587_v53 = vmul.f32 %v7077_v14, %v7081_v49  ;;  %v2635_v48 = vmul.f32 %v7077_v14, %v7082_v8 }
 0x46c   :  { %v2683_v58 = vmul.f32 %v7077_v14, %v7083_v4  ;;  %v2731_v39 = vmul.f32 %v7077_v14, %v7084_v43  ;;  %3888 = vst [vmem:[%s6468_s4 + $0xe0] sm:$0xff] %v3684_v33   ;;  %v6161_v52 = vadd.f32 %v6133_v35, %v2355_v51  ;;  %v6164_v21 = vadd.f32 %v2443_v19, %v6133_v35  ;;  %v7096_v51 = vld [vmem:[#allocation158_spill] sm:$0xff]  ;;  %v7097_v19 = vld [vmem:[#allocation179_spill] sm:$0xff] }
 0x46d   :  { %v6167_v55 = vadd.f32 %v2491_v24, %v6133_v35  ;;  %v6170_v54 = vadd.f32 %v2539_v23, %v6133_v35  ;;  %3892 = vst [vmem:[%s6468_s4 + $0x100] sm:$0xff] %v3704_v61   ;;  %v6176_v47 = vadd.f32 %v2587_v53, %v6133_v35  ;;  %v6179_v1 = vadd.f32 %v2635_v48, %v6133_v35  ;;  %v7098_v24 = vld [vmem:[#allocation54_spill] sm:$0xff] }
 0x46e   :  { %v6182_v62 = vadd.f32 %v2683_v58, %v6133_v35  ;;  %v6185_v45 = vadd.f32 %v2731_v39, %v6133_v35  ;;  %v2779_v2 = vmul.f32 %v7077_v14, %v7085_v59  ;;  %v2827_v0 = vmul.f32 %v7077_v14, %v7086_v22  ;;  %3900 = vst [vmem:[%s6468_s4 + $0x140] sm:$0xff] %v3744_v38   ;;  %v7093_v38 = vld [vmem:[#allocation80_spill] sm:$0xff]  ;;  %v7099_v23 = vld [vmem:[#allocation62_spill] sm:$0xff] }
 0x46f   :  { %v2875_v15 = vmul.f32 %v7077_v14, %v7087_v60  ;;  %v2923_v28 = vmul.f32 %v7077_v14, %v7088_v25  ;;  %v6203_v50 = vmul.f32 %v7077_v14, %v7089_v44  ;;  %v6207_v29 = vmul.f32 %v7077_v14, %v7090_v42  ;;  %3904 = vst [vmem:[%s6468_s4 + $0x160] sm:$0xff] %v3764_v6   ;;  %v7100_v53 = vld [vmem:[#allocation66_spill] sm:$0xff] }
 0x470   :  { %v6211_v41 = vmul.f32 %v7077_v14, %v7091_v31  ;;  %v6215_v57 = vmul.f32 %v7077_v14, %v7092_v32  ;;  %v2411_v18 = vmax.f32 %v6161_v52, 0.0  ;;  %v2459_v37 = vmax.f32 %v6164_v21, 0.0  ;;  %3908 = vst [vmem:[%s6468_s4 + $0x180] sm:$0xff] %v3784_v46   ;;  %v7094_v46 = vld [vmem:[#allocation122_spill] sm:$0xff]  ;;  %v7106_v31 = vld [vmem:[#allocation40_spill] sm:$0xff] }
 0x471   :  { %v2507_v10 = vmax.f32 %v6167_v55, 0.0  ;;  %v2555_v16 = vmax.f32 %v6170_v54, 0.0  ;;  %v2603_v27 = vmax.f32 %v6176_v47, 0.0  ;;  %v2651_v7 = vmax.f32 %v6179_v1, 0.0  ;;  %3912 = vst [vmem:[%s6468_s4 + $0x1a0] sm:$0xff] %v3804_v9  }
 0x472   :  { %v2699_v3 = vmax.f32 %v6182_v62, 0.0  ;;  %v2747_v5 = vmax.f32 %v6185_v45, 0.0  ;;  %v6235_v33 = vadd.f32 %v2779_v2, %v6133_v35  ;;  %v6238_v30 = vadd.f32 %v2827_v0, %v6133_v35  ;;  %3916 = vst [vmem:[%s6468_s4 + $0x1c0] sm:$0xff] %v3824_v17  }
 0x473   :  { %v6241_v61 = vadd.f32 %v2875_v15, %v6133_v35  ;;  %v6244_v40 = vadd.f32 %v2923_v28, %v6133_v35  ;;  %v2399_v6 = vadd.f32 %v2374_v12, %v7093_v38  ;;  %v2447_v9 = vadd.f32 %v7094_v46, %v2374_v12  ;;  %3920 = vst [vmem:[%s6468_s4 + $0x1e0] sm:$0xff] %v3844_v20   ;;  %v7104_v28 = vld [vmem:[#allocation143_spill] sm:$0xff] }
 0x474   :  { %v2495_v14 = vadd.f32 %v7095_v56, %v2374_v12  ;;  %v2543_v26 = vadd.f32 %v7096_v51, %v2374_v12  ;;  %v2591_v34 = vadd.f32 %v7097_v19, %v2374_v12  ;;  %v2639_v63 = vadd.f32 %v7098_v24, %v2374_v12  ;;  %v7110_v56 = vld [vmem:[#allocation34_spill] sm:$0xff] }
 0x475   :  { %v2687_v49 = vadd.f32 %v7099_v23, %v2374_v12  ;;  %v2735_v17 = vadd.f32 %v7100_v53, %v2374_v12  ;;  %v2407_v8 = vmax.f32 %v2399_v6, 0.0  ;;  %v2455_v48 = vmax.f32 %v2447_v9, 0.0  ;;  %v7108_v6 = vld [vmem:[#allocation94_spill] sm:$0xff] }
 0x476   :  { %v2503_v4 = vmax.f32 %v2495_v14, 0.0  ;;  %v2551_v58 = vmax.f32 %v2543_v26, 0.0  ;;  %v2599_v43 = vmax.f32 %v2591_v34, 0.0  ;;  %v2647_v39 = vmax.f32 %v2639_v63, 0.0  ;;  %v7115_v34 = vld [vmem:[#allocation27_spill] sm:$0xff]  ;;  %v7116_v63 = vld [vmem:[#allocation85_spill] sm:$0xff] }
 0x477   :  { %v2695_v59 = vmax.f32 %v2687_v49, 0.0  ;;  %v2743_v2 = vmax.f32 %v2735_v17, 0.0  ;;  %v7101_v22 = vmax.f32 %v5836_v13, 0.0  ;;  %v7102_v20 = vmax.f32 %v5838_v11, 0.0  ;;  %v7112_v13 = vld [vmem:[#allocation127_spill] sm:$0xff]  ;;  %v7114_v11 = vld [vmem:[#allocation150_spill] sm:$0xff] }
 0x478   :  { %v7103_v15 = vmax.f32 %v5840_v36, 0.0  ;;  %v7105_v44 = vmax.f32 %v7104_v28, 0.0  ;;  %v7107_v32 = vmax.f32 %v7106_v31, 0.0  ;;  %v7109_v46 = vmax.f32 %v7108_v6, 0.0  ;;  %v7117_v49 = vld [vmem:[#allocation152_spill] sm:$0xff]  ;;  %v7118_v17 = vld [vmem:[#allocation73_spill] sm:$0xff] }
 0x479   :  { %v3549_v0 = vpack.c.bf16 %v2407_v8, %v7101_v22  ;;  %v3569_v60 = vpack.c.bf16 %v2455_v48, %v7102_v20  ;;  %v7111_v14 = vmax.f32 %v7110_v56, 0.0  ;;  %v7113_v26 = vmax.f32 %v7112_v13, 0.0  ;;  %v7119_v48 = vld [vmem:[#allocation128_spill] sm:$0xff] }
 0x47a   :  { %v3589_v25 = vpack.c.bf16 %v2503_v4, %v7103_v15  ;;  %v3609_v42 = vpack.c.bf16 %v2551_v58, %v7105_v44  ;;  %v3629_v38 = vpack.c.bf16 %v2599_v43, %v7107_v32  ;;  %v3649_v9 = vpack.c.bf16 %v2647_v39, %v7109_v46  ;;  %v7120_v58 = vld [vmem:[#allocation79_spill] sm:$0xff]  ;;  %v7122_v32 = vld [vmem:[#allocation168_spill] sm:$0xff]  ;;  %v7124_v46 = vld [vmem:[#allocation174_spill] sm:$0xff] }
 0x47b   :  { %v3669_v51 = vpack.c.bf16 %v2695_v59, %v7111_v14  ;;  %v3689_v19 = vpack.c.bf16 %v2743_v2, %v7113_v26  ;;  %3861 = vst [vmem:[%s6468_s4 + $0x8] sm:$0xff] %v3549_v0   ;;  %v2783_v36 = vadd.f32 %v7114_v11, %v2374_v12  ;;  %v2831_v24 = vadd.f32 %v7115_v34, %v2374_v12  ;;  %v7121_v39 = vld [vmem:[#allocation35_spill] sm:$0xff]  ;;  %v7128_v11 = vld [vmem:[#allocation50_spill] sm:$0xff]  ;;  %v7130_v34 = vld [vmem:[#allocation36_spill] sm:$0xff] }
 0x47c   :  { %v2879_v23 = vadd.f32 %v7116_v63, %v2374_v12  ;;  %v2927_v53 = vadd.f32 %v7117_v49, %v2374_v12  ;;  %3865 = vst [vmem:[%s6468_s4 + $0x28] sm:$0xff] %v3569_v60   ;;  %v2975_v8 = vadd.f32 %v7118_v17, %v2374_v12  ;;  %v3023_v4 = vadd.f32 %v7119_v48, %v2374_v12 }
 0x47d   :  { %v3071_v43 = vadd.f32 %v7120_v58, %v2374_v12  ;;  %v3119_v59 = vadd.f32 %v7121_v39, %v2374_v12  ;;  %3869 = vst [vmem:[%s6468_s4 + $0x48] sm:$0xff] %v3589_v25   ;;  %v2791_v2 = vmax.f32 %v2783_v36, 0.0  ;;  %v2839_v22 = vmax.f32 %v2831_v24, 0.0  ;;  %v7138_v58 = vld [vmem:[#allocation20_spill] sm:$0xff] }
 0x47e   :  { %v2887_v0 = vmax.f32 %v2879_v23, 0.0  ;;  %v2935_v20 = vmax.f32 %v2927_v53, 0.0  ;;  %3873 = vst [vmem:[%s6468_s4 + $0x68] sm:$0xff] %v3609_v42   ;;  %v2983_v60 = vmax.f32 %v2975_v8, 0.0  ;;  %v3031_v15 = vmax.f32 %v3023_v4, 0.0  ;;  %v7136_v8 = vld [vmem:[#allocation175_spill] sm:$0xff] }
 0x47f   :  { %v3079_v28 = vmax.f32 %v3071_v43, 0.0  ;;  %v3127_v44 = vmax.f32 %v3119_v59, 0.0  ;;  %v2795_v31 = vmax.f32 %v6235_v33, 0.0  ;;  %v6299_v12 = vadd.f32 %v6203_v50, %v6133_v35  ;;  %3877 = vst [vmem:[%s6468_s4 + $0x88] sm:$0xff] %v3629_v38   ;;  %v7126_v50 = vld [vmem:[#allocation170_spill] sm:$0xff]  ;;  %v7132_v38 = vld [vmem:[#allocation135_spill] sm:$0xff] }
 0x480   :  { %v6303_v25 = vadd.f32 %v6207_v29, %v6133_v35  ;;  %v7123_v42 = vmax.f32 %v7122_v32, 0.0  ;;  %3881 = vst [vmem:[%s6468_s4 + $0xa8] sm:$0xff] %v3649_v9   ;;  %v7125_v56 = vmax.f32 %v7124_v46, 0.0  ;;  %v7127_v13 = vmax.f32 %v7126_v50, 0.0  ;;  %v7134_v9 = vld [vmem:[#allocation32_spill] sm:$0xff]  ;;  %v7139_v43 = vld [vmem:[#allocation90_spill] sm:$0xff] }
 0x481   :  { %v7129_v29 = vmax.f32 %v7128_v11, 0.0  ;;  %v7131_v24 = vmax.f32 %v7130_v34, 0.0  ;;  %3885 = vst [vmem:[%s6468_s4 + $0xc8] sm:$0xff] %v3669_v51   ;;  %v7133_v23 = vmax.f32 %v7132_v38, 0.0  ;;  %v7135_v53 = vmax.f32 %v7134_v9, 0.0  ;;  %v7140_v59 = vld [vmem:[#allocation60_spill] sm:$0xff] }
 0x482   :  { %v3709_v6 = vpack.c.bf16 %v2791_v2, %v7123_v42  ;;  %v3729_v14 = vpack.c.bf16 %v2839_v22, %v7125_v56  ;;  %v3749_v26 = vpack.c.bf16 %v2887_v0, %v7127_v13  ;;  %v7137_v48 = vmax.f32 %v7136_v8, 0.0  ;;  %3889 = vst [vmem:[%s6468_s4 + $0xe8] sm:$0xff] %v3689_v19   ;;  %v7141_v51 = vld [vmem:[#allocation100_spill] sm:$0xff]  ;;  %v7142_v0 = vld [vmem:[#allocation145_spill] sm:$0xff]  ;;  %v7145_v32 = vld [vmem:[#allocation102_spill] sm:$0xff] }
 0x483   :  { %v3829_v36 = vpack.c.bf16 %v3079_v28, %v7129_v29  ;;  %v3849_v63 = vpack.c.bf16 %v3127_v44, %v7131_v24  ;;  %v3769_v49 = vpack.c.bf16 %v2935_v20, %v7133_v23  ;;  %v3789_v17 = vpack.c.bf16 %v2983_v60, %v7135_v53  ;;  %v7143_v60 = vld [vmem:[#allocation22_spill] sm:$0xff]  ;;  %v7144_v44 = vld [vmem:[#allocation61_spill] sm:$0xff]  ;;  %v7147_v50 = vld [vmem:[#allocation24_spill] sm:$0xff] }
 0x484   :  { %v3809_v4 = vpack.c.bf16 %v3031_v15, %v7137_v48  ;;  %v2354_v39 = vmul.f32 %v7139_v43, %v7138_v58  ;;  %v2442_v2 = vmul.f32 %v7139_v43, %v7140_v59  ;;  %v2490_v22 = vmul.f32 %v7139_v43, %v7141_v51  ;;  %v2389_v15 = vpop.permute.xlu1 %2388  ;;  %3893 = vst [vmem:[%s6468_s4 + $0x108] sm:$0xff] %v3709_v6   ;;  %v7146_v46 = vld [vmem:[#allocation146_spill] sm:$0xff]  ;;  %v7149_v6 = vld [vmem:[#allocation156_spill] sm:$0xff]  ;;  %v7151_v23 = vld [vmem:[#allocation169_spill] sm:$0xff] }
 0x485   :  { %v2538_v20 = vmul.f32 %v7139_v43, %v7142_v0  ;;  %v2586_v28 = vmul.f32 %v7139_v43, %v7143_v60  ;;  %v2634_v19 = vmul.f32 %v7139_v43, %v7144_v44  ;;  %v2682_v42 = vmul.f32 %v7139_v43, %v7145_v32  ;;  %3897 = vst [vmem:[%s6468_s4 + $0x128] sm:$0xff] %v3729_v14   ;;  %v7148_v11 = vld [vmem:[#allocation118_spill] sm:$0xff] }
 0x486   :  { %v2730_v56 = vmul.f32 %v7139_v43, %v7146_v46  ;;  %v2778_v13 = vmul.f32 %v7139_v43, %v7147_v50  ;;  %v2826_v29 = vmul.f32 %v7139_v43, %v7148_v11  ;;  %v2874_v34 = vmul.f32 %v7139_v43, %v7149_v6  ;;  %v7150_v24 = vld [vmem:[#allocation186_spill] sm:$0xff]  ;;  %3901 = vst [vmem:[%s6468_s4 + $0x148] sm:$0xff] %v3749_v26   ;;  %v7154_v46 = vld [vmem:[#allocation160_spill] sm:$0xff] }
 0x487   :  { %v2922_v38 = vmul.f32 %v7139_v43, %v7150_v24  ;;  %v2970_v9 = vmul.f32 %v7139_v43, %v7151_v23  ;;  %v2402_v53 = vadd.f32 %v2389_v15, %v2354_v39  ;;  %v2450_v8 = vadd.f32 %v2442_v2, %v2389_v15  ;;  %3905 = vst [vmem:[%s6468_s4 + $0x168] sm:$0xff] %v3769_v49   ;;  %v7152_v39 = vld [vmem:[#allocation147_spill] sm:$0xff] }
 0x488   :  { %v2498_v48 = vadd.f32 %v2490_v22, %v2389_v15  ;;  %v2546_v14 = vadd.f32 %v2538_v20, %v2389_v15  ;;  %v2594_v58 = vadd.f32 %v2586_v28, %v2389_v15  ;;  %v2642_v59 = vadd.f32 %v2634_v19, %v2389_v15  ;;  %3909 = vst [vmem:[%s6468_s4 + $0x188] sm:$0xff] %v3789_v17   ;;  %v7153_v28 = vld [vmem:[#allocation72_spill] sm:$0xff] }
 0x489   :  { %v2690_v51 = vadd.f32 %v2682_v42, %v2389_v15  ;;  %v2738_v0 = vadd.f32 %v2730_v56, %v2389_v15  ;;  %v2410_v60 = vmax.f32 %v2402_v53, 0.0  ;;  %v2458_v44 = vmax.f32 %v2450_v8, 0.0  ;;  %3913 = vst [vmem:[%s6468_s4 + $0x1a8] sm:$0xff] %v3809_v4  }
 0x48a   :  { %v2506_v32 = vmax.f32 %v2498_v48, 0.0  ;;  %v2554_v26 = vmax.f32 %v2546_v14, 0.0  ;;  %v3018_v2 = vmul.f32 %v7139_v43, %v7152_v39  ;;  %v2602_v49 = vmax.f32 %v2594_v58, 0.0  ;;  %3917 = vst [vmem:[%s6468_s4 + $0x1c8] sm:$0xff] %v3829_v36  }
 0x48b   :  { %v2650_v22 = vmax.f32 %v2642_v59, 0.0  ;;  %v2698_v20 = vmax.f32 %v2690_v51, 0.0  ;;  %v3066_v17 = vmul.f32 %v7139_v43, %v7153_v28  ;;  %v3559_v19 = vpack.c.bf16 %v2411_v18, %v2410_v60  ;;  %3921 = vst [vmem:[%s6468_s4 + $0x1e8] sm:$0xff] %v3849_v63  }
 0x48c   :  { %v3579_v42 = vpack.c.bf16 %v2459_v37, %v2458_v44  ;;  %v3599_v4 = vpack.c.bf16 %v2507_v10, %v2506_v32  ;;  %v3114_v56 = vmul.f32 %v7139_v43, %v7154_v46  ;;  %v3619_v36 = vpack.c.bf16 %v2555_v16, %v2554_v26 }
 0x48d   :  { %v3639_v52 = vpack.c.bf16 %v2603_v27, %v2602_v49  ;;  %v2746_v18 = vmax.f32 %v2738_v0, 0.0  ;;  %3863 = vst [vmem:[%s6468_s4 + $0x18] sm:$0xff] %v3559_v19   ;;  %v2786_v21 = vadd.f32 %v2778_v13, %v2389_v15  ;;  %v2834_v55 = vadd.f32 %v2826_v29, %v2389_v15 }
 0x48e   :  { %v2882_v37 = vadd.f32 %v2874_v34, %v2389_v15  ;;  %v2930_v10 = vadd.f32 %v2922_v38, %v2389_v15  ;;  %3867 = vst [vmem:[%s6468_s4 + $0x38] sm:$0xff] %v3579_v42   ;;  %v3659_v54 = vpack.c.bf16 %v2651_v7, %v2650_v22  ;;  %v3679_v47 = vpack.c.bf16 %v2699_v3, %v2698_v20 }
 0x48f   :  { %v2978_v16 = vadd.f32 %v2970_v9, %v2389_v15  ;;  %v3026_v27 = vadd.f32 %v3018_v2, %v2389_v15  ;;  %3871 = vst [vmem:[%s6468_s4 + $0x58] sm:$0xff] %v3599_v4   ;;  %v2794_v63 = vmax.f32 %v2786_v21, 0.0  ;;  %v2842_v43 = vmax.f32 %v2834_v55, 0.0 }
 0x490   :  { %v2890_v50 = vmax.f32 %v2882_v37, 0.0  ;;  %v3074_v13 = vadd.f32 %v3066_v17, %v2389_v15  ;;  %v2843_v11 = vmax.f32 %v6238_v30, 0.0  ;;  %3875 = vst [vmem:[%s6468_s4 + $0x78] sm:$0xff] %v3619_v36   ;;  %v3699_v1 = vpack.c.bf16 %v2747_v5, %v2746_v18 }
 0x491   :  { %v2938_v62 = vmax.f32 %v2930_v10, 0.0  ;;  %v3122_v7 = vadd.f32 %v3114_v56, %v2389_v15  ;;  %v2891_v3 = vmax.f32 %v6241_v61, 0.0  ;;  %v3075_v29 = vadd.f32 %v6211_v41, %v6133_v35  ;;  %3879 = vst [vmem:[%s6468_s4 + $0x98] sm:$0xff] %v3639_v52  }
 0x492   :  { %v3719_v30 = vpack.c.bf16 %v2795_v31, %v2794_v63  ;;  %v2986_v6 = vmax.f32 %v2978_v16, 0.0  ;;  %v2939_v34 = vmax.f32 %v6244_v40, 0.0  ;;  %v3123_v45 = vadd.f32 %v6215_v57, %v6133_v35  ;;  %3883 = vst [vmem:[%s6468_s4 + $0xb8] sm:$0xff] %v3659_v54  }
 0x493   :  { %v3739_v5 = vpack.c.bf16 %v2843_v11, %v2842_v43  ;;  %v3034_v61 = vmax.f32 %v3026_v27, 0.0  ;;  %v2987_v41 = vmax.f32 %v6299_v12, 0.0  ;;  %3887 = vst [vmem:[%s6468_s4 + $0xd8] sm:$0xff] %v3679_v47   ;;  %v3759_v33 = vpack.c.bf16 %v2891_v3, %v2890_v50 }
 0x494   :  { %v3082_v31 = vmax.f32 %v3074_v13, 0.0  ;;  %v3035_v15 = vmax.f32 %v6303_v25, 0.0  ;;  %3891 = vst [vmem:[%s6468_s4 + $0xf8] sm:$0xff] %v3699_v1   ;;  %v3779_v35 = vpack.c.bf16 %v2939_v34, %v2938_v62  ;;  %v3130_v57 = vmax.f32 %v3122_v7, 0.0 }
 0x495   :  { %v3083_v40 = vmax.f32 %v3075_v29, 0.0  ;;  %3895 = vst [vmem:[%s6468_s4 + $0x118] sm:$0xff] %v3719_v30   ;;  %v3799_v12 = vpack.c.bf16 %v2987_v41, %v2986_v6  ;;  %v3131_v24 = vmax.f32 %v3123_v45, 0.0 }
 0x496   :  { %3899 = vst [vmem:[%s6468_s4 + $0x138] sm:$0xff] %v3739_v5   ;;  %v3819_v38 = vpack.c.bf16 %v3035_v15, %v3034_v61 }
 0x497   :  { %3903 = vst [vmem:[%s6468_s4 + $0x158] sm:$0xff] %v3759_v33   ;;  %v3839_v25 = vpack.c.bf16 %v3083_v40, %v3082_v31  ;;  %v3859_v23 = vpack.c.bf16 %v3131_v24, %v3130_v57 }
 0x498   :  { %3907 = vst [vmem:[%s6468_s4 + $0x178] sm:$0xff] %v3779_v35  }
 0x499   :  { %3911 = vst [vmem:[%s6468_s4 + $0x198] sm:$0xff] %v3799_v12  }
 0x49a   :  { %3915 = vst [vmem:[%s6468_s4 + $0x1b8] sm:$0xff] %v3819_v38  }
 0x49b   :  { %3919 = vst [vmem:[%s6468_s4 + $0x1d8] sm:$0xff] %v3839_v25  }
 0x49c   :  { %3923 = vst [vmem:[%s6468_s4 + $0x1f8] sm:$0xff] %v3859_v23  }

// kernel: generator_forward.7
= control target key start
LH: loop header
LB: loop body
LE: loop exit
PB: predicated region body
PF: predicated region fallthrough
CT: control target
= control target key end

     0   :  { %vm238_vm0 = vcmask 261120   ;;  %s949_s0 = inlined_call_operand.vmem [shape: bf16[288,128], index: 0, kind: input, shape index: {}]   ;;  %s950_s1 = inlined_call_operand.vmem [shape: bf16[64,288], index: 1, kind: input, shape index: {}]   ;;  %s951_s2 = inlined_call_operand.vmem [shape: f32[16,1], index: 2, kind: input, shape index: {}]   ;;  %s952_s3 = inlined_call_operand.vmem [shape: f32[16,1], index: 3, kind: input, shape index: {}]   ;;  %s953_s4 = inlined_call_operand.vmem [shape: bf16[64,128], index: 4, kind: output, shape index: {}]  }
   0x1   :  { %v663_v0 = vld [vmem:[%s949_s0 + $0x38] sm:$0xff]  ;;  %v673_v2 = vld [vmem:[%s949_s0 + $0x88] sm:$0xff]  ;;  %v662_v3 = vld [vmem:[%s949_s0 + $0x30] sm:$0xff] }
   0x2   :  { %v671_v1 = vld [vmem:[%s949_s0 + $0x78] sm:$0xff]  ;;  %251 = vmatpush.bf16.msra.mxu0 %v663_v0  ;;  %697 = vmatpush.bf16.msra.mxu3 %v663_v0  ;;  %v670_v4 = vld [vmem:[%s949_s0 + $0x70] sm:$0xff]  ;;  %v672_v5 = vld [vmem:[%s949_s0 + $0x80] sm:$0xff] }
   0x3   :  { %705 = vmatpush.bf16.msra.mxu1 %v671_v1  ;;  %315 = vmatpush.bf16.msra.mxu2 %v673_v2  ;;  %v530_v6 = vld [vmem:[%s950_s1 + $0x8] sm:$0xf]  ;;  %v646_v7 = vld [vmem:[%s950_s1 + $0x10] sm:$0xf0]  ;;  %v660_v11 = vld [vmem:[%s949_s0 + $0x20] sm:$0xff] }
   0x4   :  { %v661_v8 = vld [vmem:[%s949_s0 + $0x28] sm:$0xff]  ;;  %v531_v10 = vor.u32 %v646_v7, %v530_v6  ;;  %v668_v12 = vld [vmem:[%s949_s0 + $0x60] sm:$0xff]  ;;  %v659_v13 = vld [vmem:[%s949_s0 + $0x18] sm:$0xff] }
   0x5   :  { %v669_v9 = vld [vmem:[%s949_s0 + $0x68] sm:$0xff]  ;;  %v667_v14 = vld [vmem:[%s949_s0 + $0x58] sm:$0xff]  ;;  %v658_v15 = vld [vmem:[%s949_s0 + $0x10] sm:$0xff] }
   0x6   :  { %252 = vmatpush.bf16.msra.mxu0 %v662_v3  ;;  %698 = vmatpush.bf16.msra.mxu3 %v662_v3  ;;  %v666_v16 = vld [vmem:[%s949_s0 + $0x50] sm:$0xff]  ;;  %v542_v17 = vld [vmem:[%s950_s1 + $0x20] sm:$0xf]  ;;  %v649_v18 = vld [vmem:[%s950_s1 + $0x28] sm:$0xf0] }
   0x7   :  { %706 = vmatpush.bf16.msra.mxu1 %v670_v4  ;;  %316 = vmatpush.bf16.msra.mxu2 %v672_v5  ;;  %v657_v19 = vld [vmem:[%s949_s0 + $0x8] sm:$0xff]  ;;  %v543_v21 = vor.u32 %v649_v18, %v542_v17  ;;  %v656_v22 = vld [vmem:[%s949_s0] sm:$0xff]  ;;  %v534_v23 = vld [vmem:[%s950_s1 + $0x18] sm:$0xf] }
   0x8   :  { %v665_v20 = vld [vmem:[%s949_s0 + $0x48] sm:$0xff]  ;;  %v648_v24 = vld [vmem:[%s950_s1 + $0x20] sm:$0xf0]  ;;  %v522_v25 = vld [vmem:[%s950_s1] sm:$0xf] }
   0x9   :  { %v645_v26 = vld [vmem:[%s950_s1 + $0x8] sm:$0xf0]  ;;  %v664_v27 = vld [vmem:[%s949_s0 + $0x40] sm:$0xff]  ;;  %v647_v28 = vld [vmem:[%s950_s1 + $0x1c] sm:$0xf]  ;;  %v535_v30 = vor.u32 %v648_v24, %v534_v23 }
   0xa   :  { %253 = vmatpush.bf16.msra.mxu0 %v661_v8  ;;  %699 = vmatpush.bf16.msra.mxu3 %v661_v8  ;;  %v536_v29 = vld [vmem:[%s950_s1 + $0x24] sm:$0xf0]  ;;  %v523_v31 = vor.u32 %v645_v26, %v522_v25  ;;  %v554_v33 = vld [vmem:[%s950_s1 + $0x38] sm:$0xf]  ;;  %v652_v34 = vld [vmem:[%s950_s1 + $0x40] sm:$0xf0] }
   0xb   :  { %707 = vmatpush.bf16.msra.mxu1 %v669_v9  ;;  %640 = vmatmul.msk.bf16.vlgmr.msra.gmra.mxu2 %vm238_vm0, %v531_v10  ;;  %v539_v32 = vor.u32 %v647_v28, %v536_v29  ;;  %v555_v35 = vor.u32 %v652_v34, %v554_v33  ;;  %v546_v36 = vld [vmem:[%s950_s1 + $0x30] sm:$0xf]  ;;  %v651_v37 = vld [vmem:[%s950_s1 + $0x38] sm:$0xf0]  ;;  %v650_v38 = vld [vmem:[%s950_s1 + $0x34] sm:$0xf] }
   0xc   :  { %v548_v39 = vld [vmem:[%s950_s1 + $0x3c] sm:$0xf0]  ;;  %v547_v40 = vor.u32 %v651_v37, %v546_v36  ;;  %v566_v42 = vld [vmem:[%s950_s1 + $0x50] sm:$0xf]  ;;  %v655_v43 = vld [vmem:[%s950_s1 + $0x58] sm:$0xf0] }
   0xd   :  { %v551_v41 = vor.u32 %v650_v38, %v548_v39  ;;  %v644_v44 = vld [vmem:[%s950_s1 + $0x4] sm:$0xf]  ;;  %v524_v45 = vld [vmem:[%s950_s1 + $0xc] sm:$0xf0]  ;;  %v567_v46 = vor.u32 %v655_v43, %v566_v42  ;;  %v558_v48 = vld [vmem:[%s950_s1 + $0x48] sm:$0xf] }
   0xe   :  { %254 = vmatpush.bf16.msra.mxu0 %v660_v11  ;;  %700 = vmatpush.bf16.msra.mxu3 %v660_v11  ;;  %v527_v47 = vor.u32 %v644_v44, %v524_v45  ;;  %v654_v49 = vld [vmem:[%s950_s1 + $0x50] sm:$0xf0]  ;;  %v653_v50 = vld [vmem:[%s950_s1 + $0x4c] sm:$0xf]  ;;  %v560_v51 = vld [vmem:[%s950_s1 + $0x54] sm:$0xf0] }
   0xf   :  { %708 = vmatpush.bf16.msra.mxu1 %v668_v12  ;;  %v559_v52 = vor.u32 %v654_v49, %v558_v48  ;;  %v563_v53 = vor.u32 %v653_v50, %v560_v51 }
  0x12   :  { %255 = vmatpush.bf16.msra.mxu0 %v659_v13  ;;  %701 = vmatpush.bf16.msra.mxu3 %v659_v13 }
  0x13   :  { %709 = vmatpush.bf16.msra.mxu1 %v667_v14 }
  0x16   :  { %256 = vmatpush.bf16.msra.mxu0 %v658_v15  ;;  %702 = vmatpush.bf16.msra.mxu3 %v658_v15 }
  0x17   :  { %710 = vmatpush.bf16.msra.mxu1 %v666_v16 }
  0x1a   :  { %257 = vmatpush.bf16.msra.mxu0 %v657_v19  ;;  %703 = vmatpush.bf16.msra.mxu3 %v657_v19 }
  0x1b   :  { %711 = vmatpush.bf16.msra.mxu1 %v665_v20  ;;  %641 = vmatmul.msk.bf16.gmra.mxu2 %vm238_vm0, %v543_v21 }
  0x1e   :  { %258 = vmatpush.bf16.msra.mxu0 %v656_v22  ;;  %704 = vmatpush.bf16.msra.mxu3 %v656_v22 }
  0x1f   :  { %712 = vmatpush.bf16.msra.mxu1 %v664_v27 }
  0x21   :  { %264 = vmatmul.bf16.vlgmr.msra.gmra.mxu3 %v535_v30  ;;  %259 = vmatmul.bf16.vlgmr.msra.gmra.mxu0 %v523_v31 }
  0x22   :  { %280 = vmatpush.bf16.msrb.mxu0 %v671_v1  ;;  %293 = vmatmul.bf16.vlgmr.msra.gmra.mxu1 %v539_v32 }
  0x26   :  { %281 = vmatpush.bf16.msrb.mxu0 %v670_v4 }
  0x2a   :  { %282 = vmatpush.bf16.msrb.mxu0 %v669_v9 }
  0x2b   :  { %642 = vmatmul.msk.bf16.gmra.mxu2 %vm238_vm0, %v555_v35 }
  0x2e   :  { %283 = vmatpush.bf16.msrb.mxu0 %v668_v12 }
  0x31   :  { %269 = vmatmul.bf16.gmra.mxu3 %v547_v40 }
  0x32   :  { %284 = vmatpush.bf16.msrb.mxu0 %v667_v14  ;;  %298 = vmatmul.bf16.gmra.mxu1 %v551_v41 }
  0x36   :  { %285 = vmatpush.bf16.msrb.mxu0 %v666_v16 }
  0x3a   :  { %286 = vmatpush.bf16.msrb.mxu0 %v665_v20 }
  0x3b   :  { %643 = vmatmul.msk.bf16.gmra.mxu2 %vm238_vm0, %v567_v46 }
  0x3e   :  { %287 = vmatpush.bf16.msrb.mxu0 %v664_v27 }
  0x41   :  { %288 = vmatmul.bf16.vlgmr.msrb.gmra.mxu0 %v527_v47  ;;  %274 = vmatmul.bf16.gmra.mxu3 %v559_v52 }
  0x42   :  { %303 = vmatmul.bf16.gmra.mxu1 %v563_v53 }
  0x8e   :  { %v318_v54 = vpop.f32.mrf.mxu2 }
  0x96   :  { %v320_v55 = vpop.f32.mrf.mxu2 }
  0x9e   :  { %v323_v56 = vpop.f32.mrf.mxu2  ;;  %v260_v63 = vpop.f32.mrf.mxu0 }
  0x9f   :  { %v294_v57 = vpop.f32.mrf.mxu1 }
  0xa4   :  { %v265_v58 = vpop.f32.mrf.mxu3 }
  0xa5   :  { %v295_v59 = vadd.f32 %v294_v57, %v265_v58 }
  0xa6   :  { %v325_v60 = vpop.f32.mrf.mxu2  ;;  %v262_v6 = vpop.f32.mrf.mxu0 }
  0xa7   :  { %v877_v61 = vadd.f32 %v323_v56, %v295_v59  ;;  %v296_v62 = vpop.f32.mrf.mxu1 }
  0xa9   :  { %364 = vadd.xlane.f32.xlu1 %v877_v61  ;;  %v370_v0 = vmul.f32 %v877_v61, %v877_v61 }
  0xab   :  { %372 = vadd.xlane.f32.xlu0 %v370_v0 }
  0xac   :  { %v267_v1 = vpop.f32.mrf.mxu3 }
  0xad   :  { %v297_v2 = vadd.f32 %v296_v62, %v267_v1 }
  0xae   :  { %v328_v3 = vpop.f32.mrf.mxu2 }
  0xaf   :  { %v882_v4 = vadd.f32 %v325_v60, %v297_v2  ;;  %v299_v5 = vpop.f32.mrf.mxu1 }
  0xb1   :  { %366 = vadd.xlane.f32.xlu1 %v882_v4  ;;  %v371_v9 = vmul.f32 %v882_v4, %v882_v4 }
  0xb4   :  { %v270_v7 = vpop.f32.mrf.mxu3 }
  0xb5   :  { %v300_v8 = vadd.f32 %v299_v5, %v270_v7 }
  0xb6   :  { %v330_v11 = vpop.f32.mrf.mxu2 }
  0xb7   :  { %v301_v10 = vpop.f32.mrf.mxu1  ;;  %v887_v12 = vadd.f32 %v328_v3, %v300_v8 }
  0xb9   :  { %374 = vadd.xlane.f32.xlu1 %v371_v9  ;;  %v386_v16 = vmul.f32 %v887_v12, %v887_v12 }
  0xbc   :  { %v272_v15 = vpop.f32.mrf.mxu3 }
  0xbd   :  { %v302_v25 = vadd.f32 %v301_v10, %v272_v15 }
  0xbe   :  { %v289_v13 = vpop.f32.mrf.mxu0  ;;  %v333_v20 = vpop.f32.mrf.mxu2 }
  0xbf   :  { %v290_v14 = vadd.f32 %v289_v13, %v260_v63  ;;  %v304_v19 = vpop.f32.mrf.mxu1  ;;  %v900_v30 = vadd.f32 %v330_v11, %v302_v25 }
  0xc1   :  { %v891_v17 = vadd.f32 %v318_v54, %v290_v14  ;;  %388 = vadd.xlane.f32.xlu1 %v386_v16  ;;  %v387_v35 = vmul.f32 %v900_v30, %v900_v30  ;;  %v721_v54 = vmov 0  }
  0xc2   :  { %715 = vset.pattern.permute.xlu2 %v721_v54  ;;  %714 = vset.pattern.permute.xlu1 %v721_v54 }
  0xc3   :  { %348 = vadd.xlane.f32.xlu0 %v891_v17  ;;  %v354_v18 = vmul.f32 %v891_v17, %v891_v17 }
  0xc4   :  { %v275_v23 = vpop.f32.mrf.mxu3  ;;  %716 = vset.pattern.permute.xlu0 %v721_v54 }
  0xc5   :  { %356 = vadd.xlane.f32.xlu2 %v354_v18  ;;  %v305_v32 = vadd.f32 %v304_v19, %v275_v23 }
  0xc6   :  { %v291_v21 = vpop.f32.mrf.mxu0  ;;  %v335_v28 = vpop.f32.mrf.mxu2 }
  0xc7   :  { %v292_v22 = vadd.f32 %v291_v21, %v262_v6  ;;  %v306_v26 = vpop.f32.mrf.mxu1  ;;  %v908_v34 = vadd.f32 %v333_v20, %v305_v32 }
  0xc9   :  { %v896_v24 = vadd.f32 %v320_v55, %v292_v22  ;;  %v402_v37 = vmul.f32 %v908_v34, %v908_v34 }
  0xcb   :  { %350 = vadd.xlane.f32.xlu0 %v896_v24  ;;  %v355_v33 = vmul.f32 %v896_v24, %v896_v24 }
  0xcc   :  { %v277_v27 = vpop.f32.mrf.mxu3 }
  0xcd   :  { %380 = vadd.xlane.f32.xlu2 %v887_v12  ;;  %v307_v29 = vadd.f32 %v306_v26, %v277_v27 }
  0xcf   :  { %v902_v31 = vadd.f32 %v335_v28, %v307_v29  ;;  %v419_v28 = vld [vmem:[%s951_s2 + $0x8] sm:$0xff] }
  0xd1   :  { %398 = vadd.xlane.f32.xlu1 %v902_v31  ;;  %v403_v36 = vmul.f32 %v902_v31, %v902_v31 }
  0xd3   :  { %382 = vadd.xlane.f32.xlu0 %v900_v30 }
  0xd5   :  { %358 = vadd.xlane.f32.xlu2 %v355_v33  ;;  %v418_v33 = vld [vmem:[%s951_s2] sm:$0xff] }
  0xdb   :  { %396 = vadd.xlane.f32.xlu0 %v908_v34 }
  0xdd   :  { %390 = vadd.xlane.f32.xlu2 %v387_v35 }
  0xe3   :  { %406 = vadd.xlane.f32.xlu0 %v403_v36 }
  0xe5   :  { %404 = vadd.xlane.f32.xlu2 %v402_v37 }
 0x11c   :  { %v365_v38 = vpop.xlane.xlu1 %364 }
 0x11e   :  { %v373_v39 = vpop.xlane.xlu0 %372 }
 0x124   :  { %v367_v40 = vpop.xlane.xlu1 %366 }
 0x12c   :  { %v375_v43 = vpop.xlane.xlu1 %374 }
 0x134   :  { %v389_v46 = vpop.xlane.xlu1 %388 }
 0x136   :  { %v349_v41 = vpop.xlane.xlu0 %348 }
 0x137   :  { %v368_v53 = vadd.f32 %v365_v38, %v349_v41 }
 0x138   :  { %v357_v42 = vpop.xlane.xlu2 %356 }
 0x139   :  { %v376_v58 = vadd.f32 %v373_v39, %v357_v42  ;;  %v444_v39 = vld [vmem:[%s952_s3] sm:$0xff]  ;;  %v445_v42 = vld [vmem:[%s952_s3 + $0x8] sm:$0xff] }
 0x13b   :  { %v392_v1 = vadd.f32 %v389_v46, %v376_v58 }
 0x13e   :  { %v351_v44 = vpop.xlane.xlu0 %350 }
 0x13f   :  { %v369_v49 = vadd.f32 %v367_v40, %v351_v44 }
 0x140   :  { %v381_v45 = vpop.xlane.xlu2 %380 }
 0x141   :  { %v384_v56 = vadd.f32 %v381_v45, %v368_v53 }
 0x144   :  { %v399_v51 = vpop.xlane.xlu1 %398 }
 0x146   :  { %v383_v47 = vpop.xlane.xlu0 %382 }
 0x147   :  { %v385_v50 = vadd.f32 %v383_v47, %v369_v49 }
 0x148   :  { %v359_v48 = vpop.xlane.xlu2 %358 }
 0x149   :  { %v401_v57 = vadd.f32 %v399_v51, %v385_v50  ;;  %v377_v59 = vadd.f32 %v375_v43, %v359_v48 }
 0x14b   :  { %v411_v62 = vmul.f32 0.001953125, %v401_v57 }
 0x14d   :  { %v415_v6 = vmul.f32 %v411_v62, %v411_v62 }
 0x14e   :  { %v397_v52 = vpop.xlane.xlu0 %396 }
 0x14f   :  { %v400_v60 = vadd.f32 %v397_v52, %v384_v56 }
 0x150   :  { %v391_v55 = vpop.xlane.xlu2 %390 }
 0x151   :  { %v393_v63 = vadd.f32 %v391_v55, %v377_v59  ;;  %v410_v2 = vmul.f32 0.001953125, %v400_v60 }
 0x153   :  { %v414_v9 = vmul.f32 %v410_v2, %v410_v2 }
 0x156   :  { %v407_v0 = vpop.xlane.xlu0 %406 }
 0x157   :  { %v409_v3 = vadd.f32 %v407_v0, %v393_v63 }
 0x158   :  { %v405_v5 = vpop.xlane.xlu2 %404 }
 0x159   :  { %v413_v7 = vmul.f32 0.001953125, %v409_v3  ;;  %v408_v8 = vadd.f32 %v405_v5, %v392_v1 }
 0x15b   :  { %v417_v10 = vsub.f32 %v413_v7, %v415_v6  ;;  %v412_v11 = vmul.f32 0.001953125, %v408_v8 }
 0x15d   :  { %v421_v13 = vadd.f32 1e-05, %v417_v10  ;;  %v416_v14 = vsub.f32 %v412_v11, %v414_v9 }
 0x15f   :  { %717 = vrsqrt.f32 %v421_v13  ;;  %v420_v15 = vadd.f32 1e-05, %v416_v14  ;;  %vm438_vm2 = vweird.f32 %v421_v13 }
 0x161   :  { %719 = vrsqrt.f32 %v420_v15  ;;  %vm428_vm5 = vweird.f32 %v420_v15 }
 0x165   :  { %v718_v16 = vpop.eup %717 }
 0x166   :  { %v433_v18 = vmul.f32 %v718_v16, %v421_v13  ;;  %vm439_vm1 = vweird.f32 %v718_v16 }
 0x167   :  { %v720_v19 = vpop.eup %719  ;;  %vm440_vm4 = vmor %vm438_vm2, %vm439_vm1 }
 0x168   :  { %v434_v20 = vmul.f32 %v718_v16, %v433_v18  ;;  %v423_v21 = vmul.f32 %v720_v19, %v420_v15  ;;  %vm429_vm3 = vweird.f32 %v720_v19 }
 0x169   :  { %vm430_vm6 = vmor %vm428_vm5, %vm429_vm3 }
 0x16a   :  { %v435_v22 = vmul.f32 0.5, %v434_v20  ;;  %v424_v23 = vmul.f32 %v720_v19, %v423_v21 }
 0x16c   :  { %v436_v25 = vsub.f32 1.5, %v435_v22  ;;  %v425_v26 = vmul.f32 0.5, %v424_v23 }
 0x16e   :  { %v426_v27 = vsub.f32 1.5, %v425_v26  ;;  %v437_v29 = vmul.f32 %v718_v16, %v436_v25 }
 0x170   :  { %v441_v32 = vsel %vm440_vm4, %v718_v16, %v437_v29  ;;  %v427_v35 = vmul.f32 %v720_v19, %v426_v27 }
 0x171   :  { %v443_v36 = vmul.f32 %v441_v32, %v419_v28 }
 0x172   :  { %v431_v37 = vsel %vm430_vm6, %v720_v19, %v427_v35 }
 0x173   :  { %457 = vperm.xlu2 %715, %v443_v36   ;;  %v442_v38 = vmul.f32 %v431_v37, %v418_v33  ;;  %v447_v41 = vmul.f32 %v443_v36, %v411_v62 }
 0x175   :  { %452 = vperm.xlu1 %714, %v442_v38   ;;  %v446_v40 = vmul.f32 %v442_v38, %v410_v2  ;;  %v449_v44 = vsub.f32 %v445_v42, %v447_v41 }
 0x177   :  { %v448_v43 = vsub.f32 %v444_v39, %v446_v40 }
 0x179   :  { %464 = vperm.xlu0 %716, %v448_v43  }
 0x17b   :  { %469 = vperm.xlu2 %715, %v449_v44  }
 0x1cd   :  { %v458_v45 = vpop.permute.xlu2 %457 }
 0x1ce   :  { %v461_v47 = vmul.f32 %v458_v45, %v896_v24  ;;  %v483_v48 = vmul.f32 %v458_v45, %v882_v4  ;;  %v495_v49 = vmul.f32 %v458_v45, %v900_v30  ;;  %v507_v51 = vmul.f32 %v458_v45, %v902_v31 }
 0x1d5   :  { %v470_v46 = vpop.permute.xlu2 %469 }
 0x1d6   :  { %v473_v52 = vadd.f32 %v470_v46, %v461_v47  ;;  %v485_v53 = vadd.f32 %v483_v48, %v470_v46  ;;  %v497_v54 = vadd.f32 %v495_v49, %v470_v46  ;;  %v509_v59 = vadd.f32 %v507_v51, %v470_v46 }
 0x1d8   :  { %v475_v63 = vmax.f32 %v473_v52, 0.0  ;;  %v487_v0 = vmax.f32 %v485_v53, 0.0  ;;  %v499_v31 = vmax.f32 %v497_v54, 0.0 }
 0x1e7   :  { %v453_v50 = vpop.permute.xlu1 %452 }
 0x1e8   :  { %v460_v55 = vmul.f32 %v453_v50, %v891_v17  ;;  %v482_v56 = vmul.f32 %v453_v50, %v877_v61  ;;  %v494_v57 = vmul.f32 %v453_v50, %v887_v12  ;;  %v506_v58 = vmul.f32 %v453_v50, %v908_v34 }
 0x1e9   :  { %v511_v17 = vmax.f32 %v509_v59, 0.0 }
 0x1eb   :  { %v465_v24 = vpop.permute.xlu0 %464 }
 0x1ec   :  { %v472_v60 = vadd.f32 %v465_v24, %v460_v55  ;;  %v484_v4 = vadd.f32 %v482_v56, %v465_v24  ;;  %v496_v62 = vadd.f32 %v494_v57, %v465_v24  ;;  %v508_v30 = vadd.f32 %v506_v58, %v465_v24 }
 0x1ee   :  { %v474_v1 = vmax.f32 %v472_v60, 0.0  ;;  %v486_v2 = vmax.f32 %v484_v4, 0.0  ;;  %v498_v3 = vmax.f32 %v496_v62, 0.0  ;;  %v510_v5 = vmax.f32 %v508_v30, 0.0 }
 0x1f0   :  { %v677_v6 = vpack.c.bf16 %v475_v63, %v474_v1  ;;  %v682_v61 = vpack.c.bf16 %v487_v0, %v486_v2  ;;  %v687_v7 = vpack.c.bf16 %v499_v31, %v498_v3  ;;  %v692_v12 = vpack.c.bf16 %v511_v17, %v510_v5 }
 0x1f2   :  { %678 = vst [vmem:[%s953_s4] sm:$0xff] %v677_v6  }
 0x1f3   :  { %694 = vst [vmem:[%s953_s4 + $0x8] sm:$0xff] %v682_v61  }
 0x1f4   :  { %695 = vst [vmem:[%s953_s4 + $0x10] sm:$0xff] %v687_v7  }
 0x1f5   :  { %696 = vst [vmem:[%s953_s4 + $0x18] sm:$0xff] %v692_v12  }

// kernel: generator_forward.8
= control target key start
LH: loop header
LB: loop body
LE: loop exit
PB: predicated region body
PF: predicated region fallthrough
CT: control target
= control target key end

     0   :  { %vm256_vm0 = vcmask 130048   ;;  %s1255_s0 = inlined_call_operand.vmem [shape: bf16[144,512], index: 0, kind: input, shape index: {}]   ;;  %s1256_s1 = inlined_call_operand.vmem [shape: bf16[32,144], index: 1, kind: input, shape index: {}]   ;;  %s1257_s2 = inlined_call_operand.vmem [shape: f32[8,1], index: 2, kind: input, shape index: {}]   ;;  %s1258_s3 = inlined_call_operand.vmem [shape: f32[8,1], index: 3, kind: input, shape index: {}]   ;;  %s1259_s4 = inlined_call_operand.vmem [shape: bf16[32,512], index: 4, kind: output, shape index: {}]  }
   0x1   :  { %v751_v0 = vld [vmem:[%s1255_s0 + $0xe0] sm:$0xf]  ;;  %v823_v1 = vld [vmem:[%s1255_s0 + $0xec] sm:$0xf0]  ;;  %v821_v2 = vld [vmem:[%s1255_s0 + $0xe4] sm:$0xf] }
   0x2   :  { %v752_v3 = vor.u32 %v823_v1, %v751_v0  ;;  %v753_v4 = vld [vmem:[%s1255_s0 + $0xf0] sm:$0xf0]  ;;  %v825_v5 = vld [vmem:[%s1255_s0 + $0x104] sm:$0xf]  ;;  %v767_v9 = vld [vmem:[%s1255_s0 + $0x100] sm:$0xf] }
   0x3   :  { %v769_v6 = vld [vmem:[%s1255_s0 + $0x110] sm:$0xf0]  ;;  %v756_v7 = vor.u32 %v821_v2, %v753_v4  ;;  %v827_v10 = vld [vmem:[%s1255_s0 + $0x10c] sm:$0xf0]  ;;  %v789_v11 = vld [vmem:[%s1256_s1 + $0x4] sm:$0xf] }
   0x4   :  { %v772_v8 = vor.u32 %v825_v5, %v769_v6  ;;  %263 = vmatpush.bf16.msra.mxu0 %v752_v3  ;;  %v768_v12 = vor.u32 %v827_v10, %v767_v9  ;;  %v625_v13 = vld [vmem:[%s1256_s1 + $0x8] sm:$0xf0]  ;;  %v735_v14 = vld [vmem:[%s1255_s0 + $0xc0] sm:$0xf]  ;;  %v819_v15 = vld [vmem:[%s1255_s0 + $0xcc] sm:$0xf0] }
   0x5   :  { %301 = vmatpush.bf16.msra.mxu2 %v756_v7  ;;  %v905_v16 = vor.u32 %v789_v11, %v625_v13  ;;  %v736_v17 = vor.u32 %v819_v15, %v735_v14  ;;  %v817_v18 = vld [vmem:[%s1255_s0 + $0xc4] sm:$0xf]  ;;  %v737_v19 = vld [vmem:[%s1255_s0 + $0xd0] sm:$0xf0]  ;;  %v759_v20 = vld [vmem:[%s1255_s0 + $0xe8] sm:$0xf] }
   0x6   :  { %327 = vmatpush.bf16.msra.mxu3 %v772_v8  ;;  %289 = vmatpush.bf16.msra.mxu1 %v768_v12  ;;  %v740_v21 = vor.u32 %v817_v18, %v737_v19  ;;  %v824_v22 = vld [vmem:[%s1255_s0 + $0xf4] sm:$0xf0]  ;;  %v775_v23 = vld [vmem:[%s1255_s0 + $0x108] sm:$0xf]  ;;  %v719_v27 = vld [vmem:[%s1255_s0 + $0xa0] sm:$0xf] }
   0x7   :  { %v828_v24 = vld [vmem:[%s1255_s0 + $0x114] sm:$0xf0]  ;;  %v760_v25 = vor.u32 %v824_v22, %v759_v20  ;;  %v815_v28 = vld [vmem:[%s1255_s0 + $0xac] sm:$0xf0]  ;;  %v813_v29 = vld [vmem:[%s1255_s0 + $0xa4] sm:$0xf] }
   0x8   :  { %v776_v26 = vor.u32 %v828_v24, %v775_v23  ;;  %264 = vmatpush.bf16.msra.mxu0 %v736_v17  ;;  %v720_v30 = vor.u32 %v815_v28, %v719_v27  ;;  %v721_v31 = vld [vmem:[%s1255_s0 + $0xb0] sm:$0xf0]  ;;  %v743_v32 = vld [vmem:[%s1255_s0 + $0xc8] sm:$0xf]  ;;  %v820_v33 = vld [vmem:[%s1255_s0 + $0xd4] sm:$0xf0] }
   0x9   :  { %783 = vmatmul.msk.bf16.vlgmr.msra.gmra.mxu3 %vm256_vm0, %v905_v16  ;;  %302 = vmatpush.bf16.msra.mxu2 %v740_v21  ;;  %v724_v34 = vor.u32 %v813_v29, %v721_v31  ;;  %v703_v35 = vld [vmem:[%s1255_s0 + $0x80] sm:$0xf]  ;;  %v811_v36 = vld [vmem:[%s1255_s0 + $0x8c] sm:$0xf0]  ;;  %v744_v37 = vor.u32 %v820_v33, %v743_v32  ;;  %v809_v38 = vld [vmem:[%s1255_s0 + $0x84] sm:$0xf] }
   0xa   :  { %781 = vmatmul.msk.bf16.vlgmr.msra.gmra.mxu1 %vm256_vm0, %v905_v16  ;;  %365 = vmatpush.bf16.msrb.mxu3 %v776_v26  ;;  %v705_v39 = vld [vmem:[%s1255_s0 + $0x90] sm:$0xf0]  ;;  %v727_v40 = vld [vmem:[%s1255_s0 + $0xa8] sm:$0xf]  ;;  %v816_v41 = vld [vmem:[%s1255_s0 + $0xb4] sm:$0xf0]  ;;  %v704_v42 = vor.u32 %v811_v36, %v703_v35 }
   0xb   :  { %339 = vmatpush.bf16.msrb.mxu1 %v760_v25  ;;  %v708_v43 = vor.u32 %v809_v38, %v705_v39  ;;  %v687_v44 = vld [vmem:[%s1255_s0 + $0x60] sm:$0xf]  ;;  %v807_v45 = vld [vmem:[%s1255_s0 + $0x6c] sm:$0xf0]  ;;  %v728_v46 = vor.u32 %v816_v41, %v727_v40  ;;  %v805_v47 = vld [vmem:[%s1255_s0 + $0x64] sm:$0xf] }
   0xc   :  { %265 = vmatpush.bf16.msra.mxu0 %v720_v30  ;;  %v689_v48 = vld [vmem:[%s1255_s0 + $0x70] sm:$0xf0]  ;;  %v711_v49 = vld [vmem:[%s1255_s0 + $0x88] sm:$0xf]  ;;  %v812_v50 = vld [vmem:[%s1255_s0 + $0x94] sm:$0xf0]  ;;  %v688_v51 = vor.u32 %v807_v45, %v687_v44 }
   0xd   :  { %303 = vmatpush.bf16.msra.mxu2 %v724_v34  ;;  %v791_v52 = vld [vmem:[%s1256_s1 + $0x14] sm:$0xf]  ;;  %v692_v53 = vor.u32 %v805_v47, %v689_v48  ;;  %v633_v54 = vld [vmem:[%s1256_s1 + $0x18] sm:$0xf0]  ;;  %v671_v55 = vld [vmem:[%s1255_s0 + $0x40] sm:$0xf]  ;;  %v712_v57 = vor.u32 %v812_v50, %v711_v49 }
   0xe   :  { %v803_v56 = vld [vmem:[%s1255_s0 + $0x4c] sm:$0xf0]  ;;  %v801_v58 = vld [vmem:[%s1255_s0 + $0x44] sm:$0xf]  ;;  %v673_v59 = vld [vmem:[%s1255_s0 + $0x50] sm:$0xf0]  ;;  %v1007_v62 = vor.u32 %v791_v52, %v633_v54 }
   0xf   :  { %340 = vmatpush.bf16.msrb.mxu1 %v744_v37  ;;  %v695_v60 = vld [vmem:[%s1255_s0 + $0x68] sm:$0xf]  ;;  %v808_v61 = vld [vmem:[%s1255_s0 + $0x74] sm:$0xf0]  ;;  %v672_v63 = vor.u32 %v803_v56, %v671_v55  ;;  %v826_v0 = vld [vmem:[%s1255_s0 + $0x10c] sm:$0xf]  ;;  %v676_v2 = vor.u32 %v801_v58, %v673_v59 }
  0x10   :  { %266 = vmatpush.bf16.msra.mxu0 %v704_v42  ;;  %v777_v1 = vld [vmem:[%s1255_s0 + $0x118] sm:$0xf0]  ;;  %v655_v3 = vld [vmem:[%s1255_s0 + $0x20] sm:$0xf]  ;;  %v799_v4 = vld [vmem:[%s1255_s0 + $0x2c] sm:$0xf0]  ;;  %v696_v6 = vor.u32 %v808_v61, %v695_v60 }
  0x11   :  { %304 = vmatpush.bf16.msra.mxu2 %v708_v43  ;;  %v780_v5 = vor.u32 %v826_v0, %v777_v1  ;;  %v797_v7 = vld [vmem:[%s1255_s0 + $0x24] sm:$0xf]  ;;  %v657_v8 = vld [vmem:[%s1255_s0 + $0x30] sm:$0xf0]  ;;  %v679_v9 = vld [vmem:[%s1255_s0 + $0x48] sm:$0xf]  ;;  %v656_v11 = vor.u32 %v799_v4, %v655_v3 }
  0x12   :  { %v804_v10 = vld [vmem:[%s1255_s0 + $0x54] sm:$0xf0]  ;;  %v660_v12 = vor.u32 %v797_v7, %v657_v8  ;;  %v639_v13 = vld [vmem:[%s1255_s0] sm:$0xf]  ;;  %v795_v14 = vld [vmem:[%s1255_s0 + $0xc] sm:$0xf0] }
  0x13   :  { %341 = vmatpush.bf16.msrb.mxu1 %v728_v46  ;;  %837 = vmatpush.bf16.msra.mxu3 %v780_v5  ;;  %v793_v15 = vld [vmem:[%s1255_s0 + $0x4] sm:$0xf]  ;;  %v680_v17 = vor.u32 %v804_v10, %v679_v9  ;;  %v641_v18 = vld [vmem:[%s1255_s0 + $0x10] sm:$0xf0]  ;;  %v822_v19 = vld [vmem:[%s1255_s0 + $0xec] sm:$0xf]  ;;  %v640_v23 = vor.u32 %v795_v14, %v639_v13 }
  0x14   :  { %267 = vmatpush.bf16.msra.mxu0 %v688_v51  ;;  %v761_v20 = vld [vmem:[%s1255_s0 + $0xf8] sm:$0xf0]  ;;  %v663_v21 = vld [vmem:[%s1255_s0 + $0x28] sm:$0xf]  ;;  %v800_v22 = vld [vmem:[%s1255_s0 + $0x34] sm:$0xf0]  ;;  %v644_v26 = vor.u32 %v793_v15, %v641_v18 }
  0x15   :  { %305 = vmatpush.bf16.msra.mxu2 %v692_v53  ;;  %v623_v24 = vld [vmem:[%s1256_s1] sm:$0xf]  ;;  %v790_v25 = vld [vmem:[%s1256_s1 + $0x4] sm:$0xf0]  ;;  %v764_v27 = vor.u32 %v822_v19, %v761_v20  ;;  %v664_v28 = vor.u32 %v800_v22, %v663_v21  ;;  %v818_v29 = vld [vmem:[%s1255_s0 + $0xcc] sm:$0xf] }
  0x16   :  { %v745_v30 = vld [vmem:[%s1255_s0 + $0xd8] sm:$0xf0]  ;;  %v624_v31 = vor.u32 %v790_v25, %v623_v24  ;;  %v647_v32 = vld [vmem:[%s1255_s0 + $0x8] sm:$0xf]  ;;  %v796_v33 = vld [vmem:[%s1255_s0 + $0x14] sm:$0xf0] }
  0x17   :  { %342 = vmatpush.bf16.msrb.mxu1 %v712_v57  ;;  %v748_v34 = vor.u32 %v818_v29, %v745_v30  ;;  %v648_v35 = vor.u32 %v796_v33, %v647_v32  ;;  %v814_v36 = vld [vmem:[%s1255_s0 + $0xac] sm:$0xf]  ;;  %v729_v37 = vld [vmem:[%s1255_s0 + $0xb8] sm:$0xf0]  ;;  %v631_v44 = vld [vmem:[%s1256_s1 + $0x10] sm:$0xf] }
  0x18   :  { %268 = vmatpush.bf16.msra.mxu0 %v672_v63  ;;  %v732_v38 = vor.u32 %v814_v36, %v729_v37  ;;  %v810_v39 = vld [vmem:[%s1255_s0 + $0x8c] sm:$0xf]  ;;  %v713_v40 = vld [vmem:[%s1255_s0 + $0x98] sm:$0xf0]  ;;  %v792_v45 = vld [vmem:[%s1256_s1 + $0x14] sm:$0xf0] }
  0x19   :  { %784 = vmatmul.msk.bf16.gmra.mxu3 %vm256_vm0, %v1007_v62  ;;  %306 = vmatpush.bf16.msra.mxu2 %v676_v2  ;;  %v716_v41 = vor.u32 %v810_v39, %v713_v40  ;;  %v806_v42 = vld [vmem:[%s1255_s0 + $0x6c] sm:$0xf]  ;;  %v697_v43 = vld [vmem:[%s1255_s0 + $0x78] sm:$0xf0]  ;;  %v632_v49 = vor.u32 %v792_v45, %v631_v44 }
  0x1a   :  { %782 = vmatmul.msk.bf16.gmra.mxu1 %vm256_vm0, %v1007_v62  ;;  %v700_v46 = vor.u32 %v806_v42, %v697_v43  ;;  %v802_v47 = vld [vmem:[%s1255_s0 + $0x4c] sm:$0xf]  ;;  %v681_v48 = vld [vmem:[%s1255_s0 + $0x58] sm:$0xf0] }
  0x1b   :  { %343 = vmatpush.bf16.msrb.mxu1 %v696_v6  ;;  %v684_v50 = vor.u32 %v802_v47, %v681_v48  ;;  %v798_v51 = vld [vmem:[%s1255_s0 + $0x2c] sm:$0xf]  ;;  %v665_v52 = vld [vmem:[%s1255_s0 + $0x38] sm:$0xf0] }
  0x1c   :  { %269 = vmatpush.bf16.msra.mxu0 %v656_v11  ;;  %v668_v53 = vor.u32 %v798_v51, %v665_v52  ;;  %v794_v54 = vld [vmem:[%s1255_s0 + $0xc] sm:$0xf]  ;;  %v649_v55 = vld [vmem:[%s1255_s0 + $0x18] sm:$0xf0] }
  0x1d   :  { %307 = vmatpush.bf16.msra.mxu2 %v660_v12  ;;  %v652_v56 = vor.u32 %v794_v54, %v649_v55 }
  0x1f   :  { %344 = vmatpush.bf16.msrb.mxu1 %v680_v17 }
  0x20   :  { %270 = vmatpush.bf16.msra.mxu0 %v640_v23 }
  0x21   :  { %308 = vmatpush.bf16.msra.mxu2 %v644_v26 }
  0x23   :  { %345 = vmatpush.bf16.msrb.mxu1 %v664_v28  ;;  %271 = vmatmul.bf16.vlgmr.msra.gmra.mxu0 %v624_v31 }
  0x24   :  { %377 = vmatpush.bf16.msrb.mxu0 %v764_v27  ;;  %309 = vmatmul.bf16.vlgmr.msra.gmra.mxu2 %v624_v31 }
  0x25   :  { %403 = vmatpush.bf16.msrb.mxu2 %v780_v5 }
  0x27   :  { %346 = vmatpush.bf16.msrb.mxu1 %v648_v35 }
  0x28   :  { %378 = vmatpush.bf16.msrb.mxu0 %v748_v34 }
  0x29   :  { %785 = vmatmul.msk.bf16.vlgmr.msrb.gmra.mxu3 %vm256_vm0, %v905_v16 }
  0x2a   :  { %347 = vmatmul.bf16.vlgmr.msrb.gmra.mxu1 %v624_v31 }
  0x2b   :  { %829 = vmatpush.bf16.msra.mxu1 %v764_v27 }
  0x2c   :  { %379 = vmatpush.bf16.msrb.mxu0 %v732_v38 }
  0x2f   :  { %830 = vmatpush.bf16.msra.mxu1 %v748_v34 }
  0x30   :  { %380 = vmatpush.bf16.msrb.mxu0 %v716_v41 }
  0x33   :  { %831 = vmatpush.bf16.msra.mxu1 %v732_v38  ;;  %276 = vmatmul.bf16.gmra.mxu0 %v632_v49 }
  0x34   :  { %381 = vmatpush.bf16.msrb.mxu0 %v700_v46  ;;  %314 = vmatmul.bf16.gmra.mxu2 %v632_v49 }
  0x37   :  { %832 = vmatpush.bf16.msra.mxu1 %v716_v41 }
  0x38   :  { %382 = vmatpush.bf16.msrb.mxu0 %v684_v50 }
  0x39   :  { %786 = vmatmul.msk.bf16.gmra.mxu3 %vm256_vm0, %v1007_v62 }
  0x3a   :  { %352 = vmatmul.bf16.gmra.mxu1 %v632_v49 }
  0x3b   :  { %833 = vmatpush.bf16.msra.mxu1 %v700_v46 }
  0x3c   :  { %383 = vmatpush.bf16.msrb.mxu0 %v668_v53 }
  0x3f   :  { %834 = vmatpush.bf16.msra.mxu1 %v684_v50 }
  0x40   :  { %384 = vmatpush.bf16.msrb.mxu0 %v652_v56 }
  0x43   :  { %835 = vmatpush.bf16.msra.mxu1 %v668_v53  ;;  %385 = vmatmul.bf16.vlgmr.msrb.gmra.mxu0 %v624_v31 }
  0x44   :  { %787 = vmatmul.msk.bf16.vlgmr.msrb.gmra.mxu2 %vm256_vm0, %v905_v16 }
  0x47   :  { %836 = vmatpush.bf16.msra.mxu1 %v652_v56 }
  0x49   :  { %788 = vmatmul.msk.bf16.vlgmr.msra.gmra.mxu3 %vm256_vm0, %v1007_v62 }
  0x4a   :  { %390 = vmatmul.bf16.vlgmr.msra.gmra.mxu1 %v632_v49 }
  0x87   :  { %v291_v57 = vpop.f32.mrf.mxu1 }
  0x8c   :  { %v329_v58 = vpop.f32.mrf.mxu3 }
  0x8f   :  { %v293_v59 = vpop.f32.mrf.mxu1 }
  0x94   :  { %v331_v60 = vpop.f32.mrf.mxu3 }
  0x97   :  { %v296_v61 = vpop.f32.mrf.mxu1 }
  0x9c   :  { %v334_v63 = vpop.f32.mrf.mxu3 }
  0x9f   :  { %v298_v0 = vpop.f32.mrf.mxu1 }
  0xa0   :  { %v272_v1 = vpop.f32.mrf.mxu0 }
  0xa1   :  { %v1131_v17 = vadd.f32 %v291_v57, %v272_v1 }
  0xa3   :  { %v441_v21 = vmul.f32 %v1131_v17, %v1131_v17 }
  0xa4   :  { %v336_v2 = vpop.f32.mrf.mxu3 }
  0xa7   :  { %v348_v3 = vpop.f32.mrf.mxu1  ;;  %v310_v4 = vpop.f32.mrf.mxu2 }
  0xa8   :  { %v274_v5 = vpop.f32.mrf.mxu0  ;;  %v1129_v13 = vadd.f32 %v329_v58, %v310_v4 }
  0xa9   :  { %v1154_v33 = vadd.f32 %v293_v59, %v274_v5 }
  0xaa   :  { %v442_v19 = vmul.f32 %v1129_v13, %v1129_v13  ;;  %v435_v24 = vadd.f32 %v1129_v13, %v1131_v17 }
  0xab   :  { %v461_v45 = vmul.f32 %v1154_v33, %v1154_v33 }
  0xac   :  { %v367_v6 = vpop.f32.mrf.mxu3  ;;  %v445_v28 = vadd.f32 %v442_v19, %v441_v21 }
  0xad   :  { %v1133_v18 = vadd.f32 %v367_v6, %v348_v3 }
  0xaf   :  { %v350_v7 = vpop.f32.mrf.mxu1  ;;  %v312_v8 = vpop.f32.mrf.mxu2  ;;  %v443_v25 = vmul.f32 %v1133_v18, %v1133_v18  ;;  %v436_v32 = vadd.f32 %v435_v24, %v1133_v18 }
  0xb0   :  { %v277_v16 = vpop.f32.mrf.mxu0  ;;  %v1145_v26 = vadd.f32 %v331_v60, %v312_v8 }
  0xb1   :  { %v1147_v29 = vadd.f32 %v296_v61, %v277_v16  ;;  %v446_v38 = vadd.f32 %v445_v28, %v443_v25  ;;  %v843_v25 = vmov 0  }
  0xb2   :  { %v462_v40 = vmul.f32 %v1145_v26, %v1145_v26  ;;  %v455_v48 = vadd.f32 %v1145_v26, %v1154_v33  ;;  %839 = vset.pattern.permute.xlu2 %v843_v25  ;;  %840 = vset.pattern.permute.xlu0 %v843_v25 }
  0xb3   :  { %v481_v50 = vmul.f32 %v1147_v29, %v1147_v29 }
  0xb4   :  { %v369_v9 = vpop.f32.mrf.mxu3  ;;  %v465_v53 = vadd.f32 %v462_v40, %v461_v45 }
  0xb5   :  { %v1156_v34 = vadd.f32 %v369_v9, %v350_v7 }
  0xb7   :  { %v353_v10 = vpop.f32.mrf.mxu1  ;;  %v315_v62 = vpop.f32.mrf.mxu2  ;;  %v463_v46 = vmul.f32 %v1156_v34, %v1156_v34  ;;  %v456_v57 = vadd.f32 %v455_v48, %v1156_v34 }
  0xb8   :  { %v279_v11 = vpop.f32.mrf.mxu0  ;;  %v1139_v23 = vadd.f32 %v334_v63, %v315_v62 }
  0xb9   :  { %v1186_v58 = vadd.f32 %v298_v0, %v279_v11  ;;  %v466_v59 = vadd.f32 %v465_v53, %v463_v46  ;;  %v515_v53 = vld [vmem:[%s1257_s2] sm:$0xff] }
  0xba   :  { %v475_v39 = vadd.f32 %v1139_v23, %v1147_v29  ;;  %v482_v47 = vmul.f32 %v1139_v23, %v1139_v23 }
  0xbb   :  { %v501_v8 = vmul.f32 %v1186_v58, %v1186_v58 }
  0xbc   :  { %v372_v12 = vpop.f32.mrf.mxu3  ;;  %v485_v60 = vadd.f32 %v482_v47, %v481_v50 }
  0xbd   :  { %v1149_v30 = vadd.f32 %v372_v12, %v353_v10 }
  0xbf   :  { %v317_v14 = vpop.f32.mrf.mxu2  ;;  %v355_v15 = vpop.f32.mrf.mxu1  ;;  %v476_v44 = vadd.f32 %v475_v39, %v1149_v30  ;;  %v483_v54 = vmul.f32 %v1149_v30, %v1149_v30 }
  0xc0   :  { %v386_v22 = vpop.f32.mrf.mxu0  ;;  %v1181_v55 = vadd.f32 %v336_v2, %v317_v14 }
  0xc1   :  { %v486_v7 = vadd.f32 %v485_v60, %v483_v54  ;;  %v528_v60 = vld [vmem:[%s1258_s3] sm:$0xff] }
  0xc2   :  { %v502_v5 = vmul.f32 %v1181_v55, %v1181_v55  ;;  %v495_v16 = vadd.f32 %v1181_v55, %v1186_v58 }
  0xc4   :  { %v374_v20 = vpop.f32.mrf.mxu3  ;;  %v505_v12 = vadd.f32 %v502_v5, %v501_v8 }
  0xc5   :  { %v1188_v61 = vadd.f32 %v374_v20, %v355_v15 }
  0xc7   :  { %v405_v27 = vpop.f32.mrf.mxu2  ;;  %v391_v35 = vpop.f32.mrf.mxu1  ;;  %v503_v9 = vmul.f32 %v1188_v61, %v1188_v61  ;;  %v496_v62 = vadd.f32 %v495_v16, %v1188_v61 }
  0xc8   :  { %v1151_v31 = vadd.f32 %v405_v27, %v386_v22  ;;  %v388_v51 = vpop.f32.mrf.mxu0 }
  0xc9   :  { %v506_v15 = vadd.f32 %v505_v12, %v503_v9 }
  0xca   :  { %v437_v36 = vadd.f32 %v436_v32, %v1151_v31  ;;  %v444_v37 = vmul.f32 %v1151_v31, %v1151_v31 }
  0xcc   :  { %v410_v41 = vpop.f32.mrf.mxu3  ;;  %438 = vadd.xlane.f32.xlu0 %v437_v36  ;;  %v447_v43 = vadd.f32 %v446_v38, %v444_v37 }
  0xcd   :  { %v1165_v42 = vadd.f32 %v410_v41, %v391_v35 }
  0xce   :  { %448 = vadd.xlane.f32.xlu1 %v447_v43 }
  0xcf   :  { %v477_v49 = vadd.f32 %v476_v44, %v1165_v42  ;;  %v407_v52 = vpop.f32.mrf.mxu2  ;;  %v484_v2 = vmul.f32 %v1165_v42, %v1165_v42  ;;  %v393_v3 = vpop.f32.mrf.mxu1 }
  0xd0   :  { %v1183_v56 = vadd.f32 %v407_v52, %v388_v51 }
  0xd1   :  { %478 = vadd.xlane.f32.xlu2 %v477_v49  ;;  %v487_v10 = vadd.f32 %v486_v7, %v484_v2 }
  0xd2   :  { %v457_v63 = vadd.f32 %v456_v57, %v1183_v56  ;;  %v464_v1 = vmul.f32 %v1183_v56, %v1183_v56 }
  0xd4   :  { %v412_v4 = vpop.f32.mrf.mxu3  ;;  %458 = vadd.xlane.f32.xlu0 %v457_v63  ;;  %v467_v0 = vadd.f32 %v466_v59, %v464_v1 }
  0xd5   :  { %v1197_v6 = vadd.f32 %v412_v4, %v393_v3 }
  0xd6   :  { %468 = vadd.xlane.f32.xlu1 %v467_v0 }
  0xd7   :  { %v504_v11 = vmul.f32 %v1197_v6, %v1197_v6  ;;  %v497_v14 = vadd.f32 %v496_v62, %v1197_v6 }
  0xd9   :  { %488 = vadd.xlane.f32.xlu2 %v487_v10  ;;  %v507_v19 = vadd.f32 %v506_v15, %v504_v11 }
  0xdc   :  { %498 = vadd.xlane.f32.xlu0 %v497_v14 }
  0xde   :  { %508 = vadd.xlane.f32.xlu1 %v507_v19 }
 0x13f   :  { %v439_v20 = vpop.xlane.xlu0 %438 }
 0x141   :  { %v449_v21 = vpop.xlane.xlu1 %448 }
 0x144   :  { %v479_v22 = vpop.xlane.xlu2 %478 }
 0x147   :  { %v459_v24 = vpop.xlane.xlu0 %458 }
 0x148   :  { %v460_v28 = vadd.f32 %v459_v24, %v439_v20 }
 0x149   :  { %v469_v27 = vpop.xlane.xlu1 %468 }
 0x14a   :  { %v470_v32 = vadd.f32 %v469_v27, %v449_v21  ;;  %v480_v36 = vadd.f32 %v479_v22, %v460_v28 }
 0x14c   :  { %v489_v35 = vpop.xlane.xlu2 %488 }
 0x14d   :  { %v490_v38 = vadd.f32 %v489_v35, %v470_v32 }
 0x14f   :  { %v499_v37 = vpop.xlane.xlu0 %498 }
 0x150   :  { %v500_v39 = vadd.f32 %v499_v37, %v480_v36 }
 0x151   :  { %v509_v40 = vpop.xlane.xlu1 %508 }
 0x152   :  { %v511_v41 = vmul.f32 0.00048828125, %v500_v39  ;;  %v510_v43 = vadd.f32 %v509_v40, %v490_v38 }
 0x154   :  { %v513_v44 = vmul.f32 %v511_v41, %v511_v41  ;;  %v512_v45 = vmul.f32 0.00048828125, %v510_v43 }
 0x156   :  { %v514_v46 = vsub.f32 %v512_v45, %v513_v44 }
 0x158   :  { %v516_v47 = vadd.f32 1e-05, %v514_v46 }
 0x15a   :  { %841 = vrsqrt.f32 %v516_v47  ;;  %vm523_vm2 = vweird.f32 %v516_v47 }
 0x160   :  { %v842_v48 = vpop.eup %841 }
 0x161   :  { %v518_v49 = vmul.f32 %v842_v48, %v516_v47  ;;  %vm524_vm1 = vweird.f32 %v842_v48 }
 0x162   :  { %vm525_vm3 = vmor %vm523_vm2, %vm524_vm1 }
 0x163   :  { %v519_v50 = vmul.f32 %v842_v48, %v518_v49 }
 0x165   :  { %v520_v51 = vmul.f32 0.5, %v519_v50 }
 0x167   :  { %v521_v52 = vsub.f32 1.5, %v520_v51 }
 0x169   :  { %v522_v54 = vmul.f32 %v842_v48, %v521_v52 }
 0x16b   :  { %v526_v57 = vsel %vm525_vm3, %v842_v48, %v522_v54 }
 0x16c   :  { %v527_v59 = vmul.f32 %v526_v57, %v515_v53 }
 0x16e   :  { %533 = vperm.xlu2 %839, %v527_v59   ;;  %v529_v63 = vmul.f32 %v527_v59, %v511_v41 }
 0x170   :  { %v530_v1 = vsub.f32 %v528_v60, %v529_v63 }
 0x172   :  { %542 = vperm.xlu0 %840, %v530_v1  }
 0x1c8   :  { %v534_v2 = vpop.permute.xlu2 %533 }
 0x1c9   :  { %v536_v3 = vmul.f32 %v534_v2, %v1131_v17  ;;  %v537_v4 = vmul.f32 %v534_v2, %v1129_v13  ;;  %v538_v5 = vmul.f32 %v534_v2, %v1133_v18  ;;  %v539_v0 = vmul.f32 %v534_v2, %v1151_v31 }
 0x1ca   :  { %v561_v7 = vmul.f32 %v534_v2, %v1154_v33  ;;  %v562_v8 = vmul.f32 %v534_v2, %v1145_v26  ;;  %v563_v16 = vmul.f32 %v534_v2, %v1156_v34  ;;  %v564_v9 = vmul.f32 %v534_v2, %v1183_v56 }
 0x1cb   :  { %v581_v10 = vmul.f32 %v534_v2, %v1147_v29  ;;  %v582_v62 = vmul.f32 %v534_v2, %v1139_v23  ;;  %v583_v17 = vmul.f32 %v534_v2, %v1149_v30  ;;  %v584_v13 = vmul.f32 %v534_v2, %v1165_v42 }
 0x1cc   :  { %v601_v18 = vmul.f32 %v534_v2, %v1186_v58  ;;  %v602_v31 = vmul.f32 %v534_v2, %v1181_v55  ;;  %v603_v33 = vmul.f32 %v534_v2, %v1188_v61  ;;  %v604_v26 = vmul.f32 %v534_v2, %v1197_v6 }
 0x1e4   :  { %v543_v11 = vpop.permute.xlu0 %542 }
 0x1e5   :  { %v545_v34 = vadd.f32 %v543_v11, %v536_v3  ;;  %v546_v12 = vadd.f32 %v543_v11, %v537_v4  ;;  %v547_v56 = vadd.f32 %v543_v11, %v538_v5  ;;  %v548_v14 = vadd.f32 %v543_v11, %v539_v0 }
 0x1e6   :  { %v565_v29 = vadd.f32 %v561_v7, %v543_v11  ;;  %v566_v15 = vadd.f32 %v562_v8, %v543_v11  ;;  %v567_v23 = vadd.f32 %v563_v16, %v543_v11  ;;  %v568_v19 = vadd.f32 %v564_v9, %v543_v11 }
 0x1e7   :  { %v549_v30 = vmax.f32 %v545_v34, 0.0  ;;  %v550_v20 = vmax.f32 %v546_v12, 0.0  ;;  %v551_v42 = vmax.f32 %v547_v56, 0.0  ;;  %v552_v21 = vmax.f32 %v548_v14, 0.0 }
 0x1e8   :  { %v569_v58 = vmax.f32 %v565_v29, 0.0  ;;  %v570_v22 = vmax.f32 %v566_v15, 0.0  ;;  %v571_v55 = vmax.f32 %v567_v23, 0.0  ;;  %v572_v24 = vmax.f32 %v568_v19, 0.0 }
 0x1e9   :  { %v553_v61 = vpack.c.bf16 %v550_v20, %v549_v30  ;;  %v554_v25 = vpack.c.bf16 %v552_v21, %v551_v42  ;;  %v585_v6 = vadd.f32 %v581_v10, %v543_v11  ;;  %v586_v27 = vadd.f32 %v582_v62, %v543_v11 }
 0x1ea   :  { %v573_v28 = vpack.c.bf16 %v570_v22, %v569_v58  ;;  %v574_v32 = vpack.c.bf16 %v572_v24, %v571_v55  ;;  %v587_v35 = vadd.f32 %v583_v17, %v543_v11  ;;  %v588_v36 = vadd.f32 %v584_v13, %v543_v11 }
 0x1eb   :  { %555 = vst [vmem:[%s1259_s4] sm:$0xff] %v553_v61  ;;  %v589_v37 = vmax.f32 %v585_v6, 0.0  ;;  %v590_v38 = vmax.f32 %v586_v27, 0.0  ;;  %v605_v39 = vadd.f32 %v601_v18, %v543_v11  ;;  %v606_v40 = vadd.f32 %v602_v31, %v543_v11 }
 0x1ec   :  { %556 = vst [vmem:[%s1259_s4 + $0x8] sm:$0xff] %v554_v25  ;;  %v591_v41 = vmax.f32 %v587_v35, 0.0  ;;  %v592_v43 = vmax.f32 %v588_v36, 0.0  ;;  %v607_v44 = vadd.f32 %v603_v33, %v543_v11  ;;  %v608_v45 = vadd.f32 %v604_v26, %v543_v11 }
 0x1ed   :  { %575 = vst [vmem:[%s1259_s4 + $0x10] sm:$0xff] %v573_v28  ;;  %v593_v46 = vpack.c.bf16 %v590_v38, %v589_v37  ;;  %v609_v47 = vmax.f32 %v605_v39, 0.0  ;;  %v610_v48 = vmax.f32 %v606_v40, 0.0 }
 0x1ee   :  { %576 = vst [vmem:[%s1259_s4 + $0x18] sm:$0xff] %v574_v32  ;;  %v594_v49 = vpack.c.bf16 %v592_v43, %v591_v41  ;;  %v611_v50 = vmax.f32 %v607_v44, 0.0  ;;  %v612_v51 = vmax.f32 %v608_v45, 0.0 }
 0x1ef   :  { %595 = vst [vmem:[%s1259_s4 + $0x20] sm:$0xff] %v593_v46  ;;  %v613_v52 = vpack.c.bf16 %v610_v48, %v609_v47 }
 0x1f0   :  { %596 = vst [vmem:[%s1259_s4 + $0x28] sm:$0xff] %v594_v49  ;;  %v614_v53 = vpack.c.bf16 %v612_v51, %v611_v50 }
 0x1f1   :  { %615 = vst [vmem:[%s1259_s4 + $0x30] sm:$0xff] %v613_v52 }
 0x1f2   :  { %616 = vst [vmem:[%s1259_s4 + $0x38] sm:$0xff] %v614_v53 }

// kernel: generator_forward.9
= control target key start
LH: loop header
LB: loop body
LE: loop exit
PB: predicated region body
PF: predicated region fallthrough
CT: control target
= control target key end

     0   :  { %s1025_s9 = smov 0   ;;  %s1027_s10 = smov 0   ;;  %s1298_s0 = inlined_call_operand.vmem [shape: bf16[72,2048], index: 0, kind: input, shape index: {}]   ;;  %s1299_s1 = inlined_call_operand.vmem [shape: bf16[16,72], index: 1, kind: input, shape index: {}]   ;;  %s1300_s2 = inlined_call_operand.vmem [shape: f32[16,2048], index: 2, kind: output, shape index: {}]  }
   0x1   :  { %s1029_s11 = smov 0  }
   0x2 LB: > { %s740_s12 = sadd.s32 4294967295, %s1008_s11   ;;  %s1042_s13 = sadd.s32 1, %s1008_s11   ;;  %s1008_s11 = sphi %s1029_s11, %s1304_s11   ;;  %s1004_s10 = sphi %s1027_s10, %s1303_s10   ;;  %s1000_s9 = sphi %s1025_s9, %s1302_s9  }
   0x3   : > { %s16_s14 = ssub.s32 %s1008_s11, %s1042_s13  ;;  %s19_s15 = sadd.s32 1, %s1004_s10 }
   0x4   : > { %p17_p0 = scmp.eq.s32.totalorder %s16_s14, 0  ;;  %p26_p1 = scmp.ne.s32.totalorder %s1004_s10, %s1000_s9 }
   0x5   : > { %p27_p2 = scmp.eq.s32.totalorder %s1008_s11, 0  ;;  %p77_p3 = scmp.eq.s32.totalorder %s740_s12, 1 }
   0x6   : > { %s1053_s16 = scalar_select %p17_p0, %s1004_s10, %s19_s15  }
   0x7   : > { %p28_p4 = por %p27_p2, %p26_p1  ;;  %p1055_p5 = por %p77_p3, %p26_p1 }
   0x8   : > { %p743_p6 = scmp.ge.s32.totalorder %s1008_s11, 2 }
   0xa   : > { %102 = sbr.rel (%p743_p6) target bundleno = 55 (0x37), region = 20 }
   0xf   : > { %105 = sbr.rel (!%p28_p4) target bundleno = 55 (0x37), region = 24  ;;  %s107_s18 = sand.u32 (%p28_p4), 1, %s1004_s10  }
  0x10   : > { %s893_s19 = sshll.u32 (%p28_p4), %s1008_s11, 5  ;;  %s928_s20 = smul.u32 (%p28_p4), 288, %s107_s18 }
  0x11   : > { %s1065_s23 = scalar_lea.vmem (%p28_p4), %s1298_s0, %s893_s19 }
  0x12   : > { %v125_v0 = vld [vmem:[%s1065_s23] sm:$0xff] (%p28_p4)  ;;  %v127_v1 = vld [vmem:[%s1065_s23 + $0x8] sm:$0xff] (%p28_p4)  ;;  %v129_v2 = vld [vmem:[%s1065_s23 + $0x10] sm:$0xff] (%p28_p4)  ;;  %s1070_s24 = scalar_lea.vmem (%p28_p4), [#allocation2], %s928_s20 }
  0x13   : > { %126 = vst [vmem:[%s1070_s24] sm:$0xff] (%p28_p4), %v125_v0  ;;  %v131_v3 = vld [vmem:[%s1065_s23 + $0x18] sm:$0xff] (%p28_p4)  ;;  %v133_v4 = vld [vmem:[%s1065_s23 + $0x40] sm:$0xff] (%p28_p4)  ;;  %v135_v5 = vld [vmem:[%s1065_s23 + $0x48] sm:$0xff] (%p28_p4) }
  0x14   : > { %128 = vst [vmem:[%s1070_s24 + $0x8] sm:$0xff] %v127_v1  ;;  %v137_v6 = vld [vmem:[%s1065_s23 + $0x50] sm:$0xff]  ;;  %v139_v7 = vld [vmem:[%s1065_s23 + $0x58] sm:$0xff]  ;;  %v141_v8 = vld [vmem:[%s1065_s23 + $0x80] sm:$0xff] }
  0x15   : > { %130 = vst [vmem:[%s1070_s24 + $0x10] sm:$0xff] %v129_v2  ;;  %v143_v9 = vld [vmem:[%s1065_s23 + $0x88] sm:$0xff]  ;;  %v145_v10 = vld [vmem:[%s1065_s23 + $0x90] sm:$0xff]  ;;  %v147_v11 = vld [vmem:[%s1065_s23 + $0x98] sm:$0xff] }
  0x16   : > { %132 = vst [vmem:[%s1070_s24 + $0x18] sm:$0xff] %v131_v3  ;;  %v149_v12 = vld [vmem:[%s1065_s23 + $0xc0] sm:$0xff]  ;;  %v151_v13 = vld [vmem:[%s1065_s23 + $0xc8] sm:$0xff]  ;;  %v153_v14 = vld [vmem:[%s1065_s23 + $0xd0] sm:$0xff] }
  0x17   : > { %134 = vst [vmem:[%s1070_s24 + $0x20] sm:$0xff] %v133_v4  ;;  %v155_v15 = vld [vmem:[%s1065_s23 + $0xd8] sm:$0xff]  ;;  %v157_v16 = vld [vmem:[%s1065_s23 + $0x100] sm:$0xff]  ;;  %v159_v17 = vld [vmem:[%s1065_s23 + $0x108] sm:$0xff] }
  0x18   : > { %136 = vst [vmem:[%s1070_s24 + $0x28] sm:$0xff] %v135_v5  ;;  %v161_v18 = vld [vmem:[%s1065_s23 + $0x110] sm:$0xff]  ;;  %v163_v19 = vld [vmem:[%s1065_s23 + $0x118] sm:$0xff]  ;;  %v165_v20 = vld [vmem:[%s1065_s23 + $0x140] sm:$0xff] }
  0x19   : > { %138 = vst [vmem:[%s1070_s24 + $0x30] sm:$0xff] %v137_v6  ;;  %v167_v21 = vld [vmem:[%s1065_s23 + $0x148] sm:$0xff]  ;;  %v169_v22 = vld [vmem:[%s1065_s23 + $0x150] sm:$0xff]  ;;  %v171_v23 = vld [vmem:[%s1065_s23 + $0x158] sm:$0xff] }
  0x1a   : > { %140 = vst [vmem:[%s1070_s24 + $0x38] sm:$0xff] %v139_v7  ;;  %v173_v24 = vld [vmem:[%s1065_s23 + $0x180] sm:$0xff]  ;;  %v175_v25 = vld [vmem:[%s1065_s23 + $0x188] sm:$0xff]  ;;  %v177_v26 = vld [vmem:[%s1065_s23 + $0x190] sm:$0xff] }
  0x1b   : > { %142 = vst [vmem:[%s1070_s24 + $0x40] sm:$0xff] %v141_v8  ;;  %v179_v27 = vld [vmem:[%s1065_s23 + $0x198] sm:$0xff]  ;;  %v181_v28 = vld [vmem:[%s1065_s23 + $0x1c0] sm:$0xff]  ;;  %v183_v29 = vld [vmem:[%s1065_s23 + $0x1c8] sm:$0xff] }
  0x1c   : > { %144 = vst [vmem:[%s1070_s24 + $0x48] sm:$0xff] %v143_v9  ;;  %v185_v30 = vld [vmem:[%s1065_s23 + $0x1d0] sm:$0xff]  ;;  %v187_v31 = vld [vmem:[%s1065_s23 + $0x1d8] sm:$0xff]  ;;  %v189_v32 = vld [vmem:[%s1065_s23 + $0x200] sm:$0xff] }
  0x1d   : > { %146 = vst [vmem:[%s1070_s24 + $0x50] sm:$0xff] %v145_v10  ;;  %v191_v33 = vld [vmem:[%s1065_s23 + $0x208] sm:$0xff]  ;;  %v193_v34 = vld [vmem:[%s1065_s23 + $0x210] sm:$0xff]  ;;  %v195_v35 = vld [vmem:[%s1065_s23 + $0x218] sm:$0xff] }
  0x1e   : > { %148 = vst [vmem:[%s1070_s24 + $0x58] sm:$0xff] %v147_v11 }
  0x1f   : > { %150 = vst [vmem:[%s1070_s24 + $0x60] sm:$0xff] %v149_v12 }
  0x20   : > { %152 = vst [vmem:[%s1070_s24 + $0x68] sm:$0xff] %v151_v13 }
  0x21   : > { %154 = vst [vmem:[%s1070_s24 + $0x70] sm:$0xff] %v153_v14 }
  0x22   : > { %156 = vst [vmem:[%s1070_s24 + $0x78] sm:$0xff] %v155_v15 }
  0x23   : > { %158 = vst [vmem:[%s1070_s24 + $0x80] sm:$0xff] %v157_v16 }
  0x24   : > { %160 = vst [vmem:[%s1070_s24 + $0x88] sm:$0xff] %v159_v17 }
  0x25   : > { %162 = vst [vmem:[%s1070_s24 + $0x90] sm:$0xff] %v161_v18 }
  0x26   : > { %164 = vst [vmem:[%s1070_s24 + $0x98] sm:$0xff] %v163_v19 }
  0x27   : > { %166 = vst [vmem:[%s1070_s24 + $0xa0] sm:$0xff] %v165_v20 }
  0x28   : > { %168 = vst [vmem:[%s1070_s24 + $0xa8] sm:$0xff] %v167_v21 }
  0x29   : > { %170 = vst [vmem:[%s1070_s24 + $0xb0] sm:$0xff] %v169_v22 }
  0x2a   : > { %172 = vst [vmem:[%s1070_s24 + $0xb8] sm:$0xff] %v171_v23 }
  0x2b   : > { %174 = vst [vmem:[%s1070_s24 + $0xc0] sm:$0xff] %v173_v24 }
  0x2c   : > { %176 = vst [vmem:[%s1070_s24 + $0xc8] sm:$0xff] %v175_v25 }
  0x2d   : > { %178 = vst [vmem:[%s1070_s24 + $0xd0] sm:$0xff] %v177_v26 }
  0x2e   : > { %180 = vst [vmem:[%s1070_s24 + $0xd8] sm:$0xff] %v179_v27 }
  0x2f   : > { %182 = vst [vmem:[%s1070_s24 + $0xe0] sm:$0xff] %v181_v28 }
  0x30   : > { %184 = vst [vmem:[%s1070_s24 + $0xe8] sm:$0xff] %v183_v29 }
  0x31   : > { %186 = vst [vmem:[%s1070_s24 + $0xf0] sm:$0xff] %v185_v30 }
  0x32   : > { %188 = vst [vmem:[%s1070_s24 + $0xf8] sm:$0xff] %v187_v31 }
  0x33   : > { %190 = vst [vmem:[%s1070_s24 + $0x100] sm:$0xff] %v189_v32 }
  0x34   : > { %192 = vst [vmem:[%s1070_s24 + $0x108] sm:$0xff] %v191_v33 }
  0x35   : > { %194 = vst [vmem:[%s1070_s24 + $0x110] sm:$0xff] %v193_v34 }
  0x36   : > { %196 = vst [vmem:[%s1070_s24 + $0x118] sm:$0xff] %v195_v35 }
  0x37 PF: > { %p746_p7 = scmp.ge.s32.totalorder %s1008_s11, 1  ;;  %p201_p8 = scmp.lt.s32.totalorder %s1008_s11, 3 }
  0x39   : > { %p202_p9 = pnand %p746_p7, %p201_p8 }
  0x3a   : > { %s208_s25 = sand.u32 (!%p202_p9), 1, %s1000_s9  }
  0x3b   : > { %205 = sbr.rel (%p202_p9) target bundleno = 267 (0x10b), region = 47  ;;  %s747_s30 = sshll.u32 (!%p202_p9), %s208_s25, 7 }
  0x3c   : > { %s929_s26 = smul.u32 (!%p202_p9), 288, %s208_s25  ;;  %s1247_s3 = scalar_lea.vmem (!%p202_p9), [#allocation3], %s747_s30 }
  0x3e   : > { %s1146_s27 = scalar_lea.vmem (!%p202_p9), [#allocation2], %s929_s26 }
  0x40   : > { %v265_v36 = vld [vmem:[%s1146_s27 + $0x100] sm:$0xff]  ;;  %v266_v37 = vld [vmem:[%s1146_s27 + $0x108] sm:$0xff]  ;;  %vm458_vm0 = vcmask 1043456   ;;  %v267_v18 = vld [vmem:[%s1146_s27 + $0x110] sm:$0xff]  ;;  %vm454_vm1 = vcmask 588800   ;;  %s927_s4 = sshll.u32 (%p1055_p5), %s740_s12, 6 }
  0x41   : > { %v374_v38 = vunpack.c.l.b16 %v265_v36  ;;  %v375_v39 = vunpack.c.h.b16 %v265_v36  ;;  %v376_v40 = vunpack.c.l.b16 %v266_v37  ;;  %v377_v41 = vunpack.c.h.b16 %v266_v37  ;;  %v850_v42 = vld [vmem:[%s1146_s27 + $0xc0] sm:$0xf]  ;;  %v919_v48 = vld [vmem:[%s1146_s27 + $0xc4] sm:$0xf]  ;;  %v858_v50 = vld [vmem:[%s1146_s27 + $0xc8] sm:$0xf]  ;;  %s636_s7 = scalar_lea.vmem (%p1055_p5), %s1300_s2, %s927_s4 }
  0x42   : > { %v923_v43 = vld [vmem:[%s1146_s27 + $0xdc] sm:$0xf0]  ;;  %v852_v49 = vld [vmem:[%s1146_s27 + $0xe0] sm:$0xf0]  ;;  %v924_v51 = vld [vmem:[%s1146_s27 + $0xe4] sm:$0xf0]  ;;  %v378_v20 = vunpack.c.l.b16 %v267_v18  ;;  %v379_v21 = vunpack.c.h.b16 %v267_v18 }
  0x43   : > { %v414_v44 = vpack.c.b16 %v374_v38, %v374_v38  ;;  %v415_v45 = vpack.c.b16 %v375_v39, %v375_v39  ;;  %v416_v46 = vpack.c.b16 %v376_v40, %v376_v40  ;;  %v417_v47 = vpack.c.b16 %v377_v41, %v377_v41  ;;  %v920_v52 = vld [vmem:[%s1146_s27 + $0xcc] sm:$0xf]  ;;  %v818_v60 = vld [vmem:[%s1146_s27 + $0x80] sm:$0xf]  ;;  %v911_v0 = vld [vmem:[%s1146_s27 + $0x84] sm:$0xf] }
  0x44   : > { %v860_v53 = vld [vmem:[%s1146_s27 + $0xe8] sm:$0xf0]  ;;  %v851_v58 = vor.u32 %v923_v43, %v850_v42  ;;  %v855_v59 = vor.u32 %v919_v48, %v852_v49  ;;  %v915_v61 = vld [vmem:[%s1146_s27 + $0x9c] sm:$0xf0]  ;;  %v859_v62 = vor.u32 %v924_v51, %v858_v50  ;;  %v820_v1 = vld [vmem:[%s1146_s27 + $0xa0] sm:$0xf0]  ;;  %v418_v37 = vpack.c.b16 %v378_v20, %v378_v20 }
  0x45   : > { %v460_v54 = vsel %vm458_vm0, %v414_v44, 0  ;;  %v463_v55 = vsel %vm458_vm0, %v415_v45, 0  ;;  %v466_v56 = vsel %vm458_vm0, %v416_v46, 0  ;;  %v469_v57 = vsel %vm458_vm0, %v417_v47, 0  ;;  %v826_v2 = vld [vmem:[%s1146_s27 + $0x88] sm:$0xf] }
  0x46   : > { %486 = vmatpush.bf16.msra.mxu0 %v460_v54  ;;  %500 = vmatpush.bf16.msra.mxu1 %v463_v55  ;;  %v863_v63 = vor.u32 %v920_v52, %v860_v53  ;;  %v916_v3 = vld [vmem:[%s1146_s27 + $0xa4] sm:$0xf0]  ;;  %v912_v4 = vld [vmem:[%s1146_s27 + $0x8c] sm:$0xf]  ;;  %v786_v6 = vld [vmem:[%s1146_s27 + $0x40] sm:$0xf]  ;;  %v819_v7 = vor.u32 %v915_v61, %v818_v60  ;;  %v823_v8 = vor.u32 %v911_v0, %v820_v1 }
  0x47   : > { %514 = vmatpush.bf16.msra.mxu2 %v466_v56  ;;  %528 = vmatpush.bf16.msra.mxu3 %v469_v57  ;;  %v828_v5 = vld [vmem:[%s1146_s27 + $0xa8] sm:$0xf0]  ;;  %v907_v9 = vld [vmem:[%s1146_s27 + $0x5c] sm:$0xf0]  ;;  %v903_v10 = vld [vmem:[%s1146_s27 + $0x44] sm:$0xf]  ;;  %v827_v12 = vor.u32 %v916_v3, %v826_v2  ;;  %v419_v38 = vpack.c.b16 %v379_v21, %v379_v21 }
  0x48   : > { %v788_v11 = vld [vmem:[%s1146_s27 + $0x60] sm:$0xf0]  ;;  %v831_v13 = vor.u32 %v912_v4, %v828_v5  ;;  %v794_v14 = vld [vmem:[%s1146_s27 + $0x48] sm:$0xf]  ;;  %v904_v16 = vld [vmem:[%s1146_s27 + $0x4c] sm:$0xf]  ;;  %v787_v22 = vor.u32 %v907_v9, %v786_v6 }
  0x49   : > { %v908_v15 = vld [vmem:[%s1146_s27 + $0x64] sm:$0xf0]  ;;  %v796_v17 = vld [vmem:[%s1146_s27 + $0x68] sm:$0xf0]  ;;  %v268_v19 = vld [vmem:[%s1146_s27 + $0x118] sm:$0xff]  ;;  %v791_v23 = vor.u32 %v903_v10, %v788_v11  ;;  %v472_v49 = vsel %vm458_vm0, %v418_v37, 0 }
  0x4a   : > { %487 = vmatpush.bf16.msra.mxu0 %v851_v58  ;;  %501 = vmatpush.bf16.msra.mxu1 %v855_v59  ;;  %v754_v24 = vld [vmem:[%s1146_s27] sm:$0xf]  ;;  %v380_v26 = vunpack.c.l.b16 %v268_v19  ;;  %v381_v27 = vunpack.c.h.b16 %v268_v19  ;;  %v795_v28 = vor.u32 %v908_v15, %v794_v14  ;;  %v799_v29 = vor.u32 %v904_v16, %v796_v17  ;;  %v895_v30 = vld [vmem:[%s1146_s27 + $0x4] sm:$0xf]  ;;  %v762_v32 = vld [vmem:[%s1146_s27 + $0x8] sm:$0xf] }
  0x4b   : > { %515 = vmatpush.bf16.msra.mxu2 %v859_v62  ;;  %529 = vmatpush.bf16.msra.mxu3 %v863_v63  ;;  %v899_v25 = vld [vmem:[%s1146_s27 + $0x1c] sm:$0xf0]  ;;  %v756_v31 = vld [vmem:[%s1146_s27 + $0x20] sm:$0xf0]  ;;  %v900_v33 = vld [vmem:[%s1146_s27 + $0x24] sm:$0xf0] }
  0x4c   : > { %v896_v34 = vld [vmem:[%s1146_s27 + $0xc] sm:$0xf]  ;;  %v755_v36 = vor.u32 %v899_v25, %v754_v24  ;;  %v759_v39 = vor.u32 %v895_v30, %v756_v31  ;;  %v420_v40 = vpack.c.b16 %v380_v26, %v380_v26  ;;  %v421_v41 = vpack.c.b16 %v381_v27, %v381_v27  ;;  %v866_v44 = vld [vmem:[%s1146_s27 + $0xd0] sm:$0xf]  ;;  %v1192_v45 = vld [vmem:[%s1299_s1] sm:$0xff] }
  0x4d   : > { %v764_v35 = vld [vmem:[%s1146_s27 + $0x28] sm:$0xf0]  ;;  %v763_v42 = vor.u32 %v900_v33, %v762_v32  ;;  %v925_v46 = vld [vmem:[%s1146_s27 + $0xec] sm:$0xf0]  ;;  %v921_v47 = vld [vmem:[%s1146_s27 + $0xd4] sm:$0xf] }
  0x4e   : > { %488 = vmatpush.bf16.msra.mxu0 %v819_v7  ;;  %502 = vmatpush.bf16.msra.mxu1 %v823_v8  ;;  %v767_v43 = vor.u32 %v896_v34, %v764_v35  ;;  %v868_v48 = vld [vmem:[%s1146_s27 + $0xf0] sm:$0xf0]  ;;  %v475_v50 = vsel %vm458_vm0, %v419_v38, 0  ;;  %v874_v51 = vld [vmem:[%s1146_s27 + $0xd8] sm:$0xf]  ;;  %v478_v53 = vsel %vm458_vm0, %v420_v40, 0  ;;  %v867_v57 = vor.u32 %v925_v46, %v866_v44 }
  0x4f   : > { %516 = vmatpush.bf16.msra.mxu2 %v827_v12  ;;  %530 = vmatpush.bf16.msra.mxu3 %v831_v13  ;;  %v926_v52 = vld [vmem:[%s1146_s27 + $0xf4] sm:$0xf0]  ;;  %v481_v54 = vsel %vm458_vm0, %v421_v41, 0  ;;  %v922_v55 = vld [vmem:[%s1146_s27 + $0xdc] sm:$0xf]  ;;  %v871_v58 = vor.u32 %v921_v47, %v868_v48 }
  0x50   : > { %v876_v56 = vld [vmem:[%s1146_s27 + $0xf8] sm:$0xf0]  ;;  %v834_v59 = vld [vmem:[%s1146_s27 + $0x90] sm:$0xf]  ;;  %v875_v61 = vor.u32 %v926_v52, %v874_v51  ;;  %v913_v63 = vld [vmem:[%s1146_s27 + $0x94] sm:$0xf] }
  0x51   : > { %v917_v60 = vld [vmem:[%s1146_s27 + $0xac] sm:$0xf0]  ;;  %v879_v62 = vor.u32 %v922_v55, %v876_v56  ;;  %v836_v0 = vld [vmem:[%s1146_s27 + $0xb0] sm:$0xf0]  ;;  %v842_v1 = vld [vmem:[%s1146_s27 + $0x98] sm:$0xf] }
  0x52   : > { %489 = vmatpush.bf16.msra.mxu0 %v787_v22  ;;  %503 = vmatpush.bf16.msra.mxu1 %v791_v23  ;;  %v918_v2 = vld [vmem:[%s1146_s27 + $0xb4] sm:$0xf0]  ;;  %v914_v3 = vld [vmem:[%s1146_s27 + $0x9c] sm:$0xf]  ;;  %v835_v5 = vor.u32 %v917_v60, %v834_v59  ;;  %v839_v6 = vor.u32 %v913_v63, %v836_v0  ;;  %v802_v7 = vld [vmem:[%s1146_s27 + $0x50] sm:$0xf] }
  0x53   : > { %517 = vmatpush.bf16.msra.mxu2 %v795_v28  ;;  %531 = vmatpush.bf16.msra.mxu3 %v799_v29  ;;  %v844_v4 = vld [vmem:[%s1146_s27 + $0xb8] sm:$0xf0]  ;;  %v909_v8 = vld [vmem:[%s1146_s27 + $0x6c] sm:$0xf0]  ;;  %v843_v9 = vor.u32 %v918_v2, %v842_v1  ;;  %v905_v11 = vld [vmem:[%s1146_s27 + $0x54] sm:$0xf] }
  0x54   : > { %v847_v10 = vor.u32 %v914_v3, %v844_v4  ;;  %v804_v12 = vld [vmem:[%s1146_s27 + $0x70] sm:$0xf0]  ;;  %v810_v13 = vld [vmem:[%s1146_s27 + $0x58] sm:$0xf]  ;;  %v906_v15 = vld [vmem:[%s1146_s27 + $0x5c] sm:$0xf]  ;;  %v803_v17 = vor.u32 %v909_v8, %v802_v7 }
  0x55   : > { %v910_v14 = vld [vmem:[%s1146_s27 + $0x74] sm:$0xf0]  ;;  %v812_v16 = vld [vmem:[%s1146_s27 + $0x78] sm:$0xf0]  ;;  %v807_v18 = vor.u32 %v905_v11, %v804_v12  ;;  %v770_v19 = vld [vmem:[%s1146_s27 + $0x10] sm:$0xf] }
  0x56   : > { %490 = vmatpush.bf16.msra.mxu0 %v755_v36  ;;  %504 = vmatpush.bf16.msra.mxu1 %v759_v39  ;;  %v901_v20 = vld [vmem:[%s1146_s27 + $0x2c] sm:$0xf0]  ;;  %v811_v21 = vor.u32 %v910_v14, %v810_v13  ;;  %v815_v22 = vor.u32 %v906_v15, %v812_v16  ;;  %v897_v23 = vld [vmem:[%s1146_s27 + $0x14] sm:$0xf]  ;;  %v778_v25 = vld [vmem:[%s1146_s27 + $0x18] sm:$0xf] }
  0x57   : > { %518 = vmatpush.bf16.msra.mxu2 %v763_v42  ;;  %532 = vmatpush.bf16.msra.mxu3 %v767_v43  ;;  %v772_v24 = vld [vmem:[%s1146_s27 + $0x30] sm:$0xf0]  ;;  %v902_v26 = vld [vmem:[%s1146_s27 + $0x34] sm:$0xf0]  ;;  %v898_v27 = vld [vmem:[%s1146_s27 + $0x1c] sm:$0xf]  ;;  %v771_v29 = vor.u32 %v901_v20, %v770_v19 }
  0x58   : > { %v780_v28 = vld [vmem:[%s1146_s27 + $0x38] sm:$0xf0]  ;;  %v775_v30 = vor.u32 %v897_v23, %v772_v24  ;;  %v779_v31 = vor.u32 %v902_v26, %v778_v25 }
  0x59   : > { %880 = vmatmul.msk.bf16.vlgmr.msra.gmra.mxu0 %vm454_vm1, %v1192_v45  ;;  %881 = vmatmul.msk.bf16.vlgmr.msra.gmra.mxu1 %vm454_vm1, %v1192_v45  ;;  %v783_v32 = vor.u32 %v898_v27, %v780_v28 }
  0x5a   : > { %542 = vmatpush.bf16.msrb.mxu0 %v472_v49  ;;  %556 = vmatpush.bf16.msrb.mxu1 %v475_v50 }
  0x5b   : > { %570 = vmatpush.bf16.msrb.mxu2 %v478_v53  ;;  %584 = vmatpush.bf16.msrb.mxu3 %v481_v54 }
  0x5c   : > { %882 = vmatmul.msk.bf16.vlgmr.msra.gmra.mxu2 %vm454_vm1, %v1192_v45  ;;  %883 = vmatmul.msk.bf16.vlgmr.msra.gmra.mxu3 %vm454_vm1, %v1192_v45 }
  0x5e   : > { %543 = vmatpush.bf16.msrb.mxu0 %v867_v57  ;;  %557 = vmatpush.bf16.msrb.mxu1 %v871_v58 }
  0x5f   : > { %571 = vmatpush.bf16.msrb.mxu2 %v875_v61  ;;  %585 = vmatpush.bf16.msrb.mxu3 %v879_v62 }
  0x62   : > { %544 = vmatpush.bf16.msrb.mxu0 %v835_v5  ;;  %558 = vmatpush.bf16.msrb.mxu1 %v839_v6 }
  0x63   : > { %572 = vmatpush.bf16.msrb.mxu2 %v843_v9  ;;  %586 = vmatpush.bf16.msrb.mxu3 %v847_v10 }
  0x66   : > { %545 = vmatpush.bf16.msrb.mxu0 %v803_v17  ;;  %559 = vmatpush.bf16.msrb.mxu1 %v807_v18 }
  0x67   : > { %573 = vmatpush.bf16.msrb.mxu2 %v811_v21  ;;  %587 = vmatpush.bf16.msrb.mxu3 %v815_v22 }
  0x6a   : > { %546 = vmatpush.bf16.msrb.mxu0 %v771_v29  ;;  %560 = vmatpush.bf16.msrb.mxu1 %v775_v30 }
  0x6b   : > { %574 = vmatpush.bf16.msrb.mxu2 %v779_v31  ;;  %588 = vmatpush.bf16.msrb.mxu3 %v783_v32 }
  0x6d   : > { %884 = vmatmul.msk.bf16.vlgmr.msrb.gmra.mxu0 %vm454_vm1, %v1192_v45  ;;  %885 = vmatmul.msk.bf16.vlgmr.msrb.gmra.mxu1 %vm454_vm1, %v1192_v45 }
  0x6e   : > { %886 = vmatmul.msk.bf16.vlgmr.msrb.gmra.mxu2 %vm454_vm1, %v1192_v45  ;;  %887 = vmatmul.msk.bf16.vlgmr.msrb.gmra.mxu3 %vm454_vm1, %v1192_v45 }
  0xd6   : > { %v492_v33 = vpop.f32.mrf.mxu0  ;;  %v506_v34 = vpop.f32.mrf.mxu1 }
  0xd7   : > { %954 = vtanh.f32 %v492_v33 }
  0xd8   : > { %956 = vtanh.f32 %v506_v34 }
  0xdd   : > { %v955_v35 = vpop.eup %954 }
  0xde   : > { %v957_v38 = vpop.eup %956  ;;  %611 = vst [vmem:[%s1247_s3] sm:$0xff] %v955_v35  ;;  %v494_v39 = vpop.f32.mrf.mxu0 }
  0xdf   : > { %v520_v36 = vpop.f32.mrf.mxu2  ;;  %v534_v37 = vpop.f32.mrf.mxu3  ;;  %612 = vst [vmem:[%s1247_s3 + $0x8] sm:$0xff] %v957_v38 }
  0xe0   : > { %958 = vtanh.f32 %v520_v36  ;;  %v508_v40 = vpop.f32.mrf.mxu1 }
  0xe1   : > { %960 = vtanh.f32 %v534_v37 }
  0xe2   : > { %962 = vtanh.f32 %v494_v39 }
  0xe3   : > { %964 = vtanh.f32 %v508_v40 }
  0xe5   : > { %v649_v1 = vld [vmem:[%s1247_s3] sm:$0xff] (%p1055_p5) }
  0xe6   : > { %v959_v41 = vpop.eup %958  ;;  %v651_v2 = vld [vmem:[%s1247_s3 + $0x8] sm:$0xff] (%p1055_p5)  ;;  %650 = vst [vmem:[%s636_s7] sm:$0xff] (%p1055_p5), %v649_v1 }
  0xe7   : > { %v961_v42 = vpop.eup %960  ;;  %613 = vst [vmem:[%s1247_s3 + $0x10] sm:$0xff] %v959_v41  ;;  %v522_v43 = vpop.f32.mrf.mxu2 }
  0xe8   : > { %v536_v44 = vpop.f32.mrf.mxu3  ;;  %v963_v45 = vpop.eup %962  ;;  %614 = vst [vmem:[%s1247_s3 + $0x18] sm:$0xff] %v961_v42  ;;  %966 = vtanh.f32 %v522_v43 }
  0xe9   : > { %v965_v46 = vpop.eup %964  ;;  %619 = vst [vmem:[%s1247_s3 + $0x40] sm:$0xff] %v963_v45  ;;  %968 = vtanh.f32 %v536_v44 }
  0xea   : > { %v548_v47 = vpop.f32.mrf.mxu0  ;;  %v562_v48 = vpop.f32.mrf.mxu1  ;;  %620 = vst [vmem:[%s1247_s3 + $0x48] sm:$0xff] %v965_v46 }
  0xeb   : > { %970 = vtanh.f32 %v548_v47  ;;  %652 = vst [vmem:[%s636_s7 + $0x8] sm:$0xff] (%p1055_p5), %v651_v2 }
  0xec   : > { %972 = vtanh.f32 %v562_v48 }
  0xee   : > { %v967_v49 = vpop.eup %966  ;;  %v653_v3 = vld [vmem:[%s1247_s3 + $0x10] sm:$0xff] (%p1055_p5) }
  0xef   : > { %v969_v50 = vpop.eup %968  ;;  %621 = vst [vmem:[%s1247_s3 + $0x50] sm:$0xff] %v967_v49  ;;  %v655_v4 = vld [vmem:[%s1247_s3 + $0x18] sm:$0xff] (%p1055_p5) }
  0xf0   : > { %622 = vst [vmem:[%s1247_s3 + $0x58] sm:$0xff] %v969_v50  ;;  %v665_v9 = vld [vmem:[%s1247_s3 + $0x40] sm:$0xff] (%p1055_p5) }
  0xf1   : > { %v971_v51 = vpop.eup %970  ;;  %v576_v52 = vpop.f32.mrf.mxu2  ;;  %654 = vst [vmem:[%s636_s7 + $0x10] sm:$0xff] (%p1055_p5), %v653_v3  ;;  %v667_v10 = vld [vmem:[%s1247_s3 + $0x48] sm:$0xff] (%p1055_p5) }
  0xf2   : > { %v590_v53 = vpop.f32.mrf.mxu3  ;;  %v973_v54 = vpop.eup %972  ;;  %615 = vst [vmem:[%s1247_s3 + $0x20] sm:$0xff] %v971_v51  ;;  %974 = vtanh.f32 %v576_v52 }
  0xf3   : > { %v550_v55 = vpop.f32.mrf.mxu0  ;;  %v564_v56 = vpop.f32.mrf.mxu1  ;;  %616 = vst [vmem:[%s1247_s3 + $0x28] sm:$0xff] %v973_v54  ;;  %976 = vtanh.f32 %v590_v53 }
  0xf4   : > { %978 = vtanh.f32 %v550_v55  ;;  %656 = vst [vmem:[%s636_s7 + $0x18] sm:$0xff] (%p1055_p5), %v655_v4 }
  0xf5   : > { %980 = vtanh.f32 %v564_v56  ;;  %666 = vst [vmem:[%s636_s7 + $0x80] sm:$0xff] (%p1055_p5), %v665_v9 }
  0xf6   : > { %v669_v11 = vld [vmem:[%s1247_s3 + $0x50] sm:$0xff] (%p1055_p5)  ;;  %668 = vst [vmem:[%s636_s7 + $0x88] sm:$0xff] (%p1055_p5), %v667_v10 }
  0xf7   : > { %v671_v12 = vld [vmem:[%s1247_s3 + $0x58] sm:$0xff] (%p1055_p5)  ;;  %670 = vst [vmem:[%s636_s7 + $0x90] sm:$0xff] (%p1055_p5), %v669_v11 }
  0xf8   : > { %v975_v57 = vpop.eup %974  ;;  %672 = vst [vmem:[%s636_s7 + $0x98] sm:$0xff] (%p1055_p5), %v671_v12 }
  0xf9   : > { %v977_v58 = vpop.eup %976  ;;  %617 = vst [vmem:[%s1247_s3 + $0x30] sm:$0xff] %v975_v57  ;;  %v578_v59 = vpop.f32.mrf.mxu2  ;;  %v657_v5 = vld [vmem:[%s1247_s3 + $0x20] sm:$0xff] (%p1055_p5) }
  0xfa   : > { %v592_v60 = vpop.f32.mrf.mxu3  ;;  %v979_v61 = vpop.eup %978  ;;  %618 = vst [vmem:[%s1247_s3 + $0x38] sm:$0xff] %v977_v58  ;;  %982 = vtanh.f32 %v578_v59  ;;  %v659_v6 = vld [vmem:[%s1247_s3 + $0x28] sm:$0xff] (%p1055_p5) }
  0xfb   : > { %v981_v62 = vpop.eup %980  ;;  %623 = vst [vmem:[%s1247_s3 + $0x60] sm:$0xff] %v979_v61  ;;  %984 = vtanh.f32 %v592_v60 }
  0xfc   : > { %624 = vst [vmem:[%s1247_s3 + $0x68] sm:$0xff] %v981_v62 }
  0xfd   : > { %658 = vst [vmem:[%s636_s7 + $0x20] sm:$0xff] (%p1055_p5), %v657_v5 }
  0xfe   : > { %633 = sbr.rel (!%p1055_p5) target bundleno = 267 (0x10b), region = 55  ;;  %660 = vst [vmem:[%s636_s7 + $0x28] sm:$0xff] (%p1055_p5), %v659_v6 }
 0x100   : > { %v983_v63 = vpop.eup %982  ;;  %v661_v7 = vld [vmem:[%s1247_s3 + $0x30] sm:$0xff] (%p1055_p5) }
 0x101   : > { %v985_v0 = vpop.eup %984  ;;  %625 = vst [vmem:[%s1247_s3 + $0x70] sm:$0xff] %v983_v63  ;;  %v663_v8 = vld [vmem:[%s1247_s3 + $0x38] sm:$0xff] (%p1055_p5) }
 0x102   : > { %626 = vst [vmem:[%s1247_s3 + $0x78] sm:$0xff] %v985_v0  ;;  %v673_v13 = vld [vmem:[%s1247_s3 + $0x60] sm:$0xff] (%p1055_p5) }
 0x103   : > { %662 = vst [vmem:[%s636_s7 + $0x30] sm:$0xff] %v661_v7  ;;  %v675_v14 = vld [vmem:[%s1247_s3 + $0x68] sm:$0xff] }
 0x104   : > { %664 = vst [vmem:[%s636_s7 + $0x38] sm:$0xff] %v663_v8 }
 0x105   : > { %674 = vst [vmem:[%s636_s7 + $0xa0] sm:$0xff] %v673_v13 }
 0x106   : > { %676 = vst [vmem:[%s636_s7 + $0xa8] sm:$0xff] %v675_v14 }
 0x108   : > { %v677_v15 = vld [vmem:[%s1247_s3 + $0x70] sm:$0xff] }
 0x109   : > { %v679_v16 = vld [vmem:[%s1247_s3 + $0x78] sm:$0xff]  ;;  %678 = vst [vmem:[%s636_s7 + $0xb0] sm:$0xff] %v677_v15 }
 0x10a   : > { %680 = vst [vmem:[%s636_s7 + $0xb8] sm:$0xff] %v679_v16 }
 0x10b PF: > { %p9_p10 = scmp.ge.s32.totalorder %s1042_s13, 4   ;;  %s1302_s9 = smov %s1004_s10 }
 0x10c   : > { %s1303_s10 = smov %s1053_s16  ;;  %s1304_s11 = smov %s1042_s13 }
 0x10d   :  { %11 = sbr.rel (!%p9_p10) target bundleno = 2 (0x2), region = 109 }

</bundles_post_ra>
